<compile_context>
chip_gen: v5e
topology: v5e:2x2
jax: 0.10.0
libtpu: 0.0.40
codegen_flags: <defaults>
</compile_context>

<pallas_src>
import math
import functools

import jax
import jax.numpy as jnp
from jax import lax
from jax.experimental import pallas as pl
from jax.experimental.pallas import tpu as pltpu

LOG_2PI = math.log(2.0 * math.pi)
_MIB = 1024 * 1024


def _round_up(n, m):
    return ((n + m - 1) // m) * m


def _tpu_generation():
    """Best-effort TPU generation tag ('v5'/'v6'/'v7') from the default backend."""
    try:
        kind = jax.devices()[0].device_kind.lower()
    except Exception:
        return None
    for tag in ("v7", "v6", "v5"):
        if tag in kind:
            return tag
    return None


def composite_prior_kernel(
    x_ref, z_ref,
    w1_ref, w2_ref, w3_ref, w4_ref, w5_ref, whead_ref,
    vecs_h_ref, vecs_z_ref, bhead_ref,
    out_ref,
    acc_xw_ref, acc_sq_ref,
    *, eps, log_w0, log_w1, log_w2, d_z, tile_k, w1_resident, bf16_sigmoid,
):
    k = pl.program_id(1)

    @pl.when(k == 0)
    def _init():
        acc_xw_ref[...] = jnp.zeros_like(acc_xw_ref)
        acc_sq_ref[...] = jnp.zeros_like(acc_sq_ref)

    # ---- K-tiled first layer + L2 row-norm accumulation ----------------------
    x = x_ref[...]                                        # (tile_b, tile_k) bf16
    if w1_resident:
        # w1 is a single resident block; take this K step's (tile_k, H) slice.
        off = pl.multiple_of(k * tile_k, tile_k)
        w1 = w1_ref[pl.ds(off, tile_k), :]
    else:
        w1 = w1_ref[...]
    acc_xw_ref[...] += jnp.dot(x, w1, preferred_element_type=jnp.float32)
    xf = x.astype(jnp.float32)
    acc_sq_ref[...] += jnp.sum(xf * xf, axis=-1, keepdims=True)

    @pl.when(k == pl.num_programs(1) - 1)
    def _finish():
        vh = vecs_h_ref[...]                              # (15, H)   f32
        vz = vecs_z_ref[...]                              # (3, D_z)  f32
        b = [vh[i:i + 1, :] for i in range(5)]            # fc biases
        g = [vh[5 + i:6 + i, :] for i in range(5)]        # LN gammas
        be = [vh[10 + i:11 + i, :] for i in range(5)]     # LN betas
        mu_prior, logvar_prior, logvar_unif = vz[0:1, :], vz[1:2, :], vz[2:3, :]
        b_head = bhead_ref[...]                           # (1, 2*D_z) = bmu|blv

        def swish(v):
            if bf16_sigmoid:   # v6e/v7x EUP bf16 path; never enable on v5e
                return v * jax.nn.sigmoid(v.astype(jnp.bfloat16)).astype(jnp.float32)
            return v * jax.nn.sigmoid(v)

        def layernorm(v, gamma, beta):
            # One-pass LN: var = E[v^2] - mean^2 (one fewer pass; eps=0.1 keeps
            # the subtraction well posed).
            m = jnp.mean(v, axis=-1, keepdims=True)
            m2 = jnp.mean(v * v, axis=-1, keepdims=True)
            return (v - m) * lax.rsqrt(m2 - m * m + eps) * gamma + beta

        def fc(h, w_ref, bias):
            return jnp.dot(h.astype(jnp.bfloat16), w_ref[...],
                           preferred_element_type=jnp.float32) + bias

        # (x/||x||) @ W1 == (x @ W1) * rsqrt(sum(x^2)); the eps clamp guards
        # all-zero rows (torch would produce 0/0 NaN there).
        inv_norm = lax.rsqrt(jnp.maximum(acc_sq_ref[...], 1e-24))
        h1 = layernorm(swish(acc_xw_ref[...] * inv_norm + b[0]), g[0], be[0])
        # Reuse acc_xw_ref as the running residual sum h1+...+h_{i-1} so fewer
        # (tile_b, H) f32 tiles stay live in vregs (v5e spill relief).
        acc_xw_ref[...] = h1
        h2 = layernorm(swish(fc(h1, w2_ref, b[1]) + acc_xw_ref[...]), g[1], be[1])
        acc_xw_ref[...] += h2
        h3 = layernorm(swish(fc(h2, w3_ref, b[2]) + acc_xw_ref[...]), g[2], be[2])
        acc_xw_ref[...] += h3
        h4 = layernorm(swish(fc(h3, w4_ref, b[3]) + acc_xw_ref[...]), g[3], be[3])
        acc_xw_ref[...] += h4
        h5 = layernorm(swish(fc(h4, w5_ref, b[4]) + acc_xw_ref[...]), g[4], be[4])

        # Fused mu|logvar head: one MXU pass over (H, 2*D_z), sliced at the D_z
        # lane boundary (free when D_z is a multiple of 128).
        head = fc(h5, whead_ref, b_head)
        post_mu = head[:, :d_z]
        post_logvar = head[:, d_z:]

        # ---- composite prior: logsumexp of three weighted gaussians -----------
        z = z_ref[...]
        zc = z - mu_prior
        zc2 = zc * zc                                     # shared by d0 and d2
        c0 = -0.5 * (logvar_prior + LOG_2PI) + log_w0     # (1, D_z) rows
        c2 = -0.5 * (logvar_unif + LOG_2PI) + log_w2
        inv_v0 = jnp.exp(-logvar_prior)                   # (1, D_z) exps only
        inv_v2 = jnp.exp(-logvar_unif)
        d0 = c0 - 0.5 * zc2 * inv_v0
        d2 = c2 - 0.5 * zc2 * inv_v2
        zd = z - post_mu
        d1 = -0.5 * (post_logvar + LOG_2PI + zd * zd * jnp.exp(-post_logvar)) + log_w1

        m = jnp.maximum(jnp.maximum(d0, d1), d2)
        out_ref[...] = m + jnp.log(
            jnp.exp(d0 - m) + jnp.exp(d1 - m) + jnp.exp(d2 - m))


def composite_prior_forward(x, z, params, *, eps=0.1,
                            mixture_weights=(3 / 20, 3 / 4, 1 / 10),
                            tile_b=512, tile_k=None,
                            w1_mode="auto",            # "auto" | "resident" | "stream"
                            bf16_sigmoid=False,        # v6e/v7x-only knob; keep False on v5e
                            vmem_limit_bytes=None):
    """Fused Encoder(x, dropout=0) + CompositePrior log-density."""
    B, D_in = x.shape
    Bz, D_z = z.shape
    assert B == Bz
    H = params["w1"].shape[1]
    gen = _tpu_generation()

    # ---- generation-aware VMEM cap -------------------------------------------
    if vmem_limit_bytes is None:
        # v5e/v6e have 128 MiB physical VMEM; v7x only 64 MiB -> leave headroom.
        vmem_limit_bytes = 100 * _MIB if gen in ("v5", "v6") else 48 * _MIB

    # ---- batch tiling ----------------------------------------------------------
    req_b = min(tile_b, B)
    cands = [d for d in range(8, req_b + 1, 8) if B % d == 0]
    if cands:
        tile_b = max(cands)
        if gen == "v7" and B // tile_b == 1:
            # Keep >= 2 batch tiles so both v7x TensorCores get work.
            split = [d for d in cands if B // d >= 2]
            if split:
                tile_b = max(split)
    else:
        tile_b = B                       # full batch as one block (allowed)
    num_b = B // tile_b

    # ---- input-dim (reduction) tiling; zero-pad D_in to a tile_k multiple ------
    if tile_k is None:
        tile_k = min(2048, _round_up(D_in, 128))
    tile_k = _round_up(int(tile_k), 128)
    D_in_pad = _round_up(D_in, tile_k)
    num_k = D_in_pad // tile_k

    # ---- w1 residency decision (keep w1 in VMEM for the whole call if it fits) -
    bytes_const = (4 * H * H + H * 2 * D_z) * 2 + (15 * H + 3 * D_z + 2 * D_z) * 4
    bytes_stream = (2 * tile_b * tile_k * 2      # x bf16, double buffered
                    + 2 * tile_b * D_z * 4       # z
                    + 2 * tile_b * D_z * 4       # out
                    + tile_b * H * 4 + tile_b * 4)  # scratch
    w1_bytes = D_in_pad * H * 2
    if w1_mode == "resident":
        w1_resident = True
    elif w1_mode == "stream":
        w1_resident = False
    else:
        w1_resident = (bytes_const + bytes_stream + w1_bytes) <= 0.65 * vmem_limit_bytes

    # ---- parameter / input packing --------------------------------------------
    xp = x.astype(jnp.float32)
    w1p = params["w1"].astype(jnp.float32)
    if D_in_pad != D_in:
        xp = jnp.pad(xp, ((0, 0), (0, D_in_pad - D_in)))
        w1p = jnp.pad(w1p, ((0, D_in_pad - D_in), (0, 0)))
    xp = xp.astype(jnp.bfloat16)                 # halve the dominant HBM stream
    w1_bf = w1p.astype(jnp.bfloat16)
    w2_bf = params["w2"].astype(jnp.bfloat16)
    w3_bf = params["w3"].astype(jnp.bfloat16)
    w4_bf = params["w4"].astype(jnp.bfloat16)
    w5_bf = params["w5"].astype(jnp.bfloat16)
    whead_bf = jnp.concatenate([params["wmu"], params["wlv"]], axis=1).astype(jnp.bfloat16)

    vecs_h = jnp.concatenate(
        [params[k] for k in ("b1", "b2", "b3", "b4", "b5",
                             "g1", "g2", "g3", "g4", "g5",
                             "be1", "be2", "be3", "be4", "be5")],
        axis=0).astype(jnp.float32)                                  # (15, H)
    vecs_z = jnp.concatenate(
        [params[k] for k in ("mu_prior", "logvar_prior", "logvar_unif")],
        axis=0).astype(jnp.float32)                                  # (3, D_z)
    bhead = jnp.concatenate([params["bmu"], params["blv"]], axis=1).astype(jnp.float32)

    args = (xp, z.astype(jnp.float32), w1_bf, w2_bf, w3_bf, w4_bf, w5_bf,
            whead_bf, vecs_h, vecs_z, bhead)

    log_ws = tuple(float(math.log(w)) for w in mixture_weights)
    kernel = functools.partial(
        composite_prior_kernel, eps=float(eps),
        log_w0=log_ws[0], log_w1=log_ws[1], log_w2=log_ws[2],
        d_z=int(D_z), tile_k=int(tile_k), w1_resident=bool(w1_resident),
        bf16_sigmoid=bool(bf16_sigmoid))

    def build(use_buffered_constants):
        def const_spec(shape):
            if use_buffered_constants and hasattr(pl, "Buffered"):
                # Constant block index -> single-buffered, DMA'd once.
                return pl.BlockSpec(shape, lambda i, k: (0, 0),
                                    pipeline_mode=pl.Buffered(1))
            return pl.BlockSpec(shape, lambda i, k: (0, 0))

        if w1_resident:
            w1_spec = const_spec((D_in_pad, H))                      # resident
        else:
            w1_spec = pl.BlockSpec((tile_k, H), lambda i, k: (k, 0))  # streamed

        in_specs = [
            pl.BlockSpec((tile_b, tile_k), lambda i, k: (i, k)),      # x (bf16)
            pl.BlockSpec((tile_b, D_z), lambda i, k: (i, 0)),         # z
            w1_spec,
            const_spec((H, H)), const_spec((H, H)),
            const_spec((H, H)), const_spec((H, H)),                   # w2..w5
            const_spec((H, 2 * D_z)),                                 # wmu|wlv fused
            const_spec(vecs_h.shape), const_spec(vecs_z.shape),
            const_spec(bhead.shape),
        ]
        return pl.pallas_call(
            kernel,
            out_shape=jax.ShapeDtypeStruct((B, D_z), jnp.float32),
            grid_spec=pltpu.PrefetchScalarGridSpec(
                num_scalar_prefetch=0,
                grid=(num_b, num_k),
                in_specs=in_specs,
                out_specs=pl.BlockSpec((tile_b, D_z), lambda i, k: (i, 0)),
                scratch_shapes=[pltpu.VMEM((tile_b, H), jnp.float32),
                                pltpu.VMEM((tile_b, 1), jnp.float32)]),
            compiler_params=pltpu.CompilerParams(
                dimension_semantics=("parallel", "arbitrary"),
                vmem_limit_bytes=int(vmem_limit_bytes)),
        )

    # Narrow fallback: only for jaxlibs that reject pl.Buffered(1) single
    # buffering of the constant blocks.  Genuine unrelated failures re-raise
    # (identically) from the fallback build or are re-raised immediately.
    try:
        return build(use_buffered_constants=True)(*args)
    except (TypeError, ValueError, NotImplementedError, pltpu.LoweringException):
        pass
    except Exception as e:  # unexpected wrapper types from the lowering stack
        msg = str(e).lower()
        if "buffer" not in msg and "pipeline" not in msg:
            raise
    return build(use_buffered_constants=False)(*args)


def init_params(key, dim_input, dim_hidden, dim_bottleneck):
    """Deterministic synthetic parameters matching the module's shapes.

    Linear weights are (in, out); LayerNorm gamma=1, beta=0; priors per
    CompositePrior.__init__ (mu=0, logvar=0, logvar_uniform=10)."""
    keys = jax.random.split(key, 7)

    def lin(k, d_in, d_out):
        w = 0.05 * jax.random.normal(k, (d_in, d_out), dtype=jnp.float32)
        b = jnp.zeros((1, d_out), dtype=jnp.float32)
        return w, b

    p = {}
    p["w1"], p["b1"] = lin(keys[0], dim_input, dim_hidden)
    p["w2"], p["b2"] = lin(keys[1], dim_hidden, dim_hidden)
    p["w3"], p["b3"] = lin(keys[2], dim_hidden, dim_hidden)
    p["w4"], p["b4"] = lin(keys[3], dim_hidden, dim_hidden)
    p["w5"], p["b5"] = lin(keys[4], dim_hidden, dim_hidden)
    for i in range(1, 6):
        p[f"g{i}"] = jnp.ones((1, dim_hidden), dtype=jnp.float32)
        p[f"be{i}"] = jnp.zeros((1, dim_hidden), dtype=jnp.float32)
    p["wmu"], p["bmu"] = lin(keys[5], dim_hidden, dim_bottleneck)
    p["wlv"], p["blv"] = lin(keys[6], dim_hidden, dim_bottleneck)
    p["mu_prior"] = jnp.zeros((1, dim_bottleneck), dtype=jnp.float32)
    p["logvar_prior"] = jnp.zeros((1, dim_bottleneck), dtype=jnp.float32)
    p["logvar_unif"] = jnp.full((1, dim_bottleneck), 10.0, dtype=jnp.float32)
    return p


def reference_forward(x, z, params, *, eps=0.1,
                      mixture_weights=(3 / 20, 3 / 4, 1 / 10), bf16_sigmoid=False):
    """Pure-JAX reference mirroring the kernel's numerics (bf16 matmul operands
    and bf16 x, one-pass LayerNorm, f32 everywhere else).  NOTE: not bit-parity
    with a PyTorch f32 forward; eps defaults to 0.1 as in the recpack Encoder."""
    def fc(h, w, b):
        return jnp.dot(h.astype(jnp.bfloat16), w.astype(jnp.bfloat16),
                       preferred_element_type=jnp.float32) + b

    def ln(v, gamma, beta):
        m = jnp.mean(v, axis=-1, keepdims=True)
        m2 = jnp.mean(v * v, axis=-1, keepdims=True)
        return (v - m) * lax.rsqrt(m2 - m * m + eps) * gamma + beta

    def swish(v):
        if bf16_sigmoid:
            return v * jax.nn.sigmoid(v.astype(jnp.bfloat16)).astype(jnp.float32)
        return v * jax.nn.sigmoid(v)

    xb = x.astype(jnp.bfloat16)
    xf = xb.astype(jnp.float32)
    inv_norm = lax.rsqrt(jnp.maximum(jnp.sum(xf * xf, axis=-1, keepdims=True), 1e-24))
    xw = jnp.dot(xb, params["w1"].astype(jnp.bfloat16), preferred_element_type=jnp.float32)
    h1 = ln(swish(xw * inv_norm + params["b1"]), params["g1"], params["be1"]); s = h1
    h2 = ln(swish(fc(h1, params["w2"], params["b2"]) + s), params["g2"], params["be2"]); s = s + h2
    h3 = ln(swish(fc(h2, params["w3"], params["b3"]) + s), params["g3"], params["be3"]); s = s + h3
    h4 = ln(swish(fc(h3, params["w4"], params["b4"]) + s), params["g4"], params["be4"]); s = s + h4
    h5 = ln(swish(fc(h4, params["w5"], params["b5"]) + s), params["g5"], params["be5"])
    post_mu = fc(h5, params["wmu"], params["bmu"])
    post_logvar = fc(h5, params["wlv"], params["blv"])

    def lpdf(zz, mu, lv):
        return -0.5 * (lv + LOG_2PI + (zz - mu) ** 2 * jnp.exp(-lv))

    d0 = lpdf(z, params["mu_prior"], params["logvar_prior"]) + math.log(mixture_weights[0])
    d1 = lpdf(z, post_mu, post_logvar) + math.log(mixture_weights[1])
    d2 = lpdf(z, params["mu_prior"], params["logvar_unif"]) + math.log(mixture_weights[2])
    m = jnp.maximum(jnp.maximum(d0, d1), d2)
    return m + jnp.log(jnp.exp(d0 - m) + jnp.exp(d1 - m) + jnp.exp(d2 - m))


if __name__ == "__main__":
    root = jax.random.PRNGKey(0)
    k1, k2 = jax.random.split(root)

    # Config 1: lane-dense shapes, multiple batch tiles and multiple K tiles.
    # w1 easily fits VMEM -> exercises the resident-w1 path with in-kernel
    # K slicing.  x kept positive so the L2 row norm is well defined.
    B, D_IN, H, D_Z = 256, 384, 128, 128
    kx, kz, kp = jax.random.split(k1, 3)
    x = jnp.abs(jax.random.normal(kx, (B, D_IN), dtype=jnp.float32)) + 0.1
    z = jax.random.normal(kz, (B, D_Z), dtype=jnp.float32)
    params = init_params(kp, D_IN, H, D_Z)

    out = composite_prior_forward(x, z, params, tile_b=128, tile_k=128)
    jax.block_until_ready(out)
    assert out.shape == (B, D_Z) and out.dtype == jnp.float32
    assert bool(jnp.all(jnp.isfinite(out)))
    ref = reference_forward(x, z, params)
    err1 = float(jnp.max(jnp.abs(out - ref)))
    assert bool(jnp.allclose(out, ref, rtol=2e-2, atol=2e-2)), err1

    # Config 2: D_in not a multiple of tile_k (exercises zero-padding) and the
    # streamed-w1 pipeline path.
    B2, D_IN2 = 128, 320
    kx2, kz2, kp2 = jax.random.split(k2, 3)
    x2 = jnp.abs(jax.random.normal(kx2, (B2, D_IN2), dtype=jnp.float32)) + 0.1
    z2 = jax.random.normal(kz2, (B2, D_Z), dtype=jnp.float32)
    params2 = init_params(kp2, D_IN2, H, D_Z)
    out2 = composite_prior_forward(x2, z2, params2, tile_b=128, tile_k=128,
                                   w1_mode="stream")
    jax.block_until_ready(out2)
    assert bool(jnp.all(jnp.isfinite(out2)))
    ref2 = reference_forward(x2, z2, params2)
    err2 = float(jnp.max(jnp.abs(out2 - ref2)))
    assert bool(jnp.allclose(out2, ref2, rtol=2e-2, atol=2e-2)), err2

    print("KERNEL_OK")
</pallas_src>

<mosaic_0001>
module attributes {stable_mosaic.version = 11 : i64} {
  func.func @composite_prior_kernel(%arg0: i32, %arg1: i32, %arg2: memref<128x128xbf16, #tpu.memory_space<vmem>>, %arg3: memref<128x128xf32, #tpu.memory_space<vmem>>, %arg4: memref<384x128xbf16, #tpu.memory_space<vmem>>, %arg5: memref<128x128xbf16, #tpu.memory_space<vmem>>, %arg6: memref<128x128xbf16, #tpu.memory_space<vmem>>, %arg7: memref<128x128xbf16, #tpu.memory_space<vmem>>, %arg8: memref<128x128xbf16, #tpu.memory_space<vmem>>, %arg9: memref<128x256xbf16, #tpu.memory_space<vmem>>, %arg10: memref<15x128xf32, #tpu.memory_space<vmem>>, %arg11: memref<3x128xf32, #tpu.memory_space<vmem>>, %arg12: memref<1x256xf32, #tpu.memory_space<vmem>>, %arg13: memref<128x128xf32, #tpu.memory_space<vmem>>, %arg14: memref<128x128xf32, #tpu.memory_space<vmem>>, %arg15: memref<128x1xf32, #tpu.memory_space<vmem>>) attributes {dimension_semantics = [#tpu.dimension_semantics<parallel>, #tpu.dimension_semantics<arbitrary>], iteration_bounds = array<i64: 2, 3>, scalar_prefetch = 0 : i64, scratch_operands = 2 : i64, tpu.core_type = #tpu.core_type<tc>, window_params = [{transform_indices = @transform_0, window_bounds = array<i64: 128, 128>}, {transform_indices = @transform_1, window_bounds = array<i64: 128, 128>}, {pipeline_mode = #tpu.pipeline_mode<synchronous>, transform_indices = @transform_2, window_bounds = array<i64: 384, 128>}, {pipeline_mode = #tpu.pipeline_mode<synchronous>, transform_indices = @transform_3, window_bounds = array<i64: 128, 128>}, {pipeline_mode = #tpu.pipeline_mode<synchronous>, transform_indices = @transform_4, window_bounds = array<i64: 128, 128>}, {pipeline_mode = #tpu.pipeline_mode<synchronous>, transform_indices = @transform_5, window_bounds = array<i64: 128, 128>}, {pipeline_mode = #tpu.pipeline_mode<synchronous>, transform_indices = @transform_6, window_bounds = array<i64: 128, 128>}, {pipeline_mode = #tpu.pipeline_mode<synchronous>, transform_indices = @transform_7, window_bounds = array<i64: 128, 256>}, {pipeline_mode = #tpu.pipeline_mode<synchronous>, transform_indices = @transform_8, window_bounds = array<i64: 15, 128>}, {pipeline_mode = #tpu.pipeline_mode<synchronous>, transform_indices = @transform_9, window_bounds = array<i64: 3, 128>}, {pipeline_mode = #tpu.pipeline_mode<synchronous>, transform_indices = @transform_10, window_bounds = array<i64: 1, 256>}, {transform_indices = @transform_11, window_bounds = array<i64: 128, 128>}]} {
    %c0_i32 = arith.constant 0 : i32
    %0 = arith.cmpi eq, %arg1, %c0_i32 : i32
    %1 = arith.extui %0 : i1 to i32
    %c0_i32_0 = arith.constant 0 : i32
    %2 = arith.cmpi ne, %1, %c0_i32_0 : i32
    scf.if %2 {
      %cst_13 = arith.constant 0.000000e+00 : f32
      %22 = vector.broadcast %cst_13 : f32 to vector<128x128xf32>
      %c0_14 = arith.constant 0 : index
      %c0_15 = arith.constant 0 : index
      %23 = vector.load %arg14[%c0_14, %c0_15] : memref<128x128xf32, #tpu.memory_space<vmem>>, vector<128x128xf32>
      tpu.vector_store %arg14[%c0_14, %c0_15], %22 {strides = array<i32>} : memref<128x128xf32, #tpu.memory_space<vmem>>, vector<128x128xf32>,
      %cst_16 = arith.constant 0.000000e+00 : f32
      %24 = vector.broadcast %cst_16 : f32 to vector<128x1xf32>
      %c0_17 = arith.constant 0 : index
      %c0_18 = arith.constant 0 : index
      %25 = vector.load %arg15[%c0_17, %c0_18] : memref<128x1xf32, #tpu.memory_space<vmem>>, vector<128x1xf32>
      tpu.vector_store %arg15[%c0_17, %c0_18], %24 {strides = array<i32>} : memref<128x1xf32, #tpu.memory_space<vmem>>, vector<128x1xf32>,
    } else {
    }
    %c0 = arith.constant 0 : index
    %c0_1 = arith.constant 0 : index
    %3 = vector.load %arg2[%c0, %c0_1] : memref<128x128xbf16, #tpu.memory_space<vmem>>, vector<128x128xbf16>
    %c128_i32 = arith.constant 128 : i32
    %4 = arith.muli %arg1, %c128_i32 : i32
    %5 = tpu.assume_multiple %4, 128 : i32
    %6 = arith.index_cast %5 : i32 to index
    %c0_2 = arith.constant 0 : index
    %7 = vector.load %arg4[%6, %c0_2] : memref<384x128xbf16, #tpu.memory_space<vmem>>, vector<128x128xbf16>
    %c0_3 = arith.constant 0 : index
    %c0_4 = arith.constant 0 : index
    %8 = vector.load %arg14[%c0_3, %c0_4] : memref<128x128xf32, #tpu.memory_space<vmem>>, vector<128x128xf32>
    %cst = arith.constant dense<0.000000e+00> : vector<128x128xf32>
    %9 = tpu.matmul %3, %7, %cst {dimension_numbers = #tpu.dot_dimension_numbers<[1], [0], [0], [1], [0, 0, 1, 1], [], []>} : vector<128x128xbf16>, vector<128x128xbf16>, vector<128x128xf32> -> vector<128x128xf32>
    %10 = arith.addf %8, %9 : vector<128x128xf32>
    %c0_5 = arith.constant 0 : index
    %c0_6 = arith.constant 0 : index
    %11 = vector.load %arg14[%c0_5, %c0_6] : memref<128x128xf32, #tpu.memory_space<vmem>>, vector<128x128xf32>
    tpu.vector_store %arg14[%c0_5, %c0_6], %10 {strides = array<i32>} : memref<128x128xf32, #tpu.memory_space<vmem>>, vector<128x128xf32>,
    %12 = arith.extf %3 : vector<128x128xbf16> to vector<128x128xf32>
    %c0_7 = arith.constant 0 : index
    %c0_8 = arith.constant 0 : index
    %13 = vector.load %arg15[%c0_7, %c0_8] : memref<128x1xf32, #tpu.memory_space<vmem>>, vector<128x1xf32>
    %14 = arith.mulf %12, %12 : vector<128x128xf32>
    %cst_9 = arith.constant dense<0.000000e+00> : vector<128xf32>
    %15 = vector.multi_reduction <add>, %14, %cst_9 [1] : vector<128x128xf32> to vector<128xf32>
    %16 = vector.shape_cast %15 : vector<128xf32> to vector<128x1xf32>
    %17 = arith.addf %13, %16 : vector<128x1xf32>
    %c0_10 = arith.constant 0 : index
    %c0_11 = arith.constant 0 : index
    %18 = vector.load %arg15[%c0_10, %c0_11] : memref<128x1xf32, #tpu.memory_space<vmem>>, vector<128x1xf32>
    tpu.vector_store %arg15[%c0_10, %c0_11], %17 {strides = array<i32>} : memref<128x1xf32, #tpu.memory_space<vmem>>, vector<128x1xf32>,
    %c2_i32 = arith.constant 2 : i32
    %19 = arith.cmpi eq, %arg1, %c2_i32 : i32
    %20 = arith.extui %19 : i1 to i32
    %c0_i32_12 = arith.constant 0 : i32
    %21 = arith.cmpi ne, %20, %c0_i32_12 : i32
    scf.if %21 {
      %c0_13 = arith.constant 0 : index
      %c0_14 = arith.constant 0 : index
      %22 = vector.load %arg10[%c0_13, %c0_14] : memref<15x128xf32, #tpu.memory_space<vmem>>, vector<15x128xf32>
      %c0_15 = arith.constant 0 : index
      %c0_16 = arith.constant 0 : index
      %23 = vector.load %arg11[%c0_15, %c0_16] : memref<3x128xf32, #tpu.memory_space<vmem>>, vector<3x128xf32>
      %24 = vector.extract_strided_slice %22 {offsets = [0, 0], sizes = [1, 128], strides = [1, 1]} : vector<15x128xf32> to vector<1x128xf32>
      %25 = vector.extract_strided_slice %22 {offsets = [1, 0], sizes = [1, 128], strides = [1, 1]} : vector<15x128xf32> to vector<1x128xf32>
      %26 = vector.extract_strided_slice %22 {offsets = [2, 0], sizes = [1, 128], strides = [1, 1]} : vector<15x128xf32> to vector<1x128xf32>
      %27 = vector.extract_strided_slice %22 {offsets = [3, 0], sizes = [1, 128], strides = [1, 1]} : vector<15x128xf32> to vector<1x128xf32>
      %28 = vector.extract_strided_slice %22 {offsets = [4, 0], sizes = [1, 128], strides = [1, 1]} : vector<15x128xf32> to vector<1x128xf32>
      %29 = vector.extract_strided_slice %22 {offsets = [5, 0], sizes = [1, 128], strides = [1, 1]} : vector<15x128xf32> to vector<1x128xf32>
      %30 = vector.extract_strided_slice %22 {offsets = [6, 0], sizes = [1, 128], strides = [1, 1]} : vector<15x128xf32> to vector<1x128xf32>
      %31 = vector.extract_strided_slice %22 {offsets = [7, 0], sizes = [1, 128], strides = [1, 1]} : vector<15x128xf32> to vector<1x128xf32>
      %32 = vector.extract_strided_slice %22 {offsets = [8, 0], sizes = [1, 128], strides = [1, 1]} : vector<15x128xf32> to vector<1x128xf32>
      %33 = vector.extract_strided_slice %22 {offsets = [9, 0], sizes = [1, 128], strides = [1, 1]} : vector<15x128xf32> to vector<1x128xf32>
      %34 = vector.extract_strided_slice %22 {offsets = [10, 0], sizes = [1, 128], strides = [1, 1]} : vector<15x128xf32> to vector<1x128xf32>
      %35 = vector.extract_strided_slice %22 {offsets = [11, 0], sizes = [1, 128], strides = [1, 1]} : vector<15x128xf32> to vector<1x128xf32>
      %36 = vector.extract_strided_slice %22 {offsets = [12, 0], sizes = [1, 128], strides = [1, 1]} : vector<15x128xf32> to vector<1x128xf32>
      %37 = vector.extract_strided_slice %22 {offsets = [13, 0], sizes = [1, 128], strides = [1, 1]} : vector<15x128xf32> to vector<1x128xf32>
      %38 = vector.extract_strided_slice %22 {offsets = [14, 0], sizes = [1, 128], strides = [1, 1]} : vector<15x128xf32> to vector<1x128xf32>
      %39 = vector.extract_strided_slice %23 {offsets = [0, 0], sizes = [1, 128], strides = [1, 1]} : vector<3x128xf32> to vector<1x128xf32>
      %40 = vector.extract_strided_slice %23 {offsets = [1, 0], sizes = [1, 128], strides = [1, 1]} : vector<3x128xf32> to vector<1x128xf32>
      %41 = vector.extract_strided_slice %23 {offsets = [2, 0], sizes = [1, 128], strides = [1, 1]} : vector<3x128xf32> to vector<1x128xf32>
      %c0_17 = arith.constant 0 : index
      %c0_18 = arith.constant 0 : index
      %42 = vector.load %arg12[%c0_17, %c0_18] : memref<1x256xf32, #tpu.memory_space<vmem>>, vector<1x256xf32>
      %c0_19 = arith.constant 0 : index
      %c0_20 = arith.constant 0 : index
      %43 = vector.load %arg15[%c0_19, %c0_20] : memref<128x1xf32, #tpu.memory_space<vmem>>, vector<128x1xf32>
      %cst_21 = arith.constant 1.000000e-24 : f32
      %44 = vector.broadcast %cst_21 : f32 to vector<128x1xf32>
      %45 = arith.maximumf %43, %44 : vector<128x1xf32>
      %46 = math.rsqrt %45 : vector<128x1xf32>
      %c0_22 = arith.constant 0 : index
      %c0_23 = arith.constant 0 : index
      %47 = vector.load %arg14[%c0_22, %c0_23] : memref<128x128xf32, #tpu.memory_space<vmem>>, vector<128x128xf32>
      %48 = vector.broadcast %46 : vector<128x1xf32> to vector<128x128xf32>
      %49 = arith.mulf %47, %48 : vector<128x128xf32>
      %50 = vector.broadcast %24 : vector<1x128xf32> to vector<128x128xf32>
      %51 = arith.addf %49, %50 : vector<128x128xf32>
      %52 = arith.negf %51 : vector<128x128xf32>
      %53 = math.exp %52 : vector<128x128xf32>
      %cst_24 = arith.constant 1.000000e+00 : f32
      %54 = vector.broadcast %cst_24 : f32 to vector<128x128xf32>
      %55 = arith.addf %54, %53 : vector<128x128xf32>
      %56 = arith.divf %54, %55 : vector<128x128xf32>
      %57 = arith.mulf %51, %56 : vector<128x128xf32>
      %cst_25 = arith.constant dense<0.000000e+00> : vector<128xf32>
      %58 = vector.multi_reduction <add>, %57, %cst_25 [1] : vector<128x128xf32> to vector<128xf32>
      %59 = vector.shape_cast %58 : vector<128xf32> to vector<128x1xf32>
      %cst_26 = arith.constant 1.280000e+02 : f32
      %60 = vector.broadcast %cst_26 : f32 to vector<128x1xf32>
      %61 = arith.divf %59, %60 : vector<128x1xf32>
      %62 = arith.mulf %57, %57 : vector<128x128xf32>
      %cst_27 = arith.constant dense<0.000000e+00> : vector<128xf32>
      %63 = vector.multi_reduction <add>, %62, %cst_27 [1] : vector<128x128xf32> to vector<128xf32>
      %64 = vector.shape_cast %63 : vector<128xf32> to vector<128x1xf32>
      %cst_28 = arith.constant 1.280000e+02 : f32
      %65 = vector.broadcast %cst_28 : f32 to vector<128x1xf32>
      %66 = arith.divf %64, %65 : vector<128x1xf32>
      %67 = vector.broadcast %61 : vector<128x1xf32> to vector<128x128xf32>
      %68 = arith.subf %57, %67 : vector<128x128xf32>
      %69 = arith.mulf %61, %61 : vector<128x1xf32>
      %70 = arith.subf %66, %69 : vector<128x1xf32>
      %cst_29 = arith.constant 1.000000e-01 : f32
      %71 = vector.broadcast %cst_29 : f32 to vector<128x1xf32>
      %72 = arith.addf %70, %71 : vector<128x1xf32>
      %73 = math.rsqrt %72 : vector<128x1xf32>
      %74 = vector.broadcast %73 : vector<128x1xf32> to vector<128x128xf32>
      %75 = arith.mulf %68, %74 : vector<128x128xf32>
      %76 = vector.broadcast %29 : vector<1x128xf32> to vector<128x128xf32>
      %77 = arith.mulf %75, %76 : vector<128x128xf32>
      %78 = vector.broadcast %34 : vector<1x128xf32> to vector<128x128xf32>
      %79 = arith.addf %77, %78 : vector<128x128xf32>
      %c0_30 = arith.constant 0 : index
      %c0_31 = arith.constant 0 : index
      %80 = vector.load %arg14[%c0_30, %c0_31] : memref<128x128xf32, #tpu.memory_space<vmem>>, vector<128x128xf32>
      tpu.vector_store %arg14[%c0_30, %c0_31], %79 {strides = array<i32>} : memref<128x128xf32, #tpu.memory_space<vmem>>, vector<128x128xf32>,
      %81 = arith.truncf %79 : vector<128x128xf32> to vector<128x128xbf16>
      %c0_32 = arith.constant 0 : index
      %c0_33 = arith.constant 0 : index
      %82 = vector.load %arg5[%c0_32, %c0_33] : memref<128x128xbf16, #tpu.memory_space<vmem>>, vector<128x128xbf16>
      %cst_34 = arith.constant dense<0.000000e+00> : vector<128x128xf32>
      %83 = tpu.matmul %81, %82, %cst_34 {dimension_numbers = #tpu.dot_dimension_numbers<[1], [0], [0], [1], [0, 0, 1, 1], [], []>} : vector<128x128xbf16>, vector<128x128xbf16>, vector<128x128xf32> -> vector<128x128xf32>
      %84 = vector.broadcast %25 : vector<1x128xf32> to vector<128x128xf32>
      %85 = arith.addf %83, %84 : vector<128x128xf32>
      %c0_35 = arith.constant 0 : index
      %c0_36 = arith.constant 0 : index
      %86 = vector.load %arg14[%c0_35, %c0_36] : memref<128x128xf32, #tpu.memory_space<vmem>>, vector<128x128xf32>
      %87 = arith.addf %85, %86 : vector<128x128xf32>
      %88 = arith.negf %87 : vector<128x128xf32>
      %89 = math.exp %88 : vector<128x128xf32>
      %cst_37 = arith.constant 1.000000e+00 : f32
      %90 = vector.broadcast %cst_37 : f32 to vector<128x128xf32>
      %91 = arith.addf %90, %89 : vector<128x128xf32>
      %92 = arith.divf %90, %91 : vector<128x128xf32>
      %93 = arith.mulf %87, %92 : vector<128x128xf32>
      %cst_38 = arith.constant dense<0.000000e+00> : vector<128xf32>
      %94 = vector.multi_reduction <add>, %93, %cst_38 [1] : vector<128x128xf32> to vector<128xf32>
      %95 = vector.shape_cast %94 : vector<128xf32> to vector<128x1xf32>
      %cst_39 = arith.constant 1.280000e+02 : f32
      %96 = vector.broadcast %cst_39 : f32 to vector<128x1xf32>
      %97 = arith.divf %95, %96 : vector<128x1xf32>
      %98 = arith.mulf %93, %93 : vector<128x128xf32>
      %cst_40 = arith.constant dense<0.000000e+00> : vector<128xf32>
      %99 = vector.multi_reduction <add>, %98, %cst_40 [1] : vector<128x128xf32> to vector<128xf32>
      %100 = vector.shape_cast %99 : vector<128xf32> to vector<128x1xf32>
      %cst_41 = arith.constant 1.280000e+02 : f32
      %101 = vector.broadcast %cst_41 : f32 to vector<128x1xf32>
      %102 = arith.divf %100, %101 : vector<128x1xf32>
      %103 = vector.broadcast %97 : vector<128x1xf32> to vector<128x128xf32>
      %104 = arith.subf %93, %103 : vector<128x128xf32>
      %105 = arith.mulf %97, %97 : vector<128x1xf32>
      %106 = arith.subf %102, %105 : vector<128x1xf32>
      %cst_42 = arith.constant 1.000000e-01 : f32
      %107 = vector.broadcast %cst_42 : f32 to vector<128x1xf32>
      %108 = arith.addf %106, %107 : vector<128x1xf32>
      %109 = math.rsqrt %108 : vector<128x1xf32>
      %110 = vector.broadcast %109 : vector<128x1xf32> to vector<128x128xf32>
      %111 = arith.mulf %104, %110 : vector<128x128xf32>
      %112 = vector.broadcast %30 : vector<1x128xf32> to vector<128x128xf32>
      %113 = arith.mulf %111, %112 : vector<128x128xf32>
      %114 = vector.broadcast %35 : vector<1x128xf32> to vector<128x128xf32>
      %115 = arith.addf %113, %114 : vector<128x128xf32>
      %c0_43 = arith.constant 0 : index
      %c0_44 = arith.constant 0 : index
      %116 = vector.load %arg14[%c0_43, %c0_44] : memref<128x128xf32, #tpu.memory_space<vmem>>, vector<128x128xf32>
      %117 = arith.addf %116, %115 : vector<128x128xf32>
      %c0_45 = arith.constant 0 : index
      %c0_46 = arith.constant 0 : index
      %118 = vector.load %arg14[%c0_45, %c0_46] : memref<128x128xf32, #tpu.memory_space<vmem>>, vector<128x128xf32>
      tpu.vector_store %arg14[%c0_45, %c0_46], %117 {strides = array<i32>} : memref<128x128xf32, #tpu.memory_space<vmem>>, vector<128x128xf32>,
      %119 = arith.truncf %115 : vector<128x128xf32> to vector<128x128xbf16>
      %c0_47 = arith.constant 0 : index
      %c0_48 = arith.constant 0 : index
      %120 = vector.load %arg6[%c0_47, %c0_48] : memref<128x128xbf16, #tpu.memory_space<vmem>>, vector<128x128xbf16>
      %cst_49 = arith.constant dense<0.000000e+00> : vector<128x128xf32>
      %121 = tpu.matmul %119, %120, %cst_49 {dimension_numbers = #tpu.dot_dimension_numbers<[1], [0], [0], [1], [0, 0, 1, 1], [], []>} : vector<128x128xbf16>, vector<128x128xbf16>, vector<128x128xf32> -> vector<128x128xf32>
      %122 = vector.broadcast %26 : vector<1x128xf32> to vector<128x128xf32>
      %123 = arith.addf %121, %122 : vector<128x128xf32>
      %c0_50 = arith.constant 0 : index
      %c0_51 = arith.constant 0 : index
      %124 = vector.load %arg14[%c0_50, %c0_51] : memref<128x128xf32, #tpu.memory_space<vmem>>, vector<128x128xf32>
      %125 = arith.addf %123, %124 : vector<128x128xf32>
      %126 = arith.negf %125 : vector<128x128xf32>
      %127 = math.exp %126 : vector<128x128xf32>
      %cst_52 = arith.constant 1.000000e+00 : f32
      %128 = vector.broadcast %cst_52 : f32 to vector<128x128xf32>
      %129 = arith.addf %128, %127 : vector<128x128xf32>
      %130 = arith.divf %128, %129 : vector<128x128xf32>
      %131 = arith.mulf %125, %130 : vector<128x128xf32>
      %cst_53 = arith.constant dense<0.000000e+00> : vector<128xf32>
      %132 = vector.multi_reduction <add>, %131, %cst_53 [1] : vector<128x128xf32> to vector<128xf32>
      %133 = vector.shape_cast %132 : vector<128xf32> to vector<128x1xf32>
      %cst_54 = arith.constant 1.280000e+02 : f32
      %134 = vector.broadcast %cst_54 : f32 to vector<128x1xf32>
      %135 = arith.divf %133, %134 : vector<128x1xf32>
      %136 = arith.mulf %131, %131 : vector<128x128xf32>
      %cst_55 = arith.constant dense<0.000000e+00> : vector<128xf32>
      %137 = vector.multi_reduction <add>, %136, %cst_55 [1] : vector<128x128xf32> to vector<128xf32>
      %138 = vector.shape_cast %137 : vector<128xf32> to vector<128x1xf32>
      %cst_56 = arith.constant 1.280000e+02 : f32
      %139 = vector.broadcast %cst_56 : f32 to vector<128x1xf32>
      %140 = arith.divf %138, %139 : vector<128x1xf32>
      %141 = vector.broadcast %135 : vector<128x1xf32> to vector<128x128xf32>
      %142 = arith.subf %131, %141 : vector<128x128xf32>
      %143 = arith.mulf %135, %135 : vector<128x1xf32>
      %144 = arith.subf %140, %143 : vector<128x1xf32>
      %cst_57 = arith.constant 1.000000e-01 : f32
      %145 = vector.broadcast %cst_57 : f32 to vector<128x1xf32>
      %146 = arith.addf %144, %145 : vector<128x1xf32>
      %147 = math.rsqrt %146 : vector<128x1xf32>
      %148 = vector.broadcast %147 : vector<128x1xf32> to vector<128x128xf32>
      %149 = arith.mulf %142, %148 : vector<128x128xf32>
      %150 = vector.broadcast %31 : vector<1x128xf32> to vector<128x128xf32>
      %151 = arith.mulf %149, %150 : vector<128x128xf32>
      %152 = vector.broadcast %36 : vector<1x128xf32> to vector<128x128xf32>
      %153 = arith.addf %151, %152 : vector<128x128xf32>
      %c0_58 = arith.constant 0 : index
      %c0_59 = arith.constant 0 : index
      %154 = vector.load %arg14[%c0_58, %c0_59] : memref<128x128xf32, #tpu.memory_space<vmem>>, vector<128x128xf32>
      %155 = arith.addf %154, %153 : vector<128x128xf32>
      %c0_60 = arith.constant 0 : index
      %c0_61 = arith.constant 0 : index
      %156 = vector.load %arg14[%c0_60, %c0_61] : memref<128x128xf32, #tpu.memory_space<vmem>>, vector<128x128xf32>
      tpu.vector_store %arg14[%c0_60, %c0_61], %155 {strides = array<i32>} : memref<128x128xf32, #tpu.memory_space<vmem>>, vector<128x128xf32>,
      %157 = arith.truncf %153 : vector<128x128xf32> to vector<128x128xbf16>
      %c0_62 = arith.constant 0 : index
      %c0_63 = arith.constant 0 : index
      %158 = vector.load %arg7[%c0_62, %c0_63] : memref<128x128xbf16, #tpu.memory_space<vmem>>, vector<128x128xbf16>
      %cst_64 = arith.constant dense<0.000000e+00> : vector<128x128xf32>
      %159 = tpu.matmul %157, %158, %cst_64 {dimension_numbers = #tpu.dot_dimension_numbers<[1], [0], [0], [1], [0, 0, 1, 1], [], []>} : vector<128x128xbf16>, vector<128x128xbf16>, vector<128x128xf32> -> vector<128x128xf32>
      %160 = vector.broadcast %27 : vector<1x128xf32> to vector<128x128xf32>
      %161 = arith.addf %159, %160 : vector<128x128xf32>
      %c0_65 = arith.constant 0 : index
      %c0_66 = arith.constant 0 : index
      %162 = vector.load %arg14[%c0_65, %c0_66] : memref<128x128xf32, #tpu.memory_space<vmem>>, vector<128x128xf32>
      %163 = arith.addf %161, %162 : vector<128x128xf32>
      %164 = arith.negf %163 : vector<128x128xf32>
      %165 = math.exp %164 : vector<128x128xf32>
      %cst_67 = arith.constant 1.000000e+00 : f32
      %166 = vector.broadcast %cst_67 : f32 to vector<128x128xf32>
      %167 = arith.addf %166, %165 : vector<128x128xf32>
      %168 = arith.divf %166, %167 : vector<128x128xf32>
      %169 = arith.mulf %163, %168 : vector<128x128xf32>
      %cst_68 = arith.constant dense<0.000000e+00> : vector<128xf32>
      %170 = vector.multi_reduction <add>, %169, %cst_68 [1] : vector<128x128xf32> to vector<128xf32>
      %171 = vector.shape_cast %170 : vector<128xf32> to vector<128x1xf32>
      %cst_69 = arith.constant 1.280000e+02 : f32
      %172 = vector.broadcast %cst_69 : f32 to vector<128x1xf32>
      %173 = arith.divf %171, %172 : vector<128x1xf32>
      %174 = arith.mulf %169, %169 : vector<128x128xf32>
      %cst_70 = arith.constant dense<0.000000e+00> : vector<128xf32>
      %175 = vector.multi_reduction <add>, %174, %cst_70 [1] : vector<128x128xf32> to vector<128xf32>
      %176 = vector.shape_cast %175 : vector<128xf32> to vector<128x1xf32>
      %cst_71 = arith.constant 1.280000e+02 : f32
      %177 = vector.broadcast %cst_71 : f32 to vector<128x1xf32>
      %178 = arith.divf %176, %177 : vector<128x1xf32>
      %179 = vector.broadcast %173 : vector<128x1xf32> to vector<128x128xf32>
      %180 = arith.subf %169, %179 : vector<128x128xf32>
      %181 = arith.mulf %173, %173 : vector<128x1xf32>
      %182 = arith.subf %178, %181 : vector<128x1xf32>
      %cst_72 = arith.constant 1.000000e-01 : f32
      %183 = vector.broadcast %cst_72 : f32 to vector<128x1xf32>
      %184 = arith.addf %182, %183 : vector<128x1xf32>
      %185 = math.rsqrt %184 : vector<128x1xf32>
      %186 = vector.broadcast %185 : vector<128x1xf32> to vector<128x128xf32>
      %187 = arith.mulf %180, %186 : vector<128x128xf32>
      %188 = vector.broadcast %32 : vector<1x128xf32> to vector<128x128xf32>
      %189 = arith.mulf %187, %188 : vector<128x128xf32>
      %190 = vector.broadcast %37 : vector<1x128xf32> to vector<128x128xf32>
      %191 = arith.addf %189, %190 : vector<128x128xf32>
      %c0_73 = arith.constant 0 : index
      %c0_74 = arith.constant 0 : index
      %192 = vector.load %arg14[%c0_73, %c0_74] : memref<128x128xf32, #tpu.memory_space<vmem>>, vector<128x128xf32>
      %193 = arith.addf %192, %191 : vector<128x128xf32>
      %c0_75 = arith.constant 0 : index
      %c0_76 = arith.constant 0 : index
      %194 = vector.load %arg14[%c0_75, %c0_76] : memref<128x128xf32, #tpu.memory_space<vmem>>, vector<128x128xf32>
      tpu.vector_store %arg14[%c0_75, %c0_76], %193 {strides = array<i32>} : memref<128x128xf32, #tpu.memory_space<vmem>>, vector<128x128xf32>,
      %195 = arith.truncf %191 : vector<128x128xf32> to vector<128x128xbf16>
      %c0_77 = arith.constant 0 : index
      %c0_78 = arith.constant 0 : index
      %196 = vector.load %arg8[%c0_77, %c0_78] : memref<128x128xbf16, #tpu.memory_space<vmem>>, vector<128x128xbf16>
      %cst_79 = arith.constant dense<0.000000e+00> : vector<128x128xf32>
      %197 = tpu.matmul %195, %196, %cst_79 {dimension_numbers = #tpu.dot_dimension_numbers<[1], [0], [0], [1], [0, 0, 1, 1], [], []>} : vector<128x128xbf16>, vector<128x128xbf16>, vector<128x128xf32> -> vector<128x128xf32>
      %198 = vector.broadcast %28 : vector<1x128xf32> to vector<128x128xf32>
      %199 = arith.addf %197, %198 : vector<128x128xf32>
      %c0_80 = arith.constant 0 : index
      %c0_81 = arith.constant 0 : index
      %200 = vector.load %arg14[%c0_80, %c0_81] : memref<128x128xf32, #tpu.memory_space<vmem>>, vector<128x128xf32>
      %201 = arith.addf %199, %200 : vector<128x128xf32>
      %202 = arith.negf %201 : vector<128x128xf32>
      %203 = math.exp %202 : vector<128x128xf32>
      %cst_82 = arith.constant 1.000000e+00 : f32
      %204 = vector.broadcast %cst_82 : f32 to vector<128x128xf32>
      %205 = arith.addf %204, %203 : vector<128x128xf32>
      %206 = arith.divf %204, %205 : vector<128x128xf32>
      %207 = arith.mulf %201, %206 : vector<128x128xf32>
      %cst_83 = arith.constant dense<0.000000e+00> : vector<128xf32>
      %208 = vector.multi_reduction <add>, %207, %cst_83 [1] : vector<128x128xf32> to vector<128xf32>
      %209 = vector.shape_cast %208 : vector<128xf32> to vector<128x1xf32>
      %cst_84 = arith.constant 1.280000e+02 : f32
      %210 = vector.broadcast %cst_84 : f32 to vector<128x1xf32>
      %211 = arith.divf %209, %210 : vector<128x1xf32>
      %212 = arith.mulf %207, %207 : vector<128x128xf32>
      %cst_85 = arith.constant dense<0.000000e+00> : vector<128xf32>
      %213 = vector.multi_reduction <add>, %212, %cst_85 [1] : vector<128x128xf32> to vector<128xf32>
      %214 = vector.shape_cast %213 : vector<128xf32> to vector<128x1xf32>
      %cst_86 = arith.constant 1.280000e+02 : f32
      %215 = vector.broadcast %cst_86 : f32 to vector<128x1xf32>
      %216 = arith.divf %214, %215 : vector<128x1xf32>
      %217 = vector.broadcast %211 : vector<128x1xf32> to vector<128x128xf32>
      %218 = arith.subf %207, %217 : vector<128x128xf32>
      %219 = arith.mulf %211, %211 : vector<128x1xf32>
      %220 = arith.subf %216, %219 : vector<128x1xf32>
      %cst_87 = arith.constant 1.000000e-01 : f32
      %221 = vector.broadcast %cst_87 : f32 to vector<128x1xf32>
      %222 = arith.addf %220, %221 : vector<128x1xf32>
      %223 = math.rsqrt %222 : vector<128x1xf32>
      %224 = vector.broadcast %223 : vector<128x1xf32> to vector<128x128xf32>
      %225 = arith.mulf %218, %224 : vector<128x128xf32>
      %226 = vector.broadcast %33 : vector<1x128xf32> to vector<128x128xf32>
      %227 = arith.mulf %225, %226 : vector<128x128xf32>
      %228 = vector.broadcast %38 : vector<1x128xf32> to vector<128x128xf32>
      %229 = arith.addf %227, %228 : vector<128x128xf32>
      %230 = arith.truncf %229 : vector<128x128xf32> to vector<128x128xbf16>
      %c0_88 = arith.constant 0 : index
      %c0_89 = arith.constant 0 : index
      %231 = vector.load %arg9[%c0_88, %c0_89] : memref<128x256xbf16, #tpu.memory_space<vmem>>, vector<128x256xbf16>
      %cst_90 = arith.constant dense<0.000000e+00> : vector<128x256xf32>
      %232 = tpu.matmul %230, %231, %cst_90 {dimension_numbers = #tpu.dot_dimension_numbers<[1], [0], [0], [1], [0, 0, 1, 1], [], []>} : vector<128x128xbf16>, vector<128x256xbf16>, vector<128x256xf32> -> vector<128x256xf32>
      %233 = vector.broadcast %42 : vector<1x256xf32> to vector<128x256xf32>
      %234 = arith.addf %232, %233 : vector<128x256xf32>
      %235 = vector.extract_strided_slice %234 {offsets = [0, 0], sizes = [128, 128], strides = [1, 1]} : vector<128x256xf32> to vector<128x128xf32>
      %236 = vector.extract_strided_slice %234 {offsets = [0, 128], sizes = [128, 128], strides = [1, 1]} : vector<128x256xf32> to vector<128x128xf32>
      %c0_91 = arith.constant 0 : index
      %c0_92 = arith.constant 0 : index
      %237 = vector.load %arg3[%c0_91, %c0_92] : memref<128x128xf32, #tpu.memory_space<vmem>>, vector<128x128xf32>
      %238 = vector.broadcast %39 : vector<1x128xf32> to vector<128x128xf32>
      %239 = arith.subf %237, %238 : vector<128x128xf32>
      %240 = arith.mulf %239, %239 : vector<128x128xf32>
      %cst_93 = arith.constant 1.83787704 : f32
      %241 = vector.broadcast %cst_93 : f32 to vector<1x128xf32>
      %242 = arith.addf %40, %241 : vector<1x128xf32>
      %cst_94 = arith.constant -5.000000e-01 : f32
      %243 = vector.broadcast %cst_94 : f32 to vector<1x128xf32>
      %244 = arith.mulf %243, %242 : vector<1x128xf32>
      %cst_95 = arith.constant -1.897120e+00 : f32
      %245 = vector.broadcast %cst_95 : f32 to vector<1x128xf32>
      %246 = arith.addf %244, %245 : vector<1x128xf32>
      %cst_96 = arith.constant 1.83787704 : f32
      %247 = vector.broadcast %cst_96 : f32 to vector<1x128xf32>
      %248 = arith.addf %41, %247 : vector<1x128xf32>
      %cst_97 = arith.constant -5.000000e-01 : f32
      %249 = vector.broadcast %cst_97 : f32 to vector<1x128xf32>
      %250 = arith.mulf %249, %248 : vector<1x128xf32>
      %cst_98 = arith.constant -2.30258512 : f32
      %251 = vector.broadcast %cst_98 : f32 to vector<1x128xf32>
      %252 = arith.addf %250, %251 : vector<1x128xf32>
      %cst_99 = arith.constant 0.000000e+00 : f32
      %253 = vector.broadcast %cst_99 : f32 to vector<1x128xf32>
      %254 = arith.subf %253, %40 : vector<1x128xf32>
      %255 = math.exp %254 : vector<1x128xf32>
      %cst_100 = arith.constant 0.000000e+00 : f32
      %256 = vector.broadcast %cst_100 : f32 to vector<1x128xf32>
      %257 = arith.subf %256, %41 : vector<1x128xf32>
      %258 = math.exp %257 : vector<1x128xf32>
      %cst_101 = arith.constant 5.000000e-01 : f32
      %259 = vector.broadcast %cst_101 : f32 to vector<128x128xf32>
      %260 = arith.mulf %259, %240 : vector<128x128xf32>
      %261 = vector.broadcast %255 : vector<1x128xf32> to vector<128x128xf32>
      %262 = arith.mulf %260, %261 : vector<128x128xf32>
      %263 = vector.broadcast %246 : vector<1x128xf32> to vector<128x128xf32>
      %264 = arith.subf %263, %262 : vector<128x128xf32>
      %cst_102 = arith.constant 5.000000e-01 : f32
      %265 = vector.broadcast %cst_102 : f32 to vector<128x128xf32>
      %266 = arith.mulf %265, %240 : vector<128x128xf32>
      %267 = vector.broadcast %258 : vector<1x128xf32> to vector<128x128xf32>
      %268 = arith.mulf %266, %267 : vector<128x128xf32>
      %269 = vector.broadcast %252 : vector<1x128xf32> to vector<128x128xf32>
      %270 = arith.subf %269, %268 : vector<128x128xf32>
      %271 = arith.subf %237, %235 : vector<128x128xf32>
      %cst_103 = arith.constant 1.83787704 : f32
      %272 = vector.broadcast %cst_103 : f32 to vector<128x128xf32>
      %273 = arith.addf %236, %272 : vector<128x128xf32>
      %274 = arith.mulf %271, %271 : vector<128x128xf32>
      %cst_104 = arith.constant 0.000000e+00 : f32
      %275 = vector.broadcast %cst_104 : f32 to vector<128x128xf32>
      %276 = arith.subf %275, %236 : vector<128x128xf32>
      %277 = math.exp %276 : vector<128x128xf32>
      %278 = arith.mulf %274, %277 : vector<128x128xf32>
      %279 = arith.addf %273, %278 : vector<128x128xf32>
      %cst_105 = arith.constant -5.000000e-01 : f32
      %280 = vector.broadcast %cst_105 : f32 to vector<128x128xf32>
      %281 = arith.mulf %280, %279 : vector<128x128xf32>
      %cst_106 = arith.constant -0.287682086 : f32
      %282 = vector.broadcast %cst_106 : f32 to vector<128x128xf32>
      %283 = arith.addf %281, %282 : vector<128x128xf32>
      %284 = arith.maximumf %264, %283 : vector<128x128xf32>
      %285 = arith.maximumf %284, %270 : vector<128x128xf32>
      %286 = arith.subf %264, %285 : vector<128x128xf32>
      %287 = math.exp %286 : vector<128x128xf32>
      %288 = arith.subf %283, %285 : vector<128x128xf32>
      %289 = math.exp %288 : vector<128x128xf32>
      %290 = arith.addf %287, %289 : vector<128x128xf32>
      %291 = arith.subf %270, %285 : vector<128x128xf32>
      %292 = math.exp %291 : vector<128x128xf32>
      %293 = arith.addf %290, %292 : vector<128x128xf32>
      %294 = math.log %293 : vector<128x128xf32>
      %295 = arith.addf %285, %294 : vector<128x128xf32>
      %c0_107 = arith.constant 0 : index
      %c0_108 = arith.constant 0 : index
      %296 = vector.load %arg13[%c0_107, %c0_108] : memref<128x128xf32, #tpu.memory_space<vmem>>, vector<128x128xf32>
      tpu.vector_store %arg13[%c0_107, %c0_108], %295 {strides = array<i32>} : memref<128x128xf32, #tpu.memory_space<vmem>>, vector<128x128xf32>,
    } else {
    }
    return
  }
  func.func @transform_0(%arg0: i32, %arg1: i32) -> (i32, i32) {
    %c0_i32 = arith.constant 0 : i32
    return %arg0, %arg1 : i32, i32
  }
  func.func @transform_1(%arg0: i32, %arg1: i32) -> (i32, i32) {
    %c0_i32 = arith.constant 0 : i32
    %c0_i32_0 = arith.constant 0 : i32
    return %arg0, %c0_i32 : i32, i32
  }
  func.func @transform_2(%arg0: i32, %arg1: i32) -> (i32, i32) {
    %c0_i32 = arith.constant 0 : i32
    %c0_i32_0 = arith.constant 0 : i32
    %c0_i32_1 = arith.constant 0 : i32
    return %c0_i32, %c0_i32_0 : i32, i32
  }
  func.func @transform_3(%arg0: i32, %arg1: i32) -> (i32, i32) {
    %c0_i32 = arith.constant 0 : i32
    %c0_i32_0 = arith.constant 0 : i32
    %c0_i32_1 = arith.constant 0 : i32
    return %c0_i32, %c0_i32_0 : i32, i32
  }
  func.func @transform_4(%arg0: i32, %arg1: i32) -> (i32, i32) {
    %c0_i32 = arith.constant 0 : i32
    %c0_i32_0 = arith.constant 0 : i32
    %c0_i32_1 = arith.constant 0 : i32
    return %c0_i32, %c0_i32_0 : i32, i32
  }
  func.func @transform_5(%arg0: i32, %arg1: i32) -> (i32, i32) {
    %c0_i32 = arith.constant 0 : i32
    %c0_i32_0 = arith.constant 0 : i32
    %c0_i32_1 = arith.constant 0 : i32
    return %c0_i32, %c0_i32_0 : i32, i32
  }
  func.func @transform_6(%arg0: i32, %arg1: i32) -> (i32, i32) {
    %c0_i32 = arith.constant 0 : i32
    %c0_i32_0 = arith.constant 0 : i32
    %c0_i32_1 = arith.constant 0 : i32
    return %c0_i32, %c0_i32_0 : i32, i32
  }
  func.func @transform_7(%arg0: i32, %arg1: i32) -> (i32, i32) {
    %c0_i32 = arith.constant 0 : i32
    %c0_i32_0 = arith.constant 0 : i32
    %c0_i32_1 = arith.constant 0 : i32
    return %c0_i32, %c0_i32_0 : i32, i32
  }
  func.func @transform_8(%arg0: i32, %arg1: i32) -> (i32, i32) {
    %c0_i32 = arith.constant 0 : i32
    %c0_i32_0 = arith.constant 0 : i32
    %c0_i32_1 = arith.constant 0 : i32
    return %c0_i32, %c0_i32_0 : i32, i32
  }
  func.func @transform_9(%arg0: i32, %arg1: i32) -> (i32, i32) {
    %c0_i32 = arith.constant 0 : i32
    %c0_i32_0 = arith.constant 0 : i32
    %c0_i32_1 = arith.constant 0 : i32
    return %c0_i32, %c0_i32_0 : i32, i32
  }
  func.func @transform_10(%arg0: i32, %arg1: i32) -> (i32, i32) {
    %c0_i32 = arith.constant 0 : i32
    %c0_i32_0 = arith.constant 0 : i32
    %c0_i32_1 = arith.constant 0 : i32
    return %c0_i32, %c0_i32_0 : i32, i32
  }
  func.func @transform_11(%arg0: i32, %arg1: i32) -> (i32, i32) {
    %c0_i32 = arith.constant 0 : i32
    %c0_i32_0 = arith.constant 0 : i32
    return %arg0, %c0_i32 : i32, i32
  }
}

</mosaic_0001>

<bundles_post_ra>
// kernel: tpu_custom_call.1
= control target key start
LH: loop header
LB: loop body
LE: loop exit
PB: predicated region body
PF: predicated region fallthrough
CT: control target
= control target key end

     0   :  { %s11760_s0 = inlined_call_operand.hbm [shape: bf16[256,384], index: 0, kind: input, shape index: {}]   ;;  %s11761_s1 = inlined_call_operand.hbm [shape: f32[256,128], index: 1, kind: input, shape index: {}]   ;;  %s11762_s2 = inlined_call_operand.hbm [shape: bf16[384,128], index: 2, kind: input, shape index: {}]   ;;  %s11763_s3 = inlined_call_operand.hbm [shape: bf16[128,128], index: 3, kind: input, shape index: {}]   ;;  %s11764_s4 = inlined_call_operand.hbm [shape: bf16[128,128], index: 4, kind: input, shape index: {}]   ;;  %s11765_s5 = inlined_call_operand.hbm [shape: bf16[128,128], index: 5, kind: input, shape index: {}]   ;;  %s11766_s6 = inlined_call_operand.hbm [shape: bf16[128,128], index: 6, kind: input, shape index: {}]   ;;  %s11767_s7 = inlined_call_operand.hbm [shape: bf16[128,256], index: 7, kind: input, shape index: {}]   ;;  %s11768_s8 = inlined_call_operand.hbm [shape: f32[15,128], index: 8, kind: input, shape index: {}]   ;;  %s11769_s9 = inlined_call_operand.vmem [shape: f32[3,128], index: 9, kind: input, shape index: {}]   ;;  %s11770_s10 = inlined_call_operand.vmem [shape: f32[1,256], index: 10, kind: input, shape index: {}]   ;;  %s11771_s11 = inlined_call_operand.hbm [shape: f32[256,128], index: 11, kind: output, shape index: {}]  }
   0x1   :  { %11783 = sst [smem:[#allocation34_spill]] %s11760_s0 }
   0x2   :  { %11784 = sst [smem:[#allocation35_spill]] %s11761_s1 }
   0x3   :  { %11785 = sst [smem:[#allocation36_spill]] %s11762_s2 }
   0x4   :  { %11786 = sst [smem:[#allocation37_spill]] %s11763_s3 }
   0x5   :  { %11787 = sst [smem:[#allocation38_spill]] %s11764_s4 }
   0x6   :  { %11788 = sst [smem:[#allocation39_spill]] %s11765_s5 }
   0x7   :  { %11789 = sst [smem:[#allocation40_spill]] %s11766_s6 }
   0x8   :  { %11790 = sst [smem:[#allocation41_spill]] %s11767_s7 }
   0x9   :  { %11791 = sst [smem:[#allocation42_spill]] %s11768_s8 }
   0xa   :  { %11792 = sst [smem:[#allocation43_spill]] %s11769_s9 }
   0xb   :  { %11793 = sst [smem:[#allocation44_spill]] %s11770_s10 }
   0xc   :  { %11794 = sst [smem:[#allocation45_spill]] %s11771_s11 }
   0xd   :  { %16 = vsyncpa [#allocation5], 0 }
   0xe   :  { %18 = vsyncpa [#allocation5 + $0x1], 0 }
   0xf   :  { %19 = vsyncpa [#allocation8], 0 }
  0x10   :  { %21 = vsyncpa [#allocation8 + $0x1], 0 }
  0x11   :  { %22 = vsyncpa [#allocation11], 0 }
  0x12   :  { %23 = vsyncpa [#allocation14], 0 }
  0x13   :  { %24 = vsyncpa [#allocation17], 0 }
  0x14   :  { %25 = vsyncpa [#allocation6], 0 }
  0x15   :  { %27 = vsyncpa [#allocation6 + $0x1], 0  ;;  %s8376_s17 = smov 0   ;;  %s8378_s18 = smov 0  }
  0x16   :  { %s8380_s19 = smov 0   ;;  %s8382_s20 = smov 0  }
  0x17   :  { %s8384_s21 = smov 0   ;;  %s8386_s22 = smov 0  }
  0x18   :  { %s8388_s23 = smov 0   ;;  %s8390_s24 = smov 0  }
  0x19   :  { %s8392_s25 = smov 0   ;;  %s8394_s26 = smov 0  }
  0x1a   :  { %s8396_s27 = smov 0  }
  0x1b LB: > { %11795 = sst [smem:[#allocation27_spill]] %s8281_s23  ;;  %s8432_s28 = sadd.s32 4294967295, %s8297_s27   ;;  %s8297_s27 = sphi %s8396_s27, %s33_s27   ;;  %s8293_s26 = sphi %s8394_s26, %s11897_s26   ;;  %s8289_s25 = sphi %s8392_s25, %s11896_s25   ;;  %s8285_s24 = sphi %s8390_s24, %s11895_s24   ;;  %s8281_s23 = sphi %s8388_s23, %s11894_s23   ;;  %s8277_s22 = sphi %s8386_s22, %s11893_s22   ;;  %s8273_s21 = sphi %s8384_s21, %s11892_s21   ;;  %s8269_s20 = sphi %s8382_s20, %s11891_s20   ;;  %s8265_s19 = sphi %s8380_s19, %s11890_s19   ;;  %s8261_s18 = sphi %s8378_s18, %s11889_s18   ;;  %s8257_s17 = sphi %s8376_s17, %s11888_s17  }
  0x1c   : > { %11796 = sst [smem:[#allocation28_spill]] %s8285_s24  ;;  %p6531_p0 = scmp.ge.s32.totalorder %s8297_s27, 1 }
  0x1d   : > { %p68_p1 = scmp.eq.s32.totalorder %s8432_s28, 0  ;;  %p319_p2 = scmp.lt.s32.totalorder %s8297_s27, 7 }
  0x1e   : > { %s11797_s2 = sld [smem:[#allocation36_spill]]  ;;  %s8299_s14 = smov [#allocation9]  }
  0x1f   : > { %p8440_p3 = pnand %p6531_p0, %p319_p2  ;;  %s332_s15 = sshll.u32 %s8299_s14, 4  ;;  %s333_s15 = int_to_ptr.vmem [resolvable:$true] %s332_s15 }
  0x20   : > { %s11801_s3 = sld [smem:[#allocation37_spill]]  ;;  %s11777_s30 = smov 64  }
  0x21   : > { %s11798_s13 = scalar_select %p8440_p3, 1, 0 }
  0x22   : > { %p7044_p4 = pneg %p8440_p3  ;;  %s8302_s14 = smov [#allocation10]  }
  0x23   : > { %11799 = sst [smem:[#allocation29_spill]] %s11798_s13  ;;  %s346_s10 = sshll.u32 %s8302_s14, 4  ;;  %s347_s10 = int_to_ptr.vmem [resolvable:$true] %s346_s10 }
  0x24   : > { %s330_s12 = sshll.u32 %s11797_s2, 4  ;;  %p8448_p5 = pnand %p7044_p4, %p68_p1  ;;  %s331_s12 = int_to_ptr.hbm [resolvable:$true] %s330_s12 }
  0x25   : > { %s11778_s2 = smov 4   ;;  %s11802_s5 = sld [smem:[#allocation39_spill]] }
  0x26   : > { %s344_s29 = sshll.u32 %s11801_s3, 4  ;;  %s11803_s7 = sld [smem:[#allocation41_spill]]  ;;  %s345_s29 = int_to_ptr.hbm [resolvable:$true] %s344_s29 }
  0x27   : > { %7047 = dma.hbm_to_vmem [thread:$0]  (!%p8448_p5), %s331_s12, 3072, %s333_s15, [#allocation8], %s11777_s30, %s11777_s30, %s11778_s2  }
  0x28   : > { %7050 = dma.hbm_to_vmem [thread:$0]  (!%p8448_p5), %s345_s29, 1024, %s347_s10, [#allocation11], %s11777_s30, %s11777_s30, %s11778_s2  }
  0x29   : > { %s8303_s1 = smov [#allocation13]   ;;  %s8304_s9 = smov [#allocation16]  }
  0x2a   : > { %s374_s12 = sshll.u32 %s8303_s1, 4  ;;  %s402_s23 = sshll.u32 %s8304_s9, 4  ;;  %s375_s12 = int_to_ptr.vmem [resolvable:$true] %s374_s12  ;;  %s403_s23 = int_to_ptr.vmem [resolvable:$true] %s402_s23 }
  0x2b   : > { %s372_s13 = sshll.u32 %s11802_s5, 4  ;;  %s11775_s15 = smov 128   ;;  %s373_s13 = int_to_ptr.hbm [resolvable:$true] %s372_s13 }
  0x2c   : > { %s400_s3 = sshll.u32 %s11803_s7, 4  ;;  %s11776_s10 = smov 8   ;;  %s401_s3 = int_to_ptr.hbm [resolvable:$true] %s400_s3 }
  0x2d   : > { %7056 = dma.hbm_to_vmem [thread:$0]  (!%p8448_p5), %s373_s13, 1024, %s375_s12, [#allocation14], %s11777_s30, %s11777_s30, %s11778_s2  }
  0x2e   : > { %7062 = dma.hbm_to_vmem [thread:$0]  (!%p8448_p5), %s401_s3, 2048, %s403_s23, [#allocation17], %s11775_s15, %s11775_s15, %s11776_s10  }
  0x2f   : > { %s11804_s4 = sld [smem:[#allocation38_spill]]  ;;  %s8307_s11 = smov [#allocation12]  }
  0x30   : > { %s360_s13 = sshll.u32 %s8307_s11, 4  ;;  %s11805_s6 = sld [smem:[#allocation40_spill]]  ;;  %s361_s13 = int_to_ptr.vmem [resolvable:$true] %s360_s13 }
  0x31   : > { %s8308_s3 = smov [#allocation15]   ;;  %s11806_s8 = sld [smem:[#allocation42_spill]] }
  0x32   : > { %s388_s23 = sshll.u32 %s8308_s3, 4  ;;  %s42_s24 = sadd.s32 1, %s8289_s25  ;;  %s389_s23 = int_to_ptr.vmem [resolvable:$true] %s388_s23 }
  0x33   : > { %p43_p6 = scmp.ge.s32.totalorder %s42_s24, 3  ;;  %s45_s12 = sadd.s32 1, %s8293_s26 }
  0x34   : > { %s54_s3 = sadd.s32 1, %s8277_s22  ;;  %p61_p7 = scmp.ne.s32.totalorder %s8277_s22, %s8273_s21 }
  0x35   : > { %s358_s14 = sshll.u32 %s11804_s4, 4  ;;  %s11899_s24 = smov (%p43_p6, %s42_s24), 0  ;;  %s359_s14 = int_to_ptr.hbm [resolvable:$true] %s358_s14 }
  0x36   : > { %s386_s9 = sshll.u32 %s11805_s6, 4  ;;  %11807 = sst [smem:[#allocation30_spill]] %s11899_s24  ;;  %s387_s9 = int_to_ptr.hbm [resolvable:$true] %s386_s9 }
  0x37   : > { %7053 = dma.hbm_to_vmem [thread:$0]  (!%p8448_p5), %s359_s14, 1024, %s361_s13, [#allocation11], %s11777_s30, %s11777_s30, %s11778_s2  }
  0x38   : > { %s414_s11 = sshll.u32 %s11806_s8, 4  ;;  %s8309_s14 = smov [#allocation18]   ;;  %s415_s11 = int_to_ptr.hbm [resolvable:$true] %s414_s11 }
  0x39   : > { %7059 = dma.hbm_to_vmem [thread:$0]  (!%p8448_p5), %s387_s9, 1024, %s389_s23, [#allocation14], %s11777_s30, %s11777_s30, %s11778_s2  }
  0x3a   : > { %s416_s13 = sshll.u32 %s8309_s14, 4  ;;  %s11901_s12 = smov (!%p43_p6, %s45_s12), %s8293_s26  ;;  %s417_s13 = int_to_ptr.vmem [resolvable:$true] %s416_s13 }
  0x3b   : > { %7065 = dma.hbm_to_vmem [thread:$0]  (!%p8448_p5), %s415_s11, 256, %s417_s13, [#allocation17], %s11775_s15, %s11775_s15, %s11776_s10  }
  0x3c   : > { %s50_s9 = ssub.s32 %s8289_s25, %s11899_s24  ;;  %p62_p8 = scmp.eq.s32.totalorder %s8297_s27, 0 }
  0x3d   : > { %p47_p9 = scmp.ge.s32.totalorder %s11901_s12, 2  ;;  %p67_p10 = scmp.ne.s32.totalorder %s8273_s21, %s8269_s20 }
  0x3e   : > { %p8520_p11 = por %p62_p8, %p61_p7  ;;  %p7084_p12 = scmp.lt.s32.totalorder %s8297_s27, 6 }
  0x3f   : > { %s11903_s12 = smov (%p47_p9, %s11901_s12), 0  ;;  %p8529_p13 = por %p68_p1, %p67_p10 }
  0x40   : > { %11809 = sst [smem:[#allocation31_spill]] %s11903_s12  ;;  %s436_s1 = sand.u32 1, %s8277_s22  }
  0x41   : > { %s49_s29 = ssub.s32 %s8293_s26, %s11903_s12  ;;  %s6540_s20 = sshll.u32 %s436_s1, 6 }
  0x42   : > { %s51_s11 = sor.u32 %s50_s9, %s49_s29  ;;  %p78_p0 = scmp.eq.s32.totalorder %s49_s29, 0 }
  0x43   : > { %p52_p2 = scmp.eq.s32.totalorder %s51_s11, 0  ;;  %s7009_s14 = smul.u32 48, %s8293_s26 }
  0x44   : > { %s440_s10 = scalar_lea.vmem [#allocation4], %s6540_s20  ;;  %s11811_s0 = sld [smem:[#allocation34_spill]] }
  0x45   : > { %s8538_s13 = scalar_select %p52_p2, %s8277_s22, %s54_s3  }
  0x46   : > { %s445_s15 = sadd.s32 %s8289_s25, %s7009_s14  ;;  %s450_s30 = sshll.u32 %s440_s10, 4  ;;  %s451_s30 = int_to_ptr.vmem [resolvable:$true] %s450_s30 }
  0x47   : > { %s6543_s2 = sshll.u32 %s445_s15, 2  ;;  %p7067_p4 = pnand %p7084_p12, %p8520_p11 }
  0x48   : > { %s437_s14 = scalar_lea.sflag [#allocation5], %s436_s1  ;;  %s8310_s5 = smov 192  }
  0x49   : > { %s11812_s20 = smov 4   ;;  %s11813_s6 = smov 64  }
  0x4a   : > { %s447_s4 = scalar_lea.hbm %s11811_s0, %s6543_s2  ;;  %s6530_s15 = sadd.s32 4294967294, %s8297_s27  }
  0x4b   : > { %s448_s3 = sshll.u32 %s447_s4, 4  ;;  %s80_s10 = sadd.s32 1, %s8265_s19  ;;  %s449_s3 = int_to_ptr.hbm [resolvable:$true] %s448_s3 }
  0x4c   : > { %7069 = dma.hbm_to_vmem [thread:$0]  (!%p7067_p4), %s449_s3, 1024, %s451_s30, %s437_s14, %s8310_s5, %s11813_s6, %s11812_s20  }
  0x4d   : > { %s8554_s7 = scalar_select %p78_p0, %s8265_s19, %s80_s10  }
  0x4e   : > { %p87_p5 = scmp.ne.s32.totalorder %s8265_s19, %s8261_s18  ;;  %p93_p6 = scmp.ne.s32.totalorder %s8261_s18, %s8257_s17 }
  0x4f   : > { %p306_p7 = scmp.eq.s32.totalorder %s8432_s28, 5  ;;  %p312_p9 = scmp.eq.s32.totalorder %s6530_s15, 5 }
  0x50   : > { %p8563_p10 = por %p87_p5, %p62_p8  ;;  %p8569_p11 = por %p93_p6, %p68_p1 }
  0x51   : > { %p8573_p2 = por %p306_p7, %p87_p5  ;;  %p8577_p0 = por %p312_p9, %p93_p6 }
  0x52   : > { %s460_s30 = sand.u32 1, %s8297_s27   ;;  %s462_s16 = sand.u32 1, %s8265_s19  }
  0x53   : > { %s6544_s1 = sshll.u32 %s462_s16, 7  ;;  %s6903_s29 = sshll.u32 %s8293_s26, 7 }
  0x54   : > { %s11818_s3 = sld [smem:[#allocation35_spill]]  ;;  %s464_s20 = scalar_lea.vmem [#allocation7], %s6544_s1 }
  0x55   : > { %s472_s15 = sshll.u32 %s464_s20, 4  ;;  %p7070_p8 = pnand %p7084_p12, %p8563_p10  ;;  %s473_s15 = int_to_ptr.vmem [resolvable:$true] %s472_s15 }
  0x56   : > { %s461_s0 = scalar_lea.sflag [#allocation8], %s460_s30  ;;  %s11819_s8 = smov 8  }
  0x57   : > { %s11820_s12 = smov 128   ;;  %s486_s16 = sand.u32 (!%p8440_p3), 1, %s8273_s21  }
  0x58   : > { %484 = sbr.rel (%p8440_p3) target bundleno = 2379 (0x94b), region = 64  ;;  %s487_s1 = scalar_lea.sflag (!%p8440_p3), [#allocation5], %s486_s16 }
  0x5a   : > { %s469_s14 = scalar_lea.hbm %s11818_s3, %s6903_s29  ;;  %s6548_s29 = sshll.u32 (!%p8440_p3), %s486_s16, 6 }
  0x5b   : > { %s470_s10 = sshll.u32 %s469_s14, 4  ;;  %s8597_s9 = scalar_lea.vmem (!%p8440_p3), [#allocation4], %s6548_s29  ;;  %s471_s10 = int_to_ptr.hbm [resolvable:$true] %s470_s10 }
  0x5c   : > { %7072 = dma.hbm_to_vmem [thread:$0]  (!%p7070_p8), %s471_s10, 2048, %s473_s15, %s461_s0, %s11820_s12, %s11820_s12, %s11819_s8  }
  0x5d   : > { %8228 = dma.done.wait (%p8529_p13), %s487_s1, 1024  }
  0x5e   : > { %8230 = vsyncadd (%p8529_p13), %s487_s1, 4294966272  ;;  %s496_s0 = sand.u32 1, %s8432_s28   ;;  %s498_s8 = sand.u32 1, %s8261_s18  }
  0x5f   : > { %s6549_s24 = sshll.u32 %s498_s8, 7  ;;  %s497_s12 = scalar_lea.sflag [#allocation8], %s496_s0 }
  0x60   : > { %s8607_s2 = scalar_lea.vmem [#allocation7], %s6549_s24 }
  0x61   : > { %8232 = dma.done.wait (%p8569_p11), %s497_s12, 2048  }
  0x62   : > { %8234 = vsyncadd (%p8569_p11), %s497_s12, 4294965248 }
  0x63   : > { %8236 = dma.done.wait (%p68_p1), [#allocation8], 3072  }
  0x64   : > { %8238 = vsyncadd (%p68_p1), [#allocation8], 4294964224 }
  0x65   : > { %8240 = dma.done.wait (%p68_p1), [#allocation11], 2048  }
  0x66   : > { %8242 = vsyncadd (%p68_p1), [#allocation11], 4294965248 }
  0x67   : > { %8244 = dma.done.wait (%p68_p1), [#allocation14], 2048  }
  0x68   : > { %8246 = vsyncadd (%p68_p1), [#allocation14], 4294965248 }
  0x69   : > { %8248 = dma.done.wait (%p68_p1), [#allocation17], 2304  }
  0x6a   : > { %8250 = vsyncadd (%p68_p1), [#allocation17], 4294964992  ;;  %s8629_s23 = scalar_lea.vmem [#allocation19], %s6549_s24  ;;  %s11822_s4 = sld [smem:[#allocation27_spill]] }
  0x70   : > { %p6558_p3 = scmp.ne.s32.totalorder %s11822_s4, 0 }
  0x72   : > { %586 = sbr.rel (%p6558_p3) target bundleno = 152 (0x98), region = 104 }
  0x77   : > { %v8311_v0 = vmov 0.0   ;;  %vm603_vm0 = vcmask 7168  }
  0x78   : > { %587 = vst [vmem:[#allocation2 + $0x30] sm:$0xff] %v8311_v0 }
  0x79   : > { %588 = vst [vmem:[#allocation2] sm:$0xff] %v8311_v0 }
  0x7a   : > { %589 = vst [vmem:[#allocation2 + $0x58] sm:$0xff] %v8311_v0 }
  0x7b   : > { %590 = vst [vmem:[#allocation2 + $0x18] sm:$0xff] %v8311_v0 }
  0x7c   : > { %591 = vst [vmem:[#allocation2 + $0x50] sm:$0xff] %v8311_v0 }
  0x7d   : > { %592 = vst [vmem:[#allocation2 + $0x68] sm:$0xff] %v8311_v0 }
  0x7e   : > { %593 = vst [vmem:[#allocation2 + $0x8] sm:$0xff] %v8311_v0 }
  0x7f   : > { %594 = vst [vmem:[#allocation2 + $0x48] sm:$0xff] %v8311_v0 }
  0x80   : > { %595 = vst [vmem:[#allocation2 + $0x40] sm:$0xff] %v8311_v0 }
  0x81   : > { %596 = vst [vmem:[#allocation2 + $0x20] sm:$0xff] %v8311_v0 }
  0x82   : > { %597 = vst [vmem:[#allocation2 + $0x10] sm:$0xff] %v8311_v0 }
  0x83   : > { %598 = vst [vmem:[#allocation2 + $0x38] sm:$0xff] %v8311_v0 }
  0x84   : > { %599 = vst [vmem:[#allocation2 + $0x60] sm:$0xff] %v8311_v0 }
  0x85   : > { %600 = vst [vmem:[#allocation2 + $0x70] sm:$0xff] %v8311_v0 }
  0x86   : > { %601 = vst [vmem:[#allocation2 + $0x78] sm:$0xff] %v8311_v0 }
  0x87   : > { %602 = vst [vmem:[#allocation2 + $0x28] sm:$0xff] %v8311_v0 }
  0x88   : > { %604 = vst.msk [vmem:[#allocation3] sm:$0xff] %vm603_vm0, %v8311_v0 }
  0x89   : > { %605 = vst.msk [vmem:[#allocation3 + $0x8] sm:$0xff] %vm603_vm0, %v8311_v0 }
  0x8a   : > { %606 = vst.msk [vmem:[#allocation3 + $0x10] sm:$0xff] %vm603_vm0, %v8311_v0 }
  0x8b   : > { %607 = vst.msk [vmem:[#allocation3 + $0x18] sm:$0xff] %vm603_vm0, %v8311_v0 }
  0x8c   : > { %608 = vst.msk [vmem:[#allocation3 + $0x20] sm:$0xff] %vm603_vm0, %v8311_v0 }
  0x8d   : > { %609 = vst.msk [vmem:[#allocation3 + $0x28] sm:$0xff] %vm603_vm0, %v8311_v0 }
  0x8e   : > { %610 = vst.msk [vmem:[#allocation3 + $0x30] sm:$0xff] %vm603_vm0, %v8311_v0 }
  0x8f   : > { %611 = vst.msk [vmem:[#allocation3 + $0x38] sm:$0xff] %vm603_vm0, %v8311_v0 }
  0x90   : > { %612 = vst.msk [vmem:[#allocation3 + $0x40] sm:$0xff] %vm603_vm0, %v8311_v0 }
  0x91   : > { %613 = vst.msk [vmem:[#allocation3 + $0x48] sm:$0xff] %vm603_vm0, %v8311_v0 }
  0x92   : > { %614 = vst.msk [vmem:[#allocation3 + $0x50] sm:$0xff] %vm603_vm0, %v8311_v0 }
  0x93   : > { %615 = vst.msk [vmem:[#allocation3 + $0x58] sm:$0xff] %vm603_vm0, %v8311_v0 }
  0x94   : > { %616 = vst.msk [vmem:[#allocation3 + $0x60] sm:$0xff] %vm603_vm0, %v8311_v0 }
  0x95   : > { %617 = vst.msk [vmem:[#allocation3 + $0x68] sm:$0xff] %vm603_vm0, %v8311_v0 }
  0x96   : > { %618 = vst.msk [vmem:[#allocation3 + $0x70] sm:$0xff] %vm603_vm0, %v8311_v0 }
  0x97   : > { %619 = vst.msk [vmem:[#allocation3 + $0x78] sm:$0xff] %vm603_vm0, %v8311_v0 }
  0x98 PF: > { %s11823_s28 = sld [smem:[#allocation27_spill]]  ;;  %v620_v1 = vld [vmem:[%s8597_s9] sm:$0xff]   ;;  %v624_v6 = vld [vmem:[%s8597_s9 + $0x10] sm:$0xff]   ;;  %v622_v8 = vld [vmem:[%s8597_s9 + $0x8] sm:$0xff]   ;;  %vm946_vm1 = vcmask 7168  }
  0x99   : > { %v850_v2 = vunpack.c.l.bf16 %v620_v1  ;;  %v854_v7 = vunpack.c.l.bf16 %v624_v6  ;;  %v851_v9 = vunpack.c.h.bf16 %v620_v1  ;;  %v852_v10 = vunpack.c.l.bf16 %v622_v8  ;;  %v626_v16 = vld [vmem:[%s8597_s9 + $0x18] sm:$0xff]   ;;  %v628_v25 = vld [vmem:[%s8597_s9 + $0x20] sm:$0xff]   ;;  %v631_v33 = vld [vmem:[%s8597_s9 + $0x2c] sm:$0xff]  }
  0x9a   : > { %v855_v18 = vunpack.c.h.bf16 %v624_v6  ;;  %v853_v19 = vunpack.c.h.bf16 %v622_v8  ;;  %v856_v20 = vunpack.c.l.bf16 %v626_v16  ;;  %v858_v26 = vunpack.c.l.bf16 %v628_v25  ;;  %v630_v34 = vld [vmem:[%s8597_s9 + $0x28] sm:$0xf]  ;;  %v6904_v38 = vld [vmem:[%s8597_s9] sm:$0xff]  ;;  %v6906_v39 = vld [vmem:[%s8597_s9 + $0x10] sm:$0xff] }
  0x9b   : > { %v882_v4 = vmul.f32 %v850_v2, %v850_v2  ;;  %v886_v12 = vmul.f32 %v854_v7, %v854_v7  ;;  %v884_v13 = vmul.f32 %v852_v10, %v852_v10  ;;  %v883_v14 = vmul.f32 %v851_v9, %v851_v9  ;;  %v6908_v41 = vld [vmem:[%s8597_s9 + $0x20] sm:$0xff]  ;;  %v6910_v42 = vld [vmem:[%s8597_s9 + $0x30] sm:$0xff]  ;;  %v634_v46 = vld [vmem:[%s8597_s9 + $0x38] sm:$0xff]  }
  0x9c   : > { %v887_v21 = vmul.f32 %v855_v18, %v855_v18  ;;  %v885_v22 = vmul.f32 %v853_v19, %v853_v19  ;;  %v888_v23 = vmul.f32 %v856_v20, %v856_v20  ;;  %v857_v27 = vunpack.c.h.bf16 %v626_v16  ;;  %v633_v47 = vld [vmem:[%s8597_s9 + $0x34] sm:$0xf]  ;;  %v6907_v54 = vld [vmem:[%s8597_s9 + $0x18] sm:$0xff]  ;;  %v6905_v55 = vld [vmem:[%s8597_s9 + $0x8] sm:$0xff] }
  0x9d   : > { %898 = vadd.xlane.f32.xlu0 %v882_v4  ;;  %906 = vadd.xlane.f32.xlu2 %v886_v12  ;;  %v859_v28 = vunpack.c.h.bf16 %v628_v25  ;;  %v890_v30 = vmul.f32 %v858_v26, %v858_v26  ;;  %v861_v36 = vunpack.c.l.bf16 %v631_v33  ;;  %v860_v37 = vunpack.c.l.bf16 %v630_v34  ;;  %v6909_v56 = vld [vmem:[%s8597_s9 + $0x28] sm:$0xff]  ;;  %v6911_v57 = vld [vmem:[%s8597_s9 + $0x38] sm:$0xff]  ;;  %v866_v58 = vld [vmem:[#allocation3] sm:$0xff] }
  0x9e   : > { %s6559_s30 = sshll.u32 %s11823_s28, 7  ;;  %902 = vadd.xlane.f32.xlu1 %v884_v13  ;;  %v889_v31 = vmul.f32 %v857_v27, %v857_v27  ;;  %v862_v40 = vunpack.c.h.bf16 %v631_v33  ;;  %v864_v48 = vunpack.c.l.bf16 %v634_v46  ;;  %v863_v49 = vunpack.c.l.bf16 %v633_v47  ;;  %v870_v61 = vld [vmem:[#allocation3 + $0x20] sm:$0xff]  ;;  %v868_v62 = vld [vmem:[#allocation3 + $0x10] sm:$0xff]  ;;  %v871_v6 = vld [vmem:[#allocation3 + $0x28] sm:$0xff]  ;;  %p6625_p1 = scmp.ne.s32.totalorder %s11823_s28, 2 }
  0x9f   : > { %s637_s11 = sshra.s32 %s6559_s30, 3  ;;  %v891_v32 = vmul.f32 %v859_v28, %v859_v28  ;;  %v893_v43 = vmul.f32 %v861_v36, %v861_v36  ;;  %v892_v44 = vmul.f32 %v860_v37, %v860_v37  ;;  %v865_v50 = vunpack.c.h.bf16 %v634_v46  ;;  %v869_v7 = vld [vmem:[#allocation3 + $0x18] sm:$0xff]  ;;  %v872_v8 = vld [vmem:[#allocation3 + $0x30] sm:$0xff]  ;;  %v875_v19 = vld [vmem:[#allocation3 + $0x48] sm:$0xff] }
  0xa0   : > { %s6560_s3 = sshll.u32 %s637_s11, 2  ;;  %v894_v45 = vmul.f32 %v862_v40, %v862_v40  ;;  %v896_v51 = vmul.f32 %v864_v48, %v864_v48  ;;  %v895_v52 = vmul.f32 %v863_v49, %v863_v49  ;;  %v873_v16 = vld [vmem:[#allocation3 + $0x38] sm:$0xff]  ;;  %v876_v25 = vld [vmem:[#allocation3 + $0x50] sm:$0xff]  ;;  %v878_v28 = vld [vmem:[#allocation3 + $0x60] sm:$0xff] }
  0xa1   : > { %s8650_s14 = scalar_lea.vmem [#allocation9], %s6560_s3  ;;  %v897_v53 = vmul.f32 %v865_v50, %v865_v50  ;;  %v657_v33 = vld [vmem:[#allocation2 + $0x30] sm:$0xff]  ;;  %v665_v48 = vld [vmem:[#allocation2 + $0x40] sm:$0xff] }
  0xa2   : > { %v6919_v3 = vld [vmem:[%s8650_s14 + $0x38] sm:$0xff]  ;;  %v6918_v5 = vld [vmem:[%s8650_s14 + $0x30] sm:$0xff]  ;;  %v6917_v11 = vld [vmem:[%s8650_s14 + $0x28] sm:$0xff] }
  0xa3   : > { %769 = vmatpush.bf16.msra.mxu0 %v6919_v3  ;;  %6969 = vmatpush.bf16.msra.mxu1 %v6919_v3  ;;  %v6916_v15 = vld [vmem:[%s8650_s14 + $0x20] sm:$0xff]  ;;  %v6915_v17 = vld [vmem:[%s8650_s14 + $0x18] sm:$0xff]  ;;  %v6914_v24 = vld [vmem:[%s8650_s14 + $0x10] sm:$0xff] }
  0xa4   : > { %6970 = vmatpush.bf16.msra.mxu2 %v6919_v3  ;;  %6971 = vmatpush.bf16.msra.mxu3 %v6919_v3  ;;  %v6913_v29 = vld [vmem:[%s8650_s14 + $0x8] sm:$0xff]  ;;  %v6912_v35 = vld [vmem:[%s8650_s14] sm:$0xff]  ;;  %v661_v34 = vld [vmem:[#allocation2 + $0x50] sm:$0xff] }
  0xa5   : > { %900 = vadd.xlane.f32.xlu0 %v883_v14  ;;  %908 = vadd.xlane.f32.xlu2 %v887_v21  ;;  %v867_v3 = vld [vmem:[#allocation3 + $0x8] sm:$0xff]  ;;  %v880_v37 = vld [vmem:[#allocation3 + $0x70] sm:$0xff]  ;;  %v669_v49 = vld [vmem:[#allocation2 + $0x60] sm:$0xff] }
  0xa6   : > { %904 = vadd.xlane.f32.xlu1 %v885_v22  ;;  %v658_v50 = vld [vmem:[#allocation2] sm:$0xff] }
  0xa7   : > { %770 = vmatpush.bf16.msra.mxu0 %v6918_v5  ;;  %6972 = vmatpush.bf16.msra.mxu1 %v6918_v5 }
  0xa8   : > { %6973 = vmatpush.bf16.msra.mxu2 %v6918_v5  ;;  %6974 = vmatpush.bf16.msra.mxu3 %v6918_v5 }
  0xab   : > { %771 = vmatpush.bf16.msra.mxu0 %v6917_v11  ;;  %6975 = vmatpush.bf16.msra.mxu1 %v6917_v11 }
  0xac   : > { %6976 = vmatpush.bf16.msra.mxu2 %v6917_v11  ;;  %6977 = vmatpush.bf16.msra.mxu3 %v6917_v11 }
  0xad   : > { %910 = vadd.xlane.f32.xlu0 %v888_v23  ;;  %914 = vadd.xlane.f32.xlu2 %v890_v30 }
  0xae   : > { %912 = vadd.xlane.f32.xlu1 %v889_v31 }
  0xaf   : > { %772 = vmatpush.bf16.msra.mxu0 %v6916_v15  ;;  %6978 = vmatpush.bf16.msra.mxu1 %v6916_v15 }
  0xb0   : > { %6979 = vmatpush.bf16.msra.mxu2 %v6916_v15  ;;  %6980 = vmatpush.bf16.msra.mxu3 %v6916_v15  ;;  %v874_v15 = vld [vmem:[#allocation3 + $0x40] sm:$0xff] }
  0xb3   : > { %773 = vmatpush.bf16.msra.mxu0 %v6915_v17  ;;  %6981 = vmatpush.bf16.msra.mxu1 %v6915_v17 }
  0xb4   : > { %6982 = vmatpush.bf16.msra.mxu2 %v6915_v17  ;;  %6983 = vmatpush.bf16.msra.mxu3 %v6915_v17 }
  0xb5   : > { %916 = vadd.xlane.f32.xlu0 %v891_v32  ;;  %920 = vadd.xlane.f32.xlu2 %v893_v43  ;;  %v881_v43 = vld [vmem:[#allocation3 + $0x78] sm:$0xff] }
  0xb6   : > { %918 = vadd.xlane.f32.xlu1 %v892_v44 }
  0xb7   : > { %774 = vmatpush.bf16.msra.mxu0 %v6914_v24  ;;  %6984 = vmatpush.bf16.msra.mxu1 %v6914_v24 }
  0xb8   : > { %6985 = vmatpush.bf16.msra.mxu2 %v6914_v24  ;;  %6986 = vmatpush.bf16.msra.mxu3 %v6914_v24  ;;  %v877_v24 = vld [vmem:[#allocation3 + $0x58] sm:$0xff] }
  0xbb   : > { %775 = vmatpush.bf16.msra.mxu0 %v6913_v29  ;;  %6987 = vmatpush.bf16.msra.mxu1 %v6913_v29 }
  0xbc   : > { %6988 = vmatpush.bf16.msra.mxu2 %v6913_v29  ;;  %6989 = vmatpush.bf16.msra.mxu3 %v6913_v29 }
  0xbd   : > { %922 = vadd.xlane.f32.xlu0 %v894_v45  ;;  %926 = vadd.xlane.f32.xlu2 %v896_v51  ;;  %v662_v51 = vld [vmem:[#allocation2 + $0x68] sm:$0xff] }
  0xbe   : > { %924 = vadd.xlane.f32.xlu1 %v895_v52 }
  0xbf   : > { %776 = vmatpush.bf16.msra.mxu0 %v6912_v35  ;;  %6990 = vmatpush.bf16.msra.mxu1 %v6912_v35 }
  0xc0   : > { %6991 = vmatpush.bf16.msra.mxu2 %v6912_v35  ;;  %6992 = vmatpush.bf16.msra.mxu3 %v6912_v35 }
  0xc2   : > { %777 = vmatmul.bf16.vlgmr.msra.gmra.mxu0 %v6904_v38  ;;  %787 = vmatmul.bf16.vlgmr.msra.gmra.mxu1 %v6906_v39  ;;  %v879_v38 = vld [vmem:[#allocation3 + $0x68] sm:$0xff] }
  0xc3   : > { %797 = vmatmul.bf16.vlgmr.msra.gmra.mxu2 %v6908_v41  ;;  %807 = vmatmul.bf16.vlgmr.msra.gmra.mxu3 %v6910_v42 }
  0xc5   : > { %928 = vadd.xlane.f32.xlu0 %v897_v53 }
  0xd2   : > { %792 = vmatmul.bf16.gmra.mxu1 %v6907_v54  ;;  %782 = vmatmul.bf16.gmra.mxu0 %v6905_v55 }
  0xd3   : > { %802 = vmatmul.bf16.gmra.mxu2 %v6909_v56  ;;  %812 = vmatmul.bf16.gmra.mxu3 %v6911_v57 }
 0x110   : > { %v899_v59 = vpop.xlane.xlu0 %898  ;;  %v907_v63 = vpop.xlane.xlu2 %906 }
 0x111   : > { %v930_v60 = vadd.f32 %v899_v59, %v866_v58  ;;  %v934_v0 = vadd.f32 %v907_v63, %v870_v61  ;;  %v903_v1 = vpop.xlane.xlu1 %902  ;;  %v670_v61 = vld [vmem:[#allocation2 + $0x70] sm:$0xff]  ;;  %v663_v63 = vld [vmem:[#allocation2 + $0x8] sm:$0xff] }
 0x112   : > { %v932_v2 = vadd.f32 %v903_v1, %v868_v62  ;;  %v659_v62 = vld [vmem:[#allocation2 + $0x58] sm:$0xff] }
 0x113   : > { %947 = vst.msk [vmem:[#allocation3] sm:$0xff] %vm946_vm1, %v930_v60  ;;  %v666_v60 = vld [vmem:[#allocation2 + $0x20] sm:$0xff] }
 0x114   : > { %951 = vst.msk [vmem:[#allocation3 + $0x20] sm:$0xff] %vm946_vm1, %v934_v0 }
 0x115   : > { %949 = vst.msk [vmem:[#allocation3 + $0x10] sm:$0xff] %vm946_vm1, %v932_v2 }
 0x118   : > { %v901_v4 = vpop.xlane.xlu0 %900  ;;  %v909_v9 = vpop.xlane.xlu2 %908 }
 0x119   : > { %v931_v5 = vadd.f32 %v901_v4, %v867_v3  ;;  %v905_v10 = vpop.xlane.xlu1 %904  ;;  %v935_v11 = vadd.f32 %v909_v9, %v871_v6  ;;  %v671_v9 = vld [vmem:[#allocation2 + $0x78] sm:$0xff] }
 0x11a   : > { %v933_v12 = vadd.f32 %v905_v10, %v869_v7  ;;  %v660_v10 = vld [vmem:[#allocation2 + $0x18] sm:$0xff] }
 0x11b   : > { %948 = vst.msk [vmem:[#allocation3 + $0x8] sm:$0xff] %vm946_vm1, %v931_v5 }
 0x11c   : > { %952 = vst.msk [vmem:[#allocation3 + $0x28] sm:$0xff] %vm946_vm1, %v935_v11  ;;  %v664_v11 = vld [vmem:[#allocation2 + $0x48] sm:$0xff] }
 0x11d   : > { %950 = vst.msk [vmem:[#allocation3 + $0x18] sm:$0xff] %vm946_vm1, %v933_v12 }
 0x120   : > { %v911_v13 = vpop.xlane.xlu0 %910  ;;  %v915_v17 = vpop.xlane.xlu2 %914 }
 0x121   : > { %v936_v14 = vadd.f32 %v911_v13, %v872_v8  ;;  %v913_v18 = vpop.xlane.xlu1 %912  ;;  %v938_v20 = vadd.f32 %v915_v17, %v874_v15  ;;  %v667_v8 = vld [vmem:[#allocation2 + $0x10] sm:$0xff] }
 0x122   : > { %v937_v21 = vadd.f32 %v913_v18, %v873_v16 }
 0x123   : > { %953 = vst.msk [vmem:[#allocation3 + $0x30] sm:$0xff] %vm946_vm1, %v936_v14 }
 0x124   : > { %955 = vst.msk [vmem:[#allocation3 + $0x40] sm:$0xff] %vm946_vm1, %v938_v20  ;;  %v668_v20 = vld [vmem:[#allocation2 + $0x38] sm:$0xff] }
 0x125   : > { %954 = vst.msk [vmem:[#allocation3 + $0x38] sm:$0xff] %vm946_vm1, %v937_v21  ;;  %v672_v21 = vld [vmem:[#allocation2 + $0x28] sm:$0xff] }
 0x128   : > { %v917_v22 = vpop.xlane.xlu0 %916  ;;  %v921_v26 = vpop.xlane.xlu2 %920 }
 0x129   : > { %v939_v23 = vadd.f32 %v917_v22, %v875_v19  ;;  %v919_v27 = vpop.xlane.xlu1 %918  ;;  %v941_v29 = vadd.f32 %v921_v26, %v877_v24 }
 0x12a   : > { %v940_v30 = vadd.f32 %v919_v27, %v876_v25 }
 0x12b   : > { %956 = vst.msk [vmem:[#allocation3 + $0x48] sm:$0xff] %vm946_vm1, %v939_v23 }
 0x12c   : > { %958 = vst.msk [vmem:[#allocation3 + $0x58] sm:$0xff] %vm946_vm1, %v941_v29 }
 0x12d   : > { %957 = vst.msk [vmem:[#allocation3 + $0x50] sm:$0xff] %vm946_vm1, %v940_v30 }
 0x130   : > { %v923_v31 = vpop.xlane.xlu0 %922  ;;  %v927_v41 = vpop.xlane.xlu2 %926 }
 0x131   : > { %v942_v32 = vadd.f32 %v923_v31, %v878_v28  ;;  %v925_v42 = vpop.xlane.xlu1 %924  ;;  %v944_v44 = vadd.f32 %v927_v41, %v880_v37 }
 0x132   : > { %v943_v45 = vadd.f32 %v925_v42, %v879_v38 }
 0x133   : > { %959 = vst.msk [vmem:[#allocation3 + $0x60] sm:$0xff] %vm946_vm1, %v942_v32 }
 0x134   : > { %961 = vst.msk [vmem:[#allocation3 + $0x70] sm:$0xff] %vm946_vm1, %v944_v44 }
 0x135   : > { %960 = vst.msk [vmem:[#allocation3 + $0x68] sm:$0xff] %vm946_vm1, %v943_v45 }
 0x138   : > { %v929_v46 = vpop.xlane.xlu0 %928 }
 0x139   : > { %v945_v47 = vadd.f32 %v929_v46, %v881_v43 }
 0x13b   : > { %962 = vst.msk [vmem:[#allocation3 + $0x78] sm:$0xff] %vm946_vm1, %v945_v47 }
 0x13f   : > { %v778_v35 = vpop.f32.mrf.mxu0  ;;  %v788_v36 = vpop.f32.mrf.mxu1 }
 0x140   : > { %v818_v39 = vadd.f32 %v778_v35, %v657_v33  ;;  %v822_v40 = vadd.f32 %v788_v36, %v661_v34 }
 0x142   : > { %834 = vst [vmem:[#allocation2 + $0x30] sm:$0xff] %v818_v39 }
 0x143   : > { %838 = vst [vmem:[#allocation2 + $0x50] sm:$0xff] %v822_v40 }
 0x146   : > { %v798_v52 = vpop.f32.mrf.mxu2  ;;  %v808_v53 = vpop.f32.mrf.mxu3 }
 0x147   : > { %v826_v54 = vadd.f32 %v798_v52, %v665_v48  ;;  %v830_v55 = vadd.f32 %v808_v53, %v669_v49  ;;  %v780_v56 = vpop.f32.mrf.mxu0  ;;  %v790_v57 = vpop.f32.mrf.mxu1 }
 0x148   : > { %v819_v58 = vadd.f32 %v780_v56, %v658_v50  ;;  %v823_v59 = vadd.f32 %v790_v57, %v662_v51 }
 0x149   : > { %842 = vst [vmem:[#allocation2 + $0x40] sm:$0xff] %v826_v54 }
 0x14a   : > { %846 = vst [vmem:[#allocation2 + $0x60] sm:$0xff] %v830_v55 }
 0x14b   : > { %835 = vst [vmem:[#allocation2] sm:$0xff] %v819_v58 }
 0x14c   : > { %839 = vst [vmem:[#allocation2 + $0x68] sm:$0xff] %v823_v59 }
 0x14e   : > { %v800_v0 = vpop.f32.mrf.mxu2  ;;  %v810_v1 = vpop.f32.mrf.mxu3 }
 0x14f   : > { %v827_v2 = vadd.f32 %v800_v0, %v666_v60  ;;  %v831_v3 = vadd.f32 %v810_v1, %v670_v61  ;;  %v783_v4 = vpop.f32.mrf.mxu0  ;;  %v793_v5 = vpop.f32.mrf.mxu1 }
 0x150   : > { %v820_v6 = vadd.f32 %v783_v4, %v659_v62  ;;  %v824_v7 = vadd.f32 %v793_v5, %v663_v63 }
 0x151   : > { %843 = vst [vmem:[#allocation2 + $0x20] sm:$0xff] %v827_v2 }
 0x152   : > { %847 = vst [vmem:[#allocation2 + $0x70] sm:$0xff] %v831_v3 }
 0x153   : > { %836 = vst [vmem:[#allocation2 + $0x58] sm:$0xff] %v820_v6 }
 0x154   : > { %840 = vst [vmem:[#allocation2 + $0x8] sm:$0xff] %v824_v7 }
 0x156   : > { %v803_v12 = vpop.f32.mrf.mxu2  ;;  %v813_v13 = vpop.f32.mrf.mxu3 }
 0x157   : > { %v828_v14 = vadd.f32 %v803_v12, %v667_v8  ;;  %v832_v15 = vadd.f32 %v813_v13, %v671_v9  ;;  %v785_v16 = vpop.f32.mrf.mxu0  ;;  %v795_v17 = vpop.f32.mrf.mxu1 }
 0x158   : > { %v821_v18 = vadd.f32 %v785_v16, %v660_v10  ;;  %v825_v19 = vadd.f32 %v795_v17, %v664_v11 }
 0x159   : > { %844 = vst [vmem:[#allocation2 + $0x10] sm:$0xff] %v828_v14 }
 0x15a   : > { %848 = vst [vmem:[#allocation2 + $0x78] sm:$0xff] %v832_v15 }
 0x15b   : > { %837 = vst [vmem:[#allocation2 + $0x18] sm:$0xff] %v821_v18 }
 0x15c   : > { %841 = vst [vmem:[#allocation2 + $0x48] sm:$0xff] %v825_v19 }
 0x15e   : > { %v805_v22 = vpop.f32.mrf.mxu2  ;;  %v815_v23 = vpop.f32.mrf.mxu3  ;;  %966 = sbr.rel (%p6625_p1) target bundleno = 2357 (0x935), region = 108 }
 0x15f   : > { %v829_v24 = vadd.f32 %v805_v22, %v668_v20  ;;  %v833_v25 = vadd.f32 %v815_v23, %v672_v21 }
 0x161   : > { %845 = vst [vmem:[#allocation2 + $0x38] sm:$0xff] %v829_v24 }
 0x162   : > { %849 = vst [vmem:[#allocation2 + $0x28] sm:$0xff] %v833_v25 }
 0x163   : > { %v973_v26 = vld [vmem:[#allocation3 + $0x10] sm:$0xff]  ;;  %v971_v27 = vld [vmem:[#allocation3] sm:$0xff]  ;;  %v974_v28 = vld [vmem:[#allocation3 + $0x18] sm:$0xff]  ;;  %v8312_v29 = vmov 0   ;;  %s11876_s10 = sld [smem:[#allocation43_spill]] }
 0x164   : > { %7199 = vset.pattern.permute.xlu1 %v8312_v29  ;;  %7198 = vset.pattern.permute.xlu0 %v8312_v29  ;;  %v989_v30 = vmax.f32 %v973_v26, 1e-24  ;;  %v987_v31 = vmax.f32 %v971_v27, 1e-24  ;;  %v8693_v32 = vmax.f32 %v974_v28, 1e-24 }
 0x165   : > { %v972_v33 = vld [vmem:[#allocation3 + $0x8] sm:$0xff]  ;;  %v978_v34 = vld [vmem:[#allocation3 + $0x38] sm:$0xff]  ;;  %v977_v35 = vld [vmem:[#allocation3 + $0x30] sm:$0xff]  ;;  %7200 = vset.pattern.permute.xlu2 %v8312_v29  ;;  %s11877_s1 = sld [smem:[#allocation44_spill]] }
 0x166   : > { %7201 = vrsqrt.f32 %v989_v30  ;;  %v8695_v36 = vmax.f32 %v972_v33, 1e-24  ;;  %v8697_v37 = vmax.f32 %v978_v34, 1e-24  ;;  %v8699_v38 = vmax.f32 %v977_v35, 1e-24 }
 0x167   : > { %7203 = vrsqrt.f32 %v987_v31  ;;  %v981_v39 = vld [vmem:[#allocation3 + $0x50] sm:$0xff]  ;;  %v980_v40 = vld [vmem:[#allocation3 + $0x48] sm:$0xff]  ;;  %v975_v44 = vld [vmem:[#allocation3 + $0x20] sm:$0xff]  ;;  %vm1029_vm2 = vweird.f32 %v989_v30  ;;  %vm1009_vm3 = vweird.f32 %v987_v31  ;;  %vm1039_vm8 = vweird.f32 %v8693_v32 }
 0x168   : > { %7205 = vrsqrt.f32 %v8693_v32  ;;  %v8705_v41 = vmax.f32 %v981_v39, 1e-24  ;;  %v8707_v43 = vmax.f32 %v980_v40, 1e-24  ;;  %v8716_v52 = vmax.f32 %v975_v44, 1e-24 }
 0x169   : > { %7207 = vrsqrt.f32 %v8695_v36  ;;  %v984_v60 = vld [vmem:[#allocation3 + $0x68] sm:$0xff]  ;;  %vm1019_vm10 = vweird.f32 %v8695_v36  ;;  %vm1079_vm14 = vweird.f32 %v8697_v37  ;;  %vm1069_vm0 = vweird.f32 %v8699_v38  ;;  %v8861_v24 = vld [vmem:[#allocation18] sm:$0xff]  ;;  %v1163_v27 = vld [vmem:[#allocation2 + $0x30] sm:$0xff] }
 0x16a   : > { %7209 = vrsqrt.f32 %v8697_v37  ;;  %v8737_v5 = vmax.f32 %v984_v60, 1e-24  ;;  %v976_v15 = vld [vmem:[#allocation3 + $0x28] sm:$0xff] }
 0x16b   : > { %7211 = vrsqrt.f32 %v8699_v38  ;;  %v8764_v23 = vmax.f32 %v976_v15, 1e-24 }
 0x16c   : > { %v7202_v42 = vpop.eup %7201  ;;  %7213 = vrsqrt.f32 %v8705_v41 }
 0x16d   : > { %v7204_v45 = vpop.eup %7203  ;;  %v1024_v46 = vmul.f32 %v7202_v42, %v989_v30  ;;  %7215 = vrsqrt.f32 %v8707_v43  ;;  %vm1030_vm4 = vweird.f32 %v7202_v42  ;;  %v979_v30 = vld [vmem:[#allocation3 + $0x40] sm:$0xff] }
 0x16e   : > { %v8709_v47 = vpop.eup %7205  ;;  %v1004_v48 = vmul.f32 %v7204_v45, %v987_v31  ;;  %vm1010_vm5 = vweird.f32 %v7204_v45  ;;  %7217 = vrsqrt.f32 %v8716_v52  ;;  %vm8733_vm6 = vmor %vm1029_vm2, %vm1030_vm4  ;;  %v982_v31 = vld [vmem:[#allocation3 + $0x58] sm:$0xff]  ;;  %vm1049_vm2 = vweird.f32 %v8716_v52 }
 0x16f   : > { %v8711_v49 = vpop.eup %7207  ;;  %v1025_v50 = vmul.f32 %v7202_v42, %v1024_v46  ;;  %v1034_v51 = vmul.f32 %v8709_v47, %v8693_v32  ;;  %vm8742_vm7 = vmor %vm1009_vm3, %vm1010_vm5  ;;  %vm1040_vm9 = vweird.f32 %v8709_v47  ;;  %7219 = vrsqrt.f32 %v8737_v5 }
 0x170   : > { %v8718_v53 = vpop.eup %7209  ;;  %v1005_v54 = vmul.f32 %v7204_v45, %v1004_v48  ;;  %v1014_v55 = vmul.f32 %v8711_v49, %v8695_v36  ;;  %vm1020_vm11 = vweird.f32 %v8711_v49  ;;  %vm8766_vm12 = vmor %vm1039_vm8, %vm1040_vm9  ;;  %7221 = vrsqrt.f32 %v8764_v23 }
 0x171   : > { %v8723_v56 = vpop.eup %7211  ;;  %v1026_v57 = vmul.f32 0.5, %v1025_v50  ;;  %v1035_v58 = vmul.f32 %v8709_v47, %v1034_v51  ;;  %v1074_v59 = vmul.f32 %v8718_v53, %v8697_v37  ;;  %vm8773_vm13 = vmor %vm1019_vm10, %vm1020_vm11  ;;  %vm1080_vm15 = vweird.f32 %v8718_v53 }
 0x172   : > { %v1006_v61 = vmul.f32 0.5, %v1005_v54  ;;  %v1015_v62 = vmul.f32 %v8711_v49, %v1014_v55  ;;  %v1064_v63 = vmul.f32 %v8723_v56, %v8699_v38  ;;  %v8739_v6 = vpop.eup %7213  ;;  %vm1070_vm1 = vweird.f32 %v8723_v56  ;;  %vm8801_vm4 = vmor %vm1079_vm14, %vm1080_vm15 }
 0x173   : > { %v1027_v0 = vsub.f32 1.5, %v1026_v57  ;;  %v1036_v1 = vmul.f32 0.5, %v1035_v58  ;;  %v1075_v10 = vmul.f32 %v8718_v53, %v1074_v59  ;;  %v8747_v11 = vpop.eup %7215  ;;  %v1104_v18 = vmul.f32 %v8739_v6, %v8705_v41  ;;  %vm8813_vm5 = vmor %vm1069_vm0, %vm1070_vm1 }
 0x174   : > { %v1007_v3 = vsub.f32 1.5, %v1006_v61  ;;  %v1016_v4 = vmul.f32 0.5, %v1015_v62  ;;  %v1065_v14 = vmul.f32 %v8723_v56, %v1064_v63  ;;  %v7218_v19 = vpop.eup %7217  ;;  %v1094_v22 = vmul.f32 %v8747_v11, %v8707_v43 }
 0x175   : > { %v1028_v7 = vmul.f32 %v7202_v42, %v1027_v0  ;;  %v1037_v9 = vsub.f32 1.5, %v1036_v1  ;;  %v1076_v21 = vmul.f32 0.5, %v1075_v10  ;;  %v1105_v28 = vmul.f32 %v8739_v6, %v1104_v18  ;;  %v8785_v35 = vpop.eup %7219 }
 0x176   : > { %v1008_v12 = vmul.f32 %v7204_v45, %v1007_v3  ;;  %v1017_v13 = vsub.f32 1.5, %v1016_v4  ;;  %v1066_v26 = vmul.f32 0.5, %v1065_v14  ;;  %v1044_v29 = vmul.f32 %v7218_v19, %v8716_v52  ;;  %v7222_v54 = vpop.eup %7221 }
 0x177   : > { %v1032_v16 = vsel %vm8733_vm6, %v7202_v42, %v1028_v7  ;;  %v1038_v20 = vmul.f32 %v8709_v47, %v1037_v9  ;;  %v1077_v33 = vsub.f32 1.5, %v1076_v21  ;;  %v1095_v34 = vmul.f32 %v8747_v11, %v1094_v22 }
 0x178   : > { %1191 = vperm.xlu1 %7199, %v1032_v16   ;;  %v1012_v17 = vsel %vm8742_vm7, %v7204_v45, %v1008_v12  ;;  %v1018_v25 = vmul.f32 %v8711_v49, %v1017_v13  ;;  %v1067_v39 = vsub.f32 1.5, %v1066_v26  ;;  %v1045_v40 = vmul.f32 %v7218_v19, %v1044_v29 }
 0x179   : > { %1181 = vperm.xlu0 %7198, %v1012_v17   ;;  %v1042_v32 = vsel %vm8766_vm12, %v8709_v47, %v1038_v20  ;;  %v8793_v42 = vmax.f32 %v979_v30, 1e-24  ;;  %v8795_v44 = vmax.f32 %v982_v31, 1e-24  ;;  %v1106_v45 = vmul.f32 0.5, %v1105_v28 }
 0x17a   : > { %v1022_v36 = vsel %vm8773_vm13, %v8711_v49, %v1018_v25  ;;  %v1046_v46 = vmul.f32 0.5, %v1045_v40  ;;  %vm1050_vm3 = vweird.f32 %v7218_v19  ;;  %v1078_v47 = vmul.f32 %v8718_v53, %v1077_v33  ;;  %v1165_v25 = vld [vmem:[#allocation2 + $0x58] sm:$0xff] }
 0x17b   : > { %v1096_v49 = vmul.f32 0.5, %v1095_v34  ;;  %v1134_v50 = vmul.f32 %v8785_v35, %v8737_v5  ;;  %7223 = vrsqrt.f32 %v8793_v42  ;;  %v1068_v51 = vmul.f32 %v8723_v56, %v1067_v39  ;;  %vm1051_vm6 = vmor %vm1049_vm2, %vm1050_vm3  ;;  %v1164_v39 = vld [vmem:[#allocation2] sm:$0xff] }
 0x17c   : > { %v1047_v37 = vsub.f32 1.5, %v1046_v46  ;;  %7225 = vrsqrt.f32 %v8795_v44  ;;  %vm1109_vm7 = vweird.f32 %v8705_v41  ;;  %v1054_v57 = vmul.f32 %v7222_v54, %v8764_v23 }
 0x17d   : > { %v1082_v58 = vsel %vm8801_vm4, %v8718_v53, %v1078_v47  ;;  %v1107_v59 = vsub.f32 1.5, %v1106_v45  ;;  %v1097_v38 = vsub.f32 1.5, %v1096_v49  ;;  %v1135_v60 = vmul.f32 %v8785_v35, %v1134_v50 }
 0x17e   : > { %v1048_v55 = vmul.f32 %v7218_v19, %v1047_v37  ;;  %v1072_v61 = vsel %vm8813_vm5, %v8723_v56, %v1068_v51  ;;  %vm1110_vm8 = vweird.f32 %v8739_v6  ;;  %v1055_v63 = vmul.f32 %v7222_v54, %v1054_v57 }
 0x17f   : > { %vm1099_vm9 = vweird.f32 %v8707_v43  ;;  %vm1100_vm10 = vweird.f32 %v8747_v11  ;;  %vm1059_vm11 = vweird.f32 %v8764_v23  ;;  %vm1060_vm12 = vweird.f32 %v7222_v54  ;;  %vm8837_vm13 = vmor %vm1109_vm7, %vm1110_vm8 }
 0x180   : > { %1196 = vperm.xlu1 %7199, %v1042_v32   ;;  %v1052_v62 = vsel %vm1051_vm6, %v7218_v19, %v1048_v55  ;;  %v1056_v53 = vmul.f32 0.5, %v1055_v63  ;;  %v1108_v56 = vmul.f32 %v8739_v6, %v1107_v59  ;;  %v1098_v4 = vmul.f32 %v8747_v11, %v1097_v38  ;;  %vm8845_vm14 = vmor %vm1099_vm9, %vm1100_vm10 }
 0x181   : > { %1186 = vperm.xlu0 %7198, %v1022_v36   ;;  %v7224_v0 = vpop.eup %7223  ;;  %1201 = vperm.xlu2 %7200, %v1052_v62   ;;  %v1136_v7 = vmul.f32 0.5, %v1135_v60  ;;  %vm1061_vm15 = vmor %vm1059_vm11, %vm1060_vm12  ;;  %vm1089_vm0 = vweird.f32 %v8793_v42  ;;  %vm1139_vm2 = vweird.f32 %v8737_v5  ;;  %vm1140_vm3 = vweird.f32 %v8785_v35  ;;  %v1166_v36 = vld [vmem:[#allocation2 + $0x18] sm:$0xff] }
 0x182   : > { %v7226_v1 = vpop.eup %7225  ;;  %v1084_v2 = vmul.f32 %v7224_v0, %v8793_v42  ;;  %v1057_v10 = vsub.f32 1.5, %v1056_v53  ;;  %v1112_v15 = vsel %vm8837_vm13, %v8739_v6, %v1108_v56  ;;  %v1102_v16 = vsel %vm8845_vm14, %v8747_v11, %v1098_v4  ;;  %vm1141_vm5 = vmor %vm1139_vm2, %vm1140_vm3 }
 0x183   : > { %v1114_v8 = vmul.f32 %v7226_v1, %v8795_v44  ;;  %v1137_v17 = vsub.f32 1.5, %v1136_v7  ;;  %vm1090_vm1 = vweird.f32 %v7224_v0  ;;  %vm1119_vm6 = vweird.f32 %v8795_v44 }
 0x184   : > { %v1085_v12 = vmul.f32 %v7224_v0, %v1084_v2  ;;  %v1058_v13 = vmul.f32 %v7222_v54, %v1057_v10  ;;  %vm1091_vm4 = vmor %vm1089_vm0, %vm1090_vm1  ;;  %vm1120_vm7 = vweird.f32 %v7226_v1  ;;  %v8864_v26 = vperm.slane %v8861_v24, 0 }
 0x185   : > { %v1115_v14 = vmul.f32 %v7226_v1, %v1114_v8  ;;  %v1138_v6 = vmul.f32 %v8785_v35, %v1137_v17  ;;  %vm1121_vm8 = vmor %vm1119_vm6, %vm1120_vm7 }
 0x186   : > { %v1086_v41 = vmul.f32 0.5, %v1085_v12  ;;  %v1062_v43 = vsel %vm1061_vm15, %v7222_v54, %v1058_v13 }
 0x187   : > { %v1116_v20 = vmul.f32 0.5, %v1115_v14  ;;  %v1142_v22 = vsel %vm1141_vm5, %v8785_v35, %v1138_v6 }
 0x188   : > { %1216 = vperm.xlu1 %7199, %v1082_v58   ;;  %v1087_v18 = vsub.f32 1.5, %v1086_v41 }
 0x189   : > { %1211 = vperm.xlu0 %7198, %v1072_v61   ;;  %1206 = vperm.xlu2 %7200, %v1062_v43   ;;  %v1117_v21 = vsub.f32 1.5, %v1116_v20 }
 0x18a   : > { %v1088_v19 = vmul.f32 %v7224_v0, %v1087_v18 }
 0x18b   : > { %v1118_v5 = vmul.f32 %v7226_v1, %v1117_v21  ;;  %v983_v21 = vld [vmem:[#allocation3 + $0x60] sm:$0xff] }
 0x18c   : > { %v1092_v11 = vsel %vm1091_vm4, %v7224_v0, %v1088_v19 }
 0x18d   : > { %v1122_v23 = vsel %vm1121_vm8, %v7226_v1, %v1118_v5 }
 0x190   : > { %1231 = vperm.xlu1 %7199, %v1112_v15  }
 0x191   : > { %1226 = vperm.xlu0 %7198, %v1102_v16   ;;  %1221 = vperm.xlu2 %7200, %v1092_v11  }
 0x198   : > { %1246 = vperm.xlu1 %7199, %v1142_v22   ;;  %v985_v22 = vld [vmem:[#allocation3 + $0x70] sm:$0xff] }
 0x199   : > { %1236 = vperm.xlu2 %7200, %v1122_v23  }
 0x1ea   : > { %v1192_v28 = vpop.permute.xlu1 %1191 }
 0x1eb   : > { %v1261_v29 = vmul.f32 %v1192_v28, %v1165_v25  ;;  %v1182_v30 = vpop.permute.xlu0 %1181 }
 0x1ec   : > { %v1259_v31 = vmul.f32 %v1182_v30, %v1163_v27  ;;  %v8891_v30 = vmax.f32 %v985_v22, 1e-24 }
 0x1ed   : > { %v1278_v32 = vadd.f32 %v8864_v26, %v1261_v29  ;;  %v999_v29 = vmax.f32 %v983_v21, 1e-24 }
 0x1ee   : > { %v8868_v33 = vadd.f32 %v8864_v26, %v1259_v31 }
 0x1ef   : > { %v6628_v34 = vmul.f32 -1.442695, %v1278_v32 }
 0x1f0   : > { %v6626_v35 = vmul.f32 -1.442695, %v8868_v33 }
 0x1f1   : > { %7227 = vpow2.f32 %v6628_v34 }
 0x1f2   : > { %7229 = vpow2.f32 %v6626_v35  ;;  %v1197_v40 = vpop.permute.xlu1 %1196 }
 0x1f3   : > { %v1262_v42 = vmul.f32 %v1197_v40, %v1166_v36  ;;  %v1187_v44 = vpop.permute.xlu0 %1186  ;;  %v1167_v36 = vld [vmem:[#allocation2 + $0x50] sm:$0xff]  ;;  %v1202_v40 = vpop.permute.xlu2 %1201 }
 0x1f4   : > { %v1260_v45 = vmul.f32 %v1187_v44, %v1164_v39 }
 0x1f5   : > { %v8872_v46 = vadd.f32 %v8864_v26, %v1262_v42 }
 0x1f6   : > { %v8875_v47 = vadd.f32 %v8864_v26, %v1260_v45  ;;  %v1263_v45 = vmul.f32 %v1202_v40, %v1167_v36 }
 0x1f7   : > { %v7228_v48 = vpop.eup %7227  ;;  %v6629_v49 = vmul.f32 -1.442695, %v8872_v46 }
 0x1f8   : > { %v7230_v50 = vpop.eup %7229  ;;  %v1342_v51 = vadd.f32 1.0, %v7228_v48  ;;  %v6627_v52 = vmul.f32 -1.442695, %v8875_v47 }
 0x1f9   : > { %v1340_v37 = vadd.f32 1.0, %v7230_v50  ;;  %7231 = vpow2.f32 %v6629_v49 }
 0x1fa   : > { %7233 = vrcp.f32 %v1342_v51  ;;  %v1395_v62 = vand.u32 2147483647, %v1342_v51  ;;  %v1397_v63 = vand.u32 2147483648, %v1342_v51  ;;  %vm1391_vm10 = vweird.f32 %v1342_v51 }
 0x1fb   : > { %7235 = vrcp.f32 %v1340_v37  ;;  %vm1361_vm14 = vweird.f32 %v1340_v37  ;;  %v1365_v12 = vand.u32 2147483647, %v1340_v37  ;;  %v1367_v13 = vand.u32 2147483648, %v1340_v37 }
 0x1fc   : > { %7237 = vpow2.f32 %v6627_v52  ;;  %vm1396_vm12 = vcmp.eq.f32.partialorder %v1395_v62, 8.507059e+37  ;;  %v1398_v56 = vor.u32 1.1754944e-38, %v1397_v63  ;;  %v8907_v52 = vadd.f32 %v8864_v26, %v1263_v45 }
 0x1fd   : > { %v1368_v15 = vor.u32 1.1754944e-38, %v1367_v13  ;;  %vm1366_vm0 = vcmp.eq.f32.partialorder %v1365_v12, 8.507059e+37  ;;  %v1217_v12 = vpop.permute.xlu1 %1216 }
 0x1ff   : > { %v7232_v54 = vpop.eup %7231 }
 0x200   : > { %v7234_v55 = vpop.eup %7233  ;;  %v1343_v57 = vadd.f32 1.0, %v7232_v54 }
 0x201   : > { %v7236_v58 = vpop.eup %7235  ;;  %v1387_v59 = vmul.f32 %v7234_v55, %v1342_v51  ;;  %vm1392_vm9 = vweird.f32 %v7234_v55 }
 0x202   : > { %v7238_v38 = vpop.eup %7237  ;;  %v1357_v61 = vmul.f32 %v7236_v58, %v1340_v37  ;;  %7239 = vrcp.f32 %v1343_v57  ;;  %vm1393_vm11 = vmor %vm1391_vm10, %vm1392_vm9  ;;  %vm1362_vm13 = vweird.f32 %v7236_v58  ;;  %v1410_v18 = vand.u32 2147483647, %v1343_v57 }
 0x203   : > { %v1388_v60 = vsub.f32 1.0, %v1387_v59  ;;  %v8879_v0 = vadd.f32 1.0, %v7238_v38  ;;  %vm1363_vm15 = vmor %vm1361_vm14, %vm1362_vm13  ;;  %v1412_v6 = vand.u32 2147483648, %v1343_v57  ;;  %vm1406_vm2 = vweird.f32 %v1343_v57  ;;  %v1207_v59 = vpop.permute.xlu2 %1206 }
 0x204   : > { %v1358_v2 = vsub.f32 1.0, %v1357_v61  ;;  %vm1411_vm4 = vcmp.eq.f32.partialorder %v1410_v18, 8.507059e+37  ;;  %vm1129_vm9 = vweird.f32 %v999_v29 }
 0x205   : > { %v1389_v1 = vmul.f32 %v7234_v55, %v1388_v60  ;;  %7241 = vrcp.f32 %v8879_v0  ;;  %v1413_v23 = vor.u32 1.1754944e-38, %v1412_v6  ;;  %v1382_v28 = vand.u32 2147483648, %v8879_v0 }
 0x206   : > { %v1359_v4 = vmul.f32 %v7236_v58, %v1358_v2  ;;  %7243 = vrsqrt.f32 %v999_v29  ;;  %vm1376_vm6 = vweird.f32 %v8879_v0 }
 0x207   : > { %v1390_v53 = vadd.f32 %v7234_v55, %v1389_v1  ;;  %7245 = vrsqrt.f32 %v8891_v30  ;;  %v1383_v39 = vor.u32 1.1754944e-38, %v1382_v28 }
 0x208   : > { %v7240_v7 = vpop.eup %7239  ;;  %v1360_v10 = vadd.f32 %v7236_v58, %v1359_v4 }
 0x209   : > { %v1394_v3 = vsel %vm1393_vm11, %v7234_v55, %v1390_v53  ;;  %v1402_v14 = vmul.f32 %v7240_v7, %v1343_v57  ;;  %vm1407_vm1 = vweird.f32 %v7240_v7  ;;  %v1168_v55 = vld [vmem:[#allocation2 + $0x68] sm:$0xff] }
 0x20a   : > { %v1399_v8 = vsel %vm1396_vm12, %v1398_v56, %v1394_v3  ;;  %v1364_v41 = vsel %vm1363_vm15, %v7236_v58, %v1360_v10  ;;  %vm1408_vm3 = vmor %vm1406_vm2, %vm1407_vm1  ;;  %v6630_v58 = vmul.f32 -1.442695, %v8907_v52  ;;  %v1264_v61 = vmul.f32 %v1207_v59, %v1168_v55  ;;  %v1169_v56 = vld [vmem:[#allocation2 + $0x8] sm:$0xff]  ;;  %v1212_v3 = vpop.permute.xlu0 %1211 }
 0x20b   : > { %v8882_v9 = vmul.f32 %v1399_v8, %v1278_v32  ;;  %v7242_v16 = vpop.eup %7241  ;;  %v1403_v17 = vsub.f32 1.0, %v1402_v14  ;;  %v1369_v43 = vsel %vm1366_vm0, %v1368_v15, %v1364_v41  ;;  %v1170_v10 = vld [vmem:[#allocation2 + $0x48] sm:$0xff]  ;;  %vm1149_vm12 = vweird.f32 %v8891_v30  ;;  %v1222_v21 = vpop.permute.xlu2 %1221 }
 0x20c   : > { %v8886_v19 = vmul.f32 %v1369_v43, %v8868_v33  ;;  %v1372_v11 = vmul.f32 %v7242_v16, %v8879_v0  ;;  %vm1377_vm5 = vweird.f32 %v7242_v16  ;;  %v1380_v33 = vand.u32 2147483647, %v8879_v0 }
 0x20d   : > { %1616 = vadd.xlane.f32.xlu2 %v8882_v9  ;;  %v1404_v20 = vmul.f32 %v7240_v7, %v1403_v17  ;;  %vm1378_vm7 = vmor %vm1376_vm6, %vm1377_vm5  ;;  %7247 = vpow2.f32 %v6630_v58  ;;  %v8916_v2 = vadd.f32 %v8864_v26, %v1264_v61  ;;  %v1265_v41 = vmul.f32 %v1212_v3, %v1169_v56  ;;  %v1232_v58 = vpop.permute.xlu1 %1231 }
 0x20e   : > { %1612 = vadd.xlane.f32.xlu0 %v8886_v19  ;;  %v1373_v25 = vsub.f32 1.0, %v1372_v11  ;;  %vm1381_vm8 = vcmp.eq.f32.partialorder %v1380_v33, 8.507059e+37  ;;  %v1667_v51 = vmul.f32 %v8886_v19, %v8886_v19 }
 0x20f   : > { %v1405_v5 = vadd.f32 %v7240_v7, %v1404_v20  ;;  %v8927_v18 = vadd.f32 %v8864_v26, %v1265_v41  ;;  %v1171_v20 = vld [vmem:[#allocation2 + $0x40] sm:$0xff] }
 0x210   : > { %v1374_v32 = vmul.f32 %v7242_v16, %v1373_v25  ;;  %v1267_v25 = vmul.f32 %v1222_v21, %v1171_v20 }
 0x211   : > { %v1409_v27 = vsel %vm1408_vm3, %v7240_v7, %v1405_v5  ;;  %v6631_v7 = vmul.f32 -1.442695, %v8916_v2 }
 0x212   : > { %v1414_v31 = vsel %vm1411_vm4, %v1413_v23, %v1409_v27  ;;  %v1375_v35 = vadd.f32 %v7242_v16, %v1374_v32  ;;  %v6632_v23 = vmul.f32 -1.442695, %v8927_v18  ;;  %v1172_v32 = vld [vmem:[#allocation2 + $0x20] sm:$0xff]  ;;  %v1227_v33 = vpop.permute.xlu0 %1226 }
 0x213   : > { %v8895_v34 = vmul.f32 %v1414_v31, %v8872_v46  ;;  %v7244_v46 = vpop.eup %7243 }
 0x214   : > { %v1379_v42 = vsel %vm1378_vm7, %v7242_v16, %v1375_v35  ;;  %v7246_v49 = vpop.eup %7245  ;;  %v1124_v50 = vmul.f32 %v7244_v46, %v999_v29  ;;  %vm1130_vm10 = vweird.f32 %v7244_v46  ;;  %v1266_v16 = vmul.f32 %v1217_v12, %v1170_v10 }
 0x215   : > { %1618 = vadd.xlane.f32.xlu2 %v8895_v34  ;;  %v1384_v44 = vsel %vm1381_vm8, %v1383_v39, %v1379_v42  ;;  %v1144_v54 = vmul.f32 %v7246_v49, %v8891_v30  ;;  %vm1131_vm11 = vmor %vm1129_vm9, %vm1130_vm10  ;;  %v7248_v8 = vpop.eup %7247  ;;  %vm1150_vm13 = vweird.f32 %v7246_v49  ;;  %v1670_v14 = vmul.f32 %v8895_v34, %v8895_v34  ;;  %v1247_v20 = vpop.permute.xlu1 %1246 }
 0x216   : > { %v8901_v48 = vmul.f32 %v1384_v44, %v8875_v47  ;;  %v1125_v37 = vmul.f32 %v7244_v46, %v1124_v50  ;;  %v986_v47 = vld [vmem:[#allocation3 + $0x78] sm:$0xff]  ;;  %vm1151_vm14 = vmor %vm1149_vm12, %vm1150_vm13  ;;  %v8923_v17 = vadd.f32 1.0, %v7248_v8  ;;  %v8930_v11 = vadd.f32 %v8864_v26, %v1266_v16  ;;  %v1237_v50 = vpop.permute.xlu2 %1236 }
 0x217   : > { %v1145_v60 = vmul.f32 %v7246_v49, %v1144_v54  ;;  %v8911_v62 = vmax.f32 %v986_v47, 1e-24  ;;  %v8938_v30 = vadd.f32 %v8864_v26, %v1267_v25  ;;  %v1268_v42 = vmul.f32 %v1227_v33, %v1172_v32  ;;  %v1173_v47 = vld [vmem:[#allocation2 + $0x10] sm:$0xff] }
 0x218   : > { %1614 = vadd.xlane.f32.xlu1 %v8901_v48  ;;  %v1126_v57 = vmul.f32 0.5, %v1125_v37  ;;  %v1668_v0 = vmul.f32 %v8901_v48, %v8901_v48  ;;  %v6633_v27 = vmul.f32 -1.442695, %v8930_v11  ;;  %vm1421_vm2 = vweird.f32 %v8923_v17 }
 0x219   : > { %v1146_v53 = vmul.f32 0.5, %v1145_v60  ;;  %7249 = vrsqrt.f32 %v8911_v62  ;;  %v6634_v39 = vmul.f32 -1.442695, %v8938_v30  ;;  %vm1159_vm15 = vweird.f32 %v8911_v62 }
 0x21a   : > { %v1127_v38 = vsub.f32 1.5, %v1126_v57  ;;  %7251 = vpow2.f32 %v6631_v7  ;;  %v8956_v55 = vadd.f32 %v8864_v26, %v1268_v42  ;;  %v1425_v3 = vand.u32 2147483647, %v8923_v17 }
 0x21b   : > { %v1147_v4 = vsub.f32 1.5, %v1146_v53  ;;  %7253 = vrcp.f32 %v8923_v17 }
 0x21c   : > { %v1128_v63 = vmul.f32 %v7244_v46, %v1127_v38  ;;  %7255 = vpow2.f32 %v6632_v23  ;;  %vm1426_vm5 = vcmp.eq.f32.partialorder %v1425_v3, 8.507059e+37 }
 0x21d   : > { %1683 = vadd.xlane.f32.xlu2 %v1667_v51  ;;  %v1148_v15 = vmul.f32 %v7246_v49, %v1147_v4  ;;  %7257 = vpow2.f32 %v6633_v27 }
 0x21e   : > { %v1132_v1 = vsel %vm1131_vm11, %v7244_v46, %v1128_v63  ;;  %v1269_v63 = vmul.f32 %v1232_v58, %v1173_v47 }
 0x21f   : > { %v7250_v13 = vpop.eup %7249  ;;  %v1152_v6 = vsel %vm1151_vm14, %v7246_v49, %v1148_v15  ;;  %v1174_v49 = vld [vmem:[#allocation2 + $0x38] sm:$0xff] }
 0x220   : > { %v1154_v43 = vmul.f32 %v7250_v13, %v8911_v62  ;;  %v7252_v5 = vpop.eup %7251  ;;  %vm1160_vm0 = vweird.f32 %v7250_v13  ;;  %v1270_v59 = vmul.f32 %v1237_v50, %v1174_v49  ;;  %v8983_v10 = vadd.f32 %v8864_v26, %v1269_v63 }
 0x221   : > { %v8935_v28 = vadd.f32 1.0, %v7252_v5  ;;  %v8940_v31 = vpop.eup %7253  ;;  %vm8947_vm1 = vmor %vm1159_vm15, %vm1160_vm0 }
 0x222   : > { %1241 = vperm.xlu0 %7198, %v1132_v1   ;;  %v1155_v22 = vmul.f32 %v7250_v13, %v1154_v43  ;;  %v1417_v36 = vmul.f32 %v8940_v31, %v8923_v17  ;;  %v7256_v40 = vpop.eup %7255  ;;  %vm1422_vm3 = vweird.f32 %v8940_v31  ;;  %v1427_v1 = vand.u32 2147483648, %v8923_v17  ;;  %v1176_v43 = vld [vmem:[#allocation2 + $0x70] sm:$0xff] }
 0x223   : > { %7259 = vrcp.f32 %v8935_v28  ;;  %v7258_v45 = vpop.eup %7257  ;;  %v8953_v54 = vadd.f32 1.0, %v7256_v40  ;;  %v8972_v53 = vadd.f32 %v8864_v26, %v1270_v59  ;;  %vm8976_vm4 = vmor %vm1421_vm2, %vm1422_vm3  ;;  %vm1436_vm6 = vweird.f32 %v8935_v28 }
 0x224   : > { %v1156_v29 = vmul.f32 0.5, %v1155_v22  ;;  %v1418_v46 = vsub.f32 1.0, %v1417_v36  ;;  %7261 = vpow2.f32 %v6634_v39  ;;  %v8958_v57 = vadd.f32 1.0, %v7258_v45 }
 0x225   : > { %1685 = vadd.xlane.f32.xlu2 %v1668_v0  ;;  %7263 = vrcp.f32 %v8953_v54  ;;  %v6635_v0 = vmul.f32 -1.442695, %v8956_v55  ;;  %v6637_v41 = vmul.f32 -1.442695, %v8972_v53  ;;  %v6636_v17 = vmul.f32 -1.442695, %v8983_v10 }
 0x226   : > { %v1157_v35 = vsub.f32 1.5, %v1156_v29  ;;  %v1419_v60 = vmul.f32 %v8940_v31, %v1418_v46  ;;  %7265 = vrcp.f32 %v8958_v57  ;;  %v1442_v5 = vand.u32 2147483648, %v8935_v28 }
 0x227   : > { %7267 = vpow2.f32 %v6635_v0  ;;  %v1440_v27 = vand.u32 2147483647, %v8935_v28  ;;  %v1272_v32 = vmul.f32 %v1247_v20, %v1176_v43  ;;  %v1457_v63 = vand.u32 2147483648, %v8953_v54 }
 0x228   : > { %v1158_v44 = vmul.f32 %v7250_v13, %v1157_v35  ;;  %v1420_v56 = vadd.f32 %v8940_v31, %v1419_v60  ;;  %v1443_v39 = vor.u32 1.1754944e-38, %v1442_v5  ;;  %vm1451_vm11 = vweird.f32 %v8953_v54 }
 0x229   : > { %v8951_v37 = vpop.eup %7259  ;;  %vm1441_vm9 = vcmp.eq.f32.partialorder %v1440_v27, 8.507059e+37  ;;  %v9024_v45 = vadd.f32 %v8864_v26, %v1272_v32  ;;  %vm1466_vm14 = vweird.f32 %v8958_v57 }
 0x22a   : > { %v1162_v38 = vsel %vm8947_vm1, %v7250_v13, %v1158_v44  ;;  %v1432_v61 = vmul.f32 %v8951_v37, %v8935_v28  ;;  %v7262_v62 = vpop.eup %7261  ;;  %v1428_v13 = vor.u32 1.1754944e-38, %v1427_v1  ;;  %vm1437_vm7 = vweird.f32 %v8951_v37 }
 0x22b   : > { %v8980_v8 = vadd.f32 1.0, %v7262_v62  ;;  %v8985_v12 = vpop.eup %7263  ;;  %vm9009_vm8 = vmor %vm1436_vm6, %vm1437_vm7  ;;  %v6639_v58 = vmul.f32 -1.442695, %v9024_v45  ;;  %v1455_v62 = vand.u32 2147483647, %v8953_v54 }
 0x22c   : > { %v1433_v4 = vsub.f32 1.0, %v1432_v61  ;;  %v8992_v16 = vpop.eup %7265  ;;  %v1447_v21 = vmul.f32 %v8985_v12, %v8953_v54  ;;  %vm1452_vm10 = vweird.f32 %v8985_v12 }
 0x22d   : > { %1689 = vadd.xlane.f32.xlu2 %v1670_v14  ;;  %v1424_v14 = vsel %vm8976_vm4, %v8940_v31, %v1420_v56  ;;  %7269 = vrcp.f32 %v8980_v8  ;;  %v7268_v23 = vpop.eup %7267  ;;  %v1462_v29 = vmul.f32 %v8992_v16, %v8958_v57  ;;  %vm1467_vm12 = vweird.f32 %v8992_v16  ;;  %vm9051_vm13 = vmor %vm1451_vm11, %vm1452_vm10 }
 0x22e   : > { %v1434_v15 = vmul.f32 %v8951_v37, %v1433_v4  ;;  %v1429_v22 = vsel %vm1426_vm5, %v1428_v13, %v1424_v14  ;;  %7271 = vpow2.f32 %v6637_v41  ;;  %v1448_v35 = vsub.f32 1.0, %v1447_v21  ;;  %vm1468_vm0 = vmor %vm1466_vm14, %vm1467_vm12 }
 0x22f   : > { %v9014_v33 = vmul.f32 %v1429_v22, %v8907_v52  ;;  %7273 = vpow2.f32 %v6636_v17  ;;  %v9018_v40 = vadd.f32 1.0, %v7268_v23  ;;  %v1463_v28 = vsub.f32 1.0, %v1462_v29 }
 0x230   : > { %v1435_v25 = vadd.f32 %v8951_v37, %v1434_v15  ;;  %v1449_v46 = vmul.f32 %v8985_v12, %v1448_v35  ;;  %v1472_v56 = vand.u32 2147483648, %v8958_v57  ;;  %v1470_v4 = vand.u32 2147483647, %v8958_v57 }
 0x231   : > { %1251 = vperm.xlu1 %7199, %v1152_v6   ;;  %v1669_v6 = vmul.f32 %v8882_v9, %v8882_v9  ;;  %v1671_v52 = vmul.f32 %v9014_v33, %v9014_v33  ;;  %7275 = vrcp.f32 %v9018_v40  ;;  %vm1456_vm15 = vcmp.eq.f32.partialorder %v1455_v62, 8.507059e+37 }
 0x232   : > { %v1439_v42 = vsel %vm9009_vm8, %v8951_v37, %v1435_v25  ;;  %v1464_v37 = vmul.f32 %v8992_v16, %v1463_v28  ;;  %v1458_v13 = vor.u32 1.1754944e-38, %v1457_v63  ;;  %vm1481_vm1 = vweird.f32 %v8980_v8 }
 0x233   : > { %v9016_v36 = vpop.eup %7269  ;;  %v1444_v50 = vsel %vm1441_vm9, %v1443_v39, %v1439_v42  ;;  %v1473_v15 = vor.u32 1.1754944e-38, %v1472_v56  ;;  %v1487_v57 = vand.u32 2147483648, %v8980_v8  ;;  %vm1471_vm3 = vcmp.eq.f32.partialorder %v1470_v4, 8.507059e+37 }
 0x234   : > { %v7272_v44 = vpop.eup %7271  ;;  %v1477_v49 = vmul.f32 %v9016_v36, %v8980_v8  ;;  %v9037_v59 = vmul.f32 %v1444_v50, %v8916_v2  ;;  %v1465_v0 = vadd.f32 %v8992_v16, %v1464_v37  ;;  %vm1482_vm2 = vweird.f32 %v9016_v36 }
 0x235   : > { %v7274_v51 = vpop.eup %7273  ;;  %v9032_v47 = vadd.f32 1.0, %v7272_v44  ;;  %v1485_v20 = vand.u32 2147483647, %v8980_v8  ;;  %vm1483_vm4 = vmor %vm1481_vm1, %vm1482_vm2  ;;  %v1488_v23 = vor.u32 1.1754944e-38, %v1487_v57  ;;  %v1502_v42 = vand.u32 2147483648, %v9018_v40 }
 0x236   : > { %v1478_v60 = vsub.f32 1.0, %v1477_v49  ;;  %v9041_v61 = vadd.f32 1.0, %v7274_v51  ;;  %v1672_v54 = vmul.f32 %v9037_v59, %v9037_v59  ;;  %v1469_v41 = vsel %vm1468_vm0, %v8992_v16, %v1465_v0 }
 0x237   : > { %7277 = vrcp.f32 %v9032_v47  ;;  %v9049_v2 = vpop.eup %7275  ;;  %v1474_v16 = vsel %vm1471_vm3, %v1473_v15, %v1469_v41  ;;  %vm1486_vm5 = vcmp.eq.f32.partialorder %v1485_v20, 8.507059e+37  ;;  %vm1496_vm7 = vweird.f32 %v9018_v40 }
 0x238   : > { %7279 = vpow2.f32 %v6639_v58  ;;  %v1479_v7 = vmul.f32 %v9016_v36, %v1478_v60  ;;  %v1492_v14 = vmul.f32 %v9049_v2, %v9018_v40  ;;  %v9083_v25 = vmul.f32 %v1474_v16, %v8930_v11 }
 0x239   : > { %7281 = vrcp.f32 %v9041_v61  ;;  %vm1497_vm6 = vweird.f32 %v9049_v2  ;;  %v1500_v44 = vand.u32 2147483647, %v9018_v40  ;;  %v1503_v49 = vor.u32 1.1754944e-38, %v1502_v42  ;;  %v6926_v42 = vld [vmem:[#allocation10 + $0x30] sm:$0xff] }
 0x23a   : > { %v1480_v43 = vadd.f32 %v9016_v36, %v1479_v7  ;;  %v1493_v22 = vsub.f32 1.0, %v1492_v14  ;;  %v1674_v28 = vmul.f32 %v9083_v25, %v9083_v25  ;;  %vm1498_vm8 = vmor %vm1496_vm7, %vm1497_vm6  ;;  %vm1526_vm9 = vweird.f32 %v9032_v47 }
 0x23b   : > { %vm1501_vm11 = vcmp.eq.f32.partialorder %v1500_v44, 8.507059e+37  ;;  %v1532_v50 = vand.u32 2147483648, %v9032_v47  ;;  %v8313_v51 = vmov 128.0   ;;  %vm1511_vm14 = vweird.f32 %v9041_v61 }
 0x23c   : > { %v1484_v27 = vsel %vm1483_vm4, %v9016_v36, %v1480_v43  ;;  %v1515_v1 = vand.u32 2147483647, %v9041_v61 }
 0x23d   : > { %v9072_v17 = vpop.eup %7277  ;;  %v1489_v32 = vsel %vm1486_vm5, %v1488_v23, %v1484_v27  ;;  %v1533_v56 = vor.u32 1.1754944e-38, %v1532_v50  ;;  %v1175_v50 = vld [vmem:[#allocation2 + $0x60] sm:$0xff] }
 0x23e   : > { %v1522_v8 = vmul.f32 %v9072_v17, %v9032_v47  ;;  %v9095_v11 = vmul.f32 %v1489_v32, %v8938_v30  ;;  %vm1527_vm10 = vweird.f32 %v9072_v17  ;;  %vm1516_vm1 = vcmp.eq.f32.partialorder %v1515_v1, 8.507059e+37 }
 0x240   : > { %v1523_v35 = vsub.f32 1.0, %v1522_v8  ;;  %v1675_v0 = vmul.f32 %v9095_v11, %v9095_v11 }
 0x242   : > { %v1524_v30 = vmul.f32 %v9072_v17, %v1523_v35 }
 0x244   : > { %v1525_v58 = vadd.f32 %v9072_v17, %v1524_v30 }
 0x245   : > { %1256 = vperm.xlu2 %7200, %v1162_v38   ;;  %v1450_v38 = vadd.f32 %v8985_v12, %v1449_v46 }
 0x247   : > { %v1454_v3 = vsel %vm9051_vm13, %v8985_v12, %v1450_v38  ;;  %v1530_v38 = vand.u32 2147483647, %v9032_v47  ;;  %vm9119_vm13 = vmor %vm1526_vm9, %vm1527_vm10 }
 0x248   : > { %v1459_v12 = vsel %vm1456_vm15, %v1458_v13, %v1454_v3  ;;  %v1529_v3 = vsel %vm9119_vm13, %v9072_v17, %v1525_v58 }
 0x249   : > { %v9077_v21 = vmul.f32 %v1459_v12, %v8927_v18  ;;  %v1494_v18 = vmul.f32 %v9049_v2, %v1493_v22  ;;  %vm1531_vm0 = vcmp.eq.f32.partialorder %v1530_v38, 8.507059e+37 }
 0x24b   : > { %v1495_v36 = vadd.f32 %v9049_v2, %v1494_v18  ;;  %v1673_v60 = vmul.f32 %v9077_v21, %v9077_v21 }
 0x24c   : > { %1687 = vadd.xlane.f32.xlu0 %v1669_v6  ;;  %v7280_v6 = vpop.eup %7279 }
 0x24d   : > { %v9079_v5 = vpop.eup %7281  ;;  %v9092_v31 = vadd.f32 1.0, %v7280_v6 }
 0x24e   : > { %v1507_v29 = vmul.f32 %v9079_v5, %v9041_v61  ;;  %vm1512_vm12 = vweird.f32 %v9079_v5 }
 0x24f   : > { %7283 = vrcp.f32 %v9092_v31  ;;  %vm1513_vm15 = vmor %vm1511_vm14, %vm1512_vm12  ;;  %v1562_v22 = vand.u32 2147483648, %v9092_v31  ;;  %vm1556_vm3 = vweird.f32 %v9092_v31 }
 0x250   : > { %v1508_v39 = vsub.f32 1.0, %v1507_v29  ;;  %7285 = vrcp.f32 %v8313_v51  ;;  %v6925_v51 = vld [vmem:[#allocation10 + $0x28] sm:$0xff] }
 0x251   : > { %v1563_v8 = vor.u32 1.1754944e-38, %v1562_v22 }
 0x252   : > { %v1509_v46 = vmul.f32 %v9079_v5, %v1508_v39 }
 0x254   : > { %1691 = vadd.xlane.f32.xlu0 %v1671_v52  ;;  %v1499_v52 = vsel %vm1498_vm8, %v9049_v2, %v1495_v36  ;;  %v1510_v62 = vadd.f32 %v9079_v5, %v1509_v46  ;;  %v1517_v2 = vand.u32 2147483648, %v9041_v61 }
 0x255   : > { %v7284_v40 = vpop.eup %7283  ;;  %v1504_v37 = vsel %vm1501_vm11, %v1503_v49, %v1499_v52 }
 0x256   : > { %v9128_v47 = vmul.f32 %v1504_v37, %v8956_v55  ;;  %v7286_v4 = vpop.eup %7285  ;;  %v1514_v7 = vsel %vm1513_vm15, %v9079_v5, %v1510_v62  ;;  %v1518_v13 = vor.u32 1.1754944e-38, %v1517_v2  ;;  %v1534_v55 = vsel %vm1531_vm0, %v1533_v56, %v1529_v3  ;;  %v6924_v37 = vld [vmem:[#allocation10 + $0x20] sm:$0xff]  ;;  %v6923_v2 = vld [vmem:[#allocation10 + $0x18] sm:$0xff] }
 0x257   : > { %v1645_v14 = vmul.f32 128.0, %v7286_v4  ;;  %v9140_v15 = vmul.f32 %v1534_v55, %v8972_v53  ;;  %vm1557_vm2 = vweird.f32 %v7284_v40  ;;  %vm1649_vm5 = vweird.f32 %v7286_v4 }
 0x258   : > { %v1519_v61 = vsel %vm1516_vm1, %v1518_v13, %v1514_v7  ;;  %v1676_v12 = vmul.f32 %v9128_v47, %v9128_v47  ;;  %vm1558_vm4 = vmor %vm1556_vm3, %vm1557_vm2 }
 0x259   : > { %v9143_v57 = vmul.f32 %v1519_v61, %v8983_v10  ;;  %v1646_v43 = vsub.f32 1.0, %v1645_v14  ;;  %v1560_v10 = vand.u32 2147483647, %v9092_v31  ;;  %v1678_v5 = vmul.f32 %v9140_v15, %v9140_v15  ;;  %v6921_v61 = vld [vmem:[#allocation10 + $0x8] sm:$0xff] }
 0x25b   : > { %1620 = vadd.xlane.f32.xlu1 %v9014_v33  ;;  %v1647_v16 = vmul.f32 %v7286_v4, %v1646_v43  ;;  %v1677_v53 = vmul.f32 %v9143_v57, %v9143_v57  ;;  %vm1561_vm6 = vcmp.eq.f32.partialorder %v1560_v10, 8.507059e+37 }
 0x25c   : > { %1693 = vadd.xlane.f32.xlu0 %v1672_v54  ;;  %v1552_v54 = vmul.f32 %v7284_v40, %v9092_v31  ;;  %v6927_v31 = vld [vmem:[#allocation10 + $0x38] sm:$0xff] }
 0x25d   : > { %v1648_v27 = vadd.f32 %v7286_v4, %v1647_v16  ;;  %2094 = vmatpush.bf16.msra.mxu0 %v6927_v31  ;;  %6993 = vmatpush.bf16.msra.mxu2 %v6927_v31 }
 0x25e   : > { %v1553_v41 = vsub.f32 1.0, %v1552_v54 }
 0x25f   : > { %v9158_v32 = vsel %vm1649_vm5, %v7286_v4, %v1648_v27  ;;  %v6922_v4 = vld [vmem:[#allocation10 + $0x10] sm:$0xff] }
 0x260   : > { %v1554_v17 = vmul.f32 %v7284_v40, %v1553_v41  ;;  %v1177_v41 = vld [vmem:[#allocation2 + $0x78] sm:$0xff] }
 0x261   : > { %2095 = vmatpush.bf16.msra.mxu0 %v6926_v42  ;;  %6994 = vmatpush.bf16.msra.mxu2 %v6926_v42 }
 0x262   : > { %v1555_v6 = vadd.f32 %v7284_v40, %v1554_v17 }
 0x263   : > { %1624 = vadd.xlane.f32.xlu1 %v9077_v21 }
 0x264   : > { %1626 = vadd.xlane.f32.xlu0 %v9083_v25  ;;  %v1559_v23 = vsel %vm1558_vm4, %v7284_v40, %v1555_v6 }
 0x265   : > { %v1564_v29 = vsel %vm1561_vm6, %v1563_v8, %v1559_v23  ;;  %2096 = vmatpush.bf16.msra.mxu0 %v6925_v51  ;;  %6995 = vmatpush.bf16.msra.mxu2 %v6925_v51 }
 0x266   : > { %v9161_v36 = vmul.f32 %v1564_v29, %v9024_v45 }
 0x269   : > { %2097 = vmatpush.bf16.msra.mxu0 %v6924_v37  ;;  %6996 = vmatpush.bf16.msra.mxu2 %v6924_v37  ;;  %v9207_v37 = vperm.slane %v8861_v24, 5 }
 0x26b   : > { %1628 = vadd.xlane.f32.xlu1 %v9095_v11 }
 0x26c   : > { %1697 = vadd.xlane.f32.xlu0 %v1674_v28 }
 0x26d   : > { %2098 = vmatpush.bf16.msra.mxu0 %v6923_v2  ;;  %6997 = vmatpush.bf16.msra.mxu2 %v6923_v2 }
 0x26e   : > { %1622 = vadd.xlane.f32.xlu2 %v9037_v59 }
 0x271   : > { %2099 = vmatpush.bf16.msra.mxu0 %v6922_v4  ;;  %6998 = vmatpush.bf16.msra.mxu2 %v6922_v4 }
 0x273   : > { %1695 = vadd.xlane.f32.xlu1 %v1673_v60 }
 0x274   : > { %1630 = vadd.xlane.f32.xlu0 %v9128_v47 }
 0x275   : > { %2100 = vmatpush.bf16.msra.mxu0 %v6921_v61  ;;  %6999 = vmatpush.bf16.msra.mxu2 %v6921_v61 }
 0x276   : > { %1699 = vadd.xlane.f32.xlu2 %v1675_v0 }
 0x27b   : > { %1701 = vadd.xlane.f32.xlu1 %v1676_v12 }
 0x27c   : > { %1632 = vadd.xlane.f32.xlu0 %v9143_v57 }
 0x27e   : > { %1634 = vadd.xlane.f32.xlu2 %v9140_v15 }
 0x280   : > { %v9146_v20 = vpop.xlane.xlu2 %1616 }
 0x281   : > { %v1613_v35 = vpop.xlane.xlu0 %1612 }
 0x282   : > { %v9164_v39 = vmul.f32 %v9158_v32, %v1613_v35 }
 0x283   : > { %1703 = vadd.xlane.f32.xlu1 %v1677_v53  ;;  %v1178_v53 = vld [vmem:[#allocation2 + $0x28] sm:$0xff] }
 0x284   : > { %1705 = vadd.xlane.f32.xlu0 %v1678_v5  ;;  %v1747_v44 = vmul.f32 %v9164_v39, %v9164_v39  ;;  %v6920_v5 = vld [vmem:[#allocation10] sm:$0xff] }
 0x285   : > { %2101 = vmatpush.bf16.msra.mxu0 %v6920_v5  ;;  %7000 = vmatpush.bf16.msra.mxu2 %v6920_v5  ;;  %v9240_v5 = vmul.f32 %v9158_v32, %v9146_v20 }
 0x288   : > { %v9156_v18 = vpop.xlane.xlu2 %1618 }
 0x289   : > { %v9188_v29 = vmul.f32 %v9158_v32, %v9156_v18 }
 0x28b   : > { %1638 = vadd.xlane.f32.xlu1 %v9161_v36  ;;  %v1615_v52 = vpop.xlane.xlu1 %1614 }
 0x28c   : > { %v9171_v46 = vmul.f32 %v9158_v32, %v1615_v52 }
 0x28e   : > { %v1748_v60 = vmul.f32 %v9171_v46, %v9171_v46 }
 0x290   : > { %v1684_v28 = vpop.xlane.xlu2 %1683 }
 0x291   : > { %v1715_v30 = vmul.f32 %v1684_v28, %v9158_v32 }
 0x293   : > { %v1763_v45 = vsub.f32 %v1715_v30, %v1747_v44  ;;  %v1731_v30 = vsub.f32 %v8886_v19, %v9164_v39 }
 0x294   : > { %v1242_v40 = vpop.permute.xlu0 %1241 }
 0x295   : > { %v1779_v49 = vadd.f32 0.1, %v1763_v45  ;;  %v1271_v58 = vmul.f32 %v1242_v40, %v1175_v50  ;;  %v1750_v50 = vmul.f32 %v9188_v29, %v9188_v29 }
 0x297   : > { %7287 = vrsqrt.f32 %v1779_v49  ;;  %v9177_v63 = vadd.f32 %v8864_v26, %v1271_v58  ;;  %vm1801_vm8 = vweird.f32 %v1779_v49  ;;  %v1732_v58 = vsub.f32 %v8901_v48, %v9171_v46 }
 0x298   : > { %v1686_v38 = vpop.xlane.xlu2 %1685 }
 0x299   : > { %v1716_v62 = vmul.f32 %v1686_v38, %v9158_v32  ;;  %v6638_v1 = vmul.f32 -1.442695, %v9177_v63 }
 0x29b   : > { %v1764_v0 = vsub.f32 %v1716_v62, %v1748_v60  ;;  %7289 = vpow2.f32 %v6638_v1 }
 0x29d   : > { %v7288_v56 = vpop.eup %7287  ;;  %v1780_v54 = vadd.f32 0.1, %v1764_v0 }
 0x29e   : > { %v1796_v3 = vmul.f32 %v7288_v56, %v1779_v49  ;;  %vm1802_vm7 = vweird.f32 %v7288_v56 }
 0x29f   : > { %7291 = vrsqrt.f32 %v1780_v54  ;;  %vm9190_vm9 = vmor %vm1801_vm8, %vm1802_vm7  ;;  %vm1811_vm11 = vweird.f32 %v1780_v54 }
 0x2a0   : > { %v1797_v7 = vmul.f32 %v7288_v56, %v1796_v3  ;;  %v1690_v13 = vpop.xlane.xlu2 %1689 }
 0x2a1   : > { %v7290_v14 = vpop.eup %7289  ;;  %v1718_v52 = vmul.f32 %v1690_v13, %v9158_v32 }
 0x2a2   : > { %v1798_v55 = vmul.f32 0.5, %v1797_v7  ;;  %v9180_v43 = vadd.f32 1.0, %v7290_v14 }
 0x2a3   : > { %v1252_v6 = vpop.permute.xlu1 %1251  ;;  %v1766_v38 = vsub.f32 %v1718_v52, %v1750_v50 }
 0x2a4   : > { %v1799_v12 = vsub.f32 1.5, %v1798_v55  ;;  %v1273_v22 = vmul.f32 %v1252_v6, %v1177_v41  ;;  %7293 = vrcp.f32 %v9180_v43  ;;  %v1547_v0 = vand.u32 2147483648, %v9180_v43 }
 0x2a5   : > { %v7292_v17 = vpop.eup %7291  ;;  %v1545_v3 = vand.u32 2147483647, %v9180_v43  ;;  %v9217_v7 = vadd.f32 0.1, %v1766_v38  ;;  %vm1541_vm14 = vweird.f32 %v9180_v43 }
 0x2a6   : > { %v1806_v16 = vmul.f32 %v7292_v17, %v1780_v54  ;;  %v1800_v10 = vmul.f32 %v7288_v56, %v1799_v12  ;;  %v9184_v27 = vadd.f32 %v8864_v26, %v1273_v22  ;;  %vm1812_vm10 = vweird.f32 %v7292_v17 }
 0x2a7   : > { %vm1813_vm12 = vmor %vm1811_vm11, %vm1812_vm10  ;;  %v1548_v55 = vor.u32 1.1754944e-38, %v1547_v0  ;;  %vm1546_vm0 = vcmp.eq.f32.partialorder %v1545_v3, 8.507059e+37  ;;  %vm1831_vm10 = vweird.f32 %v9217_v7 }
 0x2a8   : > { %v1807_v23 = vmul.f32 %v7292_v17, %v1806_v16  ;;  %v1257_v8 = vpop.permute.xlu2 %1256  ;;  %v6640_v28 = vmul.f32 -1.442695, %v9184_v27  ;;  %v1804_v44 = vsel %vm9190_vm9, %v7288_v56, %v1800_v10 }
 0x2a9   : > { %v1274_v31 = vmul.f32 %v1257_v8, %v1178_v53  ;;  %v1955_v40 = vmul.f32 %v1804_v44, %v1731_v30  ;;  %v1749_v30 = vmul.f32 %v9240_v5, %v9240_v5 }
 0x2aa   : > { %v1808_v42 = vmul.f32 0.5, %v1807_v23  ;;  %7295 = vpow2.f32 %v6640_v28  ;;  %v7294_v49 = vpop.eup %7293 }
 0x2ab   : > { %v9201_v45 = vadd.f32 %v8864_v26, %v1274_v31  ;;  %v1537_v19 = vmul.f32 %v7294_v49, %v9180_v43  ;;  %v968_v26 = vld [vmem:[#allocation18 + $0x8] sm:$0x7f]  ;;  %v1972_v1 = vmul.f32 %v9207_v37, %v1955_v40  ;;  %vm1542_vm13 = vweird.f32 %v7294_v49 }
 0x2ac   : > { %v1809_v18 = vsub.f32 1.5, %v1808_v42  ;;  %v9214_v24 = vperm.slane %v968_v26, 2  ;;  %vm1543_vm15 = vmor %vm1541_vm14, %vm1542_vm13 }
 0x2ad   : > { %v6641_v51 = vmul.f32 -1.442695, %v9201_v45  ;;  %v1538_v60 = vsub.f32 1.0, %v1537_v19 }
 0x2ae   : > { %v1810_v39 = vmul.f32 %v7292_v17, %v1809_v18  ;;  %v9222_v41 = vadd.f32 %v9214_v24, %v1972_v1 }
 0x2af   : > { %7297 = vpow2.f32 %v6641_v51  ;;  %v1539_v54 = vmul.f32 %v7294_v49, %v1538_v60 }
 0x2b0   : > { %v1814_v62 = vsel %vm1813_vm12, %v7292_v17, %v1810_v39  ;;  %v7296_v56 = vpop.eup %7295 }
 0x2b1   : > { %v1956_v2 = vmul.f32 %v1814_v62, %v1732_v58  ;;  %v1354_v4 = vadd.f32 1.0, %v7296_v56  ;;  %v1540_v46 = vadd.f32 %v7294_v49, %v1539_v54 }
 0x2b3   : > { %v1973_v48 = vmul.f32 %v9207_v37, %v1956_v2  ;;  %7299 = vrcp.f32 %v1354_v4  ;;  %v1544_v12 = vsel %vm1543_vm15, %v7294_v49, %v1540_v46  ;;  %v1577_v35 = vand.u32 2147483648, %v1354_v4 }
 0x2b4   : > { %7301 = vrsqrt.f32 %v9217_v7  ;;  %v1549_v17 = vsel %vm1546_vm0, %v1548_v55, %v1544_v12  ;;  %v1575_v44 = vand.u32 2147483647, %v1354_v4  ;;  %vm1571_vm2 = vweird.f32 %v1354_v4 }
 0x2b5   : > { %v7298_v13 = vpop.eup %7297  ;;  %v9225_v61 = vadd.f32 %v9214_v24, %v1973_v48  ;;  %v9231_v43 = vmul.f32 %v1549_v17, %v9177_v63  ;;  %v1680_v63 = vmul.f32 %v9161_v36, %v9161_v36  ;;  %v1578_v49 = vor.u32 1.1754944e-38, %v1577_v35 }
 0x2b6   : > { %v1355_v14 = vadd.f32 1.0, %v7298_v13  ;;  %vm1576_vm5 = vcmp.eq.f32.partialorder %v1575_v44, 8.507059e+37  ;;  %v1733_v44 = vsub.f32 %v8882_v9, %v9240_v5 }
 0x2b7   : > { %v2021_v6 = vpack.c.bf16 %v9225_v61, %v9222_v41  ;;  %1636 = vadd.xlane.f32.xlu2 %v9231_v43  ;;  %v1679_v16 = vmul.f32 %v9231_v43, %v9231_v43 }
 0x2b8   : > { %7303 = vrcp.f32 %v1355_v14  ;;  %v1592_v50 = vand.u32 2147483648, %v1355_v14  ;;  %v1590_v19 = vand.u32 2147483647, %v1355_v14  ;;  %vm1586_vm6 = vweird.f32 %v1355_v14 }
 0x2b9   : > { %2102 = vmatmul.bf16.vlgmr.msra.gmra.mxu0 %v2021_v6  ;;  %v7300_v22 = vpop.eup %7299  ;;  %1707 = vadd.xlane.f32.xlu0 %v1679_v16 }
 0x2ba   : > { %v1567_v53 = vmul.f32 %v7300_v22, %v1354_v4  ;;  %v9236_v10 = vpop.eup %7301  ;;  %vm1572_vm1 = vweird.f32 %v7300_v22  ;;  %v1593_v0 = vor.u32 1.1754944e-38, %v1592_v50  ;;  %vm1591_vm8 = vcmp.eq.f32.partialorder %v1590_v19, 8.507059e+37 }
 0x2bb   : > { %v1826_v42 = vmul.f32 %v9236_v10, %v9217_v7  ;;  %vm1573_vm3 = vmor %vm1571_vm2, %vm1572_vm1  ;;  %vm1832_vm9 = vweird.f32 %v9236_v10 }
 0x2bc   : > { %v1568_v8 = vsub.f32 1.0, %v1567_v53  ;;  %vm1833_vm11 = vmor %vm1831_vm10, %vm1832_vm9 }
 0x2bd   : > { %v1827_v26 = vmul.f32 %v9236_v10, %v1826_v42 }
 0x2be   : > { %v7304_v23 = vpop.eup %7303  ;;  %v1569_v28 = vmul.f32 %v7300_v22, %v1568_v8  ;;  %v1734_v8 = vsub.f32 %v8895_v34, %v9188_v29 }
 0x2bf   : > { %v1582_v31 = vmul.f32 %v7304_v23, %v1355_v14  ;;  %v1688_v18 = vpop.xlane.xlu0 %1687  ;;  %1709 = vadd.xlane.f32.xlu2 %v1680_v63  ;;  %vm1587_vm4 = vweird.f32 %v7304_v23  ;;  %v1828_v56 = vmul.f32 0.5, %v1827_v26 }
 0x2c0   : > { %v1570_v20 = vadd.f32 %v7300_v22, %v1569_v28  ;;  %v1717_v51 = vmul.f32 %v1688_v18, %v9158_v32  ;;  %vm1588_vm7 = vmor %vm1586_vm6, %vm1587_vm4 }
 0x2c1   : > { %v1583_v52 = vsub.f32 1.0, %v1582_v31 }
 0x2c2   : > { %v1574_v39 = vsel %vm1573_vm3, %v7300_v22, %v1570_v20  ;;  %v1765_v58 = vsub.f32 %v1717_v51, %v1749_v30 }
 0x2c3   : > { %v1584_v40 = vmul.f32 %v7304_v23, %v1583_v52  ;;  %v1579_v38 = vsel %vm1576_vm5, %v1578_v49, %v1574_v39 }
 0x2c4   : > { %v9251_v62 = vmul.f32 %v1579_v38, %v9184_v27  ;;  %v1781_v2 = vadd.f32 0.1, %v1765_v58  ;;  %v1829_v27 = vsub.f32 1.5, %v1828_v56 }
 0x2c5   : > { %v1585_v60 = vadd.f32 %v7304_v23, %v1584_v40 }
 0x2c6   : > { %1640 = vadd.xlane.f32.xlu1 %v9251_v62  ;;  %v1681_v54 = vmul.f32 %v9251_v62, %v9251_v62  ;;  %7305 = vrsqrt.f32 %v1781_v2  ;;  %v1830_v12 = vmul.f32 %v9236_v10, %v1829_v27  ;;  %vm1821_vm13 = vweird.f32 %v1781_v2 }
 0x2c7   : > { %v1589_v1 = vsel %vm1588_vm7, %v7304_v23, %v1585_v60  ;;  %v1692_v48 = vpop.xlane.xlu0 %1691 }
 0x2c8   : > { %v1594_v3 = vsel %vm1591_vm8, %v1593_v0, %v1589_v1  ;;  %1711 = vadd.xlane.f32.xlu2 %v1681_v54  ;;  %v1719_v16 = vmul.f32 %v1692_v48, %v9158_v32  ;;  %v1834_v23 = vsel %vm1833_vm11, %v9236_v10, %v1830_v12 }
 0x2c9   : > { %v9257_v4 = vmul.f32 %v1594_v3, %v9201_v45  ;;  %v1958_v7 = vmul.f32 %v1834_v23, %v1734_v8 }
 0x2cb   : > { %1642 = vadd.xlane.f32.xlu0 %v9257_v4  ;;  %v1682_v46 = vmul.f32 %v9257_v4, %v9257_v4  ;;  %v1975_v34 = vmul.f32 %v9207_v37, %v1958_v7 }
 0x2cc   : > { %v7306_v13 = vpop.eup %7305 }
 0x2cd   : > { %v1816_v55 = vmul.f32 %v7306_v13, %v1781_v2  ;;  %vm1822_vm12 = vweird.f32 %v7306_v13  ;;  %v9290_v9 = vadd.f32 %v9214_v24, %v1975_v34 }
 0x2ce   : > { %v1621_v14 = vpop.xlane.xlu1 %1620  ;;  %1713 = vadd.xlane.f32.xlu1 %v1682_v46  ;;  %vm1823_vm14 = vmor %vm1821_vm13, %vm1822_vm12 }
 0x2cf   : > { %v9265_v17 = vmul.f32 %v9158_v32, %v1621_v14  ;;  %v1817_v45 = vmul.f32 %v7306_v13, %v1816_v55  ;;  %v1694_v6 = vpop.xlane.xlu0 %1693 }
 0x2d0   : > { %v1720_v38 = vmul.f32 %v1694_v6, %v9158_v32 }
 0x2d1   : > { %v1751_v22 = vmul.f32 %v9265_v17, %v9265_v17  ;;  %v1818_v53 = vmul.f32 0.5, %v1817_v45 }
 0x2d3   : > { %v1767_v35 = vsub.f32 %v1719_v16, %v1751_v22  ;;  %v1819_v63 = vsub.f32 1.5, %v1818_v53 }
 0x2d5   : > { %v9274_v31 = vadd.f32 0.1, %v1767_v35  ;;  %v1820_v28 = vmul.f32 %v7306_v13, %v1819_v63 }
 0x2d6   : > { %v1625_v42 = vpop.xlane.xlu1 %1624 }
 0x2d7   : > { %7307 = vrsqrt.f32 %v9274_v31  ;;  %v1627_v30 = vpop.xlane.xlu0 %1626  ;;  %v1824_v10 = vsel %vm1823_vm14, %v7306_v13, %v1820_v28  ;;  %v9307_v2 = vmul.f32 %v9158_v32, %v1625_v42  ;;  %vm1841_vm0 = vweird.f32 %v9274_v31 }
 0x2d8   : > { %v1957_v52 = vmul.f32 %v1824_v10, %v1733_v44  ;;  %v9284_v20 = vmul.f32 %v9158_v32, %v1627_v30 }
 0x2d9   : > { %v1753_v13 = vmul.f32 %v9307_v2, %v9307_v2 }
 0x2da   : > { %v1974_v29 = vmul.f32 %v9207_v37, %v1957_v52  ;;  %v1754_v39 = vmul.f32 %v9284_v20, %v9284_v20 }
 0x2dc   : > { %v9287_v49 = vadd.f32 %v9214_v24, %v1974_v29 }
 0x2dd   : > { %v9281_v18 = vpop.eup %7307 }
 0x2de   : > { %v1629_v5 = vpop.xlane.xlu1 %1628  ;;  %v1836_v50 = vmul.f32 %v9281_v18, %v9274_v31  ;;  %v2022_v51 = vpack.c.bf16 %v9290_v9, %v9287_v49  ;;  %vm1842_vm15 = vweird.f32 %v9281_v18  ;;  %v1735_v31 = vsub.f32 %v9014_v33, %v9265_v17 }
 0x2df   : > { %v1698_v19 = vpop.xlane.xlu0 %1697  ;;  %v9310_v56 = vmul.f32 %v9158_v32, %v1629_v5  ;;  %vm1843_vm1 = vmor %vm1841_vm0, %vm1842_vm15 }
 0x2e0   : > { %v1722_v58 = vmul.f32 %v1698_v19, %v9158_v32  ;;  %2107 = vmatmul.bf16.gmra.mxu0 %v2022_v51  ;;  %v1837_v0 = vmul.f32 %v9281_v18, %v1836_v50 }
 0x2e1   : > { %v1623_v40 = vpop.xlane.xlu2 %1622  ;;  %v1755_v12 = vmul.f32 %v9310_v56, %v9310_v56 }
 0x2e2   : > { %v9297_v26 = vmul.f32 %v9158_v32, %v1623_v40  ;;  %v1770_v1 = vsub.f32 %v1722_v58, %v1754_v39  ;;  %v1838_v46 = vmul.f32 0.5, %v1837_v0 }
 0x2e4   : > { %v1752_v60 = vmul.f32 %v9297_v26, %v9297_v26  ;;  %v9312_v3 = vadd.f32 0.1, %v1770_v1  ;;  %v1839_v53 = vsub.f32 1.5, %v1838_v46 }
 0x2e6   : > { %v1768_v54 = vsub.f32 %v1720_v38, %v1752_v60  ;;  %v1696_v27 = vpop.xlane.xlu1 %1695  ;;  %7309 = vrsqrt.f32 %v9312_v3  ;;  %v1840_v44 = vmul.f32 %v9281_v18, %v1839_v53  ;;  %vm1871_vm12 = vweird.f32 %v9312_v3 }
 0x2e7   : > { %v1721_v55 = vmul.f32 %v1696_v27, %v9158_v32  ;;  %v1631_v45 = vpop.xlane.xlu0 %1630 }
 0x2e8   : > { %v1784_v48 = vadd.f32 0.1, %v1768_v54  ;;  %v9324_v8 = vmul.f32 %v9158_v32, %v1631_v45  ;;  %v1844_v19 = vsel %vm1843_vm1, %v9281_v18, %v1840_v44  ;;  %v1736_v45 = vsub.f32 %v9037_v59, %v9297_v26 }
 0x2e9   : > { %v1700_v14 = vpop.xlane.xlu2 %1699  ;;  %v1769_v16 = vsub.f32 %v1721_v55, %v1753_v13  ;;  %v1959_v27 = vmul.f32 %v1844_v19, %v1735_v31 }
 0x2ea   : > { %7311 = vrsqrt.f32 %v1784_v48  ;;  %v1723_v6 = vmul.f32 %v1700_v14, %v9158_v32  ;;  %v1756_v10 = vmul.f32 %v9324_v8, %v9324_v8  ;;  %vm1851_vm3 = vweird.f32 %v1784_v48 }
 0x2eb   : > { %v9321_v23 = vadd.f32 0.1, %v1769_v16 }
 0x2ec   : > { %v1771_v22 = vsub.f32 %v1723_v6, %v1755_v12  ;;  %v9328_v63 = vpop.eup %7309 }
 0x2ed   : > { %7313 = vrsqrt.f32 %v9321_v23  ;;  %v1866_v42 = vmul.f32 %v9328_v63, %v9312_v3  ;;  %vm1872_vm8 = vweird.f32 %v9328_v63  ;;  %vm1861_vm9 = vweird.f32 %v9321_v23 }
 0x2ee   : > { %v9326_v35 = vadd.f32 0.1, %v1771_v22  ;;  %v1702_v28 = vpop.xlane.xlu1 %1701  ;;  %vm9414_vm13 = vmor %vm1871_vm12, %vm1872_vm8 }
 0x2ef   : > { %v1724_v52 = vmul.f32 %v1702_v28, %v9158_v32  ;;  %v1633_v34 = vpop.xlane.xlu0 %1632  ;;  %v1867_v51 = vmul.f32 %v9328_v63, %v1866_v42 }
 0x2f0   : > { %v7312_v7 = vpop.eup %7311  ;;  %7315 = vrsqrt.f32 %v9326_v35  ;;  %v9347_v38 = vmul.f32 %v9158_v32, %v1633_v34  ;;  %vm1881_vm7 = vweird.f32 %v9326_v35 }
 0x2f1   : > { %v1846_v30 = vmul.f32 %v7312_v7, %v1784_v48  ;;  %v1772_v5 = vsub.f32 %v1724_v52, %v1756_v10  ;;  %v1635_v50 = vpop.xlane.xlu2 %1634  ;;  %vm1852_vm2 = vweird.f32 %v7312_v7  ;;  %v1868_v46 = vmul.f32 0.5, %v1867_v51 }
 0x2f2   : > { %v9356_v1 = vmul.f32 %v9158_v32, %v1635_v50  ;;  %v1757_v14 = vmul.f32 %v9347_v38, %v9347_v38  ;;  %vm1853_vm4 = vmor %vm1851_vm3, %vm1852_vm2  ;;  %v1976_v10 = vmul.f32 %v9207_v37, %v1959_v27 }
 0x2f3   : > { %v1847_v29 = vmul.f32 %v7312_v7, %v1846_v30  ;;  %v9341_v40 = vpop.eup %7313  ;;  %v9344_v58 = vadd.f32 0.1, %v1772_v5  ;;  %v1869_v34 = vsub.f32 1.5, %v1868_v46 }
 0x2f4   : > { %v1856_v0 = vmul.f32 %v9341_v40, %v9321_v23  ;;  %v1758_v16 = vmul.f32 %v9356_v1, %v9356_v1  ;;  %vm1862_vm5 = vweird.f32 %v9341_v40  ;;  %v9383_v31 = vadd.f32 %v9214_v24, %v1976_v10 }
 0x2f5   : > { %v1848_v39 = vmul.f32 0.5, %v1847_v29  ;;  %7317 = vrsqrt.f32 %v9344_v58  ;;  %vm9397_vm11 = vmor %vm1861_vm9, %vm1862_vm5  ;;  %v1739_v23 = vsub.f32 %v9095_v11, %v9310_v56  ;;  %v1738_v11 = vsub.f32 %v9083_v25, %v9284_v20 }
 0x2f6   : > { %v9349_v60 = vpop.eup %7315  ;;  %v1857_v13 = vmul.f32 %v9341_v40, %v1856_v0  ;;  %v1704_v55 = vpop.xlane.xlu1 %1703  ;;  %vm1891_vm15 = vweird.f32 %v9344_v58 }
 0x2f7   : > { %v1849_v54 = vsub.f32 1.5, %v1848_v39  ;;  %v1876_v18 = vmul.f32 %v9349_v60, %v9326_v35  ;;  %v1725_v12 = vmul.f32 %v1704_v55, %v9158_v32  ;;  %v1706_v48 = vpop.xlane.xlu0 %1705  ;;  %vm1882_vm6 = vweird.f32 %v9349_v60 }
 0x2f8   : > { %v1858_v6 = vmul.f32 0.5, %v1857_v13  ;;  %v1726_v28 = vmul.f32 %v1706_v48, %v9158_v32  ;;  %vm9391_vm10 = vmor %vm1881_vm7, %vm1882_vm6 }
 0x2f9   : > { %v1850_v33 = vmul.f32 %v7312_v7, %v1849_v54  ;;  %v1877_v17 = vmul.f32 %v9349_v60, %v1876_v18  ;;  %v1773_v42 = vsub.f32 %v1725_v12, %v1757_v14  ;;  %v1870_v54 = vmul.f32 %v9328_v63, %v1869_v34 }
 0x2fa   : > { %v1859_v30 = vsub.f32 1.5, %v1858_v6  ;;  %v1774_v59 = vsub.f32 %v1726_v28, %v1758_v16 }
 0x2fb   : > { %v1854_v22 = vsel %vm1853_vm4, %v7312_v7, %v1850_v33  ;;  %v1878_v53 = vmul.f32 0.5, %v1877_v17  ;;  %v7318_v52 = vpop.eup %7317  ;;  %v9372_v5 = vadd.f32 0.1, %v1773_v42  ;;  %v1737_v33 = vsub.f32 %v9077_v21, %v9307_v2 }
 0x2fc   : > { %v1960_v44 = vmul.f32 %v1854_v22, %v1736_v45  ;;  %v1886_v26 = vmul.f32 %v7318_v52, %v9344_v58  ;;  %v1860_v50 = vmul.f32 %v9341_v40, %v1859_v30  ;;  %v1790_v19 = vadd.f32 0.1, %v1774_v59 }
 0x2fd   : > { %v1879_v29 = vsub.f32 1.5, %v1878_v53  ;;  %7319 = vrsqrt.f32 %v9372_v5  ;;  %vm1892_vm14 = vweird.f32 %v7318_v52  ;;  %v1874_v3 = vsel %vm9414_vm13, %v9328_v63, %v1870_v54 }
 0x2fe   : > { %v1977_v7 = vmul.f32 %v9207_v37, %v1960_v44  ;;  %v1887_v39 = vmul.f32 %v7318_v52, %v1886_v26  ;;  %7321 = vrsqrt.f32 %v1790_v19  ;;  %v1864_v55 = vsel %vm9397_vm11, %v9341_v40, %v1860_v50  ;;  %vm1893_vm0 = vmor %vm1891_vm15, %vm1892_vm14 }
 0x2ff   : > { %v1880_v51 = vmul.f32 %v9349_v60, %v1879_v29  ;;  %v1961_v2 = vmul.f32 %v1864_v55, %v1737_v33  ;;  %v1740_v45 = vsub.f32 %v9128_v47, %v9324_v8  ;;  %v1962_v25 = vmul.f32 %v1874_v3, %v1738_v11 }
 0x300   : > { %v9386_v0 = vadd.f32 %v9214_v24, %v1977_v7  ;;  %v1888_v27 = vmul.f32 0.5, %v1887_v39  ;;  %vm1901_vm3 = vweird.f32 %v9372_v5  ;;  %vm1911_vm5 = vweird.f32 %v1790_v19 }
 0x301   : > { %v1884_v13 = vsel %vm9391_vm10, %v9349_v60, %v1880_v51  ;;  %v1978_v42 = vmul.f32 %v9207_v37, %v1961_v2  ;;  %v1979_v30 = vmul.f32 %v9207_v37, %v1962_v25  ;;  %v1742_v7 = vsub.f32 %v9140_v15, %v9356_v1 }
 0x302   : > { %v2023_v46 = vpack.c.bf16 %v9386_v0, %v9383_v31  ;;  %v1889_v14 = vsub.f32 1.5, %v1888_v27  ;;  %v1963_v56 = vmul.f32 %v1884_v13, %v1739_v23 }
 0x303   : > { %v7320_v60 = vpop.eup %7319  ;;  %v9438_v34 = vadd.f32 %v9214_v24, %v1978_v42  ;;  %v9444_v26 = vadd.f32 %v9214_v24, %v1979_v30 }
 0x304   : > { %2112 = vmatmul.bf16.gmra.mxu0 %v2023_v46  ;;  %v1890_v40 = vmul.f32 %v7318_v52, %v1889_v14  ;;  %v1896_v21 = vmul.f32 %v7320_v60, %v9372_v5  ;;  %v7322_v12 = vpop.eup %7321  ;;  %v1980_v22 = vmul.f32 %v9207_v37, %v1963_v56  ;;  %vm1902_vm1 = vweird.f32 %v7320_v60  ;;  %v9471_v14 = vld [vmem:[#allocation18] sm:$0xff] }
 0x305   : > { %v1906_v16 = vmul.f32 %v7322_v12, %v1790_v19  ;;  %vm1912_vm2 = vweird.f32 %v7322_v12  ;;  %vm1903_vm4 = vmor %vm1901_vm3, %vm1902_vm1  ;;  %v2024_v50 = vpack.c.bf16 %v9444_v26, %v9438_v34  ;;  %v1741_v5 = vsub.f32 %v9143_v57, %v9347_v38  ;;  %v1639_v38 = vpop.xlane.xlu1 %1638 }
 0x306   : > { %v1897_v6 = vmul.f32 %v7320_v60, %v1896_v21  ;;  %v1894_v48 = vsel %vm1893_vm0, %v7318_v52, %v1890_v40  ;;  %v9432_v47 = vadd.f32 %v9214_v24, %v1980_v22  ;;  %vm1913_vm6 = vmor %vm1911_vm5, %vm1912_vm2  ;;  %v9469_v33 = vmul.f32 %v9158_v32, %v1639_v38 }
 0x307   : > { %v1964_v20 = vmul.f32 %v1894_v48, %v1740_v45  ;;  %v1907_v63 = vmul.f32 %v7322_v12, %v1906_v16 }
 0x308   : > { %v1898_v53 = vmul.f32 0.5, %v1897_v6  ;;  %v1760_v3 = vmul.f32 %v9469_v33, %v9469_v33 }
 0x309   : > { %v1981_v58 = vmul.f32 %v9207_v37, %v1964_v20  ;;  %v1908_v44 = vmul.f32 0.5, %v1907_v63 }
 0x30a   : > { %v1899_v28 = vsub.f32 1.5, %v1898_v53 }
 0x30b   : > { %v9435_v8 = vadd.f32 %v9214_v24, %v1981_v58  ;;  %v1909_v52 = vsub.f32 1.5, %v1908_v44 }
 0x30c   : > { %v1900_v10 = vmul.f32 %v7320_v60, %v1899_v28 }
 0x30d   : > { %v2025_v29 = vpack.c.bf16 %v9435_v8, %v9432_v47  ;;  %v1910_v59 = vmul.f32 %v7322_v12, %v1909_v52 }
 0x30e   : > { %v1904_v51 = vsel %vm1903_vm4, %v7320_v60, %v1900_v10  ;;  %v9474_v60 = vperm.slane %v9471_v14, 1 }
 0x30f   : > { %2122 = vmatmul.bf16.vlgmr.msra.gmra.mxu2 %v2025_v29  ;;  %v1914_v39 = vsel %vm1913_vm6, %v7322_v12, %v1910_v59  ;;  %v1965_v18 = vmul.f32 %v1904_v51, %v1741_v5 }
 0x310   : > { %v1966_v54 = vmul.f32 %v1914_v39, %v1742_v7 }
 0x311   : > { %v1982_v35 = vmul.f32 %v9207_v37, %v1965_v18 }
 0x312   : > { %v1983_v19 = vmul.f32 %v9207_v37, %v1966_v54 }
 0x313   : > { %v9458_v15 = vadd.f32 %v9214_v24, %v1982_v35 }
 0x314   : > { %2117 = vmatmul.bf16.gmra.mxu0 %v2024_v50  ;;  %v9455_v27 = vadd.f32 %v9214_v24, %v1983_v19 }
 0x316   : > { %v2026_v1 = vpack.c.bf16 %v9455_v27, %v9458_v15 }
 0x31f   : > { %2127 = vmatmul.bf16.gmra.mxu2 %v2026_v1 }
 0x32a   : > { %v1637_v46 = vpop.xlane.xlu2 %1636 }
 0x32b   : > { %v9463_v57 = vmul.f32 %v9158_v32, %v1637_v46 }
 0x32c   : > { %v1708_v13 = vpop.xlane.xlu0 %1707 }
 0x32d   : > { %v1759_v23 = vmul.f32 %v9463_v57, %v9463_v57  ;;  %v1727_v55 = vmul.f32 %v1708_v13, %v9158_v32 }
 0x32f   : > { %v1775_v17 = vsub.f32 %v1727_v55, %v1759_v23 }
 0x331   : > { %v1791_v11 = vadd.f32 0.1, %v1775_v17  ;;  %v1743_v17 = vsub.f32 %v9231_v43, %v9463_v57 }
 0x332   : > { %v1710_v56 = vpop.xlane.xlu2 %1709 }
 0x333   : > { %7323 = vrsqrt.f32 %v1791_v11  ;;  %v1728_v40 = vmul.f32 %v1710_v56, %v9158_v32  ;;  %vm1921_vm8 = vweird.f32 %v1791_v11 }
 0x335   : > { %v1776_v12 = vsub.f32 %v1728_v40, %v1760_v3 }
 0x336   : > { %v2103_v21 = vpop.f32.mrf.mxu0 }
 0x337   : > { %v2104_v2 = vadd.f32 %v2103_v21, %v9474_v60  ;;  %v1792_v6 = vadd.f32 0.1, %v1776_v12 }
 0x339   : > { %v9481_v45 = vadd.f32 %v2104_v2, %v9222_v41  ;;  %v1641_v16 = vpop.xlane.xlu1 %1640  ;;  %v7324_v25 = vpop.eup %7323  ;;  %7325 = vrsqrt.f32 %v1792_v6  ;;  %vm1931_vm11 = vweird.f32 %v1792_v6 }
 0x33a   : > { %v9485_v20 = vmul.f32 %v9158_v32, %v1641_v16  ;;  %v1916_v22 = vmul.f32 %v7324_v25, %v1791_v11  ;;  %vm1922_vm7 = vweird.f32 %v7324_v25 }
 0x33b   : > { %v6674_v48 = vmul.f32 -1.442695, %v9481_v45  ;;  %v1712_v53 = vpop.xlane.xlu2 %1711  ;;  %vm1923_vm9 = vmor %vm1921_vm8, %vm1922_vm7 }
 0x33c   : > { %v1761_v63 = vmul.f32 %v9485_v20, %v9485_v20  ;;  %v1729_v42 = vmul.f32 %v1712_v53, %v9158_v32  ;;  %v1917_v44 = vmul.f32 %v7324_v25, %v1916_v22 }
 0x33d   : > { %7327 = vpow2.f32 %v6674_v48  ;;  %v1744_v48 = vsub.f32 %v9161_v36, %v9469_v33 }
 0x33e   : > { %v2105_v58 = vpop.f32.mrf.mxu0  ;;  %v1643_v28 = vpop.xlane.xlu0 %1642  ;;  %v1777_v52 = vsub.f32 %v1729_v42, %v1761_v63  ;;  %v1918_v29 = vmul.f32 0.5, %v1917_v44 }
 0x33f   : > { %v2106_v30 = vadd.f32 %v2105_v58, %v9474_v60  ;;  %v9492_v10 = vmul.f32 %v9158_v32, %v1643_v28  ;;  %v7326_v7 = vpop.eup %7325 }
 0x340   : > { %v9497_v50 = vadd.f32 0.1, %v1777_v52  ;;  %v1919_v5 = vsub.f32 1.5, %v1918_v29  ;;  %v1926_v54 = vmul.f32 %v7326_v7, %v1792_v6  ;;  %vm1932_vm10 = vweird.f32 %v7326_v7 }
 0x341   : > { %v9495_v59 = vadd.f32 %v2106_v30, %v9225_v61  ;;  %v1762_v51 = vmul.f32 %v9492_v10, %v9492_v10  ;;  %v1714_v19 = vpop.xlane.xlu1 %1713  ;;  %vm1933_vm12 = vmor %vm1931_vm11, %vm1932_vm10 }
 0x342   : > { %7329 = vrsqrt.f32 %v9497_v50  ;;  %v1730_v1 = vmul.f32 %v1714_v19, %v9158_v32  ;;  %v1920_v46 = vmul.f32 %v7324_v25, %v1919_v5  ;;  %v1927_v38 = vmul.f32 %v7326_v7, %v1926_v54 }
 0x343   : > { %v7328_v39 = vpop.eup %7327  ;;  %v6675_v18 = vmul.f32 -1.442695, %v9495_v59  ;;  %vm1941_vm0 = vweird.f32 %v9497_v50 }
 0x344   : > { %v2223_v35 = vadd.f32 1.0, %v7328_v39  ;;  %v1778_v13 = vsub.f32 %v1730_v1, %v1762_v51  ;;  %v1928_v23 = vmul.f32 0.5, %v1927_v38  ;;  %v1924_v55 = vsel %vm1923_vm9, %v7324_v25, %v1920_v46 }
 0x345   : > { %7331 = vpow2.f32 %v6675_v18  ;;  %v1967_v21 = vmul.f32 %v1924_v55, %v1743_v17 }
 0x346   : > { %7333 = vrcp.f32 %v2223_v35  ;;  %v9506_v56 = vadd.f32 0.1, %v1778_v13  ;;  %v1929_v3 = vsub.f32 1.5, %v1928_v23  ;;  %v2248_v44 = vand.u32 2147483647, %v2223_v35 }
 0x347   : > { %v1984_v63 = vmul.f32 %v9207_v37, %v1967_v21  ;;  %v2250_v30 = vand.u32 2147483648, %v2223_v35  ;;  %vm2244_vm15 = vweird.f32 %v2223_v35 }
 0x348   : > { %v7330_v40 = vpop.eup %7329  ;;  %7335 = vrsqrt.f32 %v9506_v56  ;;  %v1930_v11 = vmul.f32 %v7326_v7, %v1929_v3  ;;  %vm2249_vm3 = vcmp.eq.f32.partialorder %v2248_v44, 8.507059e+37  ;;  %vm1951_vm5 = vweird.f32 %v9506_v56 }
 0x349   : > { %v1936_v12 = vmul.f32 %v7330_v40, %v9497_v50  ;;  %vm1942_vm14 = vweird.f32 %v7330_v40  ;;  %v9519_v29 = vadd.f32 %v9214_v24, %v1984_v63  ;;  %v2251_v19 = vor.u32 1.1754944e-38, %v2250_v30 }
 0x34a   : > { %v1934_v57 = vsel %vm1933_vm12, %v7326_v7, %v1930_v11  ;;  %vm9527_vm2 = vmor %vm1941_vm0, %vm1942_vm14 }
 0x34b   : > { %v7332_v2 = vpop.eup %7331  ;;  %v1937_v43 = vmul.f32 %v7330_v40, %v1936_v12  ;;  %v1968_v53 = vmul.f32 %v1934_v57, %v1744_v48 }
 0x34c   : > { %v7334_v16 = vpop.eup %7333  ;;  %v9512_v25 = vadd.f32 1.0, %v7332_v2 }
 0x34d   : > { %v2240_v22 = vmul.f32 %v7334_v16, %v2223_v35  ;;  %v1938_v42 = vmul.f32 0.5, %v1937_v43  ;;  %v1985_v28 = vmul.f32 %v9207_v37, %v1968_v53  ;;  %vm2245_vm13 = vweird.f32 %v7334_v16 }
 0x34e   : > { %7337 = vrcp.f32 %v9512_v25  ;;  %v7336_v6 = vpop.eup %7335  ;;  %vm2246_vm1 = vmor %vm2244_vm15, %vm2245_vm13  ;;  %v1745_v35 = vsub.f32 %v9251_v62, %v9485_v20  ;;  %v2263_v21 = vand.u32 2147483647, %v9512_v25  ;;  %v2265_v2 = vand.u32 2147483648, %v9512_v25 }
 0x34f   : > { %v2241_v58 = vsub.f32 1.0, %v2240_v22  ;;  %v1939_v52 = vsub.f32 1.5, %v1938_v42  ;;  %v1946_v36 = vmul.f32 %v7336_v6, %v9506_v56  ;;  %v9522_v7 = vadd.f32 %v9214_v24, %v1985_v28 }
 0x350   : > { %vm1952_vm4 = vweird.f32 %v7336_v6  ;;  %vm2259_vm8 = vweird.f32 %v9512_v25  ;;  %vm2264_vm10 = vcmp.eq.f32.partialorder %v2263_v21, 8.507059e+37 }
 0x351   : > { %v2242_v33 = vmul.f32 %v7334_v16, %v2241_v58  ;;  %v1940_v51 = vmul.f32 %v7330_v40, %v1939_v52  ;;  %v1947_v39 = vmul.f32 %v7336_v6, %v1946_v36  ;;  %v2027_v18 = vpack.c.bf16 %v9522_v7, %v9519_v29  ;;  %vm1953_vm7 = vmor %vm1951_vm5, %vm1952_vm4 }
 0x353   : > { %v2243_v5 = vadd.f32 %v7334_v16, %v2242_v33  ;;  %v1948_v46 = vmul.f32 0.5, %v1947_v39  ;;  %2132 = vmatmul.bf16.gmra.mxu2 %v2027_v18  ;;  %v1944_v50 = vsel %vm9527_vm2, %v7330_v40, %v1940_v51 }
 0x354   : > { %v7338_v54 = vpop.eup %7337  ;;  %v1969_v11 = vmul.f32 %v1944_v50, %v1745_v35 }
 0x355   : > { %v2247_v38 = vsel %vm2246_vm1, %v7334_v16, %v2243_v5  ;;  %v2255_v13 = vmul.f32 %v7338_v54, %v9512_v25  ;;  %v1949_v55 = vsub.f32 1.5, %v1948_v46  ;;  %vm2260_vm6 = vweird.f32 %v7338_v54 }
 0x356   : > { %v2252_v23 = vsel %vm2249_vm3, %v2251_v19, %v2247_v38  ;;  %vm2261_vm9 = vmor %vm2259_vm8, %vm2260_vm6  ;;  %v2266_v16 = vor.u32 1.1754944e-38, %v2265_v2  ;;  %v1986_v43 = vmul.f32 %v9207_v37, %v1969_v11 }
 0x357   : > { %v9537_v17 = vmul.f32 %v2252_v23, %v9481_v45  ;;  %v2256_v3 = vsub.f32 1.0, %v2255_v13  ;;  %v1950_v12 = vmul.f32 %v7336_v6, %v1949_v55  ;;  %v1746_v45 = vsub.f32 %v9257_v4, %v9492_v10 }
 0x358   : > { %v9554_v10 = vadd.f32 %v9214_v24, %v1986_v43 }
 0x359   : > { %2495 = vadd.xlane.f32.xlu0 %v9537_v17  ;;  %v2543_v62 = vmul.f32 %v9537_v17, %v9537_v17  ;;  %v2257_v20 = vmul.f32 %v7338_v54, %v2256_v3  ;;  %v1954_v56 = vsel %vm1953_vm7, %v7336_v6, %v1950_v12 }
 0x35a   : > { %v1970_v48 = vmul.f32 %v1954_v56, %v1746_v45 }
 0x35b   : > { %2559 = vadd.xlane.f32.xlu1 %v2543_v62  ;;  %v2258_v40 = vadd.f32 %v7338_v54, %v2257_v20 }
 0x35c   : > { %v1987_v53 = vmul.f32 %v9207_v37, %v1970_v48 }
 0x35d   : > { %v2262_v57 = vsel %vm2261_vm9, %v7338_v54, %v2258_v40  ;;  %v2108_v4 = vpop.f32.mrf.mxu0 }
 0x35e   : > { %v2267_v22 = vsel %vm2264_vm10, %v2266_v16, %v2262_v57  ;;  %v9557_v25 = vadd.f32 %v9214_v24, %v1987_v53  ;;  %v2109_v42 = vadd.f32 %v2108_v4, %v9474_v60 }
 0x35f   : > { %v9551_v63 = vmul.f32 %v2267_v22, %v9495_v59 }
 0x360   : > { %v2028_v37 = vpack.c.bf16 %v9557_v25, %v9554_v10  ;;  %v2161_v59 = vadd.f32 %v2109_v42, %v9287_v49 }
 0x361   : > { %2497 = vadd.xlane.f32.xlu2 %v9551_v63  ;;  %v2544_v58 = vmul.f32 %v9551_v63, %v9551_v63 }
 0x362   : > { %v6676_v6 = vmul.f32 -1.442695, %v2161_v59 }
 0x363   : > { %2561 = vadd.xlane.f32.xlu0 %v2544_v58  ;;  %2137 = vmatmul.bf16.gmra.mxu2 %v2028_v37 }
 0x364   : > { %7339 = vpow2.f32 %v6676_v6 }
 0x365   : > { %v2110_v28 = vpop.f32.mrf.mxu0 }
 0x366   : > { %v2111_v24 = vadd.f32 %v2110_v28, %v9474_v60 }
 0x368   : > { %v2162_v44 = vadd.f32 %v2111_v24, %v9290_v9 }
 0x36a   : > { %v7340_v30 = vpop.eup %7339  ;;  %v6677_v52 = vmul.f32 -1.442695, %v2162_v44 }
 0x36b   : > { %v2225_v36 = vadd.f32 1.0, %v7340_v30 }
 0x36c   : > { %7341 = vpow2.f32 %v6677_v52 }
 0x36d   : > { %7343 = vrcp.f32 %v2225_v36  ;;  %v2280_v18 = vand.u32 2147483648, %v2225_v36  ;;  %v2278_v1 = vand.u32 2147483647, %v2225_v36  ;;  %vm2274_vm12 = vweird.f32 %v2225_v36 }
 0x36f   : > { %v2281_v13 = vor.u32 1.1754944e-38, %v2280_v18  ;;  %vm2279_vm14 = vcmp.eq.f32.partialorder %v2278_v1, 8.507059e+37 }
 0x372   : > { %v7342_v33 = vpop.eup %7341 }
 0x373   : > { %v7344_v51 = vpop.eup %7343  ;;  %v2226_v39 = vadd.f32 1.0, %v7342_v33 }
 0x374   : > { %v2270_v5 = vmul.f32 %v7344_v51, %v2225_v36  ;;  %vm2275_vm11 = vweird.f32 %v7344_v51 }
 0x375   : > { %7345 = vrcp.f32 %v2226_v39  ;;  %vm2276_vm13 = vmor %vm2274_vm12, %vm2275_vm11  ;;  %v2295_v11 = vand.u32 2147483648, %v2226_v39  ;;  %v2293_v20 = vand.u32 2147483647, %v2226_v39  ;;  %vm2289_vm0 = vweird.f32 %v2226_v39 }
 0x376   : > { %v2271_v54 = vsub.f32 1.0, %v2270_v5 }
 0x377   : > { %v2296_v16 = vor.u32 1.1754944e-38, %v2295_v11  ;;  %vm2294_vm2 = vcmp.eq.f32.partialorder %v2293_v20, 8.507059e+37 }
 0x378   : > { %v2272_v19 = vmul.f32 %v7344_v51, %v2271_v54 }
 0x37a   : > { %v2273_v46 = vadd.f32 %v7344_v51, %v2272_v19 }
 0x37b   : > { %v7346_v38 = vpop.eup %7345 }
 0x37c   : > { %v2277_v35 = vsel %vm2276_vm13, %v7344_v51, %v2273_v46  ;;  %v2285_v23 = vmul.f32 %v7346_v38, %v2226_v39  ;;  %vm2290_vm15 = vweird.f32 %v7346_v38 }
 0x37d   : > { %v2282_v50 = vsel %vm2279_vm14, %v2281_v13, %v2277_v35  ;;  %vm2291_vm1 = vmor %vm2289_vm0, %vm2290_vm15 }
 0x37e   : > { %v9568_v55 = vmul.f32 %v2282_v50, %v2161_v59  ;;  %v2286_v21 = vsub.f32 1.0, %v2285_v23 }
 0x380   : > { %2499 = vadd.xlane.f32.xlu2 %v9568_v55  ;;  %v2545_v12 = vmul.f32 %v9568_v55, %v9568_v55  ;;  %v2287_v62 = vmul.f32 %v7346_v38, %v2286_v21 }
 0x381   : > { %v2113_v3 = vpop.f32.mrf.mxu0 }
 0x382   : > { %v2114_v2 = vadd.f32 %v2113_v3, %v9474_v60  ;;  %2563 = vadd.xlane.f32.xlu0 %v2545_v12  ;;  %v2288_v40 = vadd.f32 %v7346_v38, %v2287_v62 }
 0x384   : > { %v9575_v45 = vadd.f32 %v2114_v2, %v9383_v31  ;;  %v2292_v48 = vsel %vm2291_vm1, %v7346_v38, %v2288_v40 }
 0x385   : > { %v2297_v43 = vsel %vm2294_vm2, %v2296_v16, %v2292_v48 }
 0x386   : > { %v6678_v56 = vmul.f32 -1.442695, %v9575_v45  ;;  %v9578_v57 = vmul.f32 %v2297_v43, %v2162_v44 }
 0x388   : > { %7347 = vpow2.f32 %v6678_v56  ;;  %2501 = vadd.xlane.f32.xlu1 %v9578_v57  ;;  %v2546_v4 = vmul.f32 %v9578_v57, %v9578_v57 }
 0x389   : > { %v2115_v22 = vpop.f32.mrf.mxu0 }
 0x38a   : > { %v2116_v53 = vadd.f32 %v2115_v22, %v9474_v60  ;;  %2565 = vadd.xlane.f32.xlu2 %v2546_v4 }
 0x38c   : > { %v9585_v42 = vadd.f32 %v2116_v53, %v9386_v0 }
 0x38e   : > { %v7348_v58 = vpop.eup %7347  ;;  %v6679_v37 = vmul.f32 -1.442695, %v9585_v42 }
 0x38f   : > { %v2227_v59 = vadd.f32 1.0, %v7348_v58 }
 0x390   : > { %7349 = vpow2.f32 %v6679_v37 }
 0x391   : > { %7351 = vrcp.f32 %v2227_v59  ;;  %v2118_v6 = vpop.f32.mrf.mxu0  ;;  %v2310_v46 = vand.u32 2147483648, %v2227_v59  ;;  %v2308_v23 = vand.u32 2147483647, %v2227_v59  ;;  %vm2304_vm4 = vweird.f32 %v2227_v59 }
 0x392   : > { %v2119_v28 = vadd.f32 %v2118_v6, %v9474_v60  ;;  %v2123_v24 = vpop.f32.mrf.mxu2 }
 0x393   : > { %v2124_v30 = vadd.f32 %v2123_v24, %v9474_v60  ;;  %v2311_v20 = vor.u32 1.1754944e-38, %v2310_v46  ;;  %vm2309_vm6 = vcmp.eq.f32.partialorder %v2308_v23, 8.507059e+37 }
 0x394   : > { %v9590_v44 = vadd.f32 %v2119_v28, %v9438_v34 }
 0x395   : > { %v9595_v39 = vadd.f32 %v2124_v30, %v9432_v47 }
 0x396   : > { %v7350_v52 = vpop.eup %7349  ;;  %v6680_v36 = vmul.f32 -1.442695, %v9590_v44 }
 0x397   : > { %v7352_v33 = vpop.eup %7351  ;;  %v2228_v51 = vadd.f32 1.0, %v7350_v52  ;;  %v6682_v54 = vmul.f32 -1.442695, %v9595_v39 }
 0x398   : > { %7353 = vpow2.f32 %v6680_v36  ;;  %v2300_v5 = vmul.f32 %v7352_v33, %v2227_v59  ;;  %vm2305_vm3 = vweird.f32 %v7352_v33 }
 0x399   : > { %7355 = vrcp.f32 %v2228_v51  ;;  %v2120_v18 = vpop.f32.mrf.mxu0  ;;  %vm2306_vm5 = vmor %vm2304_vm4, %vm2305_vm3  ;;  %v2323_v58 = vand.u32 2147483647, %v2228_v51  ;;  %v2325_v37 = vand.u32 2147483648, %v2228_v51  ;;  %vm2319_vm8 = vweird.f32 %v2228_v51 }
 0x39a   : > { %v2121_v19 = vadd.f32 %v2120_v18, %v9474_v60  ;;  %v2301_v1 = vsub.f32 1.0, %v2300_v5  ;;  %7357 = vpow2.f32 %v6682_v54  ;;  %v2125_v38 = vpop.f32.mrf.mxu2 }
 0x39b   : > { %v2126_v50 = vadd.f32 %v2125_v38, %v9474_v60  ;;  %v2326_v5 = vor.u32 1.1754944e-38, %v2325_v37  ;;  %vm2324_vm10 = vcmp.eq.f32.partialorder %v2323_v58, 8.507059e+37 }
 0x39c   : > { %v9600_v13 = vadd.f32 %v2121_v19, %v9444_v26  ;;  %v2302_v35 = vmul.f32 %v7352_v33, %v2301_v1 }
 0x39d   : > { %v9607_v62 = vadd.f32 %v2126_v50, %v9435_v8 }
 0x39e   : > { %v7354_v3 = vpop.eup %7353  ;;  %v6681_v21 = vmul.f32 -1.442695, %v9600_v13  ;;  %v2303_v2 = vadd.f32 %v7352_v33, %v2302_v35 }
 0x39f   : > { %v7356_v11 = vpop.eup %7355  ;;  %v9604_v12 = vadd.f32 1.0, %v7354_v3  ;;  %v6683_v48 = vmul.f32 -1.442695, %v9607_v62 }
 0x3a0   : > { %7359 = vpow2.f32 %v6681_v21  ;;  %v2307_v40 = vsel %vm2306_vm5, %v7352_v33, %v2303_v2  ;;  %v2315_v56 = vmul.f32 %v7356_v11, %v2228_v51  ;;  %v7358_v16 = vpop.eup %7357  ;;  %vm2320_vm7 = vweird.f32 %v7356_v11 }
 0x3a1   : > { %7361 = vrcp.f32 %v9604_v12  ;;  %v2312_v43 = vsel %vm2309_vm6, %v2311_v20, %v2307_v40  ;;  %v9611_v22 = vadd.f32 1.0, %v7358_v16  ;;  %vm2321_vm9 = vmor %vm2319_vm8, %vm2320_vm7  ;;  %v2338_v50 = vand.u32 2147483647, %v9604_v12 }
 0x3a2   : > { %v9614_v53 = vmul.f32 %v2312_v43, %v9575_v45  ;;  %v2316_v4 = vsub.f32 1.0, %v2315_v56  ;;  %7363 = vpow2.f32 %v6683_v48  ;;  %v2128_v59 = vpop.f32.mrf.mxu2  ;;  %v2340_v3 = vand.u32 2147483648, %v9604_v12 }
 0x3a3   : > { %7365 = vrcp.f32 %v9611_v22  ;;  %v2129_v24 = vadd.f32 %v2128_v59, %v9474_v60  ;;  %vm2334_vm12 = vweird.f32 %v9604_v12  ;;  %vm2339_vm14 = vcmp.eq.f32.partialorder %v2338_v50, 8.507059e+37 }
 0x3a4   : > { %2503 = vadd.xlane.f32.xlu1 %v9614_v53  ;;  %v2547_v6 = vmul.f32 %v9614_v53, %v9614_v53  ;;  %v2317_v28 = vmul.f32 %v7356_v11, %v2316_v4  ;;  %v2341_v43 = vor.u32 1.1754944e-38, %v2340_v3  ;;  %vm2364_vm5 = vweird.f32 %v9611_v22 }
 0x3a5   : > { %v9624_v33 = vadd.f32 %v2129_v24, %v9458_v15 }
 0x3a6   : > { %v7360_v30 = vpop.eup %7359  ;;  %2567 = vadd.xlane.f32.xlu2 %v2547_v6  ;;  %v2318_v45 = vadd.f32 %v7356_v11, %v2317_v28 }
 0x3a7   : > { %v7362_v52 = vpop.eup %7361  ;;  %v9621_v36 = vadd.f32 1.0, %v7360_v30  ;;  %v6684_v1 = vmul.f32 -1.442695, %v9624_v33 }
 0x3a8   : > { %v2322_v54 = vsel %vm2321_vm9, %v7356_v11, %v2318_v45  ;;  %v2330_v18 = vmul.f32 %v7362_v52, %v9604_v12  ;;  %v7364_v19 = vpop.eup %7363  ;;  %vm2335_vm11 = vweird.f32 %v7362_v52 }
 0x3a9   : > { %7367 = vrcp.f32 %v9621_v36  ;;  %v2327_v46 = vsel %vm2324_vm10, %v2326_v5, %v2322_v54  ;;  %v9629_v38 = vpop.eup %7365  ;;  %v9631_v51 = vadd.f32 1.0, %v7364_v19  ;;  %vm2336_vm13 = vmor %vm2334_vm12, %vm2335_vm11  ;;  %v2353_v5 = vand.u32 2147483647, %v9621_v36 }
 0x3aa   : > { %v9634_v35 = vmul.f32 %v2327_v46, %v9585_v42  ;;  %v2331_v23 = vsub.f32 1.0, %v2330_v18  ;;  %7369 = vpow2.f32 %v6684_v1  ;;  %v2360_v21 = vmul.f32 %v9629_v38, %v9611_v22  ;;  %v2130_v2 = vpop.f32.mrf.mxu2 }
 0x3ab   : > { %7371 = vrcp.f32 %v9631_v51  ;;  %v2131_v42 = vadd.f32 %v2130_v2, %v9474_v60  ;;  %vm2349_vm0 = vweird.f32 %v9621_v36  ;;  %v2370_v1 = vand.u32 2147483648, %v9611_v22 }
 0x3ac   : > { %2505 = vadd.xlane.f32.xlu0 %v9634_v35  ;;  %v2548_v11 = vmul.f32 %v9634_v35, %v9634_v35  ;;  %v2332_v20 = vmul.f32 %v7362_v52, %v2331_v23  ;;  %v2361_v56 = vsub.f32 1.0, %v2360_v21  ;;  %v2385_v23 = vand.u32 2147483648, %v9631_v51 }
 0x3ad   : > { %v9647_v48 = vadd.f32 %v2131_v42, %v9455_v27  ;;  %vm2365_vm1 = vweird.f32 %v9629_v38  ;;  %v2383_v2 = vand.u32 2147483647, %v9631_v51  ;;  %vm2354_vm4 = vcmp.eq.f32.partialorder %v2353_v5, 8.507059e+37 }
 0x3ae   : > { %2569 = vadd.xlane.f32.xlu1 %v2548_v11  ;;  %v2333_v40 = vadd.f32 %v7362_v52, %v2332_v20  ;;  %v2362_v45 = vmul.f32 %v9629_v38, %v2361_v56  ;;  %vm2379_vm6 = vweird.f32 %v9631_v51  ;;  %vm9673_vm7 = vmor %vm2364_vm5, %vm2365_vm1 }
 0x3af   : > { %v7368_v16 = vpop.eup %7367  ;;  %v6685_v59 = vmul.f32 -1.442695, %v9647_v48  ;;  %vm2384_vm9 = vcmp.eq.f32.partialorder %v2383_v2, 8.507059e+37 }
 0x3b0   : > { %v2337_v4 = vsel %vm2336_vm13, %v7362_v52, %v2333_v40  ;;  %v2345_v58 = vmul.f32 %v7368_v16, %v9621_v36  ;;  %v7370_v37 = vpop.eup %7369  ;;  %v2355_v52 = vand.u32 2147483648, %v9621_v36  ;;  %vm2350_vm15 = vweird.f32 %v7368_v16 }
 0x3b1   : > { %v2342_v6 = vsel %vm2339_vm14, %v2341_v43, %v2337_v4  ;;  %v7372_v28 = vpop.eup %7371  ;;  %v9651_v24 = vadd.f32 1.0, %v7370_v37  ;;  %7373 = vpow2.f32 %v6685_v59  ;;  %v2363_v50 = vadd.f32 %v9629_v38, %v2362_v45  ;;  %vm2351_vm2 = vmor %vm2349_vm0, %vm2350_vm15 }
 0x3b2   : > { %v9654_v12 = vmul.f32 %v2342_v6, %v9590_v44  ;;  %v2346_v30 = vsub.f32 1.0, %v2345_v58  ;;  %v2375_v54 = vmul.f32 %v7372_v28, %v9631_v51  ;;  %v2356_v3 = vor.u32 1.1754944e-38, %v2355_v52 }
 0x3b3   : > { %7375 = vrcp.f32 %v9651_v24  ;;  %vm2380_vm3 = vweird.f32 %v7372_v28  ;;  %v2368_v36 = vand.u32 2147483647, %v9611_v22  ;;  %v2367_v22 = vsel %vm9673_vm7, %v9629_v38, %v2363_v50 }
 0x3b4   : > { %2507 = vadd.xlane.f32.xlu0 %v9654_v12  ;;  %v2549_v18 = vmul.f32 %v9654_v12, %v9654_v12  ;;  %v2347_v19 = vmul.f32 %v7368_v16, %v2346_v30  ;;  %v2376_v44 = vsub.f32 1.0, %v2375_v54  ;;  %vm2381_vm8 = vmor %vm2379_vm6, %vm2380_vm3  ;;  %v2371_v59 = vor.u32 1.1754944e-38, %v2370_v1 }
 0x3b5   : > { %vm2369_vm10 = vcmp.eq.f32.partialorder %v2368_v36, 8.507059e+37  ;;  %v2400_v38 = vand.u32 2147483648, %v9651_v24  ;;  %v2398_v52 = vand.u32 2147483647, %v9651_v24  ;;  %vm2394_vm12 = vweird.f32 %v9651_v24 }
 0x3b6   : > { %2571 = vadd.xlane.f32.xlu1 %v2549_v18  ;;  %v2348_v46 = vadd.f32 %v7368_v16, %v2347_v19  ;;  %v2377_v21 = vmul.f32 %v7372_v28, %v2376_v44  ;;  %v2372_v45 = vsel %vm2369_vm10, %v2371_v59, %v2367_v22 }
 0x3b7   : > { %v7374_v20 = vpop.eup %7373  ;;  %v9694_v54 = vmul.f32 %v2372_v45, %v9595_v39  ;;  %vm2399_vm14 = vcmp.eq.f32.partialorder %v2398_v52, 8.507059e+37 }
 0x3b8   : > { %v2352_v11 = vsel %vm2351_vm2, %v7368_v16, %v2348_v46  ;;  %v2378_v40 = vadd.f32 %v7372_v28, %v2377_v21  ;;  %v2234_v4 = vadd.f32 1.0, %v7374_v20  ;;  %v2386_v16 = vor.u32 1.1754944e-38, %v2385_v23 }
 0x3b9   : > { %v2357_v42 = vsel %vm2354_vm4, %v2356_v3, %v2352_v11  ;;  %v7376_v43 = vpop.eup %7375  ;;  %v2551_v46 = vmul.f32 %v9694_v54, %v9694_v54 }
 0x3ba   : > { %v9678_v58 = vmul.f32 %v2357_v42, %v9600_v13  ;;  %v2382_v37 = vsel %vm2381_vm8, %v7372_v28, %v2378_v40  ;;  %v2390_v51 = vmul.f32 %v7376_v43, %v9651_v24  ;;  %7377 = vrcp.f32 %v2234_v4  ;;  %v6935_v40 = vld [vmem:[#allocation12 + $0x38] sm:$0xff] }
 0x3bb   : > { %v2387_v30 = vsel %vm2384_vm9, %v2386_v16, %v2382_v37  ;;  %vm2395_vm11 = vweird.f32 %v7376_v43  ;;  %v2415_v3 = vand.u32 2147483648, %v2234_v4  ;;  %v2413_v21 = vand.u32 2147483647, %v2234_v4  ;;  %2986 = vmatpush.bf16.msra.mxu1 %v6935_v40  ;;  %7001 = vmatpush.bf16.msra.mxu3 %v6935_v40 }
 0x3bc   : > { %2509 = vadd.xlane.f32.xlu2 %v9678_v58  ;;  %v2550_v6 = vmul.f32 %v9678_v58, %v9678_v58  ;;  %v9688_v13 = vmul.f32 %v2387_v30, %v9607_v62  ;;  %v2391_v5 = vsub.f32 1.0, %v2390_v51  ;;  %vm2396_vm13 = vmor %vm2394_vm12, %vm2395_vm11  ;;  %v2401_v62 = vor.u32 1.1754944e-38, %v2400_v38 }
 0x3bd   : > { %vm2409_vm0 = vweird.f32 %v2234_v4  ;;  %v2416_v36 = vor.u32 1.1754944e-38, %v2415_v3  ;;  %vm2414_vm2 = vcmp.eq.f32.partialorder %v2413_v21, 8.507059e+37 }
 0x3be   : > { %2573 = vadd.xlane.f32.xlu0 %v2550_v6  ;;  %2513 = vadd.xlane.f32.xlu1 %v9688_v13  ;;  %v2392_v28 = vmul.f32 %v7376_v43, %v2391_v5  ;;  %v2552_v11 = vmul.f32 %v9688_v13, %v9688_v13  ;;  %v6933_v6 = vld [vmem:[#allocation12 + $0x28] sm:$0xff] }
 0x3c0   : > { %v2393_v18 = vadd.f32 %v7376_v43, %v2392_v28  ;;  %v7378_v19 = vpop.eup %7377  ;;  %v6932_v28 = vld [vmem:[#allocation12 + $0x20] sm:$0xff] }
 0x3c1   : > { %v2405_v1 = vmul.f32 %v7378_v19, %v2234_v4  ;;  %vm2410_vm15 = vweird.f32 %v7378_v19  ;;  %v6934_v4 = vld [vmem:[#allocation12 + $0x30] sm:$0xff] }
 0x3c2   : > { %v2397_v44 = vsel %vm2396_vm13, %v7376_v43, %v2393_v18  ;;  %vm2411_vm1 = vmor %vm2409_vm0, %vm2410_vm15  ;;  %2987 = vmatpush.bf16.msra.mxu1 %v6934_v4  ;;  %7002 = vmatpush.bf16.msra.mxu3 %v6934_v4 }
 0x3c3   : > { %v2402_v23 = vsel %vm2399_vm14, %v2401_v62, %v2397_v44  ;;  %v2406_v39 = vsub.f32 1.0, %v2405_v1  ;;  %v6931_v1 = vld [vmem:[#allocation12 + $0x18] sm:$0xff] }
 0x3c4   : > { %2511 = vadd.xlane.f32.xlu2 %v9694_v54  ;;  %v9701_v50 = vmul.f32 %v2402_v23, %v9624_v33 }
 0x3c5   : > { %v2407_v24 = vmul.f32 %v7378_v19, %v2406_v39 }
 0x3c6   : > { %2575 = vadd.xlane.f32.xlu0 %v2551_v46  ;;  %2515 = vadd.xlane.f32.xlu1 %v9701_v50 }
 0x3c7   : > { %v2408_v2 = vadd.f32 %v7378_v19, %v2407_v24  ;;  %2988 = vmatpush.bf16.msra.mxu1 %v6933_v6  ;;  %7003 = vmatpush.bf16.msra.mxu3 %v6933_v6 }
 0x3c9   : > { %v2412_v20 = vsel %vm2411_vm1, %v7378_v19, %v2408_v2  ;;  %v6930_v2 = vld [vmem:[#allocation12 + $0x10] sm:$0xff] }
 0x3ca   : > { %v2417_v33 = vsel %vm2414_vm2, %v2416_v36, %v2412_v20 }
 0x3cb   : > { %v9710_v43 = vmul.f32 %v2417_v33, %v9647_v48  ;;  %v2553_v48 = vmul.f32 %v9701_v50, %v9701_v50  ;;  %2989 = vmatpush.bf16.msra.mxu1 %v6932_v28  ;;  %7004 = vmatpush.bf16.msra.mxu3 %v6932_v28  ;;  %v6929_v33 = vld [vmem:[#allocation12 + $0x8] sm:$0xff] }
 0x3cc   : > { %v2496_v42 = vpop.xlane.xlu0 %2495  ;;  %2577 = vadd.xlane.f32.xlu2 %v2552_v11 }
 0x3cd   : > { %v9707_v56 = vmul.f32 %v2496_v42, %v9158_v32  ;;  %v2554_v59 = vmul.f32 %v9710_v43, %v9710_v43 }
 0x3ce   : > { %v2560_v16 = vpop.xlane.xlu1 %2559  ;;  %2517 = vadd.xlane.f32.xlu0 %v9710_v43 }
 0x3cf   : > { %v2623_v22 = vmul.f32 %v9707_v56, %v9707_v56  ;;  %v2591_v37 = vmul.f32 %v2560_v16, %v9158_v32  ;;  %2581 = vadd.xlane.f32.xlu1 %v2554_v59  ;;  %2990 = vmatpush.bf16.msra.mxu1 %v6931_v1  ;;  %v2607_v28 = vsub.f32 %v9537_v17, %v9707_v56 }
 0x3d0   : > { %7005 = vmatpush.bf16.msra.mxu3 %v6931_v1 }
 0x3d1   : > { %v2639_v51 = vsub.f32 %v2591_v37, %v2623_v22 }
 0x3d3   : > { %v2655_v30 = vadd.f32 0.1, %v2639_v51  ;;  %2991 = vmatpush.bf16.msra.mxu1 %v6930_v2 }
 0x3d4   : > { %2579 = vadd.xlane.f32.xlu2 %v2553_v48  ;;  %v2498_v45 = vpop.xlane.xlu2 %2497  ;;  %7006 = vmatpush.bf16.msra.mxu3 %v6930_v2  ;;  %v6928_v48 = vld [vmem:[#allocation12] sm:$0xff] }
 0x3d5   : > { %7379 = vrsqrt.f32 %v2655_v30  ;;  %v9721_v5 = vmul.f32 %v2498_v45, %v9158_v32  ;;  %vm2677_vm4 = vweird.f32 %v2655_v30 }
 0x3d6   : > { %v2562_v38 = vpop.xlane.xlu0 %2561  ;;  %v2133_v19 = vpop.f32.mrf.mxu2 }
 0x3d7   : > { %v2624_v52 = vmul.f32 %v9721_v5, %v9721_v5  ;;  %v2592_v18 = vmul.f32 %v2562_v38, %v9158_v32  ;;  %v2134_v44 = vadd.f32 %v2133_v19, %v9474_v60  ;;  %2992 = vmatpush.bf16.msra.mxu1 %v6929_v33  ;;  %v2608_v17 = vsub.f32 %v9551_v63, %v9721_v5 }
 0x3d8   : > { %7007 = vmatpush.bf16.msra.mxu3 %v6929_v33 }
 0x3d9   : > { %v2640_v62 = vsub.f32 %v2592_v18, %v2624_v52  ;;  %v9728_v3 = vadd.f32 %v2134_v44, %v9519_v29 }
 0x3db   : > { %v7380_v46 = vpop.eup %7379  ;;  %v2656_v23 = vadd.f32 0.1, %v2640_v62  ;;  %v6686_v21 = vmul.f32 -1.442695, %v9728_v3  ;;  %2993 = vmatpush.bf16.msra.mxu1 %v6928_v48  ;;  %v9740_v62 = vperm.slane %v9471_v14, 6 }
 0x3dc   : > { %v2672_v39 = vmul.f32 %v7380_v46, %v2655_v30  ;;  %vm2678_vm3 = vweird.f32 %v7380_v46  ;;  %7008 = vmatpush.bf16.msra.mxu3 %v6928_v48 }
 0x3dd   : > { %7381 = vrsqrt.f32 %v2656_v23  ;;  %vm2679_vm5 = vmor %vm2677_vm4, %vm2678_vm3  ;;  %vm2687_vm7 = vweird.f32 %v2656_v23 }
 0x3de   : > { %v2673_v24 = vmul.f32 %v7380_v46, %v2672_v39  ;;  %7383 = vpow2.f32 %v6686_v21  ;;  %v2135_v36 = vpop.f32.mrf.mxu2 }
 0x3df   : > { %v2136_v42 = vadd.f32 %v2135_v36, %v9474_v60 }
 0x3e0   : > { %v2674_v11 = vmul.f32 0.5, %v2673_v24 }
 0x3e1   : > { %v9733_v22 = vadd.f32 %v2136_v42, %v9522_v7 }
 0x3e2   : > { %v2675_v20 = vsub.f32 1.5, %v2674_v11  ;;  %v7878_v11 = vld [vmem:[#allocation18 + $0x8] sm:$0x7f] }
 0x3e3   : > { %v7382_v40 = vpop.eup %7381  ;;  %v6687_v51 = vmul.f32 -1.442695, %v9733_v22  ;;  %v9751_v36 = vperm.slane %v7878_v11, 3 }
 0x3e4   : > { %v2676_v16 = vmul.f32 %v7380_v46, %v2675_v20  ;;  %v2682_v4 = vmul.f32 %v7382_v40, %v2656_v23  ;;  %v7384_v37 = vpop.eup %7383  ;;  %vm2688_vm6 = vweird.f32 %v7382_v40 }
 0x3e5   : > { %v2235_v6 = vadd.f32 1.0, %v7384_v37  ;;  %7385 = vpow2.f32 %v6687_v51  ;;  %vm2689_vm8 = vmor %vm2687_vm7, %vm2688_vm6 }
 0x3e6   : > { %v2683_v59 = vmul.f32 %v7382_v40, %v2682_v4  ;;  %v2680_v38 = vsel %vm2679_vm5, %v7380_v46, %v2676_v16  ;;  %v2138_v52 = vpop.f32.mrf.mxu2 }
 0x3e7   : > { %7387 = vrcp.f32 %v2235_v6  ;;  %v2139_v30 = vadd.f32 %v2138_v52, %v9474_v60  ;;  %v2831_v19 = vmul.f32 %v2680_v38, %v2607_v28  ;;  %v2430_v37 = vand.u32 2147483648, %v2235_v6 }
 0x3e8   : > { %v2684_v45 = vmul.f32 0.5, %v2683_v59  ;;  %v2428_v51 = vand.u32 2147483647, %v2235_v6  ;;  %vm2424_vm10 = vweird.f32 %v2235_v6 }
 0x3e9   : > { %v9743_v1 = vadd.f32 %v2139_v30, %v9554_v10  ;;  %v2848_v14 = vmul.f32 %v9740_v62, %v2831_v19 }
 0x3ea   : > { %v2685_v18 = vsub.f32 1.5, %v2684_v45  ;;  %vm2429_vm12 = vcmp.eq.f32.partialorder %v2428_v51, 8.507059e+37 }
 0x3eb   : > { %v7386_v56 = vpop.eup %7385  ;;  %v6688_v46 = vmul.f32 -1.442695, %v9743_v1  ;;  %v9757_v33 = vadd.f32 %v9751_v36, %v2848_v14 }
 0x3ec   : > { %v2686_v44 = vmul.f32 %v7382_v40, %v2685_v18  ;;  %v9748_v21 = vadd.f32 1.0, %v7386_v56 }
 0x3ed   : > { %v7388_v24 = vpop.eup %7387  ;;  %7389 = vpow2.f32 %v6688_v46 }
 0x3ee   : > { %v2690_v39 = vsel %vm2689_vm8, %v7382_v40, %v2686_v44  ;;  %v2420_v23 = vmul.f32 %v7388_v24, %v2235_v6  ;;  %7391 = vrcp.f32 %v9748_v21  ;;  %v2140_v20 = vpop.f32.mrf.mxu2  ;;  %vm2425_vm9 = vweird.f32 %v7388_v24 }
 0x3ef   : > { %v2832_v2 = vmul.f32 %v2690_v39, %v2608_v17  ;;  %v2141_v5 = vadd.f32 %v2140_v20, %v9474_v60  ;;  %vm2426_vm11 = vmor %vm2424_vm10, %vm2425_vm9  ;;  %v2431_v44 = vor.u32 1.1754944e-38, %v2430_v37  ;;  %vm2439_vm14 = vweird.f32 %v9748_v21 }
 0x3f0   : > { %v2421_v42 = vsub.f32 1.0, %v2420_v23 }
 0x3f1   : > { %v2849_v63 = vmul.f32 %v9740_v62, %v2832_v2  ;;  %v9763_v16 = vadd.f32 %v2141_v5, %v9557_v25 }
 0x3f2   : > { %v2422_v4 = vmul.f32 %v7388_v24, %v2421_v42 }
 0x3f3   : > { %v9760_v40 = vadd.f32 %v9751_v36, %v2849_v63  ;;  %v7390_v48 = vpop.eup %7389  ;;  %v6689_v60 = vmul.f32 -1.442695, %v9763_v16  ;;  %v2500_v45 = vpop.xlane.xlu2 %2499  ;;  %v2443_v63 = vand.u32 2147483647, %v9748_v21 }
 0x3f4   : > { %v2423_v38 = vadd.f32 %v7388_v24, %v2422_v4  ;;  %v7392_v28 = vpop.eup %7391  ;;  %v9768_v52 = vadd.f32 1.0, %v7390_v48  ;;  %v9771_v18 = vmul.f32 %v2500_v45, %v9158_v32 }
 0x3f5   : > { %v2913_v59 = vpack.c.bf16 %v9760_v40, %v9757_v33  ;;  %7393 = vpow2.f32 %v6689_v60  ;;  %v2564_v30 = vpop.xlane.xlu0 %2563  ;;  %v2435_v17 = vmul.f32 %v7392_v28, %v9748_v21  ;;  %vm2440_vm13 = vweird.f32 %v7392_v28 }
 0x3f6   : > { %v2427_v19 = vsel %vm2426_vm11, %v7388_v24, %v2423_v38  ;;  %7395 = vrcp.f32 %v9768_v52  ;;  %v2625_v56 = vmul.f32 %v9771_v18, %v9771_v18  ;;  %v2593_v6 = vmul.f32 %v2564_v30, %v9158_v32  ;;  %vm2441_vm15 = vmor %vm2439_vm14, %vm2440_vm13 }
 0x3f7   : > { %2994 = vmatmul.bf16.vlgmr.msra.gmra.mxu1 %v2913_v59  ;;  %v2432_v46 = vsel %vm2429_vm12, %v2431_v44, %v2427_v19  ;;  %v2436_v39 = vsub.f32 1.0, %v2435_v17  ;;  %v2445_v24 = vand.u32 2147483648, %v9748_v21  ;;  %vm2444_vm0 = vcmp.eq.f32.partialorder %v2443_v63, 8.507059e+37 }
 0x3f8   : > { %v2641_v2 = vsub.f32 %v2593_v6, %v2625_v56  ;;  %v9779_v14 = vmul.f32 %v2432_v46, %v9728_v3  ;;  %v2460_v56 = vand.u32 2147483648, %v9768_v52  ;;  %vm2454_vm2 = vweird.f32 %v9768_v52 }
 0x3f9   : > { %v2437_v11 = vmul.f32 %v7392_v28, %v2436_v39  ;;  %v2446_v60 = vor.u32 1.1754944e-38, %v2445_v24 }
 0x3fa   : > { %v9782_v23 = vadd.f32 0.1, %v2641_v2  ;;  %2519 = vadd.xlane.f32.xlu0 %v9779_v14  ;;  %v2555_v20 = vmul.f32 %v9779_v14, %v9779_v14 }
 0x3fb   : > { %v7394_v5 = vpop.eup %7393  ;;  %v2502_v42 = vpop.xlane.xlu1 %2501  ;;  %v2438_v4 = vadd.f32 %v7392_v28, %v2437_v11 }
 0x3fc   : > { %v7396_v3 = vpop.eup %7395  ;;  %v2238_v37 = vadd.f32 1.0, %v7394_v5  ;;  %7397 = vrsqrt.f32 %v9782_v23  ;;  %v9791_v59 = vmul.f32 %v2502_v42, %v9158_v32  ;;  %2583 = vadd.xlane.f32.xlu1 %v2555_v20  ;;  %v2461_v20 = vor.u32 1.1754944e-38, %v2460_v56 }
 0x3fd   : > { %v2566_v51 = vpop.xlane.xlu2 %2565  ;;  %v2442_v48 = vsel %vm2441_vm15, %v7392_v28, %v2438_v4  ;;  %v2450_v45 = vmul.f32 %v7396_v3, %v9768_v52  ;;  %vm2455_vm1 = vweird.f32 %v7396_v3  ;;  %v2458_v28 = vand.u32 2147483647, %v9768_v52 }
 0x3fe   : > { %7399 = vrcp.f32 %v2238_v37  ;;  %v2626_v38 = vmul.f32 %v9791_v59, %v9791_v59  ;;  %v2594_v21 = vmul.f32 %v2566_v51, %v9158_v32  ;;  %v2447_v30 = vsel %vm2444_vm0, %v2446_v60, %v2442_v48  ;;  %vm2456_vm3 = vmor %vm2454_vm2, %vm2455_vm1 }
 0x3ff   : > { %v2451_v19 = vsub.f32 1.0, %v2450_v45  ;;  %v9799_v17 = vmul.f32 %v2447_v30, %v9733_v22  ;;  %vm2459_vm4 = vcmp.eq.f32.partialorder %v2458_v28, 8.507059e+37  ;;  %v2473_v45 = vand.u32 2147483647, %v2238_v37 }
 0x400   : > { %v2642_v44 = vsub.f32 %v2594_v21, %v2626_v38  ;;  %v2475_v38 = vand.u32 2147483648, %v2238_v37  ;;  %vm2469_vm6 = vweird.f32 %v2238_v37  ;;  %vm2697_vm9 = vweird.f32 %v9782_v23 }
 0x401   : > { %v2452_v6 = vmul.f32 %v7396_v3, %v2451_v19  ;;  %2521 = vadd.xlane.f32.xlu2 %v9799_v17  ;;  %v2556_v2 = vmul.f32 %v9799_v17, %v9799_v17  ;;  %vm2474_vm10 = vcmp.eq.f32.partialorder %v2473_v45, 8.507059e+37 }
 0x402   : > { %v7398_v46 = vpop.eup %7397  ;;  %v2658_v39 = vadd.f32 0.1, %v2642_v44 }
 0x403   : > { %v2692_v11 = vmul.f32 %v7398_v46, %v9782_v23  ;;  %v2453_v24 = vadd.f32 %v7396_v3, %v2452_v6  ;;  %2585 = vadd.xlane.f32.xlu0 %v2556_v2  ;;  %vm2698_vm7 = vweird.f32 %v7398_v46 }
 0x404   : > { %v7400_v22 = vpop.eup %7399  ;;  %7401 = vrsqrt.f32 %v2658_v39  ;;  %vm2699_vm11 = vmor %vm2697_vm9, %vm2698_vm7  ;;  %vm2707_vm13 = vweird.f32 %v2658_v39 }
 0x405   : > { %v2693_v63 = vmul.f32 %v7398_v46, %v2692_v11  ;;  %v2457_v5 = vsel %vm2456_vm3, %v7396_v3, %v2453_v24  ;;  %v2465_v42 = vmul.f32 %v7400_v22, %v2238_v37  ;;  %vm2470_vm5 = vweird.f32 %v7400_v22 }
 0x406   : > { %v2462_v4 = vsel %vm2459_vm4, %v2461_v20, %v2457_v5  ;;  %vm2471_vm8 = vmor %vm2469_vm6, %vm2470_vm5  ;;  %v2609_v37 = vsub.f32 %v9568_v55, %v9771_v18 }
 0x407   : > { %v2694_v51 = vmul.f32 0.5, %v2693_v63  ;;  %v9809_v48 = vmul.f32 %v2462_v4, %v9743_v1  ;;  %v2466_v60 = vsub.f32 1.0, %v2465_v42  ;;  %v2476_v1 = vor.u32 1.1754944e-38, %v2475_v38 }
 0x408   : > { %v2610_v42 = vsub.f32 %v9578_v57, %v9791_v59 }
 0x409   : > { %v2695_v21 = vsub.f32 1.5, %v2694_v51  ;;  %v2557_v52 = vmul.f32 %v9809_v48, %v9809_v48  ;;  %v2467_v30 = vmul.f32 %v7400_v22, %v2466_v60  ;;  %2523 = vadd.xlane.f32.xlu2 %v9809_v48 }
 0x40a   : > { %v7402_v19 = vpop.eup %7401 }
 0x40b   : > { %v2696_v3 = vmul.f32 %v7398_v46, %v2695_v21  ;;  %v2702_v44 = vmul.f32 %v7402_v19, %v2658_v39  ;;  %v2468_v56 = vadd.f32 %v7400_v22, %v2467_v30  ;;  %2587 = vadd.xlane.f32.xlu0 %v2557_v52  ;;  %vm2708_vm12 = vweird.f32 %v7402_v19 }
 0x40c   : > { %vm2709_vm14 = vmor %vm2707_vm13, %vm2708_vm12 }
 0x40d   : > { %v2703_v6 = vmul.f32 %v7402_v19, %v2702_v44  ;;  %v2472_v28 = vsel %vm2471_vm8, %v7400_v22, %v2468_v56  ;;  %v2700_v20 = vsel %vm2699_vm11, %v7398_v46, %v2696_v3 }
 0x40e   : > { %v2477_v2 = vsel %vm2474_vm10, %v2476_v1, %v2472_v28  ;;  %v2833_v5 = vmul.f32 %v2700_v20, %v2609_v37 }
 0x40f   : > { %v2704_v11 = vmul.f32 0.5, %v2703_v6  ;;  %v9816_v24 = vmul.f32 %v2477_v2, %v9763_v16 }
 0x410   : > { %v2850_v51 = vmul.f32 %v9740_v62, %v2833_v5 }
 0x411   : > { %v2705_v63 = vsub.f32 1.5, %v2704_v11  ;;  %2525 = vadd.xlane.f32.xlu1 %v9816_v24  ;;  %v2558_v23 = vmul.f32 %v9816_v24, %v9816_v24 }
 0x412   : > { %v9830_v39 = vadd.f32 %v9751_v36, %v2850_v51 }
 0x413   : > { %v2706_v22 = vmul.f32 %v7402_v19, %v2705_v63  ;;  %2589 = vadd.xlane.f32.xlu2 %v2558_v23 }
 0x415   : > { %v2710_v4 = vsel %vm2709_vm14, %v7402_v19, %v2706_v22 }
 0x416   : > { %v2834_v18 = vmul.f32 %v2710_v4, %v2610_v42 }
 0x417   : > { %v2504_v16 = vpop.xlane.xlu1 %2503 }
 0x418   : > { %v2531_v46 = vmul.f32 %v2504_v16, %v9158_v32  ;;  %v2851_v38 = vmul.f32 %v9740_v62, %v2834_v18 }
 0x419   : > { %v2568_v55 = vpop.xlane.xlu2 %2567 }
 0x41a   : > { %v2627_v60 = vmul.f32 %v2531_v46, %v2531_v46  ;;  %v2595_v45 = vmul.f32 %v2568_v55, %v9158_v32  ;;  %v9833_v57 = vadd.f32 %v9751_v36, %v2851_v38 }
 0x41c   : > { %v2643_v21 = vsub.f32 %v2595_v45, %v2627_v60  ;;  %v2914_v52 = vpack.c.bf16 %v9833_v57, %v9830_v39 }
 0x41e   : > { %v2659_v59 = vadd.f32 0.1, %v2643_v21  ;;  %2999 = vmatmul.bf16.gmra.mxu1 %v2914_v52 }
 0x41f   : > { %v2506_v30 = vpop.xlane.xlu0 %2505 }
 0x420   : > { %7403 = vrsqrt.f32 %v2659_v59  ;;  %v2532_v19 = vmul.f32 %v2506_v30, %v9158_v32  ;;  %vm2717_vm0 = vweird.f32 %v2659_v59 }
 0x421   : > { %v2570_v3 = vpop.xlane.xlu1 %2569 }
 0x422   : > { %v2628_v44 = vmul.f32 %v2532_v19, %v2532_v19  ;;  %v2596_v56 = vmul.f32 %v2570_v3, %v9158_v32 }
 0x424   : > { %v2644_v1 = vsub.f32 %v2596_v56, %v2628_v44 }
 0x426   : > { %v7404_v6 = vpop.eup %7403  ;;  %v2660_v28 = vadd.f32 0.1, %v2644_v1 }
 0x427   : > { %v2712_v2 = vmul.f32 %v7404_v6, %v2659_v59  ;;  %v2508_v11 = vpop.xlane.xlu0 %2507  ;;  %vm2718_vm15 = vweird.f32 %v7404_v6 }
 0x428   : > { %7405 = vrsqrt.f32 %v2660_v28  ;;  %v9840_v20 = vmul.f32 %v2508_v11, %v9158_v32  ;;  %vm2719_vm1 = vmor %vm2717_vm0, %vm2718_vm15  ;;  %vm2727_vm3 = vweird.f32 %v2660_v28 }
 0x429   : > { %v2713_v37 = vmul.f32 %v7404_v6, %v2712_v2  ;;  %v2572_v63 = vpop.xlane.xlu1 %2571  ;;  %v2611_v2 = vsub.f32 %v9614_v53, %v2531_v46 }
 0x42a   : > { %v2629_v23 = vmul.f32 %v9840_v20, %v9840_v20  ;;  %v2597_v5 = vmul.f32 %v2572_v63, %v9158_v32 }
 0x42b   : > { %v2714_v22 = vmul.f32 0.5, %v2713_v37 }
 0x42c   : > { %v2645_v42 = vsub.f32 %v2597_v5, %v2629_v23 }
 0x42d   : > { %v2715_v16 = vsub.f32 1.5, %v2714_v22 }
 0x42e   : > { %v7406_v4 = vpop.eup %7405  ;;  %v2661_v55 = vadd.f32 0.1, %v2645_v42  ;;  %v2612_v42 = vsub.f32 %v9634_v35, %v2532_v19 }
 0x42f   : > { %v2722_v18 = vmul.f32 %v7406_v4, %v2660_v28  ;;  %v2510_v51 = vpop.xlane.xlu2 %2509  ;;  %v2716_v60 = vmul.f32 %v7404_v6, %v2715_v16  ;;  %vm2728_vm2 = vweird.f32 %v7406_v4 }
 0x430   : > { %7407 = vrsqrt.f32 %v2661_v55  ;;  %v9846_v45 = vmul.f32 %v2510_v51, %v9158_v32  ;;  %vm2729_vm4 = vmor %vm2727_vm3, %vm2728_vm2  ;;  %vm2737_vm6 = vweird.f32 %v2661_v55 }
 0x431   : > { %v2723_v38 = vmul.f32 %v7406_v4, %v2722_v18  ;;  %v2574_v21 = vpop.xlane.xlu0 %2573  ;;  %v2514_v3 = vpop.xlane.xlu1 %2513  ;;  %v2720_v1 = vsel %vm2719_vm1, %v7404_v6, %v2716_v60 }
 0x432   : > { %v2630_v52 = vmul.f32 %v9846_v45, %v9846_v45  ;;  %v2598_v30 = vmul.f32 %v2574_v21, %v9158_v32  ;;  %v2835_v22 = vmul.f32 %v2720_v1, %v2611_v2  ;;  %v9861_v35 = vmul.f32 %v2514_v3, %v9158_v32 }
 0x433   : > { %v2724_v44 = vmul.f32 0.5, %v2723_v38 }
 0x434   : > { %v2646_v56 = vsub.f32 %v2598_v30, %v2630_v52  ;;  %v2852_v21 = vmul.f32 %v9740_v62, %v2835_v22  ;;  %v2632_v3 = vmul.f32 %v9861_v35, %v9861_v35 }
 0x435   : > { %v2725_v11 = vsub.f32 1.5, %v2724_v44 }
 0x436   : > { %v7408_v37 = vpop.eup %7407  ;;  %v2662_v63 = vadd.f32 0.1, %v2646_v56 }
 0x437   : > { %v2726_v23 = vmul.f32 %v7406_v4, %v2725_v11  ;;  %v2732_v5 = vmul.f32 %v7408_v37, %v2661_v55  ;;  %v2512_v59 = vpop.xlane.xlu2 %2511  ;;  %vm2738_vm5 = vweird.f32 %v7408_v37  ;;  %v2613_v55 = vsub.f32 %v9654_v12, %v9840_v20 }
 0x438   : > { %7409 = vrsqrt.f32 %v2662_v63  ;;  %v9854_v16 = vmul.f32 %v2512_v59, %v9158_v32  ;;  %vm9875_vm7 = vmor %vm2737_vm6, %vm2738_vm5  ;;  %vm2747_vm9 = vweird.f32 %v2662_v63  ;;  %v2614_v20 = vsub.f32 %v9678_v58, %v9846_v45 }
 0x439   : > { %v2733_v18 = vmul.f32 %v7408_v37, %v2732_v5  ;;  %v2576_v6 = vpop.xlane.xlu0 %2575  ;;  %v2730_v51 = vsel %vm2729_vm4, %v7406_v4, %v2726_v23  ;;  %v2516_v60 = vpop.xlane.xlu1 %2515  ;;  %v9868_v23 = vadd.f32 %v9751_v36, %v2852_v21 }
 0x43a   : > { %v2631_v53 = vmul.f32 %v9854_v16, %v9854_v16  ;;  %v2599_v46 = vmul.f32 %v2576_v6, %v9158_v32  ;;  %v2836_v28 = vmul.f32 %v2730_v51, %v2612_v42 }
 0x43b   : > { %v2734_v38 = vmul.f32 0.5, %v2733_v18 }
 0x43c   : > { %v2647_v19 = vsub.f32 %v2599_v46, %v2631_v53  ;;  %v2853_v52 = vmul.f32 %v9740_v62, %v2836_v28  ;;  %v9887_v28 = vmul.f32 %v2516_v60, %v9158_v32 }
 0x43d   : > { %v2735_v30 = vsub.f32 1.5, %v2734_v38 }
 0x43e   : > { %v7410_v44 = vpop.eup %7409  ;;  %v2663_v56 = vadd.f32 0.1, %v2647_v19  ;;  %v9865_v4 = vadd.f32 %v9751_v36, %v2853_v52  ;;  %v2633_v60 = vmul.f32 %v9887_v28, %v9887_v28 }
 0x43f   : > { %v2736_v1 = vmul.f32 %v7408_v37, %v2735_v30  ;;  %v2742_v2 = vmul.f32 %v7410_v44, %v2662_v63  ;;  %v2578_v11 = vpop.xlane.xlu2 %2577  ;;  %vm2748_vm8 = vweird.f32 %v7410_v44 }
 0x440   : > { %7411 = vrsqrt.f32 %v2663_v56  ;;  %v2600_v5 = vmul.f32 %v2578_v11, %v9158_v32  ;;  %v2915_v22 = vpack.c.bf16 %v9865_v4, %v9868_v23  ;;  %vm2749_vm10 = vmor %vm2747_vm9, %vm2748_vm8  ;;  %vm2757_vm12 = vweird.f32 %v2663_v56 }
 0x441   : > { %v2743_v59 = vmul.f32 %v7410_v44, %v2742_v2  ;;  %v2518_v6 = vpop.xlane.xlu0 %2517  ;;  %v2740_v46 = vsel %vm9875_vm7, %v7408_v37, %v2736_v1 }
 0x442   : > { %v2648_v18 = vsub.f32 %v2600_v5, %v2632_v3  ;;  %v9880_v53 = vmul.f32 %v2518_v6, %v9158_v32  ;;  %3004 = vmatmul.bf16.gmra.mxu1 %v2915_v22  ;;  %v2582_v21 = vpop.xlane.xlu1 %2581  ;;  %v2837_v11 = vmul.f32 %v2740_v46, %v2613_v55 }
 0x443   : > { %v2744_v51 = vmul.f32 0.5, %v2743_v59  ;;  %v2602_v30 = vmul.f32 %v2582_v21, %v9158_v32 }
 0x444   : > { %v2664_v38 = vadd.f32 0.1, %v2648_v18  ;;  %v2634_v52 = vmul.f32 %v9880_v53, %v9880_v53 }
 0x445   : > { %v2745_v19 = vsub.f32 1.5, %v2744_v51  ;;  %v2854_v51 = vmul.f32 %v9740_v62, %v2837_v11 }
 0x446   : > { %v7412_v2 = vpop.eup %7411  ;;  %7413 = vrsqrt.f32 %v2664_v38  ;;  %v2650_v1 = vsub.f32 %v2602_v30, %v2634_v52  ;;  %vm2767_vm15 = vweird.f32 %v2664_v38 }
 0x447   : > { %v2746_v3 = vmul.f32 %v7410_v44, %v2745_v19  ;;  %v2752_v37 = vmul.f32 %v7412_v2, %v2663_v56  ;;  %v2580_v12 = vpop.xlane.xlu2 %2579  ;;  %vm2758_vm11 = vweird.f32 %v7412_v2  ;;  %v9900_v19 = vadd.f32 %v9751_v36, %v2854_v51 }
 0x448   : > { %v2601_v5 = vmul.f32 %v2580_v12, %v9158_v32  ;;  %v2666_v22 = vadd.f32 0.1, %v2650_v1  ;;  %vm2759_vm13 = vmor %vm2757_vm12, %vm2758_vm11  ;;  %v2615_v12 = vsub.f32 %v9694_v54, %v9854_v16 }
 0x449   : > { %v2753_v59 = vmul.f32 %v7412_v2, %v2752_v37  ;;  %v2750_v42 = vsel %vm2749_vm10, %v7410_v44, %v2746_v3 }
 0x44a   : > { %v2649_v18 = vsub.f32 %v2601_v5, %v2633_v60  ;;  %v2838_v6 = vmul.f32 %v2750_v42, %v2614_v20  ;;  %7415 = vrsqrt.f32 %v2666_v22  ;;  %vm2787_vm5 = vweird.f32 %v2666_v22 }
 0x44b   : > { %v2754_v63 = vmul.f32 0.5, %v2753_v59 }
 0x44c   : > { %v7414_v46 = vpop.eup %7413  ;;  %v2665_v55 = vadd.f32 0.1, %v2649_v18  ;;  %v2855_v21 = vmul.f32 %v9740_v62, %v2838_v6  ;;  %v2616_v6 = vsub.f32 %v9688_v13, %v9861_v35 }
 0x44d   : > { %v2755_v58 = vsub.f32 1.5, %v2754_v63  ;;  %v2762_v45 = vmul.f32 %v7414_v46, %v2664_v38  ;;  %vm2768_vm14 = vweird.f32 %v7414_v46 }
 0x44e   : > { %7417 = vrsqrt.f32 %v2665_v55  ;;  %v9903_v52 = vadd.f32 %v9751_v36, %v2855_v21  ;;  %vm2769_vm0 = vmor %vm2767_vm15, %vm2768_vm14  ;;  %vm2777_vm3 = vweird.f32 %v2665_v55 }
 0x44f   : > { %v2756_v44 = vmul.f32 %v7412_v2, %v2755_v58  ;;  %v2763_v30 = vmul.f32 %v7414_v46, %v2762_v45 }
 0x450   : > { %v2916_v11 = vpack.c.bf16 %v9903_v52, %v9900_v19  ;;  %v7416_v3 = vpop.eup %7415 }
 0x451   : > { %v2764_v37 = vmul.f32 0.5, %v2763_v30  ;;  %v2760_v1 = vsel %vm2759_vm13, %v7412_v2, %v2756_v44  ;;  %v2782_v20 = vmul.f32 %v7416_v3, %v2666_v22  ;;  %vm2788_vm2 = vweird.f32 %v7416_v3 }
 0x452   : > { %3009 = vmatmul.bf16.gmra.mxu1 %v2916_v11  ;;  %v2839_v42 = vmul.f32 %v2760_v1, %v2615_v12  ;;  %vm2789_vm6 = vmor %vm2787_vm5, %vm2788_vm2  ;;  %v2618_v12 = vsub.f32 %v9710_v43, %v9880_v53  ;;  %v9938_v43 = vld [vmem:[#allocation18] sm:$0xff] }
 0x453   : > { %v2765_v60 = vsub.f32 1.5, %v2764_v37  ;;  %v2783_v59 = vmul.f32 %v7416_v3, %v2782_v20  ;;  %v2617_v37 = vsub.f32 %v9701_v50, %v9887_v28  ;;  %v9941_v53 = vperm.slane %v9938_v43, 2 }
 0x454   : > { %v7418_v5 = vpop.eup %7417  ;;  %v2856_v54 = vmul.f32 %v9740_v62, %v2839_v42 }
 0x455   : > { %v2766_v18 = vmul.f32 %v7414_v46, %v2765_v60  ;;  %v2772_v56 = vmul.f32 %v7418_v5, %v2665_v55  ;;  %v2784_v51 = vmul.f32 0.5, %v2783_v59  ;;  %vm2778_vm1 = vweird.f32 %v7418_v5 }
 0x456   : > { %v9914_v30 = vadd.f32 %v9751_v36, %v2856_v54  ;;  %vm2779_vm4 = vmor %vm2777_vm3, %vm2778_vm1 }
 0x457   : > { %v2773_v63 = vmul.f32 %v7418_v5, %v2772_v56  ;;  %v2770_v2 = vsel %vm2769_vm0, %v7414_v46, %v2766_v18  ;;  %v2785_v16 = vsub.f32 1.5, %v2784_v51  ;;  %v9948_v51 = vadd.f32 %v9757_v33, %v9222_v41 }
 0x458   : > { %v2840_v21 = vmul.f32 %v2770_v2, %v2616_v6 }
 0x459   : > { %v2774_v58 = vmul.f32 0.5, %v2773_v63  ;;  %v2786_v13 = vmul.f32 %v7416_v3, %v2785_v16 }
 0x45a   : > { %v2857_v45 = vmul.f32 %v9740_v62, %v2840_v21 }
 0x45b   : > { %v2775_v44 = vsub.f32 1.5, %v2774_v58  ;;  %v2790_v1 = vsel %vm2789_vm6, %v7416_v3, %v2786_v13 }
 0x45c   : > { %v9917_v38 = vadd.f32 %v9751_v36, %v2857_v45  ;;  %v2842_v60 = vmul.f32 %v2790_v1, %v2618_v12 }
 0x45d   : > { %v2776_v35 = vmul.f32 %v7418_v5, %v2775_v44 }
 0x45e   : > { %v2917_v46 = vpack.c.bf16 %v9917_v38, %v9914_v30  ;;  %v2859_v55 = vmul.f32 %v9740_v62, %v2842_v60 }
 0x45f   : > { %v2780_v11 = vsel %vm2779_vm4, %v7418_v5, %v2776_v35  ;;  %v9963_v35 = vadd.f32 %v9760_v40, %v9225_v61 }
 0x460   : > { %3014 = vmatmul.bf16.vlgmr.msra.gmra.mxu3 %v2917_v46  ;;  %v2841_v20 = vmul.f32 %v2780_v11, %v2617_v37  ;;  %v9931_v22 = vadd.f32 %v9751_v36, %v2859_v55 }
 0x461   : > { %11864 = vst [vmem:[#allocation32_spill] sm:$0xff] %v9963_v35 }
 0x462   : > { %v2858_v59 = vmul.f32 %v9740_v62, %v2841_v20 }
 0x464   : > { %v9928_v42 = vadd.f32 %v9751_v36, %v2858_v59 }
 0x466   : > { %v2918_v50 = vpack.c.bf16 %v9931_v22, %v9928_v42 }
 0x46d   : > { %v2520_v28 = vpop.xlane.xlu0 %2519 }
 0x46e   : > { %v9936_v3 = vmul.f32 %v2520_v28, %v9158_v32 }
 0x46f   : > { %v2584_v5 = vpop.xlane.xlu1 %2583 }
 0x470   : > { %3019 = vmatmul.bf16.gmra.mxu3 %v2918_v50  ;;  %v2635_v18 = vmul.f32 %v9936_v3, %v9936_v3  ;;  %v2603_v56 = vmul.f32 %v2584_v5, %v9158_v32 }
 0x472   : > { %v2651_v63 = vsub.f32 %v2603_v56, %v2635_v18 }
 0x474   : > { %v2995_v6 = vpop.f32.mrf.mxu1  ;;  %v2667_v21 = vadd.f32 0.1, %v2651_v63  ;;  %v2522_v16 = vpop.xlane.xlu2 %2521 }
 0x475   : > { %v2996_v2 = vadd.f32 %v2995_v6, %v9941_v53  ;;  %v9955_v58 = vmul.f32 %v2522_v16, %v9158_v32 }
 0x476   : > { %7419 = vrsqrt.f32 %v2667_v21  ;;  %v2586_v44 = vpop.xlane.xlu0 %2585  ;;  %vm2797_vm8 = vweird.f32 %v2667_v21 }
 0x477   : > { %v9952_v54 = vadd.f32 %v2996_v2, %v9948_v51  ;;  %v2636_v13 = vmul.f32 %v9955_v58, %v9955_v58  ;;  %v2604_v41 = vmul.f32 %v2586_v44, %v9158_v32 }
 0x479   : > { %v6722_v45 = vmul.f32 -1.442695, %v9952_v54  ;;  %v2652_v46 = vsub.f32 %v2604_v41, %v2636_v13 }
 0x47b   : > { %7421 = vpow2.f32 %v6722_v45  ;;  %v2668_v1 = vadd.f32 0.1, %v2652_v46 }
 0x47c   : > { %v2997_v33 = vpop.f32.mrf.mxu1  ;;  %v7420_v37 = vpop.eup %7419 }
 0x47d   : > { %v2998_v11 = vadd.f32 %v2997_v33, %v9941_v53  ;;  %v2792_v20 = vmul.f32 %v7420_v37, %v2667_v21  ;;  %v2524_v60 = vpop.xlane.xlu2 %2523  ;;  %7423 = vrsqrt.f32 %v2668_v1  ;;  %vm2798_vm7 = vweird.f32 %v7420_v37 }
 0x47e   : > { %v9970_v55 = vmul.f32 %v2524_v60, %v9158_v32  ;;  %v2588_v40 = vpop.xlane.xlu0 %2587  ;;  %vm2799_vm9 = vmor %vm2797_vm8, %vm2798_vm7  ;;  %vm2807_vm12 = vweird.f32 %v2668_v1 }
 0x47f   : > { %v9967_v12 = vadd.f32 %v2998_v11, %v9963_v35  ;;  %v2793_v28 = vmul.f32 %v7420_v37, %v2792_v20  ;;  %v2605_v18 = vmul.f32 %v2588_v40, %v9158_v32 }
 0x480   : > { %v2637_v5 = vmul.f32 %v9970_v55, %v9970_v55 }
 0x481   : > { %v7422_v59 = vpop.eup %7421  ;;  %v6723_v50 = vmul.f32 -1.442695, %v9967_v12  ;;  %v2794_v56 = vmul.f32 0.5, %v2793_v28 }
 0x482   : > { %v3115_v61 = vadd.f32 1.0, %v7422_v59  ;;  %v2653_v6 = vsub.f32 %v2605_v18, %v2637_v5  ;;  %v2619_v5 = vsub.f32 %v9779_v14, %v9936_v3  ;;  %v2620_v3 = vsub.f32 %v9799_v17, %v9955_v58 }
 0x483   : > { %7425 = vpow2.f32 %v6723_v50  ;;  %v2795_v63 = vsub.f32 1.5, %v2794_v56  ;;  %v7424_v2 = vpop.eup %7423 }
 0x484   : > { %7427 = vrcp.f32 %v3115_v61  ;;  %v9976_v16 = vadd.f32 0.1, %v2653_v6  ;;  %v2526_v45 = vpop.xlane.xlu1 %2525  ;;  %v2802_v13 = vmul.f32 %v7424_v2, %v2668_v1  ;;  %vm2808_vm10 = vweird.f32 %v7424_v2 }
 0x485   : > { %v2796_v44 = vmul.f32 %v7420_v37, %v2795_v63  ;;  %v9979_v41 = vmul.f32 %v2526_v45, %v9158_v32  ;;  %v3142_v45 = vand.u32 2147483648, %v3115_v61  ;;  %vm2809_vm13 = vmor %vm2807_vm12, %vm2808_vm10  ;;  %vm3136_vm14 = vweird.f32 %v3115_v61 }
 0x486   : > { %7429 = vrsqrt.f32 %v9976_v16  ;;  %v2590_v46 = vpop.xlane.xlu2 %2589  ;;  %v2803_v20 = vmul.f32 %v7424_v2, %v2802_v13  ;;  %vm2817_vm4 = vweird.f32 %v9976_v16 }
 0x487   : > { %v2638_v59 = vmul.f32 %v9979_v41, %v9979_v41  ;;  %v2606_v50 = vmul.f32 %v2590_v46, %v9158_v32  ;;  %v2800_v28 = vsel %vm2799_vm9, %v7420_v37, %v2796_v44  ;;  %v3140_v37 = vand.u32 2147483647, %v3115_v61 }
 0x488   : > { %v2804_v18 = vmul.f32 0.5, %v2803_v20  ;;  %v2843_v63 = vmul.f32 %v2800_v28, %v2619_v5 }
 0x489   : > { %v7426_v33 = vpop.eup %7425  ;;  %v2654_v21 = vsub.f32 %v2606_v50, %v2638_v59  ;;  %vm3141_vm0 = vcmp.eq.f32.partialorder %v3140_v37, 8.507059e+37 }
 0x48a   : > { %v7428_v11 = vpop.eup %7427  ;;  %v9982_v60 = vadd.f32 1.0, %v7426_v33  ;;  %v2805_v6 = vsub.f32 1.5, %v2804_v18  ;;  %v2860_v28 = vmul.f32 %v9740_v62, %v2843_v63 }
 0x48b   : > { %v3132_v40 = vmul.f32 %v7428_v11, %v3115_v61  ;;  %v9992_v33 = vadd.f32 0.1, %v2654_v21  ;;  %vm3137_vm11 = vweird.f32 %v7428_v11 }
 0x48c   : > { %7431 = vrcp.f32 %v9982_v60  ;;  %v9990_v13 = vpop.eup %7429  ;;  %v2806_v44 = vmul.f32 %v7424_v2, %v2805_v6  ;;  %vm3138_vm15 = vmor %vm3136_vm14, %vm3137_vm11  ;;  %v3155_v6 = vand.u32 2147483647, %v9982_v60  ;;  %v3157_v63 = vand.u32 2147483648, %v9982_v60 }
 0x48d   : > { %v3133_v56 = vsub.f32 1.0, %v3132_v40  ;;  %v2812_v14 = vmul.f32 %v9990_v13, %v9976_v16  ;;  %7433 = vrsqrt.f32 %v9992_v33  ;;  %v3143_v40 = vor.u32 1.1754944e-38, %v3142_v45 }
 0x48e   : > { %v2810_v50 = vsel %vm2809_vm13, %v7424_v2, %v2806_v44  ;;  %v10007_v2 = vadd.f32 %v9751_v36, %v2860_v28  ;;  %vm2818_vm2 = vweird.f32 %v9990_v13  ;;  %vm3151_vm3 = vweird.f32 %v9982_v60 }
 0x48f   : > { %v3134_v35 = vmul.f32 %v7428_v11, %v3133_v56  ;;  %v2813_v59 = vmul.f32 %v9990_v13, %v2812_v14  ;;  %v2844_v1 = vmul.f32 %v2810_v50, %v2620_v3  ;;  %v3158_v50 = vor.u32 1.1754944e-38, %v3157_v63  ;;  %vm10024_vm6 = vmor %vm2817_vm4, %vm2818_vm2 }
 0x490   : > { %vm3156_vm7 = vcmp.eq.f32.partialorder %v3155_v6, 8.507059e+37  ;;  %vm2827_vm9 = vweird.f32 %v9992_v33 }
 0x491   : > { %v3135_v46 = vadd.f32 %v7428_v11, %v3134_v35  ;;  %v2814_v21 = vmul.f32 0.5, %v2813_v59  ;;  %v2861_v58 = vmul.f32 %v9740_v62, %v2844_v1 }
 0x492   : > { %v7432_v20 = vpop.eup %7431 }
 0x493   : > { %v3139_v5 = vsel %vm3138_vm15, %v7428_v11, %v3135_v46  ;;  %v3147_v18 = vmul.f32 %v7432_v20, %v9982_v60  ;;  %v2815_v56 = vsub.f32 1.5, %v2814_v21  ;;  %v7434_v11 = vpop.eup %7433  ;;  %v10012_v45 = vadd.f32 %v9751_v36, %v2861_v58 }
 0x494   : > { %v3144_v17 = vsel %vm3141_vm0, %v3143_v40, %v3139_v5  ;;  %vm3152_vm1 = vweird.f32 %v7432_v20  ;;  %v2822_v14 = vmul.f32 %v7434_v11, %v9992_v33  ;;  %v2621_v60 = vsub.f32 %v9809_v48, %v9970_v55 }
 0x495   : > { %v10004_v35 = vmul.f32 %v3144_v17, %v9952_v54  ;;  %v3148_v61 = vsub.f32 1.0, %v3147_v18  ;;  %v2816_v44 = vmul.f32 %v9990_v13, %v2815_v56  ;;  %v2919_v3 = vpack.c.bf16 %v10012_v45, %v10007_v2  ;;  %vm3153_vm5 = vmor %vm3151_vm3, %vm3152_vm1 }
 0x496   : > { %v2823_v59 = vmul.f32 %v7434_v11, %v2822_v14  ;;  %vm2828_vm8 = vweird.f32 %v7434_v11  ;;  %v10038_v58 = vadd.f32 %v9830_v39, %v9287_v49  ;;  %v2622_v48 = vsub.f32 %v9816_v24, %v9979_v41 }
 0x497   : > { %3387 = vadd.xlane.f32.xlu1 %v10004_v35  ;;  %v3435_v37 = vmul.f32 %v10004_v35, %v10004_v35  ;;  %v3149_v54 = vmul.f32 %v7432_v20, %v3148_v61  ;;  %3024 = vmatmul.bf16.gmra.mxu3 %v2919_v3  ;;  %v2820_v18 = vsel %vm10024_vm6, %v9990_v13, %v2816_v44  ;;  %vm2829_vm10 = vmor %vm2827_vm9, %vm2828_vm8 }
 0x498   : > { %v2824_v1 = vmul.f32 0.5, %v2823_v59  ;;  %v2845_v61 = vmul.f32 %v2820_v18, %v2621_v60 }
 0x499   : > { %3451 = vadd.xlane.f32.xlu2 %v3435_v37  ;;  %v3150_v46 = vadd.f32 %v7432_v20, %v3149_v54  ;;  %v10052_v54 = vadd.f32 %v9833_v57, %v9290_v9 }
 0x49a   : > { %v2825_v21 = vsub.f32 1.5, %v2824_v1  ;;  %v2862_v6 = vmul.f32 %v9740_v62, %v2845_v61  ;;  %v10068_v61 = vadd.f32 %v9868_v23, %v9383_v31 }
 0x49b   : > { %v3154_v40 = vsel %vm3153_vm5, %v7432_v20, %v3150_v46  ;;  %v3000_v17 = vpop.f32.mrf.mxu1 }
 0x49c   : > { %v3159_v5 = vsel %vm3156_vm7, %v3158_v50, %v3154_v40  ;;  %v3001_v20 = vadd.f32 %v3000_v17, %v9941_v53  ;;  %v2826_v56 = vmul.f32 %v7434_v11, %v2825_v21  ;;  %v10056_v24 = vadd.f32 %v9751_v36, %v2862_v6 }
 0x49d   : > { %v10034_v16 = vmul.f32 %v3159_v5, %v9967_v12 }
 0x49e   : > { %v3053_v12 = vadd.f32 %v3001_v20, %v10038_v58  ;;  %v2830_v49 = vsel %vm2829_vm10, %v7434_v11, %v2826_v56 }
 0x49f   : > { %3389 = vadd.xlane.f32.xlu0 %v10034_v16  ;;  %v3436_v13 = vmul.f32 %v10034_v16, %v10034_v16  ;;  %v2846_v55 = vmul.f32 %v2830_v49, %v2622_v48 }
 0x4a0   : > { %v6724_v39 = vmul.f32 -1.442695, %v3053_v12 }
 0x4a1   : > { %3453 = vadd.xlane.f32.xlu1 %v3436_v13  ;;  %v2863_v63 = vmul.f32 %v9740_v62, %v2846_v55 }
 0x4a2   : > { %7435 = vpow2.f32 %v6724_v39 }
 0x4a3   : > { %v3002_v37 = vpop.f32.mrf.mxu1  ;;  %v10059_v41 = vadd.f32 %v9751_v36, %v2863_v63 }
 0x4a4   : > { %v3003_v33 = vadd.f32 %v3002_v37, %v9941_v53 }
 0x4a5   : > { %v2920_v44 = vpack.c.bf16 %v10059_v41, %v10056_v24 }
 0x4a6   : > { %v3054_v11 = vadd.f32 %v3003_v33, %v10052_v54 }
 0x4a7   : > { %3029 = vmatmul.bf16.gmra.mxu3 %v2920_v44 }
 0x4a8   : > { %v7436_v14 = vpop.eup %7435  ;;  %v6725_v62 = vmul.f32 -1.442695, %v3054_v11 }
 0x4a9   : > { %v3117_v3 = vadd.f32 1.0, %v7436_v14 }
 0x4aa   : > { %7437 = vpow2.f32 %v6725_v62  ;;  %v10079_v62 = vadd.f32 %v9865_v4, %v9386_v0  ;;  %v10091_v0 = vadd.f32 %v9900_v19, %v9438_v34 }
 0x4ab   : > { %7439 = vrcp.f32 %v3117_v3  ;;  %v3172_v28 = vand.u32 2147483648, %v3117_v3  ;;  %v3170_v40 = vand.u32 2147483647, %v3117_v3  ;;  %vm3166_vm12 = vweird.f32 %v3117_v3 }
 0x4ad   : > { %v3173_v18 = vor.u32 1.1754944e-38, %v3172_v28  ;;  %vm3171_vm14 = vcmp.eq.f32.partialorder %v3170_v40, 8.507059e+37 }
 0x4b0   : > { %v7438_v9 = vpop.eup %7437 }
 0x4b1   : > { %v7440_v57 = vpop.eup %7439  ;;  %v3118_v46 = vadd.f32 1.0, %v7438_v9 }
 0x4b2   : > { %v3162_v59 = vmul.f32 %v7440_v57, %v3117_v3  ;;  %vm3167_vm11 = vweird.f32 %v7440_v57 }
 0x4b3   : > { %7441 = vrcp.f32 %v3118_v46  ;;  %vm3168_vm13 = vmor %vm3166_vm12, %vm3167_vm11  ;;  %v3185_v48 = vand.u32 2147483647, %v3118_v46  ;;  %v3187_v49 = vand.u32 2147483648, %v3118_v46  ;;  %vm3181_vm0 = vweird.f32 %v3118_v46 }
 0x4b4   : > { %v3163_v50 = vsub.f32 1.0, %v3162_v59 }
 0x4b5   : > { %v3188_v31 = vor.u32 1.1754944e-38, %v3187_v49  ;;  %vm3186_vm2 = vcmp.eq.f32.partialorder %v3185_v48, 8.507059e+37 }
 0x4b6   : > { %v3164_v36 = vmul.f32 %v7440_v57, %v3163_v50 }
 0x4b8   : > { %v3165_v1 = vadd.f32 %v7440_v57, %v3164_v36 }
 0x4b9   : > { %v7442_v5 = vpop.eup %7441 }
 0x4ba   : > { %v3169_v60 = vsel %vm3168_vm13, %v7440_v57, %v3165_v1  ;;  %v3177_v21 = vmul.f32 %v7442_v5, %v3118_v46  ;;  %vm3182_vm15 = vweird.f32 %v7442_v5 }
 0x4bb   : > { %v3174_v17 = vsel %vm3171_vm14, %v3173_v18, %v3169_v60  ;;  %vm3183_vm1 = vmor %vm3181_vm0, %vm3182_vm15 }
 0x4bc   : > { %v10064_v20 = vmul.f32 %v3174_v17, %v3053_v12  ;;  %v3178_v13 = vsub.f32 1.0, %v3177_v21  ;;  %v10100_v21 = vadd.f32 %v9903_v52, %v9444_v26 }
 0x4be   : > { %3391 = vadd.xlane.f32.xlu0 %v10064_v20  ;;  %v3437_v39 = vmul.f32 %v10064_v20, %v10064_v20  ;;  %v3179_v6 = vmul.f32 %v7442_v5, %v3178_v13 }
 0x4bf   : > { %v3005_v56 = vpop.f32.mrf.mxu1 }
 0x4c0   : > { %v3006_v55 = vadd.f32 %v3005_v56, %v9941_v53  ;;  %3455 = vadd.xlane.f32.xlu1 %v3437_v39  ;;  %v3180_v63 = vadd.f32 %v7442_v5, %v3179_v6 }
 0x4c2   : > { %v3055_v12 = vadd.f32 %v3006_v55, %v10068_v61  ;;  %v3184_v37 = vsel %vm3183_vm1, %v7442_v5, %v3180_v63 }
 0x4c3   : > { %v3189_v33 = vsel %vm3186_vm2, %v3188_v31, %v3184_v37 }
 0x4c4   : > { %v6726_v23 = vmul.f32 -1.442695, %v3055_v12  ;;  %v10075_v44 = vmul.f32 %v3189_v33, %v3054_v11 }
 0x4c6   : > { %7443 = vpow2.f32 %v6726_v23  ;;  %3393 = vadd.xlane.f32.xlu2 %v10075_v44  ;;  %v3438_v3 = vmul.f32 %v10075_v44, %v10075_v44 }
 0x4c7   : > { %v3007_v14 = vpop.f32.mrf.mxu1 }
 0x4c8   : > { %v3008_v9 = vadd.f32 %v3007_v14, %v9941_v53  ;;  %3457 = vadd.xlane.f32.xlu0 %v3438_v3 }
 0x4ca   : > { %v10086_v57 = vadd.f32 %v3008_v9, %v10079_v62 }
 0x4cc   : > { %v7444_v46 = vpop.eup %7443  ;;  %v6727_v11 = vmul.f32 -1.442695, %v10086_v57 }
 0x4cd   : > { %v3119_v59 = vadd.f32 1.0, %v7444_v46 }
 0x4ce   : > { %7445 = vpow2.f32 %v6727_v11 }
 0x4cf   : > { %7447 = vrcp.f32 %v3119_v59  ;;  %v3010_v50 = vpop.f32.mrf.mxu1  ;;  %v3202_v17 = vand.u32 2147483648, %v3119_v59  ;;  %v3200_v48 = vand.u32 2147483647, %v3119_v59  ;;  %vm3196_vm4 = vweird.f32 %v3119_v59 }
 0x4d0   : > { %v3011_v4 = vadd.f32 %v3010_v50, %v9941_v53 }
 0x4d1   : > { %v3203_v26 = vor.u32 1.1754944e-38, %v3202_v17  ;;  %vm3201_vm6 = vcmp.eq.f32.partialorder %v3200_v48, 8.507059e+37 }
 0x4d2   : > { %v10095_v28 = vadd.f32 %v3011_v4, %v10091_v0 }
 0x4d4   : > { %v7446_v36 = vpop.eup %7445  ;;  %v6728_v40 = vmul.f32 -1.442695, %v10095_v28 }
 0x4d5   : > { %v7448_v1 = vpop.eup %7447  ;;  %v3120_v5 = vadd.f32 1.0, %v7446_v36 }
 0x4d6   : > { %7449 = vpow2.f32 %v6728_v40  ;;  %v3192_v18 = vmul.f32 %v7448_v1, %v3119_v59  ;;  %vm3197_vm3 = vweird.f32 %v7448_v1  ;;  %v10114_v59 = vadd.f32 %v9914_v30, %v9432_v47 }
 0x4d7   : > { %7451 = vrcp.f32 %v3120_v5  ;;  %v3012_v60 = vpop.f32.mrf.mxu1  ;;  %vm3198_vm5 = vmor %vm3196_vm4, %vm3197_vm3  ;;  %v3217_v14 = vand.u32 2147483648, %v3120_v5  ;;  %v3215_v11 = vand.u32 2147483647, %v3120_v5  ;;  %vm3211_vm8 = vweird.f32 %v3120_v5 }
 0x4d8   : > { %v3013_v34 = vadd.f32 %v3012_v60, %v9941_v53  ;;  %v3193_v19 = vsub.f32 1.0, %v3192_v18 }
 0x4d9   : > { %v3218_v18 = vor.u32 1.1754944e-38, %v3217_v14  ;;  %vm3216_vm10 = vcmp.eq.f32.partialorder %v3215_v11, 8.507059e+37 }
 0x4da   : > { %v10104_v13 = vadd.f32 %v3013_v34, %v10100_v21  ;;  %v3194_v56 = vmul.f32 %v7448_v1, %v3193_v19 }
 0x4dc   : > { %v7450_v49 = vpop.eup %7449  ;;  %v6729_v39 = vmul.f32 -1.442695, %v10104_v13  ;;  %v3195_v55 = vadd.f32 %v7448_v1, %v3194_v56 }
 0x4dd   : > { %v7452_v6 = vpop.eup %7451  ;;  %v3121_v63 = vadd.f32 1.0, %v7450_v49 }
 0x4de   : > { %7453 = vpow2.f32 %v6729_v39  ;;  %v3199_v52 = vsel %vm3198_vm5, %v7448_v1, %v3195_v55  ;;  %v3207_v31 = vmul.f32 %v7452_v6, %v3120_v5  ;;  %vm3212_vm7 = vweird.f32 %v7452_v6 }
 0x4df   : > { %7455 = vrcp.f32 %v3121_v63  ;;  %v3204_v23 = vsel %vm3201_vm6, %v3203_v26, %v3199_v52  ;;  %vm3213_vm9 = vmor %vm3211_vm8, %vm3212_vm7  ;;  %v3232_v5 = vand.u32 2147483648, %v3121_v63  ;;  %v3230_v39 = vand.u32 2147483647, %v3121_v63 }
 0x4e0   : > { %v10107_v37 = vmul.f32 %v3204_v23, %v3055_v12  ;;  %v3208_v33 = vsub.f32 1.0, %v3207_v31  ;;  %v10129_v55 = vadd.f32 %v9917_v38, %v9435_v8  ;;  %vm3226_vm12 = vweird.f32 %v3121_v63 }
 0x4e1   : > { %v3233_v31 = vor.u32 1.1754944e-38, %v3232_v5  ;;  %vm3231_vm14 = vcmp.eq.f32.partialorder %v3230_v39, 8.507059e+37  ;;  %v10159_v39 = vadd.f32 %v9931_v22, %v9455_v27 }
 0x4e2   : > { %3395 = vadd.xlane.f32.xlu2 %v10107_v37  ;;  %v3439_v9 = vmul.f32 %v10107_v37, %v10107_v37  ;;  %v3209_v46 = vmul.f32 %v7452_v6, %v3208_v33 }
 0x4e3   : > { %v3015_v3 = vpop.f32.mrf.mxu3 }
 0x4e4   : > { %v3016_v50 = vadd.f32 %v3015_v3, %v9941_v53  ;;  %v7454_v4 = vpop.eup %7453  ;;  %3459 = vadd.xlane.f32.xlu0 %v3439_v9  ;;  %v3210_v12 = vadd.f32 %v7452_v6, %v3209_v46 }
 0x4e5   : > { %v7456_v36 = vpop.eup %7455  ;;  %v3122_v40 = vadd.f32 1.0, %v7454_v4 }
 0x4e6   : > { %v10118_v1 = vadd.f32 %v3016_v50, %v10114_v59  ;;  %v3214_v60 = vsel %vm3213_vm9, %v7452_v6, %v3210_v12  ;;  %v3222_v34 = vmul.f32 %v7456_v36, %v3121_v63  ;;  %vm3227_vm11 = vweird.f32 %v7456_v36 }
 0x4e7   : > { %7457 = vrcp.f32 %v3122_v40  ;;  %v3219_v30 = vsel %vm3216_vm10, %v3218_v18, %v3214_v60  ;;  %vm3228_vm13 = vmor %vm3226_vm12, %vm3227_vm11  ;;  %v3245_v63 = vand.u32 2147483647, %v3122_v40  ;;  %v3247_v11 = vand.u32 2147483648, %v3122_v40 }
 0x4e8   : > { %v6730_v47 = vmul.f32 -1.442695, %v10118_v1  ;;  %v10122_v19 = vmul.f32 %v3219_v30, %v10086_v57  ;;  %v3223_v17 = vsub.f32 1.0, %v3222_v34  ;;  %vm3241_vm0 = vweird.f32 %v3122_v40 }
 0x4e9   : > { %v3248_v34 = vor.u32 1.1754944e-38, %v3247_v11  ;;  %vm3246_vm2 = vcmp.eq.f32.partialorder %v3245_v63, 8.507059e+37 }
 0x4ea   : > { %7459 = vpow2.f32 %v6730_v47  ;;  %3397 = vadd.xlane.f32.xlu1 %v10122_v19  ;;  %v3440_v48 = vmul.f32 %v10122_v19, %v10122_v19  ;;  %v3224_v49 = vmul.f32 %v7456_v36, %v3223_v17 }
 0x4eb   : > { %v3017_v56 = vpop.f32.mrf.mxu3 }
 0x4ec   : > { %v3018_v6 = vadd.f32 %v3017_v56, %v9941_v53  ;;  %3461 = vadd.xlane.f32.xlu2 %v3440_v48  ;;  %v3225_v57 = vadd.f32 %v7456_v36, %v3224_v49 }
 0x4ed   : > { %v7458_v26 = vpop.eup %7457 }
 0x4ee   : > { %v10133_v52 = vadd.f32 %v3018_v6, %v10129_v55  ;;  %v3229_v23 = vsel %vm3228_vm13, %v7456_v36, %v3225_v57  ;;  %v3237_v33 = vmul.f32 %v7458_v26, %v3122_v40  ;;  %vm3242_vm15 = vweird.f32 %v7458_v26 }
 0x4ef   : > { %v3234_v9 = vsel %vm3231_vm14, %v3233_v31, %v3229_v23  ;;  %v10144_v36 = vadd.f32 %v9928_v42, %v9458_v15  ;;  %vm3243_vm1 = vmor %vm3241_vm0, %vm3242_vm15 }
 0x4f0   : > { %v7460_v14 = vpop.eup %7459  ;;  %v6731_v3 = vmul.f32 -1.442695, %v10133_v52  ;;  %v10137_v38 = vmul.f32 %v3234_v9, %v10095_v28  ;;  %v3238_v46 = vsub.f32 1.0, %v3237_v33 }
 0x4f1   : > { %v3123_v8 = vadd.f32 1.0, %v7460_v14 }
 0x4f2   : > { %7461 = vpow2.f32 %v6731_v3  ;;  %3399 = vadd.xlane.f32.xlu1 %v10137_v38  ;;  %v3441_v4 = vmul.f32 %v10137_v38, %v10137_v38  ;;  %v3239_v12 = vmul.f32 %v7458_v26, %v3238_v46 }
 0x4f3   : > { %7463 = vrcp.f32 %v3123_v8  ;;  %v3020_v50 = vpop.f32.mrf.mxu3  ;;  %v3260_v23 = vand.u32 2147483647, %v3123_v8  ;;  %vm3256_vm4 = vweird.f32 %v3123_v8 }
 0x4f4   : > { %v3021_v28 = vadd.f32 %v3020_v50, %v9941_v53  ;;  %3463 = vadd.xlane.f32.xlu2 %v3441_v4  ;;  %v3240_v18 = vadd.f32 %v7458_v26, %v3239_v12 }
 0x4f5   : > { %vm3261_vm6 = vcmp.eq.f32.partialorder %v3260_v23, 8.507059e+37 }
 0x4f6   : > { %v10148_v60 = vadd.f32 %v3021_v28, %v10144_v36  ;;  %v3244_v47 = vsel %vm3243_vm1, %v7458_v26, %v3240_v18  ;;  %v3262_v26 = vand.u32 2147483648, %v3123_v8 }
 0x4f7   : > { %v3249_v5 = vsel %vm3246_vm2, %v3248_v34, %v3244_v47 }
 0x4f8   : > { %v7462_v30 = vpop.eup %7461  ;;  %v6732_v17 = vmul.f32 -1.442695, %v10148_v60  ;;  %v10152_v15 = vmul.f32 %v3249_v5, %v10104_v13  ;;  %v3263_v27 = vor.u32 1.1754944e-38, %v3262_v26 }
 0x4f9   : > { %v7464_v56 = vpop.eup %7463  ;;  %v3124_v48 = vadd.f32 1.0, %v7462_v30 }
 0x4fa   : > { %7465 = vpow2.f32 %v6732_v17  ;;  %v3252_v42 = vmul.f32 %v7464_v56, %v3123_v8  ;;  %3401 = vadd.xlane.f32.xlu0 %v10152_v15  ;;  %v3442_v49 = vmul.f32 %v10152_v15, %v10152_v15  ;;  %vm3257_vm3 = vweird.f32 %v7464_v56 }
 0x4fb   : > { %7467 = vrcp.f32 %v3124_v48  ;;  %v3022_v40 = vpop.f32.mrf.mxu3  ;;  %vm3258_vm5 = vmor %vm3256_vm4, %vm3257_vm3  ;;  %v3277_v12 = vand.u32 2147483648, %v3124_v48  ;;  %v3275_v18 = vand.u32 2147483647, %v3124_v48  ;;  %vm3271_vm8 = vweird.f32 %v3124_v48 }
 0x4fc   : > { %v3023_v6 = vadd.f32 %v3022_v40, %v9941_v53  ;;  %v3253_v57 = vsub.f32 1.0, %v3252_v42  ;;  %3465 = vadd.xlane.f32.xlu1 %v3442_v49 }
 0x4fd   : > { %vm3276_vm10 = vcmp.eq.f32.partialorder %v3275_v18, 8.507059e+37 }
 0x4fe   : > { %v10163_v13 = vadd.f32 %v3023_v6, %v10159_v39  ;;  %v3254_v31 = vmul.f32 %v7464_v56, %v3253_v57 }
 0x500   : > { %v7466_v33 = vpop.eup %7465  ;;  %v6733_v14 = vmul.f32 -1.442695, %v10163_v13  ;;  %v3255_v3 = vadd.f32 %v7464_v56, %v3254_v31 }
 0x501   : > { %v7468_v9 = vpop.eup %7467  ;;  %v3125_v46 = vadd.f32 1.0, %v7466_v33 }
 0x502   : > { %7469 = vpow2.f32 %v6733_v14  ;;  %v3259_v22 = vsel %vm3258_vm5, %v7464_v56, %v3255_v3  ;;  %v3267_v63 = vmul.f32 %v7468_v9, %v3124_v48  ;;  %vm3272_vm7 = vweird.f32 %v7468_v9  ;;  %v6943_v48 = vld [vmem:[#allocation13 + $0x38] sm:$0xff] }
 0x503   : > { %7471 = vrcp.f32 %v3125_v46  ;;  %v3264_v11 = vsel %vm3261_vm6, %v3263_v27, %v3259_v22  ;;  %vm3273_vm9 = vmor %vm3271_vm8, %vm3272_vm7  ;;  %v3292_v33 = vand.u32 2147483648, %v3125_v46  ;;  %3878 = vmatpush.bf16.msrb.mxu2 %v6943_v48  ;;  %v6942_v27 = vld [vmem:[#allocation13 + $0x30] sm:$0xff]  ;;  %vm3286_vm12 = vweird.f32 %v3125_v46 }
 0x504   : > { %v10167_v50 = vmul.f32 %v3264_v11, %v10118_v1  ;;  %v3268_v4 = vsub.f32 1.0, %v3267_v63  ;;  %v3278_v1 = vor.u32 1.1754944e-38, %v3277_v12 }
 0x506   : > { %3403 = vadd.xlane.f32.xlu0 %v10167_v50  ;;  %v3443_v8 = vmul.f32 %v10167_v50, %v10167_v50  ;;  %v3269_v28 = vmul.f32 %v7468_v9, %v3268_v4  ;;  %v3293_v4 = vor.u32 1.1754944e-38, %v3292_v33 }
 0x507   : > { %3879 = vmatpush.bf16.msrb.mxu2 %v6942_v27  ;;  %v6939_v27 = vld [vmem:[#allocation13 + $0x18] sm:$0xff] }
 0x508   : > { %v7470_v34 = vpop.eup %7469  ;;  %3467 = vadd.xlane.f32.xlu1 %v3443_v8  ;;  %v3270_v47 = vadd.f32 %v7468_v9, %v3269_v28  ;;  %v6941_v28 = vld [vmem:[#allocation13 + $0x28] sm:$0xff] }
 0x509   : > { %v7472_v30 = vpop.eup %7471  ;;  %v10172_v17 = vadd.f32 1.0, %v7470_v34 }
 0x50a   : > { %v3388_v5 = vpop.xlane.xlu1 %3387  ;;  %v3274_v56 = vsel %vm3273_vm9, %v7468_v9, %v3270_v47  ;;  %v3282_v42 = vmul.f32 %v7472_v30, %v3125_v46  ;;  %vm3287_vm11 = vweird.f32 %v7472_v30  ;;  %v3290_v9 = vand.u32 2147483647, %v3125_v46 }
 0x50b   : > { %7473 = vrcp.f32 %v10172_v17  ;;  %v10176_v40 = vmul.f32 %v3388_v5, %v9158_v32  ;;  %v3279_v49 = vsel %vm3276_vm10, %v3278_v1, %v3274_v56  ;;  %vm3288_vm13 = vmor %vm3286_vm12, %vm3287_vm11  ;;  %3880 = vmatpush.bf16.msrb.mxu2 %v6941_v28  ;;  %v3305_v48 = vand.u32 2147483647, %v10172_v17  ;;  %v6938_v28 = vld [vmem:[#allocation13 + $0x10] sm:$0xff] }
 0x50c   : > { %v3452_v6 = vpop.xlane.xlu2 %3451  ;;  %v10179_v57 = vmul.f32 %v3279_v49, %v10133_v52  ;;  %v3283_v26 = vsub.f32 1.0, %v3282_v42  ;;  %vm3291_vm14 = vcmp.eq.f32.partialorder %v3290_v9, 8.507059e+37  ;;  %v3307_v42 = vand.u32 2147483648, %v10172_v17 }
 0x50d   : > { %v3515_v31 = vmul.f32 %v10176_v40, %v10176_v40  ;;  %v3483_v23 = vmul.f32 %v3452_v6, %v9158_v32  ;;  %vm3301_vm0 = vweird.f32 %v10172_v17  ;;  %vm3306_vm2 = vcmp.eq.f32.partialorder %v3305_v48, 8.507059e+37  ;;  %v6936_v48 = vld [vmem:[#allocation13] sm:$0xff] }
 0x50e   : > { %3405 = vadd.xlane.f32.xlu2 %v10179_v57  ;;  %v3444_v14 = vmul.f32 %v10179_v57, %v10179_v57  ;;  %v3284_v3 = vmul.f32 %v7472_v30, %v3283_v26 }
 0x50f   : > { %v3531_v52 = vsub.f32 %v3483_v23, %v3515_v31 }
 0x510   : > { %3469 = vadd.xlane.f32.xlu0 %v3444_v14  ;;  %v3285_v22 = vadd.f32 %v7472_v30, %v3284_v3  ;;  %v3308_v14 = vor.u32 1.1754944e-38, %v3307_v42 }
 0x511   : > { %v7474_v63 = vpop.eup %7473  ;;  %v3547_v11 = vadd.f32 0.1, %v3531_v52 }
 0x512   : > { %v3390_v12 = vpop.xlane.xlu0 %3389  ;;  %v3289_v8 = vsel %vm3288_vm13, %v7472_v30, %v3285_v22  ;;  %v3297_v18 = vmul.f32 %v7474_v63, %v10172_v17  ;;  %vm3302_vm15 = vweird.f32 %v7474_v63 }
 0x513   : > { %7475 = vrsqrt.f32 %v3547_v11  ;;  %v10189_v34 = vmul.f32 %v3390_v12, %v9158_v32  ;;  %v3294_v47 = vsel %vm3291_vm14, %v3293_v4, %v3289_v8  ;;  %vm3303_vm1 = vmor %vm3301_vm0, %vm3302_vm15  ;;  %vm3569_vm4 = vweird.f32 %v3547_v11 }
 0x514   : > { %v3454_v1 = vpop.xlane.xlu1 %3453  ;;  %v10192_v5 = vmul.f32 %v3294_v47, %v10148_v60  ;;  %v3298_v46 = vsub.f32 1.0, %v3297_v18  ;;  %v6940_v60 = vld [vmem:[#allocation13 + $0x20] sm:$0xff] }
 0x515   : > { %v3516_v56 = vmul.f32 %v10189_v34, %v10189_v34  ;;  %v3484_v30 = vmul.f32 %v3454_v1, %v9158_v32  ;;  %3881 = vmatpush.bf16.msrb.mxu2 %v6940_v60  ;;  %v10220_v60 = vadd.f32 %v10012_v45, %v9522_v7  ;;  %v3500_v7 = vsub.f32 %v10034_v16, %v10189_v34 }
 0x516   : > { %3407 = vadd.xlane.f32.xlu2 %v10192_v5  ;;  %v3445_v49 = vmul.f32 %v10192_v5, %v10192_v5  ;;  %v3299_v6 = vmul.f32 %v7474_v63, %v3298_v46 }
 0x517   : > { %v3532_v26 = vsub.f32 %v3484_v30, %v3516_v56  ;;  %v6937_v30 = vld [vmem:[#allocation13 + $0x8] sm:$0xff] }
 0x518   : > { %3471 = vadd.xlane.f32.xlu0 %v3445_v49  ;;  %v3300_v31 = vadd.f32 %v7474_v63, %v3299_v6 }
 0x519   : > { %v7476_v23 = vpop.eup %7475  ;;  %v3548_v33 = vadd.f32 0.1, %v3532_v26  ;;  %3882 = vmatpush.bf16.msrb.mxu2 %v6939_v27  ;;  %v3499_v26 = vsub.f32 %v10004_v35, %v10176_v40 }
 0x51a   : > { %v3564_v3 = vmul.f32 %v7476_v23, %v3547_v11  ;;  %v3304_v9 = vsel %vm3303_vm1, %v7474_v63, %v3300_v31  ;;  %v3025_v8 = vpop.f32.mrf.mxu3  ;;  %v10211_v63 = vadd.f32 %v10007_v2, %v9519_v29  ;;  %vm3570_vm3 = vweird.f32 %v7476_v23 }
 0x51b   : > { %7477 = vrsqrt.f32 %v3548_v33  ;;  %v3309_v52 = vsel %vm3306_vm2, %v3308_v14, %v3304_v9  ;;  %v3026_v18 = vadd.f32 %v3025_v8, %v9941_v53  ;;  %vm3571_vm5 = vmor %vm3569_vm4, %vm3570_vm3  ;;  %vm3579_vm7 = vweird.f32 %v3548_v33 }
 0x51c   : > { %v3565_v22 = vmul.f32 %v7476_v23, %v3564_v3  ;;  %v10204_v4 = vmul.f32 %v3309_v52, %v10163_v13 }
 0x51d   : > { %v10215_v13 = vadd.f32 %v3026_v18, %v10211_v63  ;;  %3883 = vmatpush.bf16.msrb.mxu2 %v6938_v28 }
 0x51e   : > { %v3566_v12 = vmul.f32 0.5, %v3565_v22  ;;  %3409 = vadd.xlane.f32.xlu1 %v10204_v4  ;;  %v3446_v17 = vmul.f32 %v10204_v4, %v10204_v4 }
 0x51f   : > { %v6734_v42 = vmul.f32 -1.442695, %v10215_v13 }
 0x520   : > { %v3567_v47 = vsub.f32 1.5, %v3566_v12  ;;  %3473 = vadd.xlane.f32.xlu2 %v3446_v17  ;;  %v7880_v12 = vld [vmem:[#allocation18 + $0x8] sm:$0x7f] }
 0x521   : > { %v7478_v1 = vpop.eup %7477  ;;  %7479 = vpow2.f32 %v6734_v42  ;;  %3884 = vmatpush.bf16.msrb.mxu2 %v6937_v30  ;;  %v10235_v8 = vperm.slane %v7880_v12, 4 }
 0x522   : > { %v3568_v46 = vmul.f32 %v7476_v23, %v3567_v47  ;;  %v3574_v56 = vmul.f32 %v7478_v1, %v3548_v33  ;;  %v3027_v6 = vpop.f32.mrf.mxu3  ;;  %vm3580_vm6 = vweird.f32 %v7478_v1  ;;  %v10239_v33 = vadd.f32 %v10056_v24, %v9554_v10 }
 0x523   : > { %v3028_v31 = vadd.f32 %v3027_v6, %v9941_v53  ;;  %vm3581_vm8 = vmor %vm3579_vm7, %vm3580_vm6 }
 0x524   : > { %v3575_v49 = vmul.f32 %v7478_v1, %v3574_v56  ;;  %v3572_v29 = vsel %vm3571_vm5, %v7476_v23, %v3568_v46  ;;  %v10229_v23 = vperm.slane %v9938_v43, 7 }
 0x525   : > { %v10226_v11 = vadd.f32 %v3028_v31, %v10220_v60  ;;  %v3723_v3 = vmul.f32 %v3572_v29, %v3499_v26  ;;  %3885 = vmatpush.bf16.msrb.mxu2 %v6936_v48 }
 0x526   : > { %v3576_v2 = vmul.f32 0.5, %v3575_v49 }
 0x527   : > { %v7480_v27 = vpop.eup %7479  ;;  %v6735_v35 = vmul.f32 -1.442695, %v10226_v11  ;;  %v3740_v22 = vmul.f32 %v10229_v23, %v3723_v3 }
 0x528   : > { %v3577_v14 = vsub.f32 1.5, %v3576_v2  ;;  %v3127_v40 = vadd.f32 1.0, %v7480_v27  ;;  %v10263_v2 = vadd.f32 %v10059_v41, %v9557_v25 }
 0x529   : > { %7481 = vpow2.f32 %v6735_v35  ;;  %v10247_v28 = vadd.f32 %v10235_v8, %v3740_v22 }
 0x52a   : > { %v3578_v9 = vmul.f32 %v7478_v1, %v3577_v14  ;;  %7483 = vrcp.f32 %v3127_v40  ;;  %v3030_v43 = vpop.f32.mrf.mxu3  ;;  %11867 = vst [vmem:[#allocation33_spill] sm:$0xff] %v10263_v2  ;;  %v3322_v27 = vand.u32 2147483648, %v3127_v40  ;;  %v3320_v41 = vand.u32 2147483647, %v3127_v40 }
 0x52b   : > { %v3031_v16 = vadd.f32 %v3030_v43, %v9941_v53  ;;  %vm3316_vm10 = vweird.f32 %v3127_v40 }
 0x52c   : > { %v3582_v45 = vsel %vm3581_vm8, %v7478_v1, %v3578_v9  ;;  %vm3321_vm12 = vcmp.eq.f32.partialorder %v3320_v41, 8.507059e+37 }
 0x52d   : > { %v3724_v52 = vmul.f32 %v3582_v45, %v3500_v7  ;;  %v10244_v17 = vadd.f32 %v3031_v16, %v10239_v33 }
 0x52f   : > { %v3741_v34 = vmul.f32 %v10229_v23, %v3724_v52  ;;  %v7482_v47 = vpop.eup %7481  ;;  %v6736_v1 = vmul.f32 -1.442695, %v10244_v17 }
 0x530   : > { %v7484_v24 = vpop.eup %7483  ;;  %v10255_v46 = vadd.f32 1.0, %v7482_v47  ;;  %v3323_v47 = vor.u32 1.1754944e-38, %v3322_v27 }
 0x531   : > { %v10250_v18 = vadd.f32 %v10235_v8, %v3741_v34  ;;  %v3392_v56 = vpop.xlane.xlu0 %3391  ;;  %7485 = vpow2.f32 %v6736_v1  ;;  %v3312_v42 = vmul.f32 %v7484_v24, %v3127_v40  ;;  %vm3317_vm9 = vweird.f32 %v7484_v24 }
 0x532   : > { %v10258_v30 = vmul.f32 %v3392_v56, %v9158_v32  ;;  %7487 = vrcp.f32 %v10255_v46  ;;  %v3032_v49 = vpop.f32.mrf.mxu3  ;;  %vm3318_vm11 = vmor %vm3316_vm10, %vm3317_vm9  ;;  %vm3331_vm14 = vweird.f32 %v10255_v46 }
 0x533   : > { %v3805_v10 = vpack.c.bf16 %v10250_v18, %v10247_v28  ;;  %v3456_v29 = vpop.xlane.xlu1 %3455  ;;  %v3033_v48 = vadd.f32 %v3032_v49, %v9941_v53  ;;  %v3313_v31 = vsub.f32 1.0, %v3312_v42 }
 0x534   : > { %v3517_v6 = vmul.f32 %v10258_v30, %v10258_v30  ;;  %v3485_v26 = vmul.f32 %v3456_v29, %v9158_v32  ;;  %v3337_v29 = vand.u32 2147483648, %v10255_v46 }
 0x535   : > { %3886 = vmatmul.bf16.vlgmr.msrb.gmra.mxu2 %v3805_v10  ;;  %v10270_v14 = vadd.f32 %v3033_v48, %v10263_v2  ;;  %v3314_v9 = vmul.f32 %v7484_v24, %v3313_v31 }
 0x536   : > { %v3533_v3 = vsub.f32 %v3485_v26, %v3517_v6 }
 0x537   : > { %v7486_v7 = vpop.eup %7485  ;;  %v6737_v35 = vmul.f32 -1.442695, %v10270_v14  ;;  %v3315_v22 = vadd.f32 %v7484_v24, %v3314_v9 }
 0x538   : > { %v10273_v25 = vadd.f32 0.1, %v3533_v3  ;;  %v7488_v45 = vpop.eup %7487  ;;  %v10275_v52 = vadd.f32 1.0, %v7486_v7  ;;  %v3338_v7 = vor.u32 1.1754944e-38, %v3337_v29 }
 0x539   : > { %v3394_v53 = vpop.xlane.xlu2 %3393  ;;  %7489 = vpow2.f32 %v6737_v35  ;;  %v3327_v43 = vmul.f32 %v7488_v45, %v10255_v46  ;;  %v3319_v34 = vsel %vm3318_vm11, %v7484_v24, %v3315_v22  ;;  %vm3332_vm13 = vweird.f32 %v7488_v45 }
 0x53a   : > { %v10278_v12 = vmul.f32 %v3394_v53, %v9158_v32  ;;  %7491 = vrcp.f32 %v10275_v52  ;;  %v3324_v40 = vsel %vm3321_vm12, %v3323_v47, %v3319_v34  ;;  %v3335_v24 = vand.u32 2147483647, %v10255_v46  ;;  %vm3333_vm15 = vmor %vm3331_vm14, %vm3332_vm13 }
 0x53b   : > { %v3458_v16 = vpop.xlane.xlu0 %3457  ;;  %7493 = vrsqrt.f32 %v10273_v25  ;;  %v3328_v56 = vsub.f32 1.0, %v3327_v43  ;;  %v10287_v49 = vmul.f32 %v3324_v40, %v10215_v13  ;;  %v3352_v46 = vand.u32 2147483648, %v10275_v52 }
 0x53c   : > { %v3518_v1 = vmul.f32 %v10278_v12, %v10278_v12  ;;  %v3486_v10 = vmul.f32 %v3458_v16, %v9158_v32  ;;  %vm3336_vm0 = vcmp.eq.f32.partialorder %v3335_v24, 8.507059e+37  ;;  %vm3346_vm2 = vweird.f32 %v10275_v52 }
 0x53d   : > { %v3329_v6 = vmul.f32 %v7488_v45, %v3328_v56  ;;  %3411 = vadd.xlane.f32.xlu1 %v10287_v49  ;;  %v3447_v31 = vmul.f32 %v10287_v49, %v10287_v49  ;;  %vm3589_vm6 = vweird.f32 %v10273_v25 }
 0x53e   : > { %v3534_v42 = vsub.f32 %v3486_v10, %v3518_v1  ;;  %v3350_v1 = vand.u32 2147483647, %v10275_v52 }
 0x53f   : > { %v7490_v48 = vpop.eup %7489  ;;  %v3330_v27 = vadd.f32 %v7488_v45, %v3329_v6  ;;  %3475 = vadd.xlane.f32.xlu2 %v3447_v31  ;;  %v3353_v6 = vor.u32 1.1754944e-38, %v3352_v46 }
 0x540   : > { %v10291_v26 = vadd.f32 0.1, %v3534_v42  ;;  %v7492_v3 = vpop.eup %7491  ;;  %v10296_v9 = vadd.f32 1.0, %v7490_v48  ;;  %vm3351_vm5 = vcmp.eq.f32.partialorder %v3350_v1, 8.507059e+37 }
 0x541   : > { %v7494_v13 = vpop.eup %7493  ;;  %v3342_v35 = vmul.f32 %v7492_v3, %v10275_v52  ;;  %v3334_v53 = vsel %vm3333_vm15, %v7488_v45, %v3330_v27  ;;  %vm3347_vm1 = vweird.f32 %v7492_v3 }
 0x542   : > { %7495 = vrsqrt.f32 %v10291_v26  ;;  %v3584_v41 = vmul.f32 %v7494_v13, %v10273_v25  ;;  %v3339_v22 = vsel %vm3336_vm0, %v3338_v7, %v3334_v53  ;;  %vm3348_vm3 = vmor %vm3346_vm2, %vm3347_vm1  ;;  %vm3590_vm4 = vweird.f32 %v7494_v13 }
 0x543   : > { %7497 = vrcp.f32 %v10296_v9  ;;  %v3343_v43 = vsub.f32 1.0, %v3342_v35  ;;  %v10304_v34 = vmul.f32 %v3339_v22, %v10226_v11  ;;  %vm10318_vm7 = vmor %vm3589_vm6, %vm3590_vm4  ;;  %v3365_v22 = vand.u32 2147483647, %v10296_v9 }
 0x544   : > { %v3585_v16 = vmul.f32 %v7494_v13, %v3584_v41  ;;  %vm3361_vm10 = vweird.f32 %v10296_v9  ;;  %vm3599_vm11 = vweird.f32 %v10291_v26 }
 0x545   : > { %v3344_v47 = vmul.f32 %v7492_v3, %v3343_v43  ;;  %3413 = vadd.xlane.f32.xlu0 %v10304_v34  ;;  %v3448_v40 = vmul.f32 %v10304_v34, %v10304_v34  ;;  %vm3366_vm14 = vcmp.eq.f32.partialorder %v3365_v22, 8.507059e+37 }
 0x546   : > { %v3586_v10 = vmul.f32 0.5, %v3585_v16 }
 0x547   : > { %v3345_v56 = vadd.f32 %v7492_v3, %v3344_v47  ;;  %3477 = vadd.xlane.f32.xlu1 %v3448_v40 }
 0x548   : > { %v7496_v45 = vpop.eup %7495  ;;  %v3587_v29 = vsub.f32 1.5, %v3586_v10 }
 0x549   : > { %v7498_v42 = vpop.eup %7497  ;;  %v3594_v11 = vmul.f32 %v7496_v45, %v10291_v26  ;;  %v3349_v24 = vsel %vm3348_vm3, %v7492_v3, %v3345_v56  ;;  %v3367_v3 = vand.u32 2147483648, %v10296_v9  ;;  %vm3600_vm9 = vweird.f32 %v7496_v45 }
 0x54a   : > { %v3357_v48 = vmul.f32 %v7498_v42, %v10296_v9  ;;  %v3588_v31 = vmul.f32 %v7494_v13, %v3587_v29  ;;  %v3354_v7 = vsel %vm3351_vm5, %v3353_v6, %v3349_v24  ;;  %vm3362_vm8 = vweird.f32 %v7498_v42  ;;  %vm3601_vm13 = vmor %vm3599_vm11, %vm3600_vm9 }
 0x54b   : > { %v3595_v27 = vmul.f32 %v7496_v45, %v3594_v11  ;;  %v10316_v35 = vmul.f32 %v3354_v7, %v10244_v17  ;;  %v3501_v17 = vsub.f32 %v10064_v20, %v10258_v30  ;;  %vm3363_vm12 = vmor %vm3361_vm10, %vm3362_vm8  ;;  %v3368_v10 = vor.u32 1.1754944e-38, %v3367_v3 }
 0x54c   : > { %v3358_v52 = vsub.f32 1.0, %v3357_v48  ;;  %v3592_v25 = vsel %vm10318_vm7, %v7494_v13, %v3588_v31  ;;  %v3502_v13 = vsub.f32 %v10075_v44, %v10278_v12 }
 0x54d   : > { %v3596_v53 = vmul.f32 0.5, %v3595_v27  ;;  %v3449_v43 = vmul.f32 %v10316_v35, %v10316_v35  ;;  %3415 = vadd.xlane.f32.xlu0 %v10316_v35  ;;  %v3725_v40 = vmul.f32 %v3592_v25, %v3501_v17 }
 0x54e   : > { %v3359_v16 = vmul.f32 %v7498_v42, %v3358_v52 }
 0x54f   : > { %v3597_v46 = vsub.f32 1.5, %v3596_v53  ;;  %3479 = vadd.xlane.f32.xlu1 %v3449_v43  ;;  %v3742_v24 = vmul.f32 %v10229_v23, %v3725_v40 }
 0x550   : > { %v3360_v47 = vadd.f32 %v7498_v42, %v3359_v16 }
 0x551   : > { %v3598_v1 = vmul.f32 %v7496_v45, %v3597_v46 }
 0x552   : > { %v3364_v56 = vsel %vm3363_vm12, %v7498_v42, %v3360_v47 }
 0x553   : > { %v3369_v20 = vsel %vm3366_vm14, %v3368_v10, %v3364_v56  ;;  %v3602_v29 = vsel %vm3601_vm13, %v7496_v45, %v3598_v1 }
 0x554   : > { %v10336_v11 = vmul.f32 %v3369_v20, %v10270_v14  ;;  %v3726_v6 = vmul.f32 %v3602_v29, %v3502_v13  ;;  %v10346_v14 = vadd.f32 %v10235_v8, %v3742_v24 }
 0x555   : > { %v3396_v30 = vpop.xlane.xlu2 %3395 }
 0x556   : > { %v3423_v9 = vmul.f32 %v3396_v30, %v9158_v32  ;;  %3417 = vadd.xlane.f32.xlu2 %v10336_v11  ;;  %v3450_v44 = vmul.f32 %v10336_v11, %v10336_v11  ;;  %v3743_v42 = vmul.f32 %v10229_v23, %v3726_v6 }
 0x557   : > { %v3460_v26 = vpop.xlane.xlu0 %3459 }
 0x558   : > { %v3519_v48 = vmul.f32 %v3423_v9, %v3423_v9  ;;  %v3487_v12 = vmul.f32 %v3460_v26, %v9158_v32  ;;  %3481 = vadd.xlane.f32.xlu0 %v3450_v44  ;;  %v10349_v31 = vadd.f32 %v10235_v8, %v3743_v42 }
 0x55a   : > { %v3535_v45 = vsub.f32 %v3487_v12, %v3519_v48  ;;  %v3806_v7 = vpack.c.bf16 %v10349_v31, %v10346_v14 }
 0x55c   : > { %v3551_v27 = vadd.f32 0.1, %v3535_v45  ;;  %3891 = vmatmul.bf16.gmra.mxu2 %v3806_v7 }
 0x55d   : > { %v3398_v52 = vpop.xlane.xlu1 %3397 }
 0x55e   : > { %7499 = vrsqrt.f32 %v3551_v27  ;;  %v3424_v41 = vmul.f32 %v3398_v52, %v9158_v32  ;;  %vm3609_vm0 = vweird.f32 %v3551_v27 }
 0x55f   : > { %v3462_v53 = vpop.xlane.xlu2 %3461 }
 0x560   : > { %v3520_v22 = vmul.f32 %v3424_v41, %v3424_v41  ;;  %v3488_v3 = vmul.f32 %v3462_v53, %v9158_v32 }
 0x562   : > { %v3536_v43 = vsub.f32 %v3488_v3, %v3520_v22  ;;  %v3503_v22 = vsub.f32 %v10107_v37, %v3423_v9 }
 0x564   : > { %v7500_v16 = vpop.eup %7499  ;;  %v3552_v25 = vadd.f32 0.1, %v3536_v43 }
 0x565   : > { %v3604_v17 = vmul.f32 %v7500_v16, %v3551_v27  ;;  %v3400_v46 = vpop.xlane.xlu1 %3399  ;;  %vm3610_vm15 = vweird.f32 %v7500_v16 }
 0x566   : > { %7501 = vrsqrt.f32 %v3552_v25  ;;  %v10356_v47 = vmul.f32 %v3400_v46, %v9158_v32  ;;  %vm3611_vm1 = vmor %vm3609_vm0, %vm3610_vm15  ;;  %vm3619_vm3 = vweird.f32 %v3552_v25 }
 0x567   : > { %v3605_v1 = vmul.f32 %v7500_v16, %v3604_v17  ;;  %v3464_v10 = vpop.xlane.xlu2 %3463 }
 0x568   : > { %v3521_v40 = vmul.f32 %v10356_v47, %v10356_v47  ;;  %v3489_v13 = vmul.f32 %v3464_v10, %v9158_v32 }
 0x569   : > { %v3606_v56 = vmul.f32 0.5, %v3605_v1 }
 0x56a   : > { %v3537_v20 = vsub.f32 %v3489_v13, %v3521_v40  ;;  %v3504_v40 = vsub.f32 %v10122_v19, %v3424_v41 }
 0x56b   : > { %v3607_v30 = vsub.f32 1.5, %v3606_v56 }
 0x56c   : > { %v7502_v29 = vpop.eup %7501  ;;  %v3553_v6 = vadd.f32 0.1, %v3537_v20 }
 0x56d   : > { %v3608_v26 = vmul.f32 %v7500_v16, %v3607_v30  ;;  %v3614_v24 = vmul.f32 %v7502_v29, %v3552_v25  ;;  %v3402_v48 = vpop.xlane.xlu0 %3401  ;;  %vm3620_vm2 = vweird.f32 %v7502_v29 }
 0x56e   : > { %7503 = vrsqrt.f32 %v3553_v6  ;;  %v10362_v44 = vmul.f32 %v3402_v48, %v9158_v32  ;;  %vm3621_vm4 = vmor %vm3619_vm3, %vm3620_vm2  ;;  %vm3629_vm6 = vweird.f32 %v3553_v6 }
 0x56f   : > { %v3615_v12 = vmul.f32 %v7502_v29, %v3614_v24  ;;  %v3466_v42 = vpop.xlane.xlu1 %3465  ;;  %v3612_v53 = vsel %vm3611_vm1, %v7500_v16, %v3608_v26 }
 0x570   : > { %v3522_v45 = vmul.f32 %v10362_v44, %v10362_v44  ;;  %v3490_v7 = vmul.f32 %v3466_v42, %v9158_v32  ;;  %v3727_v1 = vmul.f32 %v3612_v53, %v3503_v22 }
 0x571   : > { %v3616_v52 = vmul.f32 0.5, %v3615_v12 }
 0x572   : > { %v3538_v3 = vsub.f32 %v3490_v7, %v3522_v45  ;;  %v3744_v16 = vmul.f32 %v10229_v23, %v3727_v1 }
 0x573   : > { %v3617_v43 = vsub.f32 1.5, %v3616_v52 }
 0x574   : > { %v7504_v17 = vpop.eup %7503  ;;  %v3554_v46 = vadd.f32 0.1, %v3538_v3 }
 0x575   : > { %v3618_v10 = vmul.f32 %v7502_v29, %v3617_v43  ;;  %v3624_v27 = vmul.f32 %v7504_v17, %v3553_v6  ;;  %vm3630_vm5 = vweird.f32 %v7504_v17 }
 0x576   : > { %7505 = vrsqrt.f32 %v3554_v46  ;;  %vm3631_vm7 = vmor %vm3629_vm6, %vm3630_vm5  ;;  %vm3639_vm9 = vweird.f32 %v3554_v46 }
 0x577   : > { %v3625_v13 = vmul.f32 %v7504_v17, %v3624_v27  ;;  %v3622_v56 = vsel %vm3621_vm4, %v7502_v29, %v3618_v10  ;;  %v10378_v29 = vadd.f32 %v10235_v8, %v3744_v16  ;;  %v3505_v27 = vsub.f32 %v10137_v38, %v10356_v47 }
 0x578   : > { %v3728_v30 = vmul.f32 %v3622_v56, %v3504_v40 }
 0x579   : > { %v3404_v20 = vpop.xlane.xlu0 %3403  ;;  %v3626_v37 = vmul.f32 0.5, %v3625_v13 }
 0x57a   : > { %v10371_v9 = vmul.f32 %v3404_v20, %v9158_v32  ;;  %v3745_v24 = vmul.f32 %v10229_v23, %v3728_v30 }
 0x57b   : > { %v3468_v26 = vpop.xlane.xlu1 %3467  ;;  %v3627_v48 = vsub.f32 1.5, %v3626_v37  ;;  %v3506_v37 = vsub.f32 %v10152_v15, %v10362_v44 }
 0x57c   : > { %v3523_v25 = vmul.f32 %v10371_v9, %v10371_v9  ;;  %v3491_v19 = vmul.f32 %v3468_v26, %v9158_v32  ;;  %v7506_v41 = vpop.eup %7505  ;;  %v10381_v12 = vadd.f32 %v10235_v8, %v3745_v24 }
 0x57d   : > { %v3628_v42 = vmul.f32 %v7504_v17, %v3627_v48  ;;  %v3634_v45 = vmul.f32 %v7506_v41, %v3554_v46  ;;  %vm3640_vm8 = vweird.f32 %v7506_v41 }
 0x57e   : > { %v3539_v7 = vsub.f32 %v3491_v19, %v3523_v25  ;;  %v3807_v52 = vpack.c.bf16 %v10381_v12, %v10378_v29  ;;  %vm3641_vm10 = vmor %vm3639_vm9, %vm3640_vm8 }
 0x57f   : > { %v3635_v53 = vmul.f32 %v7506_v41, %v3634_v45  ;;  %v3632_v10 = vsel %vm3631_vm7, %v7504_v17, %v3628_v42 }
 0x580   : > { %v3555_v22 = vadd.f32 0.1, %v3539_v7  ;;  %3896 = vmatmul.bf16.gmra.mxu2 %v3807_v52  ;;  %v3729_v20 = vmul.f32 %v3632_v10, %v3505_v27 }
 0x581   : > { %v3406_v3 = vpop.xlane.xlu2 %3405  ;;  %v3636_v43 = vmul.f32 0.5, %v3635_v53 }
 0x582   : > { %7507 = vrsqrt.f32 %v3555_v22  ;;  %v10386_v1 = vmul.f32 %v3406_v3, %v9158_v32  ;;  %v3746_v25 = vmul.f32 %v10229_v23, %v3729_v20  ;;  %vm3649_vm12 = vweird.f32 %v3555_v22 }
 0x583   : > { %v3470_v40 = vpop.xlane.xlu0 %3469  ;;  %v3637_v13 = vsub.f32 1.5, %v3636_v43 }
 0x584   : > { %v3524_v6 = vmul.f32 %v10386_v1, %v10386_v1  ;;  %v3492_v56 = vmul.f32 %v3470_v40, %v9158_v32 }
 0x585   : > { %v3638_v30 = vmul.f32 %v7506_v41, %v3637_v13 }
 0x586   : > { %v3540_v16 = vsub.f32 %v3492_v56, %v3524_v6 }
 0x587   : > { %v3642_v24 = vsel %vm3641_vm10, %v7506_v41, %v3638_v30  ;;  %v10404_v41 = vadd.f32 %v10235_v8, %v3746_v25 }
 0x588   : > { %v7508_v17 = vpop.eup %7507  ;;  %v3556_v26 = vadd.f32 0.1, %v3540_v16  ;;  %v3730_v48 = vmul.f32 %v3642_v24, %v3506_v37 }
 0x589   : > { %v3644_v38 = vmul.f32 %v7508_v17, %v3555_v22  ;;  %v3408_v47 = vpop.xlane.xlu2 %3407  ;;  %vm3650_vm11 = vweird.f32 %v7508_v17 }
 0x58a   : > { %7509 = vrsqrt.f32 %v3556_v26  ;;  %v10397_v19 = vmul.f32 %v3408_v47, %v9158_v32  ;;  %v3747_v46 = vmul.f32 %v10229_v23, %v3730_v48  ;;  %vm3651_vm13 = vmor %vm3649_vm12, %vm3650_vm11  ;;  %v3507_v47 = vsub.f32 %v10167_v50, %v10371_v9 }
 0x58b   : > { %v3645_v42 = vmul.f32 %v7508_v17, %v3644_v38  ;;  %v3472_v45 = vpop.xlane.xlu0 %3471  ;;  %vm3659_vm15 = vweird.f32 %v3556_v26 }
 0x58c   : > { %v3525_v15 = vmul.f32 %v10397_v19, %v10397_v19  ;;  %v3493_v44 = vmul.f32 %v3472_v45, %v9158_v32  ;;  %v10407_v52 = vadd.f32 %v10235_v8, %v3747_v46 }
 0x58d   : > { %v3646_v7 = vmul.f32 0.5, %v3645_v42 }
 0x58e   : > { %v3541_v53 = vsub.f32 %v3493_v44, %v3525_v15  ;;  %v3808_v43 = vpack.c.bf16 %v10407_v52, %v10404_v41  ;;  %v3508_v44 = vsub.f32 %v10179_v57, %v10386_v1 }
 0x58f   : > { %v3647_v3 = vsub.f32 1.5, %v3646_v7 }
 0x590   : > { %v7510_v10 = vpop.eup %7509  ;;  %v3557_v27 = vadd.f32 0.1, %v3541_v53  ;;  %3901 = vmatmul.bf16.gmra.mxu2 %v3808_v43 }
 0x591   : > { %v3648_v40 = vmul.f32 %v7508_v17, %v3647_v3  ;;  %v3654_v13 = vmul.f32 %v7510_v10, %v3556_v26  ;;  %v3410_v6 = vpop.xlane.xlu1 %3409  ;;  %vm3660_vm14 = vweird.f32 %v7510_v10 }
 0x592   : > { %7511 = vrsqrt.f32 %v3557_v27  ;;  %v3430_v56 = vmul.f32 %v3410_v6, %v9158_v32  ;;  %vm3661_vm0 = vmor %vm3659_vm15, %vm3660_vm14  ;;  %vm3669_vm2 = vweird.f32 %v3557_v27 }
 0x593   : > { %v3655_v20 = vmul.f32 %v7510_v10, %v3654_v13  ;;  %v3474_v30 = vpop.xlane.xlu2 %3473  ;;  %v3652_v38 = vsel %vm3651_vm13, %v7508_v17, %v3648_v40 }
 0x594   : > { %v3526_v16 = vmul.f32 %v3430_v56, %v3430_v56  ;;  %v3494_v37 = vmul.f32 %v3474_v30, %v9158_v32  ;;  %v3731_v46 = vmul.f32 %v3652_v38, %v3507_v47  ;;  %v3510_v47 = vsub.f32 %v10204_v4, %v3430_v56 }
 0x595   : > { %v3656_v24 = vmul.f32 0.5, %v3655_v20 }
 0x596   : > { %v3542_v48 = vsub.f32 %v3494_v37, %v3526_v16  ;;  %v3748_v3 = vmul.f32 %v10229_v23, %v3731_v46  ;;  %v3509_v16 = vsub.f32 %v10192_v5, %v10397_v19  ;;  %v7881_v19 = vld [vmem:[#allocation18] sm:$0xff] }
 0x597   : > { %v3657_v25 = vsub.f32 1.5, %v3656_v24 }
 0x598   : > { %v7512_v42 = vpop.eup %7511  ;;  %v3558_v45 = vadd.f32 0.1, %v3542_v48  ;;  %v10420_v13 = vadd.f32 %v10235_v8, %v3748_v3 }
 0x599   : > { %v3658_v15 = vmul.f32 %v7510_v10, %v3657_v25  ;;  %v3664_v22 = vmul.f32 %v7512_v42, %v3557_v27  ;;  %vm3670_vm1 = vweird.f32 %v7512_v42 }
 0x59a   : > { %7513 = vrsqrt.f32 %v3558_v45  ;;  %vm3671_vm3 = vmor %vm3669_vm2, %vm3670_vm1  ;;  %vm3679_vm5 = vweird.f32 %v3558_v45 }
 0x59b   : > { %v3665_v7 = vmul.f32 %v7512_v42, %v3664_v22  ;;  %v3662_v53 = vsel %vm3661_vm0, %v7510_v10, %v3658_v15 }
 0x59c   : > { %v3732_v17 = vmul.f32 %v3662_v53, %v3508_v44 }
 0x59d   : > { %v3666_v50 = vmul.f32 0.5, %v3665_v7  ;;  %v10447_v7 = vadd.f32 %v10247_v28, %v9948_v51 }
 0x59e   : > { %v3749_v9 = vmul.f32 %v10229_v23, %v3732_v17 }
 0x59f   : > { %v3667_v43 = vsub.f32 1.5, %v3666_v50 }
 0x5a0   : > { %v7514_v40 = vpop.eup %7513  ;;  %v10423_v26 = vadd.f32 %v10235_v8, %v3749_v9 }
 0x5a1   : > { %v3668_v6 = vmul.f32 %v7512_v42, %v3667_v43  ;;  %v3674_v57 = vmul.f32 %v7514_v40, %v3558_v45  ;;  %vm3680_vm4 = vweird.f32 %v7514_v40  ;;  %v10440_v45 = vperm.slane %v7881_v19, 3 }
 0x5a2   : > { %v3809_v1 = vpack.c.bf16 %v10423_v26, %v10420_v13  ;;  %vm3681_vm6 = vmor %vm3679_vm5, %vm3680_vm4 }
 0x5a3   : > { %v3675_v10 = vmul.f32 %v7514_v40, %v3674_v57  ;;  %v3672_v30 = vsel %vm3671_vm3, %v7512_v42, %v3668_v6 }
 0x5a4   : > { %3906 = vmatmul.bf16.gmra.mxu2 %v3809_v1  ;;  %v3733_v24 = vmul.f32 %v3672_v30, %v3509_v16 }
 0x5a5   : > { %v3676_v20 = vmul.f32 0.5, %v3675_v10 }
 0x5a6   : > { %v3750_v27 = vmul.f32 %v10229_v23, %v3733_v24 }
 0x5a7   : > { %v3677_v37 = vsub.f32 1.5, %v3676_v20  ;;  %v11870_v20 = vld [vmem:[#allocation32_spill] sm:$0xff] }
 0x5a8   : > { %v10433_v15 = vadd.f32 %v10235_v8, %v3750_v27  ;;  %v10465_v30 = vadd.f32 %v10250_v18, %v11870_v20 }
 0x5a9   : > { %v3678_v38 = vmul.f32 %v7514_v40, %v3677_v37 }
 0x5ab   : > { %v3682_v48 = vsel %vm3681_vm6, %v7514_v40, %v3678_v38 }
 0x5ac   : > { %v3734_v25 = vmul.f32 %v3682_v48, %v3510_v47 }
 0x5ae   : > { %v3751_v46 = vmul.f32 %v10229_v23, %v3734_v25 }
 0x5b0   : > { %v10436_v42 = vadd.f32 %v10235_v8, %v3751_v46  ;;  %v3412_v4 = vpop.xlane.xlu1 %3411 }
 0x5b1   : > { %v10443_v56 = vmul.f32 %v3412_v4, %v9158_v32 }
 0x5b2   : > { %v3810_v5 = vpack.c.bf16 %v10436_v42, %v10433_v15  ;;  %v3476_v22 = vpop.xlane.xlu2 %3475 }
 0x5b3   : > { %v3527_v53 = vmul.f32 %v10443_v56, %v10443_v56  ;;  %v3495_v17 = vmul.f32 %v3476_v22, %v9158_v32 }
 0x5b4   : > { %3911 = vmatmul.bf16.gmra.mxu2 %v3810_v5 }
 0x5b5   : > { %v3543_v50 = vsub.f32 %v3495_v17, %v3527_v53 }
 0x5b7   : > { %v3559_v43 = vadd.f32 0.1, %v3543_v50 }
 0x5b8   : > { %v3887_v44 = vpop.f32.mrf.mxu2  ;;  %v3414_v40 = vpop.xlane.xlu0 %3413 }
 0x5b9   : > { %v3888_v3 = vadd.f32 %v3887_v44, %v10440_v45  ;;  %v10458_v57 = vmul.f32 %v3414_v40, %v9158_v32  ;;  %7515 = vrsqrt.f32 %v3559_v43  ;;  %vm3689_vm8 = vweird.f32 %v3559_v43 }
 0x5ba   : > { %v3478_v51 = vpop.xlane.xlu1 %3477 }
 0x5bb   : > { %v10454_v9 = vadd.f32 %v3888_v3, %v10447_v7  ;;  %v3528_v28 = vmul.f32 %v10458_v57, %v10458_v57  ;;  %v3496_v1 = vmul.f32 %v3478_v51, %v9158_v32 }
 0x5bd   : > { %v6770_v6 = vmul.f32 -1.442695, %v10454_v9  ;;  %v3544_v37 = vsub.f32 %v3496_v1, %v3528_v28 }
 0x5bf   : > { %7517 = vpow2.f32 %v6770_v6  ;;  %v3560_v38 = vadd.f32 0.1, %v3544_v37  ;;  %v7516_v47 = vpop.eup %7515 }
 0x5c0   : > { %v3889_v10 = vpop.f32.mrf.mxu2  ;;  %v3416_v48 = vpop.xlane.xlu0 %3415  ;;  %v3684_v46 = vmul.f32 %v7516_v47, %v3559_v43  ;;  %vm3690_vm7 = vweird.f32 %v7516_v47 }
 0x5c1   : > { %v3890_v16 = vadd.f32 %v3889_v10, %v10440_v45  ;;  %7519 = vrsqrt.f32 %v3560_v38  ;;  %v10473_v19 = vmul.f32 %v3416_v48, %v9158_v32  ;;  %vm3691_vm9 = vmor %vm3689_vm8, %vm3690_vm7  ;;  %vm3699_vm11 = vweird.f32 %v3560_v38 }
 0x5c2   : > { %v3480_v18 = vpop.xlane.xlu1 %3479  ;;  %v3685_v4 = vmul.f32 %v7516_v47, %v3684_v46 }
 0x5c3   : > { %v10469_v24 = vadd.f32 %v3890_v16, %v10465_v30  ;;  %v3497_v22 = vmul.f32 %v3480_v18, %v9158_v32  ;;  %v3529_v44 = vmul.f32 %v10473_v19, %v10473_v19 }
 0x5c4   : > { %v3686_v53 = vmul.f32 0.5, %v3685_v4 }
 0x5c5   : > { %v6771_v25 = vmul.f32 -1.442695, %v10469_v24  ;;  %v7518_v27 = vpop.eup %7517  ;;  %v3545_v17 = vsub.f32 %v3497_v22, %v3529_v44  ;;  %v3511_v22 = vsub.f32 %v10287_v49, %v10443_v56 }
 0x5c6   : > { %v4007_v5 = vadd.f32 1.0, %v7518_v27  ;;  %v3687_v50 = vsub.f32 1.5, %v3686_v53 }
 0x5c7   : > { %7521 = vpow2.f32 %v6771_v25  ;;  %v7520_v3 = vpop.eup %7519  ;;  %v10478_v28 = vadd.f32 0.1, %v3545_v17 }
 0x5c8   : > { %7523 = vrcp.f32 %v4007_v5  ;;  %v3694_v51 = vmul.f32 %v7520_v3, %v3560_v38  ;;  %v3688_v10 = vmul.f32 %v7516_v47, %v3687_v50  ;;  %vm3700_vm10 = vweird.f32 %v7520_v3 }
 0x5c9   : > { %v3418_v40 = vpop.xlane.xlu2 %3417  ;;  %7525 = vrsqrt.f32 %v10478_v28  ;;  %vm3701_vm13 = vmor %vm3699_vm11, %vm3700_vm10  ;;  %vm4028_vm14 = vweird.f32 %v4007_v5  ;;  %vm3709_vm5 = vweird.f32 %v10478_v28 }
 0x5ca   : > { %v10481_v1 = vmul.f32 %v3418_v40, %v9158_v32  ;;  %v3695_v48 = vmul.f32 %v7520_v3, %v3694_v51  ;;  %v3692_v18 = vsel %vm3691_vm9, %v7516_v47, %v3688_v10  ;;  %v4034_v40 = vand.u32 2147483648, %v4007_v5 }
 0x5cb   : > { %v3482_v16 = vpop.xlane.xlu0 %3481  ;;  %v3735_v50 = vmul.f32 %v3692_v18, %v3511_v22  ;;  %v3512_v10 = vsub.f32 %v10304_v34, %v10458_v57 }
 0x5cc   : > { %v3530_v25 = vmul.f32 %v10481_v1, %v10481_v1  ;;  %v3498_v27 = vmul.f32 %v3482_v16, %v9158_v32  ;;  %v3696_v46 = vmul.f32 0.5, %v3695_v48  ;;  %v4032_v16 = vand.u32 2147483647, %v4007_v5 }
 0x5cd   : > { %v7522_v6 = vpop.eup %7521  ;;  %v4035_v18 = vor.u32 1.1754944e-38, %v4034_v40 }
 0x5ce   : > { %v10483_v20 = vadd.f32 1.0, %v7522_v6  ;;  %v7524_v37 = vpop.eup %7523  ;;  %v3546_v44 = vsub.f32 %v3498_v27, %v3530_v25  ;;  %v3697_v53 = vsub.f32 1.5, %v3696_v46  ;;  %v3752_v46 = vmul.f32 %v10229_v23, %v3735_v50 }
 0x5cf   : > { %v4024_v4 = vmul.f32 %v7524_v37, %v4007_v5  ;;  %v10494_v6 = vpop.eup %7525  ;;  %vm4029_vm12 = vweird.f32 %v7524_v37  ;;  %vm4033_vm0 = vcmp.eq.f32.partialorder %v4032_v16, 8.507059e+37 }
 0x5d0   : > { %7527 = vrcp.f32 %v10483_v20  ;;  %v10492_v17 = vadd.f32 0.1, %v3546_v44  ;;  %v3698_v51 = vmul.f32 %v7520_v3, %v3697_v53  ;;  %v3704_v49 = vmul.f32 %v10494_v6, %v10478_v28  ;;  %vm4030_vm15 = vmor %vm4028_vm14, %vm4029_vm12 }
 0x5d1   : > { %v4025_v43 = vsub.f32 1.0, %v4024_v4  ;;  %v4047_v53 = vand.u32 2147483647, %v10483_v20  ;;  %v10511_v40 = vadd.f32 %v10235_v8, %v3752_v46  ;;  %vm4043_vm2 = vweird.f32 %v10483_v20 }
 0x5d2   : > { %7529 = vrsqrt.f32 %v10492_v17  ;;  %v3702_v56 = vsel %vm3701_vm13, %v7520_v3, %v3698_v51  ;;  %v3705_v25 = vmul.f32 %v10494_v6, %v3704_v49  ;;  %v4049_v3 = vand.u32 2147483648, %v10483_v20 }
 0x5d3   : > { %v4026_v2 = vmul.f32 %v7524_v37, %v4025_v43  ;;  %v3736_v27 = vmul.f32 %v3702_v56, %v3512_v10  ;;  %vm3710_vm3 = vweird.f32 %v10494_v6  ;;  %vm4048_vm6 = vcmp.eq.f32.partialorder %v4047_v53, 8.507059e+37 }
 0x5d4   : > { %v3706_v57 = vmul.f32 0.5, %v3705_v25  ;;  %v4050_v56 = vor.u32 1.1754944e-38, %v4049_v3  ;;  %vm3711_vm7 = vmor %vm3709_vm5, %vm3710_vm3  ;;  %vm3719_vm9 = vweird.f32 %v10492_v17  ;;  %v10548_v53 = vadd.f32 %v10349_v31, %v10052_v54 }
 0x5d5   : > { %v4027_v38 = vadd.f32 %v7524_v37, %v4026_v2  ;;  %v3753_v22 = vmul.f32 %v10229_v23, %v3736_v27 }
 0x5d6   : > { %v7528_v47 = vpop.eup %7527  ;;  %v3707_v50 = vsub.f32 1.5, %v3706_v57 }
 0x5d7   : > { %v4039_v48 = vmul.f32 %v7528_v47, %v10483_v20  ;;  %v4031_v4 = vsel %vm4030_vm15, %v7524_v37, %v4027_v38  ;;  %vm4044_vm1 = vweird.f32 %v7528_v47  ;;  %v10514_v37 = vadd.f32 %v10235_v8, %v3753_v22 }
 0x5d8   : > { %v4036_v44 = vsel %vm4033_vm0, %v4035_v18, %v4031_v4  ;;  %v7530_v43 = vpop.eup %7529  ;;  %v3708_v10 = vmul.f32 %v10494_v6, %v3707_v50  ;;  %vm4045_vm4 = vmor %vm4043_vm2, %vm4044_vm1  ;;  %v3513_v18 = vsub.f32 %v10316_v35, %v10473_v19  ;;  %v3514_v35 = vsub.f32 %v10336_v11, %v10481_v1 }
 0x5d9   : > { %v4040_v34 = vsub.f32 1.0, %v4039_v48  ;;  %v10507_v2 = vmul.f32 %v4036_v44, %v10454_v9  ;;  %v3714_v51 = vmul.f32 %v7530_v43, %v10492_v17  ;;  %v3811_v49 = vpack.c.bf16 %v10514_v37, %v10511_v40 }
 0x5da   : > { %v3712_v46 = vsel %vm3711_vm7, %v10494_v6, %v3708_v10  ;;  %vm3720_vm8 = vweird.f32 %v7530_v43 }
 0x5db   : > { %v4041_v5 = vmul.f32 %v7528_v47, %v4040_v34  ;;  %4279 = vadd.xlane.f32.xlu2 %v10507_v2  ;;  %v4327_v9 = vmul.f32 %v10507_v2, %v10507_v2  ;;  %v3715_v20 = vmul.f32 %v7530_v43, %v3714_v51  ;;  %3916 = vmatmul.bf16.gmra.mxu2 %v3811_v49  ;;  %vm3721_vm10 = vmor %vm3719_vm9, %vm3720_vm8 }
 0x5dc   : > { %v3737_v57 = vmul.f32 %v3712_v46, %v3513_v18 }
 0x5dd   : > { %v4042_v16 = vadd.f32 %v7528_v47, %v4041_v5  ;;  %4343 = vadd.xlane.f32.xlu0 %v4327_v9  ;;  %v3716_v25 = vmul.f32 0.5, %v3715_v20 }
 0x5de   : > { %v3754_v5 = vmul.f32 %v10229_v23, %v3737_v57  ;;  %v10564_v57 = vadd.f32 %v10378_v29, %v10068_v61 }
 0x5df   : > { %v4046_v38 = vsel %vm4045_vm4, %v7528_v47, %v4042_v16  ;;  %v3717_v4 = vsub.f32 1.5, %v3716_v25  ;;  %v3892_v34 = vpop.f32.mrf.mxu2  ;;  %v10537_v47 = vadd.f32 %v10346_v14, %v10038_v58 }
 0x5e0   : > { %v4051_v48 = vsel %vm4048_vm6, %v4050_v56, %v4046_v38  ;;  %v10552_v11 = vadd.f32 %v10235_v8, %v3754_v5 }
 0x5e1   : > { %v10527_v27 = vmul.f32 %v4051_v48, %v10469_v24  ;;  %v3893_v24 = vadd.f32 %v3892_v34, %v10440_v45  ;;  %v3718_v22 = vmul.f32 %v7530_v43, %v3717_v4 }
 0x5e3   : > { %4281 = vadd.xlane.f32.xlu1 %v10527_v27  ;;  %v4328_v28 = vmul.f32 %v10527_v27, %v10527_v27  ;;  %v3945_v19 = vadd.f32 %v3893_v24, %v10537_v47  ;;  %v3722_v6 = vsel %vm3721_vm10, %v7530_v43, %v3718_v22 }
 0x5e4   : > { %v3738_v3 = vmul.f32 %v3722_v6, %v3514_v35 }
 0x5e5   : > { %4345 = vadd.xlane.f32.xlu2 %v4328_v28  ;;  %v6772_v44 = vmul.f32 -1.442695, %v3945_v19 }
 0x5e6   : > { %v3755_v58 = vmul.f32 %v10229_v23, %v3738_v3 }
 0x5e7   : > { %7531 = vpow2.f32 %v6772_v44  ;;  %v3894_v14 = vpop.f32.mrf.mxu2 }
 0x5e8   : > { %v3895_v17 = vadd.f32 %v3894_v14, %v10440_v45  ;;  %v10555_v1 = vadd.f32 %v10235_v8, %v3755_v58 }
 0x5ea   : > { %v3946_v43 = vadd.f32 %v3895_v17, %v10548_v53  ;;  %v3812_v50 = vpack.c.bf16 %v10555_v1, %v10552_v11 }
 0x5ec   : > { %v6773_v23 = vmul.f32 -1.442695, %v3946_v43  ;;  %3921 = vmatmul.bf16.gmra.mxu2 %v3812_v50 }
 0x5ed   : > { %v7532_v51 = vpop.eup %7531 }
 0x5ee   : > { %v4009_v9 = vadd.f32 1.0, %v7532_v51  ;;  %7533 = vpow2.f32 %v6773_v23  ;;  %v10575_v51 = vadd.f32 %v10381_v12, %v10079_v62  ;;  %v10587_v62 = vadd.f32 %v10404_v41, %v10091_v0 }
 0x5f0   : > { %7535 = vrcp.f32 %v4009_v9  ;;  %v4064_v56 = vand.u32 2147483648, %v4009_v9  ;;  %v4062_v20 = vand.u32 2147483647, %v4009_v9  ;;  %vm4058_vm12 = vweird.f32 %v4009_v9 }
 0x5f2   : > { %v4065_v25 = vor.u32 1.1754944e-38, %v4064_v56  ;;  %vm4063_vm14 = vcmp.eq.f32.partialorder %v4062_v20, 8.507059e+37 }
 0x5f4   : > { %v7534_v54 = vpop.eup %7533 }
 0x5f5   : > { %v4010_v16 = vadd.f32 1.0, %v7534_v54 }
 0x5f6   : > { %v7536_v31 = vpop.eup %7535 }
 0x5f7   : > { %v4054_v10 = vmul.f32 %v7536_v31, %v4009_v9  ;;  %7537 = vrcp.f32 %v4010_v16  ;;  %vm4059_vm11 = vweird.f32 %v7536_v31  ;;  %v4079_v35 = vand.u32 2147483648, %v4010_v16 }
 0x5f8   : > { %vm4060_vm13 = vmor %vm4058_vm12, %vm4059_vm11  ;;  %v4077_v3 = vand.u32 2147483647, %v4010_v16  ;;  %vm4073_vm0 = vweird.f32 %v4010_v16 }
 0x5f9   : > { %v4055_v49 = vsub.f32 1.0, %v4054_v10  ;;  %v4080_v61 = vor.u32 1.1754944e-38, %v4079_v35 }
 0x5fa   : > { %vm4078_vm2 = vcmp.eq.f32.partialorder %v4077_v3, 8.507059e+37 }
 0x5fb   : > { %v4056_v8 = vmul.f32 %v7536_v31, %v4055_v49 }
 0x5fd   : > { %v4057_v38 = vadd.f32 %v7536_v31, %v4056_v8  ;;  %v7538_v48 = vpop.eup %7537 }
 0x5fe   : > { %v4069_v18 = vmul.f32 %v7538_v48, %v4010_v16  ;;  %vm4074_vm15 = vweird.f32 %v7538_v48 }
 0x5ff   : > { %v4061_v46 = vsel %vm4060_vm13, %v7536_v31, %v4057_v38  ;;  %vm4075_vm1 = vmor %vm4073_vm0, %vm4074_vm15 }
 0x600   : > { %v4066_v4 = vsel %vm4063_vm14, %v4065_v25, %v4061_v46  ;;  %v4070_v24 = vsub.f32 1.0, %v4069_v18  ;;  %v10596_v46 = vadd.f32 %v10407_v52, %v10100_v21 }
 0x601   : > { %v10560_v34 = vmul.f32 %v4066_v4, %v3945_v19 }
 0x602   : > { %v4071_v44 = vmul.f32 %v7538_v48, %v4070_v24 }
 0x603   : > { %v3897_v28 = vpop.f32.mrf.mxu2  ;;  %4283 = vadd.xlane.f32.xlu1 %v10560_v34  ;;  %v4329_v6 = vmul.f32 %v10560_v34, %v10560_v34 }
 0x604   : > { %v3898_v22 = vadd.f32 %v3897_v28, %v10440_v45  ;;  %v4072_v5 = vadd.f32 %v7538_v48, %v4071_v44 }
 0x605   : > { %4347 = vadd.xlane.f32.xlu2 %v4329_v6 }
 0x606   : > { %v3947_v19 = vadd.f32 %v3898_v22, %v10564_v57  ;;  %v4076_v29 = vsel %vm4075_vm1, %v7538_v48, %v4072_v5 }
 0x607   : > { %v4081_v14 = vsel %vm4078_vm2, %v4080_v61, %v4076_v29 }
 0x608   : > { %v6774_v58 = vmul.f32 -1.442695, %v3947_v19  ;;  %v10571_v17 = vmul.f32 %v4081_v14, %v3946_v43 }
 0x60a   : > { %7539 = vpow2.f32 %v6774_v58  ;;  %4285 = vadd.xlane.f32.xlu0 %v10571_v17  ;;  %v4330_v9 = vmul.f32 %v10571_v17, %v10571_v17 }
 0x60b   : > { %v3899_v50 = vpop.f32.mrf.mxu2 }
 0x60c   : > { %v3900_v23 = vadd.f32 %v3899_v50, %v10440_v45  ;;  %4349 = vadd.xlane.f32.xlu1 %v4330_v9 }
 0x60e   : > { %v10582_v54 = vadd.f32 %v3900_v23, %v10575_v51 }
 0x610   : > { %v7540_v31 = vpop.eup %7539  ;;  %v6775_v43 = vmul.f32 -1.442695, %v10582_v54 }
 0x611   : > { %v4011_v16 = vadd.f32 1.0, %v7540_v31 }
 0x612   : > { %7541 = vpow2.f32 %v6775_v43  ;;  %v10610_v43 = vadd.f32 %v10420_v13, %v10114_v59 }
 0x613   : > { %7543 = vrcp.f32 %v4011_v16  ;;  %v3902_v10 = vpop.f32.mrf.mxu2  ;;  %v4094_v18 = vand.u32 2147483648, %v4011_v16  ;;  %v4092_v24 = vand.u32 2147483647, %v4011_v16  ;;  %vm4088_vm4 = vweird.f32 %v4011_v16 }
 0x614   : > { %v3903_v12 = vadd.f32 %v3902_v10, %v10440_v45 }
 0x615   : > { %v4095_v21 = vor.u32 1.1754944e-38, %v4094_v18  ;;  %vm4093_vm6 = vcmp.eq.f32.partialorder %v4092_v24, 8.507059e+37 }
 0x616   : > { %v10591_v49 = vadd.f32 %v3903_v12, %v10587_v62 }
 0x618   : > { %v7542_v56 = vpop.eup %7541  ;;  %v6776_v8 = vmul.f32 -1.442695, %v10591_v49 }
 0x619   : > { %v7544_v20 = vpop.eup %7543  ;;  %v4012_v38 = vadd.f32 1.0, %v7542_v56 }
 0x61a   : > { %7545 = vpow2.f32 %v6776_v8  ;;  %v4084_v48 = vmul.f32 %v7544_v20, %v4011_v16  ;;  %vm4089_vm3 = vweird.f32 %v7544_v20 }
 0x61b   : > { %7547 = vrcp.f32 %v4012_v38  ;;  %v3904_v25 = vpop.f32.mrf.mxu2  ;;  %vm4090_vm5 = vmor %vm4088_vm4, %vm4089_vm3  ;;  %v4109_v14 = vand.u32 2147483648, %v4012_v38  ;;  %v4107_v31 = vand.u32 2147483647, %v4012_v38  ;;  %vm4103_vm8 = vweird.f32 %v4012_v38 }
 0x61c   : > { %v3905_v0 = vadd.f32 %v3904_v25, %v10440_v45  ;;  %v4085_v41 = vsub.f32 1.0, %v4084_v48 }
 0x61d   : > { %vm4108_vm10 = vcmp.eq.f32.partialorder %v4107_v31, 8.507059e+37 }
 0x61e   : > { %v10600_v4 = vadd.f32 %v3905_v0, %v10596_v46  ;;  %v4086_v28 = vmul.f32 %v7544_v20, %v4085_v41 }
 0x620   : > { %v7546_v22 = vpop.eup %7545  ;;  %v6777_v35 = vmul.f32 -1.442695, %v10600_v4  ;;  %v4087_v6 = vadd.f32 %v7544_v20, %v4086_v28 }
 0x621   : > { %v7548_v44 = vpop.eup %7547  ;;  %v4013_v3 = vadd.f32 1.0, %v7546_v22 }
 0x622   : > { %7549 = vpow2.f32 %v6777_v35  ;;  %v4091_v52 = vsel %vm4090_vm5, %v7544_v20, %v4087_v6  ;;  %v4099_v5 = vmul.f32 %v7548_v44, %v4012_v38  ;;  %vm4104_vm7 = vweird.f32 %v7548_v44 }
 0x623   : > { %7551 = vrcp.f32 %v4013_v3  ;;  %v4096_v58 = vsel %vm4093_vm6, %v4095_v21, %v4091_v52  ;;  %vm4105_vm9 = vmor %vm4103_vm8, %vm4104_vm7  ;;  %v4110_v20 = vor.u32 1.1754944e-38, %v4109_v14  ;;  %v4124_v38 = vand.u32 2147483648, %v4013_v3 }
 0x624   : > { %v10603_v61 = vmul.f32 %v4096_v58, %v3947_v19  ;;  %v4100_v29 = vsub.f32 1.0, %v4099_v5  ;;  %v4122_v22 = vand.u32 2147483647, %v4013_v3  ;;  %v10625_v35 = vadd.f32 %v10423_v26, %v10129_v55 }
 0x625   : > { %vm4118_vm12 = vweird.f32 %v4013_v3  ;;  %v4125_v52 = vor.u32 1.1754944e-38, %v4124_v38 }
 0x626   : > { %4287 = vadd.xlane.f32.xlu0 %v10603_v61  ;;  %v4331_v23 = vmul.f32 %v10603_v61, %v10603_v61  ;;  %v4101_v9 = vmul.f32 %v7548_v44, %v4100_v29  ;;  %vm4123_vm14 = vcmp.eq.f32.partialorder %v4122_v22, 8.507059e+37 }
 0x627   : > { %v3907_v50 = vpop.f32.mrf.mxu2 }
 0x628   : > { %v3908_v16 = vadd.f32 %v3907_v50, %v10440_v45  ;;  %v7550_v10 = vpop.eup %7549  ;;  %4351 = vadd.xlane.f32.xlu1 %v4331_v23  ;;  %v4102_v19 = vadd.f32 %v7548_v44, %v4101_v9 }
 0x629   : > { %v7552_v12 = vpop.eup %7551  ;;  %v4014_v56 = vadd.f32 1.0, %v7550_v10 }
 0x62a   : > { %v10614_v8 = vadd.f32 %v3908_v16, %v10610_v43  ;;  %v4106_v48 = vsel %vm4105_vm9, %v7548_v44, %v4102_v19  ;;  %v4114_v25 = vmul.f32 %v7552_v12, %v4013_v3  ;;  %vm4119_vm11 = vweird.f32 %v7552_v12 }
 0x62b   : > { %7553 = vrcp.f32 %v4014_v56  ;;  %v4111_v13 = vsel %vm4108_vm10, %v4110_v20, %v4106_v48  ;;  %vm4120_vm13 = vmor %vm4118_vm12, %vm4119_vm11  ;;  %v4137_v3 = vand.u32 2147483647, %v4014_v56  ;;  %v4139_v9 = vand.u32 2147483648, %v4014_v56 }
 0x62c   : > { %v6778_v59 = vmul.f32 -1.442695, %v10614_v8  ;;  %v10618_v0 = vmul.f32 %v4111_v13, %v10582_v54  ;;  %v4115_v41 = vsub.f32 1.0, %v4114_v25  ;;  %v10640_v19 = vadd.f32 %v10433_v15, %v10144_v36 }
 0x62d   : > { %vm4133_vm0 = vweird.f32 %v4014_v56  ;;  %v4140_v48 = vor.u32 1.1754944e-38, %v4139_v9  ;;  %vm4138_vm2 = vcmp.eq.f32.partialorder %v4137_v3, 8.507059e+37 }
 0x62e   : > { %7555 = vpow2.f32 %v6778_v59  ;;  %4289 = vadd.xlane.f32.xlu2 %v10618_v0  ;;  %v4332_v28 = vmul.f32 %v10618_v0, %v10618_v0  ;;  %v4116_v24 = vmul.f32 %v7552_v12, %v4115_v41 }
 0x62f   : > { %v3909_v18 = vpop.f32.mrf.mxu2 }
 0x630   : > { %v3910_v6 = vadd.f32 %v3909_v18, %v10440_v45  ;;  %4353 = vadd.xlane.f32.xlu0 %v4332_v28  ;;  %v4117_v54 = vadd.f32 %v7552_v12, %v4116_v24  ;;  %v10655_v24 = vadd.f32 %v10436_v42, %v10159_v39 }
 0x631   : > { %v7554_v44 = vpop.eup %7553 }
 0x632   : > { %v10629_v21 = vadd.f32 %v3910_v6, %v10625_v35  ;;  %v4121_v5 = vsel %vm4120_vm13, %v7552_v12, %v4117_v54  ;;  %v4129_v58 = vmul.f32 %v7554_v44, %v4014_v56  ;;  %vm4134_vm15 = vweird.f32 %v7554_v44 }
 0x633   : > { %v4126_v50 = vsel %vm4123_vm14, %v4125_v52, %v4121_v5  ;;  %vm4135_vm1 = vmor %vm4133_vm0, %vm4134_vm15 }
 0x634   : > { %v7556_v29 = vpop.eup %7555  ;;  %v6779_v14 = vmul.f32 -1.442695, %v10629_v21  ;;  %v10633_v26 = vmul.f32 %v4126_v50, %v10591_v49  ;;  %v4130_v23 = vsub.f32 1.0, %v4129_v58 }
 0x635   : > { %v4015_v55 = vadd.f32 1.0, %v7556_v29 }
 0x636   : > { %7557 = vpow2.f32 %v6779_v14  ;;  %4291 = vadd.xlane.f32.xlu2 %v10633_v26  ;;  %v4333_v16 = vmul.f32 %v10633_v26, %v10633_v26  ;;  %v4131_v10 = vmul.f32 %v7554_v44, %v4130_v23 }
 0x637   : > { %7559 = vrcp.f32 %v4015_v55  ;;  %v3912_v31 = vpop.f32.mrf.mxu2  ;;  %v4154_v54 = vand.u32 2147483648, %v4015_v55  ;;  %v4152_v52 = vand.u32 2147483647, %v4015_v55  ;;  %vm4148_vm4 = vweird.f32 %v4015_v55 }
 0x638   : > { %v3913_v49 = vadd.f32 %v3912_v31, %v10440_v45  ;;  %4355 = vadd.xlane.f32.xlu0 %v4333_v16  ;;  %v4132_v12 = vadd.f32 %v7554_v44, %v4131_v10 }
 0x639   : > { %v4155_v39 = vor.u32 1.1754944e-38, %v4154_v54  ;;  %vm4153_vm6 = vcmp.eq.f32.partialorder %v4152_v52, 8.507059e+37 }
 0x63a   : > { %v10644_v20 = vadd.f32 %v3913_v49, %v10640_v19  ;;  %v4136_v25 = vsel %vm4135_vm1, %v7554_v44, %v4132_v12 }
 0x63b   : > { %v4141_v41 = vsel %vm4138_vm2, %v4140_v48, %v4136_v25 }
 0x63c   : > { %v7558_v59 = vpop.eup %7557  ;;  %v6780_v13 = vmul.f32 -1.442695, %v10644_v20  ;;  %v10648_v36 = vmul.f32 %v4141_v41, %v10600_v4 }
 0x63d   : > { %v7560_v38 = vpop.eup %7559  ;;  %v4016_v18 = vadd.f32 1.0, %v7558_v59 }
 0x63e   : > { %7561 = vpow2.f32 %v6780_v13  ;;  %v4144_v15 = vmul.f32 %v7560_v38, %v4015_v55  ;;  %4293 = vadd.xlane.f32.xlu1 %v10648_v36  ;;  %v4334_v28 = vmul.f32 %v10648_v36, %v10648_v36  ;;  %vm4149_vm3 = vweird.f32 %v7560_v38 }
 0x63f   : > { %7563 = vrcp.f32 %v4016_v18  ;;  %v3914_v56 = vpop.f32.mrf.mxu2  ;;  %vm4150_vm5 = vmor %vm4148_vm4, %vm4149_vm3  ;;  %v4169_v16 = vand.u32 2147483648, %v4016_v18  ;;  %v4167_v49 = vand.u32 2147483647, %v4016_v18  ;;  %vm4163_vm8 = vweird.f32 %v4016_v18 }
 0x640   : > { %v3915_v22 = vadd.f32 %v3914_v56, %v10440_v45  ;;  %v4145_v6 = vsub.f32 1.0, %v4144_v15  ;;  %4357 = vadd.xlane.f32.xlu2 %v4334_v28  ;;  %v6951_v28 = vld [vmem:[#allocation15 + $0x38] sm:$0xff] }
 0x641   : > { %vm4168_vm10 = vcmp.eq.f32.partialorder %v4167_v49, 8.507059e+37  ;;  %4770 = vmatpush.bf16.msrb.mxu3 %v6951_v28 }
 0x642   : > { %v10659_v4 = vadd.f32 %v3915_v22, %v10655_v24  ;;  %v4146_v44 = vmul.f32 %v7560_v38, %v4145_v6 }
 0x644   : > { %v7562_v5 = vpop.eup %7561  ;;  %v6781_v58 = vmul.f32 -1.442695, %v10659_v4  ;;  %v4147_v29 = vadd.f32 %v7560_v38, %v4146_v44 }
 0x645   : > { %v7564_v14 = vpop.eup %7563  ;;  %v4017_v50 = vadd.f32 1.0, %v7562_v5 }
 0x646   : > { %7565 = vpow2.f32 %v6781_v58  ;;  %v4151_v42 = vsel %vm4150_vm5, %v7560_v38, %v4147_v29  ;;  %v4159_v23 = vmul.f32 %v7564_v14, %v4016_v18  ;;  %vm4164_vm7 = vweird.f32 %v7564_v14  ;;  %v6950_v29 = vld [vmem:[#allocation15 + $0x30] sm:$0xff] }
 0x647   : > { %7567 = vrcp.f32 %v4017_v50  ;;  %v4156_v3 = vsel %vm4153_vm6, %v4155_v39, %v4151_v42  ;;  %vm4165_vm9 = vmor %vm4163_vm8, %vm4164_vm7  ;;  %v4184_v18 = vand.u32 2147483648, %v4017_v50  ;;  %v4182_v5 = vand.u32 2147483647, %v4017_v50  ;;  %4771 = vmatpush.bf16.msrb.mxu3 %v6950_v29 }
 0x648   : > { %v10663_v9 = vmul.f32 %v4156_v3, %v10614_v8  ;;  %v4160_v31 = vsub.f32 1.0, %v4159_v23  ;;  %v4170_v8 = vor.u32 1.1754944e-38, %v4169_v16  ;;  %vm4178_vm12 = vweird.f32 %v4017_v50  ;;  %v6949_v16 = vld [vmem:[#allocation15 + $0x28] sm:$0xff] }
 0x649   : > { %v4185_v23 = vor.u32 1.1754944e-38, %v4184_v18  ;;  %vm4183_vm14 = vcmp.eq.f32.partialorder %v4182_v5, 8.507059e+37  ;;  %v6947_v5 = vld [vmem:[#allocation15 + $0x18] sm:$0xff] }
 0x64a   : > { %4295 = vadd.xlane.f32.xlu1 %v10663_v9  ;;  %v4335_v55 = vmul.f32 %v10663_v9, %v10663_v9  ;;  %v4161_v10 = vmul.f32 %v7564_v14, %v4160_v31 }
 0x64b   : > { %4772 = vmatpush.bf16.msrb.mxu3 %v6949_v16 }
 0x64c   : > { %v7566_v12 = vpop.eup %7565  ;;  %4359 = vadd.xlane.f32.xlu2 %v4335_v55  ;;  %v4162_v48 = vadd.f32 %v7564_v14, %v4161_v10 }
 0x64d   : > { %v7568_v25 = vpop.eup %7567  ;;  %v10668_v59 = vadd.f32 1.0, %v7566_v12 }
 0x64e   : > { %v4166_v13 = vsel %vm4165_vm9, %v7564_v14, %v4162_v48  ;;  %v4174_v41 = vmul.f32 %v7568_v25, %v4017_v50  ;;  %v4280_v15 = vpop.xlane.xlu2 %4279  ;;  %vm4179_vm11 = vweird.f32 %v7568_v25 }
 0x64f   : > { %7569 = vrcp.f32 %v10668_v59  ;;  %v4171_v38 = vsel %vm4168_vm10, %v4170_v8, %v4166_v13  ;;  %v10675_v6 = vmul.f32 %v4280_v15, %v9158_v32  ;;  %vm4180_vm13 = vmor %vm4178_vm12, %vm4179_vm11  ;;  %vm4193_vm0 = vweird.f32 %v10668_v59 }
 0x650   : > { %v10672_v56 = vmul.f32 %v4171_v38, %v10629_v21  ;;  %v4175_v22 = vsub.f32 1.0, %v4174_v41  ;;  %v4344_v54 = vpop.xlane.xlu0 %4343  ;;  %v4199_v41 = vand.u32 2147483648, %v10668_v59 }
 0x651   : > { %v4407_v21 = vmul.f32 %v10675_v6, %v10675_v6  ;;  %v4375_v58 = vmul.f32 %v4344_v54, %v9158_v32 }
 0x652   : > { %4297 = vadd.xlane.f32.xlu0 %v10672_v56  ;;  %v4336_v44 = vmul.f32 %v10672_v56, %v10672_v56  ;;  %v4176_v52 = vmul.f32 %v7568_v25, %v4175_v22  ;;  %v4200_v54 = vor.u32 1.1754944e-38, %v4199_v41  ;;  %v7882_v41 = vld [vmem:[#allocation18 + $0x8] sm:$0x7f] }
 0x653   : > { %v4423_v42 = vsub.f32 %v4375_v58, %v4407_v21 }
 0x654   : > { %4361 = vadd.xlane.f32.xlu1 %v4336_v44  ;;  %v4177_v14 = vadd.f32 %v7568_v25, %v4176_v52 }
 0x655   : > { %v7570_v39 = vpop.eup %7569  ;;  %v4439_v10 = vadd.f32 0.1, %v4423_v42 }
 0x656   : > { %v4282_v3 = vpop.xlane.xlu1 %4281  ;;  %v4181_v31 = vsel %vm4180_vm13, %v7568_v25, %v4177_v14  ;;  %v4189_v55 = vmul.f32 %v7570_v39, %v10668_v59  ;;  %v4197_v25 = vand.u32 2147483647, %v10668_v59  ;;  %vm4194_vm15 = vweird.f32 %v7570_v39 }
 0x657   : > { %v10685_v49 = vmul.f32 %v4282_v3, %v9158_v32  ;;  %v4186_v12 = vsel %vm4183_vm14, %v4185_v23, %v4181_v31  ;;  %7571 = vrsqrt.f32 %v4439_v10  ;;  %vm4195_vm1 = vmor %vm4193_vm0, %vm4194_vm15  ;;  %v6946_v3 = vld [vmem:[#allocation15 + $0x10] sm:$0xff]  ;;  %vm4461_vm4 = vweird.f32 %v4439_v10 }
 0x658   : > { %v4346_v48 = vpop.xlane.xlu2 %4345  ;;  %v10688_v8 = vmul.f32 %v4186_v12, %v10644_v20  ;;  %v4190_v50 = vsub.f32 1.0, %v4189_v55  ;;  %v6948_v20 = vld [vmem:[#allocation15 + $0x20] sm:$0xff]  ;;  %vm4198_vm2 = vcmp.eq.f32.partialorder %v4197_v25, 8.507059e+37 }
 0x659   : > { %v4408_v13 = vmul.f32 %v10685_v49, %v10685_v49  ;;  %v4376_v38 = vmul.f32 %v4346_v48, %v9158_v32  ;;  %4773 = vmatpush.bf16.msrb.mxu3 %v6948_v20  ;;  %v6945_v48 = vld [vmem:[#allocation15 + $0x8] sm:$0xff] }
 0x65a   : > { %4299 = vadd.xlane.f32.xlu0 %v10688_v8  ;;  %v4337_v15 = vmul.f32 %v10688_v8, %v10688_v8  ;;  %v4191_v28 = vmul.f32 %v7570_v39, %v4190_v50 }
 0x65b   : > { %v4424_v22 = vsub.f32 %v4376_v38, %v4408_v13  ;;  %v10716_v38 = vperm.slane %v7882_v41, 0 }
 0x65c   : > { %4363 = vadd.xlane.f32.xlu1 %v4337_v15  ;;  %v4192_v18 = vadd.f32 %v7570_v39, %v4191_v28 }
 0x65d   : > { %v4440_v44 = vadd.f32 0.1, %v4424_v22  ;;  %v7572_v21 = vpop.eup %7571  ;;  %4774 = vmatpush.bf16.msrb.mxu3 %v6947_v5  ;;  %v6944_v22 = vld [vmem:[#allocation15] sm:$0xff] }
 0x65e   : > { %v4196_v52 = vsel %vm4195_vm1, %v7570_v39, %v4192_v18  ;;  %v4456_v29 = vmul.f32 %v7572_v21, %v4439_v10  ;;  %v3917_v23 = vpop.f32.mrf.mxu2  ;;  %v10707_v39 = vadd.f32 %v10511_v40, %v10211_v63  ;;  %vm4462_vm3 = vweird.f32 %v7572_v21 }
 0x65f   : > { %v4201_v58 = vsel %vm4198_vm2, %v4200_v54, %v4196_v52  ;;  %7573 = vrsqrt.f32 %v4440_v44  ;;  %v3918_v16 = vadd.f32 %v3917_v23, %v10440_v45  ;;  %v4391_v63 = vsub.f32 %v10507_v2, %v10675_v6  ;;  %vm4463_vm5 = vmor %vm4461_vm4, %vm4462_vm3 }
 0x660   : > { %v10700_v14 = vmul.f32 %v4201_v58, %v10659_v4  ;;  %v4457_v42 = vmul.f32 %v7572_v21, %v4456_v29  ;;  %v10718_v54 = vperm.slane %v7882_v41, 5  ;;  %v10722_v10 = vadd.f32 %v10514_v37, %v10220_v60 }
 0x661   : > { %v10711_v12 = vadd.f32 %v3918_v16, %v10707_v39  ;;  %4775 = vmatpush.bf16.msrb.mxu3 %v6946_v3  ;;  %vm4471_vm7 = vweird.f32 %v4440_v44 }
 0x662   : > { %4301 = vadd.xlane.f32.xlu2 %v10700_v14  ;;  %v4338_v59 = vmul.f32 %v10700_v14, %v10700_v14  ;;  %v4458_v31 = vmul.f32 0.5, %v4457_v42  ;;  %v4392_v42 = vsub.f32 %v10527_v27, %v10685_v49 }
 0x663   : > { %v6782_v25 = vmul.f32 -1.442695, %v10711_v12 }
 0x664   : > { %4365 = vadd.xlane.f32.xlu0 %v4338_v59  ;;  %v4459_v4 = vsub.f32 1.5, %v4458_v31 }
 0x665   : > { %v7574_v55 = vpop.eup %7573  ;;  %7575 = vpow2.f32 %v6782_v25  ;;  %4776 = vmatpush.bf16.msrb.mxu3 %v6945_v48 }
 0x666   : > { %v4466_v50 = vmul.f32 %v7574_v55, %v4440_v44  ;;  %v4460_v13 = vmul.f32 %v7572_v21, %v4459_v4  ;;  %v3919_v20 = vpop.f32.mrf.mxu2  ;;  %vm4472_vm6 = vweird.f32 %v7574_v55  ;;  %v10739_v44 = vadd.f32 %v10552_v11, %v10239_v33 }
 0x667   : > { %v3920_v2 = vadd.f32 %v3919_v20, %v10440_v45  ;;  %vm4473_vm8 = vmor %vm4471_vm7, %vm4472_vm6 }
 0x668   : > { %v4467_v40 = vmul.f32 %v7574_v55, %v4466_v50  ;;  %v4464_v15 = vsel %vm4463_vm5, %v7572_v21, %v4460_v13 }
 0x669   : > { %v4615_v18 = vmul.f32 %v4464_v15, %v4391_v63  ;;  %v10727_v5 = vadd.f32 %v3920_v2, %v10722_v10  ;;  %4777 = vmatpush.bf16.msrb.mxu3 %v6944_v22  ;;  %v11871_v15 = vld [vmem:[#allocation33_spill] sm:$0xff] }
 0x66a   : > { %v4468_v28 = vmul.f32 0.5, %v4467_v40 }
 0x66b   : > { %v4632_v52 = vmul.f32 %v10716_v38, %v4615_v18  ;;  %v7576_v29 = vpop.eup %7575  ;;  %v6783_v60 = vmul.f32 -1.442695, %v10727_v5 }
 0x66c   : > { %v4469_v6 = vsub.f32 1.5, %v4468_v28  ;;  %v4019_v23 = vadd.f32 1.0, %v7576_v29 }
 0x66d   : > { %v4649_v58 = vadd.f32 %v10718_v54, %v4632_v52  ;;  %7577 = vpow2.f32 %v6783_v60 }
 0x66e   : > { %v4470_v21 = vmul.f32 %v7574_v55, %v4469_v6  ;;  %7579 = vrcp.f32 %v4019_v23  ;;  %vm4208_vm10 = vweird.f32 %v4019_v23 }
 0x66f   : > { %v10734_v59 = vadd.f32 %v4649_v58, %v10447_v7  ;;  %v3922_v31 = vpop.f32.mrf.mxu2 }
 0x670   : > { %v4474_v37 = vsel %vm4473_vm8, %v7574_v55, %v4470_v21  ;;  %v3923_v27 = vadd.f32 %v3922_v31, %v10440_v45  ;;  %v4214_v21 = vand.u32 2147483648, %v4019_v23 }
 0x671   : > { %v4616_v3 = vmul.f32 %v4474_v37, %v4392_v42  ;;  %4681 = vst [vmem:[#allocation2 + $0x30] sm:$0xff] %v10734_v59  ;;  %v4212_v42 = vand.u32 2147483647, %v4019_v23 }
 0x672   : > { %v10744_v16 = vadd.f32 %v3923_v27, %v10739_v44 }
 0x673   : > { %v4633_v49 = vmul.f32 %v10716_v38, %v4616_v3  ;;  %v7578_v55 = vpop.eup %7577  ;;  %vm4213_vm12 = vcmp.eq.f32.partialorder %v4212_v42, 8.507059e+37 }
 0x674   : > { %v6784_v4 = vmul.f32 -1.442695, %v10744_v16  ;;  %v7580_v13 = vpop.eup %7579  ;;  %v10751_v25 = vadd.f32 1.0, %v7578_v55  ;;  %v4215_v55 = vor.u32 1.1754944e-38, %v4214_v21 }
 0x675   : > { %v4650_v7 = vadd.f32 %v10718_v54, %v4633_v49  ;;  %v4204_v63 = vmul.f32 %v7580_v13, %v4019_v23  ;;  %vm4209_vm9 = vweird.f32 %v7580_v13 }
 0x676   : > { %v4284_v33 = vpop.xlane.xlu1 %4283  ;;  %7581 = vpow2.f32 %v6784_v4  ;;  %vm4210_vm11 = vmor %vm4208_vm10, %vm4209_vm9  ;;  %vm4223_vm14 = vweird.f32 %v10751_v25 }
 0x677   : > { %v10749_v48 = vadd.f32 %v4650_v7, %v10465_v30  ;;  %v4697_v50 = vpack.c.bf16 %v4650_v7, %v4649_v58  ;;  %v10754_v11 = vmul.f32 %v4284_v33, %v9158_v32  ;;  %7583 = vrcp.f32 %v10751_v25  ;;  %v3924_v40 = vpop.f32.mrf.mxu2 }
 0x678   : > { %v4348_v41 = vpop.xlane.xlu2 %4347  ;;  %v10760_v30 = vadd.f32 %v10555_v1, %v11871_v15  ;;  %v3925_v20 = vadd.f32 %v3924_v40, %v10440_v45  ;;  %v4205_v18 = vsub.f32 1.0, %v4204_v63 }
 0x679   : > { %4682 = vst [vmem:[#allocation2] sm:$0xff] %v10749_v48  ;;  %4778 = vmatmul.bf16.vlgmr.msrb.gmra.mxu3 %v4697_v50  ;;  %v4409_v28 = vmul.f32 %v10754_v11, %v10754_v11  ;;  %v4377_v22 = vmul.f32 %v4348_v41, %v9158_v32  ;;  %v4229_v41 = vand.u32 2147483648, %v10751_v25 }
 0x67a   : > { %v10767_v2 = vadd.f32 %v3925_v20, %v10760_v30  ;;  %v4206_v52 = vmul.f32 %v7580_v13, %v4205_v18 }
 0x67b   : > { %v4425_v6 = vsub.f32 %v4377_v22, %v4409_v28  ;;  %v4230_v21 = vor.u32 1.1754944e-38, %v4229_v41 }
 0x67c   : > { %v7582_v58 = vpop.eup %7581  ;;  %v6785_v29 = vmul.f32 -1.442695, %v10767_v2  ;;  %v4207_v3 = vadd.f32 %v7580_v13, %v4206_v52 }
 0x67d   : > { %v10770_v1 = vadd.f32 0.1, %v4425_v6  ;;  %v7584_v60 = vpop.eup %7583  ;;  %v10772_v37 = vadd.f32 1.0, %v7582_v58  ;;  %v4286_v45 = vpop.xlane.xlu0 %4285 }
 0x67e   : > { %7585 = vpow2.f32 %v6785_v29  ;;  %v10775_v31 = vmul.f32 %v4286_v45, %v9158_v32  ;;  %v4219_v27 = vmul.f32 %v7584_v60, %v10751_v25  ;;  %v4211_v7 = vsel %vm4210_vm11, %v7580_v13, %v4207_v3 }
 0x67f   : > { %7587 = vrcp.f32 %v10772_v37  ;;  %v4350_v49 = vpop.xlane.xlu1 %4349  ;;  %v4216_v23 = vsel %vm4213_vm12, %v4215_v55, %v4211_v7  ;;  %vm4224_vm13 = vweird.f32 %v7584_v60  ;;  %v4227_v13 = vand.u32 2147483647, %v10751_v25 }
 0x680   : > { %7589 = vrsqrt.f32 %v10770_v1  ;;  %v4410_v4 = vmul.f32 %v10775_v31, %v10775_v31  ;;  %v4378_v50 = vmul.f32 %v4350_v49, %v9158_v32  ;;  %v4220_v33 = vsub.f32 1.0, %v4219_v27  ;;  %vm4225_vm15 = vmor %vm4223_vm14, %vm4224_vm13 }
 0x681   : > { %v10784_v40 = vmul.f32 %v4216_v23, %v10711_v12  ;;  %vm4228_vm0 = vcmp.eq.f32.partialorder %v4227_v13, 8.507059e+37  ;;  %v4244_v25 = vand.u32 2147483648, %v10772_v37  ;;  %v4242_v55 = vand.u32 2147483647, %v10772_v37 }
 0x682   : > { %v4426_v63 = vsub.f32 %v4378_v50, %v4410_v4  ;;  %v4221_v15 = vmul.f32 %v7584_v60, %v4220_v33  ;;  %vm4238_vm2 = vweird.f32 %v10772_v37  ;;  %vm4481_vm6 = vweird.f32 %v10770_v1 }
 0x683   : > { %4303 = vadd.xlane.f32.xlu2 %v10784_v40  ;;  %v4339_v22 = vmul.f32 %v10784_v40, %v10784_v40  ;;  %v4245_v41 = vor.u32 1.1754944e-38, %v4244_v25  ;;  %vm4243_vm5 = vcmp.eq.f32.partialorder %v4242_v55, 8.507059e+37 }
 0x684   : > { %v7586_v28 = vpop.eup %7585  ;;  %v10788_v20 = vadd.f32 0.1, %v4426_v63  ;;  %v4222_v52 = vadd.f32 %v7584_v60, %v4221_v15 }
 0x685   : > { %v7588_v18 = vpop.eup %7587  ;;  %v10793_v6 = vadd.f32 1.0, %v7586_v28  ;;  %4367 = vadd.xlane.f32.xlu0 %v4339_v22 }
 0x686   : > { %v7590_v12 = vpop.eup %7589  ;;  %7591 = vrsqrt.f32 %v10788_v20  ;;  %v4234_v58 = vmul.f32 %v7588_v18, %v10772_v37  ;;  %v4226_v42 = vsel %vm4225_vm15, %v7584_v60, %v4222_v52  ;;  %vm4239_vm1 = vweird.f32 %v7588_v18 }
 0x687   : > { %7593 = vrcp.f32 %v10793_v6  ;;  %v4476_v29 = vmul.f32 %v7590_v12, %v10770_v1  ;;  %v4231_v45 = vsel %vm4228_vm0, %v4230_v21, %v4226_v42  ;;  %vm4482_vm3 = vweird.f32 %v7590_v12  ;;  %vm4240_vm4 = vmor %vm4238_vm2, %vm4239_vm1 }
 0x688   : > { %v4235_v3 = vsub.f32 1.0, %v4234_v58  ;;  %v10801_v49 = vmul.f32 %v4231_v45, %v10727_v5  ;;  %v4393_v37 = vsub.f32 %v10560_v34, %v10754_v11  ;;  %vm4483_vm7 = vmor %vm4481_vm6, %vm4482_vm3  ;;  %v4257_v42 = vand.u32 2147483647, %v10793_v6 }
 0x689   : > { %v4477_v27 = vmul.f32 %v7590_v12, %v4476_v29  ;;  %vm4253_vm10 = vweird.f32 %v10793_v6  ;;  %vm4491_vm11 = vweird.f32 %v10788_v20 }
 0x68a   : > { %v4236_v7 = vmul.f32 %v7588_v18, %v4235_v3  ;;  %4305 = vadd.xlane.f32.xlu1 %v10801_v49  ;;  %v4340_v50 = vmul.f32 %v10801_v49, %v10801_v49  ;;  %vm4258_vm14 = vcmp.eq.f32.partialorder %v4257_v42, 8.507059e+37 }
 0x68b   : > { %v4478_v4 = vmul.f32 0.5, %v4477_v27 }
 0x68c   : > { %v7592_v60 = vpop.eup %7591  ;;  %v4237_v23 = vadd.f32 %v7588_v18, %v4236_v7  ;;  %4369 = vadd.xlane.f32.xlu2 %v4340_v50  ;;  %v4394_v7 = vsub.f32 %v10571_v17, %v10775_v31 }
 0x68d   : > { %v7594_v33 = vpop.eup %7593  ;;  %v4479_v63 = vsub.f32 1.5, %v4478_v4  ;;  %v4486_v5 = vmul.f32 %v7592_v60, %v10788_v20  ;;  %vm4492_vm9 = vweird.f32 %v7592_v60 }
 0x68e   : > { %v4241_v15 = vsel %vm4240_vm4, %v7588_v18, %v4237_v23  ;;  %v4249_v13 = vmul.f32 %v7594_v33, %v10793_v6  ;;  %v4259_v18 = vand.u32 2147483648, %v10793_v6  ;;  %vm4254_vm8 = vweird.f32 %v7594_v33  ;;  %vm4493_vm13 = vmor %vm4491_vm11, %vm4492_vm9 }
 0x68f   : > { %v4480_v28 = vmul.f32 %v7590_v12, %v4479_v63  ;;  %v4487_v22 = vmul.f32 %v7592_v60, %v4486_v5  ;;  %v4246_v52 = vsel %vm4243_vm5, %v4245_v41, %v4241_v15  ;;  %vm4255_vm12 = vmor %vm4253_vm10, %vm4254_vm8 }
 0x690   : > { %v10815_v21 = vmul.f32 %v4246_v52, %v10744_v16  ;;  %v4250_v58 = vsub.f32 1.0, %v4249_v13 }
 0x691   : > { %v4488_v29 = vmul.f32 0.5, %v4487_v22  ;;  %v4484_v45 = vsel %vm4483_vm7, %v7590_v12, %v4480_v28  ;;  %v4260_v12 = vor.u32 1.1754944e-38, %v4259_v18 }
 0x692   : > { %v4341_v3 = vmul.f32 %v10815_v21, %v10815_v21  ;;  %v4251_v1 = vmul.f32 %v7594_v33, %v4250_v58  ;;  %v4617_v27 = vmul.f32 %v4484_v45, %v4393_v37  ;;  %4307 = vadd.xlane.f32.xlu1 %v10815_v21 }
 0x693   : > { %v4489_v25 = vsub.f32 1.5, %v4488_v29 }
 0x694   : > { %v4252_v34 = vadd.f32 %v7594_v33, %v4251_v1  ;;  %v4634_v16 = vmul.f32 %v10716_v38, %v4617_v27  ;;  %4371 = vadd.xlane.f32.xlu2 %v4341_v3 }
 0x695   : > { %v4490_v11 = vmul.f32 %v7592_v60, %v4489_v25 }
 0x696   : > { %v4256_v55 = vsel %vm4255_vm12, %v7594_v33, %v4252_v34  ;;  %v4651_v50 = vadd.f32 %v10718_v54, %v4634_v16 }
 0x697   : > { %v4261_v23 = vsel %vm4258_vm14, %v4260_v12, %v4256_v55  ;;  %v4494_v63 = vsel %vm4493_vm13, %v7592_v60, %v4490_v11 }
 0x698   : > { %v10830_v5 = vmul.f32 %v4261_v23, %v10767_v2  ;;  %v4618_v41 = vmul.f32 %v4494_v63, %v4394_v7  ;;  %v10833_v15 = vadd.f32 %v4651_v50, %v10537_v47 }
 0x699   : > { %v4288_v4 = vpop.xlane.xlu0 %4287 }
 0x69a   : > { %v4315_v6 = vmul.f32 %v4288_v4, %v9158_v32  ;;  %4309 = vadd.xlane.f32.xlu0 %v10830_v5  ;;  %v4342_v31 = vmul.f32 %v10830_v5, %v10830_v5  ;;  %v4635_v33 = vmul.f32 %v10716_v38, %v4618_v41  ;;  %4683 = vst [vmem:[#allocation2 + $0x58] sm:$0xff] %v10833_v15 }
 0x69b   : > { %v4352_v20 = vpop.xlane.xlu1 %4351 }
 0x69c   : > { %v4411_v13 = vmul.f32 %v4315_v6, %v4315_v6  ;;  %v4379_v17 = vmul.f32 %v4352_v20, %v9158_v32  ;;  %4373 = vadd.xlane.f32.xlu1 %v4342_v31  ;;  %v4652_v2 = vadd.f32 %v10718_v54, %v4635_v33  ;;  %v4395_v41 = vsub.f32 %v10603_v61, %v4315_v6 }
 0x69e   : > { %v4427_v60 = vsub.f32 %v4379_v17, %v4411_v13  ;;  %v10843_v47 = vadd.f32 %v4652_v2, %v10548_v53  ;;  %v4698_v22 = vpack.c.bf16 %v4652_v2, %v4651_v50 }
 0x6a0   : > { %v4443_v28 = vadd.f32 0.1, %v4427_v60  ;;  %4684 = vst [vmem:[#allocation2 + $0x18] sm:$0xff] %v10843_v47  ;;  %4783 = vmatmul.bf16.gmra.mxu3 %v4698_v22 }
 0x6a1   : > { %v4290_v52 = vpop.xlane.xlu2 %4289 }
 0x6a2   : > { %7595 = vrsqrt.f32 %v4443_v28  ;;  %v4316_v37 = vmul.f32 %v4290_v52, %v9158_v32  ;;  %vm4501_vm0 = vweird.f32 %v4443_v28 }
 0x6a3   : > { %v4354_v58 = vpop.xlane.xlu0 %4353 }
 0x6a4   : > { %v4412_v29 = vmul.f32 %v4316_v37, %v4316_v37  ;;  %v4380_v42 = vmul.f32 %v4354_v58, %v9158_v32 }
 0x6a6   : > { %v4428_v18 = vsub.f32 %v4380_v42, %v4412_v29 }
 0x6a8   : > { %v7596_v45 = vpop.eup %7595  ;;  %v4444_v3 = vadd.f32 0.1, %v4428_v18 }
 0x6a9   : > { %v4496_v1 = vmul.f32 %v7596_v45, %v4443_v28  ;;  %v4292_v27 = vpop.xlane.xlu2 %4291  ;;  %vm4502_vm15 = vweird.f32 %v7596_v45 }
 0x6aa   : > { %7597 = vrsqrt.f32 %v4444_v3  ;;  %v10849_v53 = vmul.f32 %v4292_v27, %v9158_v32  ;;  %vm4503_vm1 = vmor %vm4501_vm0, %vm4502_vm15  ;;  %vm4511_vm3 = vweird.f32 %v4444_v3 }
 0x6ab   : > { %v4497_v25 = vmul.f32 %v7596_v45, %v4496_v1  ;;  %v4356_v34 = vpop.xlane.xlu0 %4355 }
 0x6ac   : > { %v4413_v16 = vmul.f32 %v10849_v53, %v10849_v53  ;;  %v4381_v11 = vmul.f32 %v4356_v34, %v9158_v32 }
 0x6ad   : > { %v4498_v12 = vmul.f32 0.5, %v4497_v25 }
 0x6ae   : > { %v4429_v7 = vsub.f32 %v4381_v11, %v4413_v16 }
 0x6af   : > { %v4499_v55 = vsub.f32 1.5, %v4498_v12 }
 0x6b0   : > { %v7598_v4 = vpop.eup %7597  ;;  %v4445_v50 = vadd.f32 0.1, %v4429_v7 }
 0x6b1   : > { %v4500_v23 = vmul.f32 %v7596_v45, %v4499_v55  ;;  %v4506_v63 = vmul.f32 %v7598_v4, %v4444_v3  ;;  %v4294_v20 = vpop.xlane.xlu1 %4293  ;;  %vm4512_vm2 = vweird.f32 %v7598_v4 }
 0x6b2   : > { %7599 = vrsqrt.f32 %v4445_v50  ;;  %v10856_v13 = vmul.f32 %v4294_v20, %v9158_v32  ;;  %vm4513_vm4 = vmor %vm4511_vm3, %vm4512_vm2  ;;  %vm4521_vm6 = vweird.f32 %v4445_v50 }
 0x6b3   : > { %v4507_v17 = vmul.f32 %v7598_v4, %v4506_v63  ;;  %v4358_v31 = vpop.xlane.xlu2 %4357  ;;  %v4504_v33 = vsel %vm4503_vm1, %v7596_v45, %v4500_v23  ;;  %v4396_v45 = vsub.f32 %v10618_v0, %v4316_v37 }
 0x6b4   : > { %v4414_v60 = vmul.f32 %v10856_v13, %v10856_v13  ;;  %v4382_v2 = vmul.f32 %v4358_v31, %v9158_v32  ;;  %v4619_v22 = vmul.f32 %v4504_v33, %v4395_v41 }
 0x6b5   : > { %v4508_v52 = vmul.f32 0.5, %v4507_v17  ;;  %v4397_v17 = vsub.f32 %v10633_v26, %v10849_v53 }
 0x6b6   : > { %v4430_v28 = vsub.f32 %v4382_v2, %v4414_v60  ;;  %v4636_v58 = vmul.f32 %v10716_v38, %v4619_v22 }
 0x6b7   : > { %v4509_v29 = vsub.f32 1.5, %v4508_v52 }
 0x6b8   : > { %v7600_v61 = vpop.eup %7599  ;;  %v4446_v6 = vadd.f32 0.1, %v4430_v28  ;;  %v4653_v42 = vadd.f32 %v10718_v54, %v4636_v58 }
 0x6b9   : > { %v4510_v18 = vmul.f32 %v7598_v4, %v4509_v29  ;;  %v4516_v1 = vmul.f32 %v7600_v61, %v4445_v50  ;;  %vm4522_vm5 = vweird.f32 %v7600_v61 }
 0x6ba   : > { %7601 = vrsqrt.f32 %v4446_v6  ;;  %v10865_v27 = vadd.f32 %v4653_v42, %v10564_v57  ;;  %vm4523_vm7 = vmor %vm4521_vm6, %vm4522_vm5  ;;  %vm4531_vm9 = vweird.f32 %v4446_v6 }
 0x6bb   : > { %v4517_v25 = vmul.f32 %v7600_v61, %v4516_v1  ;;  %v4514_v34 = vsel %vm4513_vm4, %v7598_v4, %v4510_v18 }
 0x6bc   : > { %v4620_v11 = vmul.f32 %v4514_v34, %v4396_v45  ;;  %4685 = vst [vmem:[#allocation2 + $0x50] sm:$0xff] %v10865_v27  ;;  %v4398_v45 = vsub.f32 %v10648_v36, %v10856_v13 }
 0x6bd   : > { %v4296_v16 = vpop.xlane.xlu1 %4295  ;;  %v4518_v12 = vmul.f32 0.5, %v4517_v25 }
 0x6be   : > { %v10869_v7 = vmul.f32 %v4296_v16, %v9158_v32  ;;  %v4637_v3 = vmul.f32 %v10716_v38, %v4620_v11 }
 0x6bf   : > { %v4360_v55 = vpop.xlane.xlu2 %4359  ;;  %v4519_v23 = vsub.f32 1.5, %v4518_v12 }
 0x6c0   : > { %v4415_v0 = vmul.f32 %v10869_v7, %v10869_v7  ;;  %v4383_v57 = vmul.f32 %v4360_v55, %v9158_v32  ;;  %v7602_v37 = vpop.eup %7601  ;;  %v4654_v4 = vadd.f32 %v10718_v54, %v4637_v3 }
 0x6c1   : > { %v4520_v63 = vmul.f32 %v7600_v61, %v4519_v23  ;;  %v4526_v20 = vmul.f32 %v7602_v37, %v4446_v6  ;;  %vm4532_vm8 = vweird.f32 %v7602_v37 }
 0x6c2   : > { %v4431_v41 = vsub.f32 %v4383_v57, %v4415_v0  ;;  %v10879_v31 = vadd.f32 %v4654_v4, %v10575_v51  ;;  %v4699_v33 = vpack.c.bf16 %v4654_v4, %v4653_v42  ;;  %vm4533_vm10 = vmor %vm4531_vm9, %vm4532_vm8 }
 0x6c3   : > { %v4527_v60 = vmul.f32 %v7602_v37, %v4526_v20  ;;  %v4524_v22 = vsel %vm4523_vm7, %v7600_v61, %v4520_v63 }
 0x6c4   : > { %v4447_v2 = vadd.f32 0.1, %v4431_v41  ;;  %4686 = vst [vmem:[#allocation2 + $0x68] sm:$0xff] %v10879_v31  ;;  %4788 = vmatmul.bf16.gmra.mxu3 %v4699_v33  ;;  %v4621_v28 = vmul.f32 %v4524_v22, %v4397_v17 }
 0x6c5   : > { %v4298_v52 = vpop.xlane.xlu0 %4297  ;;  %v4528_v58 = vmul.f32 0.5, %v4527_v60 }
 0x6c6   : > { %7603 = vrsqrt.f32 %v4447_v2  ;;  %v10883_v50 = vmul.f32 %v4298_v52, %v9158_v32  ;;  %v4638_v26 = vmul.f32 %v10716_v38, %v4621_v28  ;;  %vm4541_vm12 = vweird.f32 %v4447_v2 }
 0x6c7   : > { %v4362_v29 = vpop.xlane.xlu1 %4361  ;;  %v4529_v53 = vsub.f32 1.5, %v4528_v58  ;;  %v4399_v52 = vsub.f32 %v10663_v9, %v10869_v7 }
 0x6c8   : > { %v4416_v51 = vmul.f32 %v10883_v50, %v10883_v50  ;;  %v4384_v61 = vmul.f32 %v4362_v29, %v9158_v32  ;;  %v4655_v42 = vadd.f32 %v10718_v54, %v4638_v26 }
 0x6c9   : > { %v4530_v18 = vmul.f32 %v7602_v37, %v4529_v53 }
 0x6ca   : > { %v4432_v1 = vsub.f32 %v4384_v61, %v4416_v51  ;;  %v10893_v25 = vadd.f32 %v4655_v42, %v10587_v62 }
 0x6cb   : > { %v4534_v11 = vsel %vm4533_vm10, %v7602_v37, %v4530_v18 }
 0x6cc   : > { %v7604_v34 = vpop.eup %7603  ;;  %v4448_v16 = vadd.f32 0.1, %v4432_v1  ;;  %v4622_v3 = vmul.f32 %v4534_v11, %v4398_v45  ;;  %4687 = vst [vmem:[#allocation2 + $0x8] sm:$0xff] %v10893_v25 }
 0x6cd   : > { %v4536_v12 = vmul.f32 %v7604_v34, %v4447_v2  ;;  %v4300_v55 = vpop.xlane.xlu0 %4299  ;;  %vm4542_vm11 = vweird.f32 %v7604_v34 }
 0x6ce   : > { %7605 = vrsqrt.f32 %v4448_v16  ;;  %v10897_v23 = vmul.f32 %v4300_v55, %v9158_v32  ;;  %v4639_v36 = vmul.f32 %v10716_v38, %v4622_v3  ;;  %vm4543_vm13 = vmor %vm4541_vm12, %vm4542_vm11  ;;  %vm4551_vm15 = vweird.f32 %v4448_v16 }
 0x6cf   : > { %v4537_v6 = vmul.f32 %v7604_v34, %v4536_v12  ;;  %v4364_v0 = vpop.xlane.xlu1 %4363 }
 0x6d0   : > { %v4417_v62 = vmul.f32 %v10897_v23, %v10897_v23  ;;  %v4385_v13 = vmul.f32 %v4364_v0, %v9158_v32  ;;  %v4656_v37 = vadd.f32 %v10718_v54, %v4639_v36 }
 0x6d1   : > { %v4538_v57 = vmul.f32 0.5, %v4537_v6 }
 0x6d2   : > { %v4433_v4 = vsub.f32 %v4385_v13, %v4417_v62  ;;  %v10905_v20 = vadd.f32 %v4656_v37, %v10596_v46  ;;  %v4700_v41 = vpack.c.bf16 %v4656_v37, %v4655_v42 }
 0x6d3   : > { %v4539_v63 = vsub.f32 1.5, %v4538_v57 }
 0x6d4   : > { %v7606_v17 = vpop.eup %7605  ;;  %v4449_v33 = vadd.f32 0.1, %v4433_v4  ;;  %4688 = vst [vmem:[#allocation2 + $0x48] sm:$0xff] %v10905_v20  ;;  %4793 = vmatmul.bf16.gmra.mxu3 %v4700_v41 }
 0x6d5   : > { %v4540_v60 = vmul.f32 %v7604_v34, %v4539_v63  ;;  %v4546_v22 = vmul.f32 %v7606_v17, %v4448_v16  ;;  %v4302_v28 = vpop.xlane.xlu2 %4301  ;;  %vm4552_vm14 = vweird.f32 %v7606_v17 }
 0x6d6   : > { %7607 = vrsqrt.f32 %v4449_v33  ;;  %v4322_v29 = vmul.f32 %v4302_v28, %v9158_v32  ;;  %vm4553_vm0 = vmor %vm4551_vm15, %vm4552_vm14  ;;  %vm4561_vm2 = vweird.f32 %v4449_v33 }
 0x6d7   : > { %v4547_v58 = vmul.f32 %v7606_v17, %v4546_v22  ;;  %v4544_v46 = vsel %vm4543_vm13, %v7604_v34, %v4540_v60  ;;  %v4366_v26 = vpop.xlane.xlu0 %4365  ;;  %v4400_v34 = vsub.f32 %v10672_v56, %v10883_v50 }
 0x6d8   : > { %v4623_v53 = vmul.f32 %v4544_v46, %v4399_v52  ;;  %v4418_v61 = vmul.f32 %v4322_v29, %v4322_v29  ;;  %v4386_v2 = vmul.f32 %v4366_v26, %v9158_v32 }
 0x6d9   : > { %v4548_v51 = vmul.f32 0.5, %v4547_v58 }
 0x6da   : > { %v4640_v42 = vmul.f32 %v10716_v38, %v4623_v53  ;;  %v4434_v1 = vsub.f32 %v4386_v2, %v4418_v61 }
 0x6db   : > { %v4549_v18 = vsub.f32 1.5, %v4548_v51 }
 0x6dc   : > { %v7608_v45 = vpop.eup %7607  ;;  %v4657_v9 = vadd.f32 %v10718_v54, %v4640_v42  ;;  %v4450_v12 = vadd.f32 0.1, %v4434_v1 }
 0x6dd   : > { %v4550_v7 = vmul.f32 %v7606_v17, %v4549_v18  ;;  %v4556_v11 = vmul.f32 %v7608_v45, %v4449_v33  ;;  %vm4562_vm1 = vweird.f32 %v7608_v45 }
 0x6de   : > { %v10917_v55 = vadd.f32 %v4657_v9, %v10610_v43  ;;  %7609 = vrsqrt.f32 %v4450_v12  ;;  %v4401_v43 = vsub.f32 %v10688_v8, %v10897_v23  ;;  %vm4563_vm3 = vmor %vm4561_vm2, %vm4562_vm1  ;;  %vm4571_vm5 = vweird.f32 %v4450_v12 }
 0x6df   : > { %v4557_v3 = vmul.f32 %v7608_v45, %v4556_v11  ;;  %v4554_v6 = vsel %vm4553_vm0, %v7606_v17, %v4550_v7 }
 0x6e0   : > { %v4624_v0 = vmul.f32 %v4554_v6, %v4400_v34  ;;  %4689 = vst [vmem:[#allocation2 + $0x40] sm:$0xff] %v10917_v55 }
 0x6e1   : > { %v4558_v36 = vmul.f32 0.5, %v4557_v3 }
 0x6e2   : > { %v4641_v62 = vmul.f32 %v10716_v38, %v4624_v0 }
 0x6e3   : > { %v4559_v13 = vsub.f32 1.5, %v4558_v36 }
 0x6e4   : > { %v4658_v16 = vadd.f32 %v10718_v54, %v4641_v62  ;;  %v7610_v57 = vpop.eup %7609 }
 0x6e5   : > { %v4560_v37 = vmul.f32 %v7608_v45, %v4559_v13  ;;  %v4566_v56 = vmul.f32 %v7610_v57, %v4450_v12  ;;  %vm4572_vm4 = vweird.f32 %v7610_v57 }
 0x6e6   : > { %v10925_v50 = vadd.f32 %v4658_v16, %v10625_v35  ;;  %v4701_v4 = vpack.c.bf16 %v4658_v16, %v4657_v9  ;;  %v4402_v35 = vsub.f32 %v10700_v14, %v4322_v29  ;;  %vm4573_vm6 = vmor %vm4571_vm5, %vm4572_vm4 }
 0x6e7   : > { %v4564_v63 = vsel %vm4563_vm3, %v7608_v45, %v4560_v37  ;;  %v4567_v41 = vmul.f32 %v7610_v57, %v4566_v56 }
 0x6e8   : > { %4690 = vst [vmem:[#allocation2 + $0x20] sm:$0xff] %v10925_v50  ;;  %4798 = vmatmul.bf16.gmra.mxu3 %v4701_v4  ;;  %v4625_v17 = vmul.f32 %v4564_v63, %v4401_v43 }
 0x6e9   : > { %v4568_v60 = vmul.f32 0.5, %v4567_v41 }
 0x6ea   : > { %v4642_v22 = vmul.f32 %v10716_v38, %v4625_v17 }
 0x6eb   : > { %v4569_v52 = vsub.f32 1.5, %v4568_v60 }
 0x6ec   : > { %v4659_v33 = vadd.f32 %v10718_v54, %v4642_v22 }
 0x6ed   : > { %v4570_v8 = vmul.f32 %v7610_v57, %v4569_v52 }
 0x6ee   : > { %v10931_v23 = vadd.f32 %v4659_v33, %v10640_v19  ;;  %v7883_v19 = vld [vmem:[#allocation18] sm:$0xff] }
 0x6ef   : > { %v4574_v28 = vsel %vm4573_vm6, %v7610_v57, %v4570_v8  ;;  %v10941_v61 = vperm.slane %v7883_v19, 4 }
 0x6f0   : > { %4691 = vst [vmem:[#allocation2 + $0x10] sm:$0xff] %v10931_v23  ;;  %v4626_v58 = vmul.f32 %v4574_v28, %v4402_v35 }
 0x6f2   : > { %v4643_v46 = vmul.f32 %v10716_v38, %v4626_v58 }
 0x6f4   : > { %v4660_v26 = vadd.f32 %v10718_v54, %v4643_v46 }
 0x6f6   : > { %v10938_v53 = vadd.f32 %v4660_v26, %v10655_v24  ;;  %v4702_v51 = vpack.c.bf16 %v4660_v26, %v4659_v33  ;;  %v4304_v14 = vpop.xlane.xlu2 %4303 }
 0x6f7   : > { %v4323_v29 = vmul.f32 %v4304_v14, %v9158_v32 }
 0x6f8   : > { %4692 = vst [vmem:[#allocation2 + $0x38] sm:$0xff] %v10938_v53  ;;  %4803 = vmatmul.bf16.gmra.mxu3 %v4702_v51  ;;  %v4368_v2 = vpop.xlane.xlu0 %4367 }
 0x6f9   : > { %v4419_v18 = vmul.f32 %v4323_v29, %v4323_v29  ;;  %v4387_v1 = vmul.f32 %v4368_v2, %v9158_v32 }
 0x6fb   : > { %v4435_v9 = vsub.f32 %v4387_v1, %v4419_v18  ;;  %v4403_v18 = vsub.f32 %v10784_v40, %v4323_v29 }
 0x6fc   : > { %v4779_v42 = vpop.f32.mrf.mxu3 }
 0x6fd   : > { %v4780_v45 = vadd.f32 %v4779_v42, %v10941_v61  ;;  %v4451_v7 = vadd.f32 0.1, %v4435_v9  ;;  %v4306_v11 = vpop.xlane.xlu1 %4305 }
 0x6fe   : > { %v10951_v34 = vmul.f32 %v4306_v11, %v9158_v32 }
 0x6ff   : > { %v10947_v24 = vadd.f32 %v4780_v45, %v10734_v59  ;;  %7611 = vrsqrt.f32 %v4451_v7  ;;  %v4370_v3 = vpop.xlane.xlu2 %4369  ;;  %vm4581_vm8 = vweird.f32 %v4451_v7 }
 0x700   : > { %v4420_v6 = vmul.f32 %v10951_v34, %v10951_v34  ;;  %v4388_v0 = vmul.f32 %v4370_v3, %v9158_v32 }
 0x701   : > { %v6818_v12 = vmul.f32 -1.442695, %v10947_v24 }
 0x702   : > { %v4436_v59 = vsub.f32 %v4388_v0, %v4420_v6 }
 0x703   : > { %7613 = vpow2.f32 %v6818_v12 }
 0x704   : > { %v4781_v36 = vpop.f32.mrf.mxu3  ;;  %v4452_v16 = vadd.f32 0.1, %v4436_v59 }
 0x705   : > { %v4782_v62 = vadd.f32 %v4781_v36, %v10941_v61  ;;  %v7612_v57 = vpop.eup %7611  ;;  %v4308_v37 = vpop.xlane.xlu1 %4307 }
 0x706   : > { %v4576_v4 = vmul.f32 %v7612_v57, %v4451_v7  ;;  %7615 = vrsqrt.f32 %v4452_v16  ;;  %v10964_v41 = vmul.f32 %v4308_v37, %v9158_v32  ;;  %vm4582_vm7 = vweird.f32 %v7612_v57 }
 0x707   : > { %v10958_v13 = vadd.f32 %v4782_v62, %v10749_v48  ;;  %v4372_v17 = vpop.xlane.xlu2 %4371  ;;  %vm4583_vm9 = vmor %vm4581_vm8, %vm4582_vm7  ;;  %vm4591_vm11 = vweird.f32 %v4452_v16 }
 0x708   : > { %v4577_v60 = vmul.f32 %v7612_v57, %v4576_v4  ;;  %v4389_v22 = vmul.f32 %v4372_v17, %v9158_v32  ;;  %v4421_v48 = vmul.f32 %v10964_v41, %v10964_v41  ;;  %v4404_v17 = vsub.f32 %v10801_v49, %v10951_v34 }
 0x709   : > { %v6819_v43 = vmul.f32 -1.442695, %v10958_v13  ;;  %v7614_v56 = vpop.eup %7613 }
 0x70a   : > { %v10961_v63 = vadd.f32 1.0, %v7614_v56  ;;  %v4578_v52 = vmul.f32 0.5, %v4577_v60  ;;  %v4437_v33 = vsub.f32 %v4389_v22, %v4421_v48 }
 0x70b   : > { %7617 = vpow2.f32 %v6819_v43 }
 0x70c   : > { %7619 = vrcp.f32 %v10961_v63  ;;  %v7616_v8 = vpop.eup %7615  ;;  %v4579_v35 = vsub.f32 1.5, %v4578_v52  ;;  %v10970_v26 = vadd.f32 0.1, %v4437_v33  ;;  %v4924_v62 = vand.u32 2147483647, %v10961_v63 }
 0x70d   : > { %v4310_v28 = vpop.xlane.xlu0 %4309  ;;  %v4586_v46 = vmul.f32 %v7616_v8, %v4452_v16  ;;  %vm4592_vm10 = vweird.f32 %v7616_v8  ;;  %v4926_v59 = vand.u32 2147483648, %v10961_v63  ;;  %vm4920_vm14 = vweird.f32 %v10961_v63 }
 0x70e   : > { %v10973_v51 = vmul.f32 %v4310_v28, %v9158_v32  ;;  %v4580_v19 = vmul.f32 %v7612_v57, %v4579_v35  ;;  %7621 = vrsqrt.f32 %v10970_v26  ;;  %vm4593_vm13 = vmor %vm4591_vm11, %vm4592_vm10  ;;  %vm4925_vm0 = vcmp.eq.f32.partialorder %v4924_v62, 8.507059e+37 }
 0x70f   : > { %v4374_v2 = vpop.xlane.xlu1 %4373  ;;  %v4587_v1 = vmul.f32 %v7616_v8, %v4586_v46  ;;  %v4927_v28 = vor.u32 1.1754944e-38, %v4926_v59  ;;  %vm4601_vm2 = vweird.f32 %v10970_v26 }
 0x710   : > { %v4422_v45 = vmul.f32 %v10973_v51, %v10973_v51  ;;  %v4390_v9 = vmul.f32 %v4374_v2, %v9158_v32  ;;  %v4584_v11 = vsel %vm4583_vm9, %v7612_v57, %v4580_v19 }
 0x711   : > { %v7618_v58 = vpop.eup %7617  ;;  %v4588_v12 = vmul.f32 0.5, %v4587_v1  ;;  %v4627_v7 = vmul.f32 %v4584_v11, %v4403_v18 }
 0x712   : > { %v10975_v14 = vadd.f32 1.0, %v7618_v58  ;;  %v7620_v42 = vpop.eup %7619  ;;  %v4438_v6 = vsub.f32 %v4390_v9, %v4422_v45 }
 0x713   : > { %v4916_v3 = vmul.f32 %v7620_v42, %v10961_v63  ;;  %v4589_v0 = vsub.f32 1.5, %v4588_v12  ;;  %v4644_v40 = vmul.f32 %v10716_v38, %v4627_v7  ;;  %vm4921_vm12 = vweird.f32 %v7620_v42 }
 0x714   : > { %7623 = vrcp.f32 %v10975_v14  ;;  %v10985_v36 = vadd.f32 0.1, %v4438_v6  ;;  %v7622_v37 = vpop.eup %7621  ;;  %vm4922_vm15 = vmor %vm4920_vm14, %vm4921_vm12  ;;  %v4939_v2 = vand.u32 2147483647, %v10975_v14  ;;  %vm4935_vm4 = vweird.f32 %v10975_v14 }
 0x715   : > { %v4917_v29 = vsub.f32 1.0, %v4916_v3  ;;  %v4590_v43 = vmul.f32 %v7616_v8, %v4589_v0  ;;  %v4661_v57 = vadd.f32 %v10718_v54, %v4644_v40  ;;  %v4596_v60 = vmul.f32 %v7622_v37, %v10970_v26 }
 0x716   : > { %7625 = vrsqrt.f32 %v10985_v36  ;;  %vm4602_vm3 = vweird.f32 %v7622_v37  ;;  %v4405_v3 = vsub.f32 %v10815_v21, %v10964_v41  ;;  %vm4940_vm7 = vcmp.eq.f32.partialorder %v4939_v2, 8.507059e+37 }
 0x717   : > { %v4918_v56 = vmul.f32 %v7620_v42, %v4917_v29  ;;  %v4594_v16 = vsel %vm4593_vm13, %v7616_v8, %v4590_v43  ;;  %v10996_v22 = vadd.f32 %v4661_v57, %v10707_v39  ;;  %v4597_v33 = vmul.f32 %v7622_v37, %v4596_v60  ;;  %vm4603_vm6 = vmor %vm4601_vm2, %vm4602_vm3 }
 0x718   : > { %v4628_v35 = vmul.f32 %v4594_v16, %v4404_v17  ;;  %v4941_v8 = vand.u32 2147483648, %v10975_v14  ;;  %vm4611_vm9 = vweird.f32 %v10985_v36 }
 0x719   : > { %v4919_v48 = vadd.f32 %v7620_v42, %v4918_v56  ;;  %4693 = vst [vmem:[#allocation2 + $0x60] sm:$0xff] %v10996_v22  ;;  %v4598_v58 = vmul.f32 0.5, %v4597_v33 }
 0x71a   : > { %v7624_v4 = vpop.eup %7623  ;;  %v4645_v46 = vmul.f32 %v10716_v38, %v4628_v35  ;;  %v4942_v26 = vor.u32 1.1754944e-38, %v4941_v8 }
 0x71b   : > { %v4931_v52 = vmul.f32 %v7624_v4, %v10975_v14  ;;  %v4923_v49 = vsel %vm4922_vm15, %v7620_v42, %v4919_v48  ;;  %vm4936_vm1 = vweird.f32 %v7624_v4  ;;  %v4599_v1 = vsub.f32 1.5, %v4598_v58 }
 0x71c   : > { %v4928_v63 = vsel %vm4925_vm0, %v4927_v28, %v4923_v49  ;;  %v7626_v18 = vpop.eup %7625  ;;  %v4662_v42 = vadd.f32 %v10718_v54, %v4645_v46  ;;  %vm4937_vm5 = vmor %vm4935_vm4, %vm4936_vm1 }
 0x71d   : > { %v4932_v34 = vsub.f32 1.0, %v4931_v52  ;;  %v11003_v39 = vmul.f32 %v4928_v63, %v10947_v24  ;;  %v4606_v45 = vmul.f32 %v7626_v18, %v10985_v36  ;;  %v4600_v11 = vmul.f32 %v7622_v37, %v4599_v1 }
 0x71e   : > { %v11014_v12 = vadd.f32 %v4662_v42, %v10722_v10  ;;  %v4703_v7 = vpack.c.bf16 %v4662_v42, %v4661_v57  ;;  %vm4612_vm8 = vweird.f32 %v7626_v18 }
 0x71f   : > { %v4933_v19 = vmul.f32 %v7624_v4, %v4932_v34  ;;  %5171 = vadd.xlane.f32.xlu0 %v11003_v39  ;;  %v5219_v9 = vmul.f32 %v11003_v39, %v11003_v39  ;;  %v4607_v6 = vmul.f32 %v7626_v18, %v4606_v45  ;;  %v4604_v40 = vsel %vm4603_vm6, %v7622_v37, %v4600_v11  ;;  %vm4613_vm10 = vmor %vm4611_vm9, %vm4612_vm8 }
 0x720   : > { %4694 = vst [vmem:[#allocation2 + $0x70] sm:$0xff] %v11014_v12  ;;  %4808 = vmatmul.bf16.gmra.mxu3 %v4703_v7  ;;  %v4629_v62 = vmul.f32 %v4604_v40, %v4405_v3 }
 0x721   : > { %v4934_v24 = vadd.f32 %v7624_v4, %v4933_v19  ;;  %5235 = vadd.xlane.f32.xlu1 %v5219_v9  ;;  %v4608_v29 = vmul.f32 0.5, %v4607_v6 }
 0x722   : > { %v4646_v57 = vmul.f32 %v10716_v38, %v4629_v62 }
 0x723   : > { %v4938_v0 = vsel %vm4937_vm5, %v7624_v4, %v4934_v24  ;;  %v4784_v59 = vpop.f32.mrf.mxu3  ;;  %v4609_v43 = vsub.f32 1.5, %v4608_v29  ;;  %v4406_v4 = vsub.f32 %v10830_v5, %v10973_v51 }
 0x724   : > { %v4943_v14 = vsel %vm4940_vm7, %v4942_v26, %v4938_v0  ;;  %v4785_v21 = vadd.f32 %v4784_v59, %v10941_v61 }
 0x725   : > { %v11021_v10 = vmul.f32 %v4943_v14, %v10958_v13  ;;  %v4610_v56 = vmul.f32 %v7626_v18, %v4609_v43  ;;  %v4663_v13 = vadd.f32 %v10718_v54, %v4646_v57 }
 0x726   : > { %v4837_v37 = vadd.f32 %v4785_v21, %v10833_v15 }
 0x727   : > { %5173 = vadd.xlane.f32.xlu2 %v11021_v10  ;;  %v5220_v41 = vmul.f32 %v11021_v10, %v11021_v10  ;;  %v4614_v60 = vsel %vm4613_vm10, %v7626_v18, %v4610_v56  ;;  %v11034_v16 = vadd.f32 %v4663_v13, %v10739_v44 }
 0x728   : > { %v6820_v17 = vmul.f32 -1.442695, %v4837_v37  ;;  %v4630_v48 = vmul.f32 %v4614_v60, %v4406_v4 }
 0x729   : > { %5237 = vadd.xlane.f32.xlu0 %v5220_v41  ;;  %4695 = vst [vmem:[#allocation2 + $0x78] sm:$0xff] %v11034_v16 }
 0x72a   : > { %7627 = vpow2.f32 %v6820_v17  ;;  %v4647_v36 = vmul.f32 %v10716_v38, %v4630_v48 }
 0x72b   : > { %v4786_v52 = vpop.f32.mrf.mxu3 }
 0x72c   : > { %v4787_v15 = vadd.f32 %v4786_v52, %v10941_v61  ;;  %v4664_v33 = vadd.f32 %v10718_v54, %v4647_v36 }
 0x72e   : > { %v4838_v35 = vadd.f32 %v4787_v15, %v10843_v47  ;;  %v11042_v5 = vadd.f32 %v4664_v33, %v10760_v30  ;;  %v4704_v51 = vpack.c.bf16 %v4664_v33, %v4663_v13 }
 0x730   : > { %v7628_v28 = vpop.eup %7627  ;;  %v6821_v44 = vmul.f32 -1.442695, %v4838_v35  ;;  %4696 = vst [vmem:[#allocation2 + $0x28] sm:$0xff] %v11042_v5  ;;  %4813 = vmatmul.bf16.gmra.mxu3 %v4704_v51 }
 0x731   : > { %v4901_v49 = vadd.f32 1.0, %v7628_v28 }
 0x732   : > { %7629 = vpow2.f32 %v6821_v44 }
 0x733   : > { %7631 = vrcp.f32 %v4901_v49  ;;  %v4956_v63 = vand.u32 2147483648, %v4901_v49  ;;  %v4954_v30 = vand.u32 2147483647, %v4901_v49  ;;  %vm4950_vm12 = vweird.f32 %v4901_v49 }
 0x735   : > { %v4957_v2 = vor.u32 1.1754944e-38, %v4956_v63  ;;  %vm4955_vm14 = vcmp.eq.f32.partialorder %v4954_v30, 8.507059e+37 }
 0x738   : > { %v7630_v34 = vpop.eup %7629 }
 0x739   : > { %v7632_v38 = vpop.eup %7631  ;;  %v4902_v58 = vadd.f32 1.0, %v7630_v34 }
 0x73a   : > { %v4946_v46 = vmul.f32 %v7632_v38, %v4901_v49  ;;  %vm4951_vm11 = vweird.f32 %v7632_v38 }
 0x73b   : > { %7633 = vrcp.f32 %v4902_v58  ;;  %vm4952_vm13 = vmor %vm4950_vm12, %vm4951_vm11  ;;  %v4971_v7 = vand.u32 2147483648, %v4902_v58  ;;  %v4969_v6 = vand.u32 2147483647, %v4902_v58  ;;  %vm4965_vm0 = vweird.f32 %v4902_v58 }
 0x73c   : > { %v4947_v54 = vsub.f32 1.0, %v4946_v46 }
 0x73d   : > { %v4972_v29 = vor.u32 1.1754944e-38, %v4971_v7  ;;  %vm4970_vm2 = vcmp.eq.f32.partialorder %v4969_v6, 8.507059e+37 }
 0x73e   : > { %v4948_v47 = vmul.f32 %v7632_v38, %v4947_v54 }
 0x740   : > { %v4949_v8 = vadd.f32 %v7632_v38, %v4948_v47 }
 0x741   : > { %v7634_v19 = vpop.eup %7633 }
 0x742   : > { %v4953_v18 = vsel %vm4952_vm13, %v7632_v38, %v4949_v8  ;;  %v4961_v1 = vmul.f32 %v7634_v19, %v4902_v58  ;;  %vm4966_vm15 = vweird.f32 %v7634_v19 }
 0x743   : > { %v4958_v42 = vsel %vm4955_vm14, %v4957_v2, %v4953_v18  ;;  %vm4967_vm1 = vmor %vm4965_vm0, %vm4966_vm15 }
 0x744   : > { %v11045_v45 = vmul.f32 %v4958_v42, %v4837_v37  ;;  %v4962_v24 = vsub.f32 1.0, %v4961_v1 }
 0x746   : > { %5175 = vadd.xlane.f32.xlu2 %v11045_v45  ;;  %v5221_v26 = vmul.f32 %v11045_v45, %v11045_v45  ;;  %v4963_v3 = vmul.f32 %v7634_v19, %v4962_v24 }
 0x747   : > { %v4789_v9 = vpop.f32.mrf.mxu3 }
 0x748   : > { %v4790_v11 = vadd.f32 %v4789_v9, %v10941_v61  ;;  %5239 = vadd.xlane.f32.xlu0 %v5221_v26  ;;  %v4964_v14 = vadd.f32 %v7634_v19, %v4963_v3 }
 0x74a   : > { %v4839_v0 = vadd.f32 %v4790_v11, %v10865_v27  ;;  %v4968_v62 = vsel %vm4967_vm1, %v7634_v19, %v4964_v14 }
 0x74b   : > { %v4973_v59 = vsel %vm4970_vm2, %v4972_v29, %v4968_v62 }
 0x74c   : > { %v6822_v40 = vmul.f32 -1.442695, %v4839_v0  ;;  %v11052_v43 = vmul.f32 %v4973_v59, %v4838_v35 }
 0x74e   : > { %7635 = vpow2.f32 %v6822_v40  ;;  %5177 = vadd.xlane.f32.xlu1 %v11052_v43  ;;  %v5222_v27 = vmul.f32 %v11052_v43, %v11052_v43 }
 0x74f   : > { %v4791_v21 = vpop.f32.mrf.mxu3 }
 0x750   : > { %v4792_v41 = vadd.f32 %v4791_v21, %v10941_v61  ;;  %5241 = vadd.xlane.f32.xlu2 %v5222_v27 }
 0x752   : > { %v11059_v57 = vadd.f32 %v4792_v41, %v10879_v31 }
 0x754   : > { %v7636_v56 = vpop.eup %7635  ;;  %v6823_v37 = vmul.f32 -1.442695, %v11059_v57 }
 0x755   : > { %v4903_v13 = vadd.f32 1.0, %v7636_v56 }
 0x756   : > { %7637 = vpow2.f32 %v6823_v37 }
 0x757   : > { %7639 = vrcp.f32 %v4903_v13  ;;  %v4794_v4 = vpop.f32.mrf.mxu3  ;;  %v4986_v28 = vand.u32 2147483648, %v4903_v13  ;;  %vm4980_vm4 = vweird.f32 %v4903_v13 }
 0x758   : > { %v4795_v17 = vadd.f32 %v4794_v4, %v10941_v61 }
 0x759   : > { %v4987_v63 = vor.u32 1.1754944e-38, %v4986_v28 }
 0x75a   : > { %v11064_v60 = vadd.f32 %v4795_v17, %v10893_v25  ;;  %v4984_v25 = vand.u32 2147483647, %v4903_v13 }
 0x75c   : > { %v7638_v48 = vpop.eup %7637  ;;  %v6824_v52 = vmul.f32 -1.442695, %v11064_v60  ;;  %vm4985_vm6 = vcmp.eq.f32.partialorder %v4984_v25, 8.507059e+37 }
 0x75d   : > { %v7640_v36 = vpop.eup %7639  ;;  %v4904_v15 = vadd.f32 1.0, %v7638_v48 }
 0x75e   : > { %7641 = vpow2.f32 %v6824_v52  ;;  %v4976_v31 = vmul.f32 %v7640_v36, %v4903_v13  ;;  %vm4981_vm3 = vweird.f32 %v7640_v36 }
 0x75f   : > { %7643 = vrcp.f32 %v4904_v15  ;;  %v4796_v33 = vpop.f32.mrf.mxu3  ;;  %vm4982_vm5 = vmor %vm4980_vm4, %vm4981_vm3  ;;  %v5001_v2 = vand.u32 2147483648, %v4904_v15  ;;  %v4999_v9 = vand.u32 2147483647, %v4904_v15  ;;  %vm4995_vm8 = vweird.f32 %v4904_v15 }
 0x760   : > { %v4797_v35 = vadd.f32 %v4796_v33, %v10941_v61  ;;  %v4977_v51 = vsub.f32 1.0, %v4976_v31 }
 0x761   : > { %vm5000_vm10 = vcmp.eq.f32.partialorder %v4999_v9, 8.507059e+37 }
 0x762   : > { %v11069_v44 = vadd.f32 %v4797_v35, %v10905_v20  ;;  %v4978_v49 = vmul.f32 %v7640_v36, %v4977_v51 }
 0x764   : > { %v7642_v34 = vpop.eup %7641  ;;  %v6825_v38 = vmul.f32 -1.442695, %v11069_v44  ;;  %v4979_v58 = vadd.f32 %v7640_v36, %v4978_v49 }
 0x765   : > { %v7644_v46 = vpop.eup %7643  ;;  %v4905_v54 = vadd.f32 1.0, %v7642_v34 }
 0x766   : > { %7645 = vpow2.f32 %v6825_v38  ;;  %v4983_v47 = vsel %vm4982_vm5, %v7640_v36, %v4979_v58  ;;  %v4991_v30 = vmul.f32 %v7644_v46, %v4904_v15  ;;  %vm4996_vm7 = vweird.f32 %v7644_v46 }
 0x767   : > { %7647 = vrcp.f32 %v4905_v54  ;;  %v4988_v8 = vsel %vm4985_vm6, %v4987_v63, %v4983_v47  ;;  %vm4997_vm9 = vmor %vm4995_vm8, %vm4996_vm7  ;;  %v5016_v41 = vand.u32 2147483648, %v4905_v54  ;;  %v5014_v37 = vand.u32 2147483647, %v4905_v54 }
 0x768   : > { %v11072_v20 = vmul.f32 %v4988_v8, %v4839_v0  ;;  %v4992_v19 = vsub.f32 1.0, %v4991_v30  ;;  %v5002_v0 = vor.u32 1.1754944e-38, %v5001_v2  ;;  %vm5010_vm12 = vweird.f32 %v4905_v54 }
 0x769   : > { %v5017_v48 = vor.u32 1.1754944e-38, %v5016_v41  ;;  %vm5015_vm14 = vcmp.eq.f32.partialorder %v5014_v37, 8.507059e+37 }
 0x76a   : > { %5179 = vadd.xlane.f32.xlu1 %v11072_v20  ;;  %v5223_v1 = vmul.f32 %v11072_v20, %v11072_v20  ;;  %v4993_v42 = vmul.f32 %v7644_v46, %v4992_v19 }
 0x76b   : > { %v4799_v18 = vpop.f32.mrf.mxu3 }
 0x76c   : > { %v4800_v24 = vadd.f32 %v4799_v18, %v10941_v61  ;;  %v7646_v11 = vpop.eup %7645  ;;  %5243 = vadd.xlane.f32.xlu2 %v5223_v1  ;;  %v4994_v7 = vadd.f32 %v7644_v46, %v4993_v42 }
 0x76d   : > { %v7648_v26 = vpop.eup %7647  ;;  %v4906_v3 = vadd.f32 1.0, %v7646_v11 }
 0x76e   : > { %v11079_v6 = vadd.f32 %v4800_v24, %v10917_v55  ;;  %v4998_v14 = vsel %vm4997_vm9, %v7644_v46, %v4994_v7  ;;  %v5006_v40 = vmul.f32 %v7648_v26, %v4905_v54  ;;  %vm5011_vm11 = vweird.f32 %v7648_v26 }
 0x76f   : > { %7649 = vrcp.f32 %v4906_v3  ;;  %v5003_v62 = vsel %vm5000_vm10, %v5002_v0, %v4998_v14  ;;  %vm5012_vm13 = vmor %vm5010_vm12, %vm5011_vm11  ;;  %v5029_v49 = vand.u32 2147483647, %v4906_v3  ;;  %v5031_v25 = vand.u32 2147483648, %v4906_v3 }
 0x770   : > { %v6826_v29 = vmul.f32 -1.442695, %v11079_v6  ;;  %v11083_v59 = vmul.f32 %v5003_v62, %v11059_v57  ;;  %v5007_v21 = vsub.f32 1.0, %v5006_v40  ;;  %vm5025_vm0 = vweird.f32 %v4906_v3 }
 0x771   : > { %vm5030_vm2 = vcmp.eq.f32.partialorder %v5029_v49, 8.507059e+37 }
 0x772   : > { %7651 = vpow2.f32 %v6826_v29  ;;  %5181 = vadd.xlane.f32.xlu0 %v11083_v59  ;;  %v5224_v55 = vmul.f32 %v11083_v59, %v11083_v59  ;;  %v5008_v56 = vmul.f32 %v7648_v26, %v5007_v21 }
 0x773   : > { %v4801_v27 = vpop.f32.mrf.mxu3 }
 0x774   : > { %v4802_v13 = vadd.f32 %v4801_v27, %v10941_v61  ;;  %5245 = vadd.xlane.f32.xlu1 %v5224_v55  ;;  %v5009_v4 = vadd.f32 %v7648_v26, %v5008_v56 }
 0x775   : > { %v7650_v17 = vpop.eup %7649 }
 0x776   : > { %v11090_v57 = vadd.f32 %v4802_v13, %v10925_v50  ;;  %v5013_v52 = vsel %vm5012_vm13, %v7648_v26, %v5009_v4  ;;  %v5021_v36 = vmul.f32 %v7650_v17, %v4906_v3  ;;  %vm5026_vm15 = vweird.f32 %v7650_v17 }
 0x777   : > { %v5018_v33 = vsel %vm5015_vm14, %v5017_v48, %v5013_v52  ;;  %vm5027_vm1 = vmor %vm5025_vm0, %vm5026_vm15 }
 0x778   : > { %v7652_v15 = vpop.eup %7651  ;;  %v6827_v31 = vmul.f32 -1.442695, %v11090_v57  ;;  %v11094_v51 = vmul.f32 %v5018_v33, %v11064_v60  ;;  %v5022_v28 = vsub.f32 1.0, %v5021_v36  ;;  %v5032_v60 = vor.u32 1.1754944e-38, %v5031_v25  ;;  %v6892_v33 = vld [vmem:[#allocation16 + $0x70] sm:$0xf] }
 0x779   : > { %v4907_v35 = vadd.f32 1.0, %v7652_v15 }
 0x77a   : > { %7653 = vpow2.f32 %v6827_v31  ;;  %5183 = vadd.xlane.f32.xlu0 %v11094_v51  ;;  %v5225_v50 = vmul.f32 %v11094_v51, %v11094_v51  ;;  %v5023_v34 = vmul.f32 %v7650_v17, %v5022_v28  ;;  %v6966_v28 = vld [vmem:[#allocation16 + $0x74] sm:$0xf] }
 0x77b   : > { %7655 = vrcp.f32 %v4907_v35  ;;  %v4804_v38 = vpop.f32.mrf.mxu3  ;;  %v5046_v11 = vand.u32 2147483648, %v4907_v35  ;;  %v5044_v26 = vand.u32 2147483647, %v4907_v35  ;;  %vm5040_vm4 = vweird.f32 %v4907_v35 }
 0x77c   : > { %v4805_v58 = vadd.f32 %v4804_v38, %v10941_v61  ;;  %5247 = vadd.xlane.f32.xlu1 %v5225_v50  ;;  %v5024_v46 = vadd.f32 %v7650_v17, %v5023_v34  ;;  %v6894_v50 = vld [vmem:[#allocation16 + $0x78] sm:$0xf0] }
 0x77d   : > { %v5047_v40 = vor.u32 1.1754944e-38, %v5046_v11  ;;  %vm5045_vm6 = vcmp.eq.f32.partialorder %v5044_v26, 8.507059e+37  ;;  %v6963_v11 = vld [vmem:[#allocation16 + $0x54] sm:$0xf0] }
 0x77e   : > { %v11101_v54 = vadd.f32 %v4805_v58, %v10931_v23  ;;  %v5028_v63 = vsel %vm5027_vm1, %v7650_v17, %v5024_v46  ;;  %v6897_v58 = vor.u32 %v6966_v28, %v6894_v50  ;;  %v6868_v28 = vld [vmem:[#allocation16 + $0x40] sm:$0xf]  ;;  %v6960_v50 = vld [vmem:[#allocation16 + $0x44] sm:$0xf] }
 0x77f   : > { %v5033_v30 = vsel %vm5030_vm2, %v5032_v60, %v5028_v63 }
 0x780   : > { %v7654_v47 = vpop.eup %7653  ;;  %v6828_v2 = vmul.f32 -1.442695, %v11101_v54  ;;  %v11105_v18 = vmul.f32 %v5033_v30, %v11069_v44  ;;  %5715 = vmatpush.bf16.msrb.mxu1 %v6897_v58  ;;  %v6860_v58 = vld [vmem:[#allocation16 + $0x30] sm:$0xf] }
 0x781   : > { %v7656_v8 = vpop.eup %7655  ;;  %v4908_v19 = vadd.f32 1.0, %v7654_v47 }
 0x782   : > { %v5036_v1 = vmul.f32 %v7656_v8, %v4907_v35  ;;  %5185 = vadd.xlane.f32.xlu2 %v11105_v18  ;;  %v5226_v42 = vmul.f32 %v11105_v18, %v11105_v18  ;;  %vm5041_vm3 = vweird.f32 %v7656_v8  ;;  %v6967_v35 = vld [vmem:[#allocation16 + $0x74] sm:$0xf0] }
 0x783   : > { %7657 = vrcp.f32 %v4908_v19  ;;  %v4806_v23 = vpop.f32.mrf.mxu3  ;;  %vm5042_vm5 = vmor %vm5040_vm4, %vm5041_vm3  ;;  %v5061_v56 = vand.u32 2147483648, %v4908_v19  ;;  %v5059_v4 = vand.u32 2147483647, %v4908_v19  ;;  %vm5055_vm8 = vweird.f32 %v4908_v19 }
 0x784   : > { %7659 = vpow2.f32 %v6828_v2  ;;  %v5037_v9 = vsub.f32 1.0, %v5036_v1  ;;  %v4807_v24 = vadd.f32 %v4806_v23, %v10941_v61  ;;  %5249 = vadd.xlane.f32.xlu0 %v5226_v42  ;;  %v6893_v25 = vor.u32 %v6967_v35, %v6892_v33  ;;  %v6964_v2 = vld [vmem:[#allocation16 + $0x64] sm:$0xf] }
 0x785   : > { %v5062_v52 = vor.u32 1.1754944e-38, %v5061_v56  ;;  %vm5060_vm10 = vcmp.eq.f32.partialorder %v5059_v4, 8.507059e+37 }
 0x786   : > { %v5038_v7 = vmul.f32 %v7656_v8, %v5037_v9  ;;  %v11112_v44 = vadd.f32 %v4807_v24, %v10938_v53  ;;  %5666 = vmatpush.bf16.msrb.mxu0 %v6893_v25  ;;  %v6886_v9 = vld [vmem:[#allocation16 + $0x68] sm:$0xf0]  ;;  %v6876_v24 = vld [vmem:[#allocation16 + $0x50] sm:$0xf]  ;;  %v6961_v25 = vld [vmem:[#allocation16 + $0x44] sm:$0xf0] }
 0x787   : > { %v6889_v26 = vor.u32 %v6964_v2, %v6886_v9 }
 0x788   : > { %v5039_v3 = vadd.f32 %v7656_v8, %v5038_v7  ;;  %v6829_v14 = vmul.f32 -1.442695, %v11112_v44 }
 0x789   : > { %v7658_v0 = vpop.eup %7657  ;;  %5716 = vmatpush.bf16.msrb.mxu1 %v6889_v26  ;;  %v6852_v26 = vld [vmem:[#allocation16 + $0x20] sm:$0xf] }
 0x78a   : > { %v7660_v29 = vpop.eup %7659  ;;  %v5043_v62 = vsel %vm5042_vm5, %v7656_v8, %v5039_v3  ;;  %v5051_v21 = vmul.f32 %v7658_v0, %v4908_v19  ;;  %7661 = vpow2.f32 %v6829_v14  ;;  %vm5056_vm7 = vweird.f32 %v7658_v0  ;;  %v6884_v8 = vld [vmem:[#allocation16 + $0x60] sm:$0xf]  ;;  %v6965_v19 = vld [vmem:[#allocation16 + $0x64] sm:$0xf0]  ;;  %v6962_v3 = vld [vmem:[#allocation16 + $0x54] sm:$0xf] }
 0x78b   : > { %v11115_v41 = vadd.f32 1.0, %v7660_v29  ;;  %v5048_v27 = vsel %vm5045_vm6, %v5047_v40, %v5043_v62  ;;  %vm5057_vm9 = vmor %vm5055_vm8, %vm5056_vm7  ;;  %v6885_v7 = vor.u32 %v6965_v19, %v6884_v8  ;;  %v6862_v8 = vld [vmem:[#allocation16 + $0x38] sm:$0xf0] }
 0x78c   : > { %v11118_v55 = vmul.f32 %v5048_v27, %v11079_v6  ;;  %v5052_v53 = vsub.f32 1.0, %v5051_v21  ;;  %v6877_v27 = vor.u32 %v6963_v11, %v6876_v24 }
 0x78d   : > { %7663 = vrcp.f32 %v11115_v41  ;;  %v5074_v46 = vand.u32 2147483647, %v11115_v41  ;;  %vm5070_vm12 = vweird.f32 %v11115_v41  ;;  %5667 = vmatpush.bf16.msrb.mxu0 %v6885_v7 }
 0x78e   : > { %5187 = vadd.xlane.f32.xlu2 %v11118_v55  ;;  %v5227_v37 = vmul.f32 %v11118_v55, %v11118_v55  ;;  %v5053_v13 = vmul.f32 %v7658_v0, %v5052_v53 }
 0x78f   : > { %vm5075_vm14 = vcmp.eq.f32.partialorder %v5074_v46, 8.507059e+37  ;;  %v6959_v46 = vld [vmem:[#allocation16 + $0x34] sm:$0xf0] }
 0x790   : > { %5251 = vadd.xlane.f32.xlu0 %v5227_v37  ;;  %v5054_v17 = vadd.f32 %v7658_v0, %v5053_v13  ;;  %v7662_v48 = vpop.eup %7661 }
 0x791   : > { %v11124_v6 = vadd.f32 1.0, %v7662_v48  ;;  %5668 = vmatpush.bf16.msrb.mxu0 %v6877_v27  ;;  %v6955_v27 = vld [vmem:[#allocation16 + $0x14] sm:$0xf0] }
 0x792   : > { %v5058_v36 = vsel %vm5057_vm9, %v7658_v0, %v5054_v17  ;;  %v5172_v38 = vpop.xlane.xlu0 %5171  ;;  %v6878_v0 = vld [vmem:[#allocation16 + $0x58] sm:$0xf0] }
 0x793   : > { %v7664_v15 = vpop.eup %7663  ;;  %v5063_v31 = vsel %vm5060_vm10, %v5062_v52, %v5058_v36  ;;  %7665 = vrcp.f32 %v11124_v6  ;;  %v11133_v60 = vmul.f32 %v5172_v38, %v9158_v32  ;;  %v6881_v53 = vor.u32 %v6962_v3, %v6878_v0  ;;  %v6870_v38 = vld [vmem:[#allocation16 + $0x48] sm:$0xf0]  ;;  %v6957_v3 = vld [vmem:[#allocation16 + $0x24] sm:$0xf0]  ;;  %v6956_v0 = vld [vmem:[#allocation16 + $0x24] sm:$0xf] }
 0x794   : > { %v11128_v49 = vmul.f32 %v5063_v31, %v11090_v57  ;;  %v5066_v34 = vmul.f32 %v7664_v15, %v11115_v41  ;;  %v5076_v57 = vand.u32 2147483648, %v11115_v41  ;;  %v5236_v30 = vpop.xlane.xlu1 %5235  ;;  %vm5071_vm11 = vweird.f32 %v7664_v15 }
 0x795   : > { %v5299_v1 = vmul.f32 %v11133_v60, %v11133_v60  ;;  %v5267_v42 = vmul.f32 %v5236_v30, %v9158_v32  ;;  %vm5072_vm13 = vmor %vm5070_vm12, %vm5071_vm11  ;;  %v5089_v36 = vand.u32 2147483647, %v11124_v6  ;;  %v5091_v31 = vand.u32 2147483648, %v11124_v6  ;;  %5717 = vmatpush.bf16.msrb.mxu1 %v6881_v53  ;;  %v6958_v30 = vld [vmem:[#allocation16 + $0x34] sm:$0xf] }
 0x796   : > { %5189 = vadd.xlane.f32.xlu1 %v11128_v49  ;;  %v5228_v63 = vmul.f32 %v11128_v49, %v11128_v49  ;;  %v5067_v47 = vsub.f32 1.0, %v5066_v34  ;;  %v5077_v21 = vor.u32 1.1754944e-38, %v5076_v57  ;;  %vm5085_vm0 = vweird.f32 %v11124_v6 }
 0x797   : > { %v5315_v40 = vsub.f32 %v5267_v42, %v5299_v1  ;;  %v6869_v34 = vor.u32 %v6961_v25, %v6868_v28  ;;  %v6873_v57 = vor.u32 %v6960_v50, %v6870_v38  ;;  %v5092_v19 = vor.u32 1.1754944e-38, %v5091_v31  ;;  %v6952_v38 = vld [vmem:[#allocation16 + $0x4] sm:$0xf] }
 0x798   : > { %5253 = vadd.xlane.f32.xlu2 %v5228_v63  ;;  %v5068_v23 = vmul.f32 %v7664_v15, %v5067_v47  ;;  %vm5090_vm2 = vcmp.eq.f32.partialorder %v5089_v36, 8.507059e+37  ;;  %v6861_v1 = vor.u32 %v6959_v46, %v6860_v58  ;;  %v6865_v9 = vor.u32 %v6958_v30, %v6862_v8 }
 0x799   : > { %v7666_v14 = vpop.eup %7665  ;;  %v11144_v37 = vadd.f32 0.1, %v5315_v40  ;;  %5669 = vmatpush.bf16.msrb.mxu0 %v6869_v34  ;;  %5718 = vmatpush.bf16.msrb.mxu1 %v6873_v57  ;;  %v6953_v34 = vld [vmem:[#allocation16 + $0x4] sm:$0xf0] }
 0x79a   : > { %v5069_v29 = vadd.f32 %v7664_v15, %v5068_v23  ;;  %v5174_v62 = vpop.xlane.xlu2 %5173  ;;  %v5081_v56 = vmul.f32 %v7666_v14, %v11124_v6  ;;  %vm5086_vm15 = vweird.f32 %v7666_v14 }
 0x79b   : > { %v11147_v13 = vmul.f32 %v5174_v62, %v9158_v32  ;;  %7667 = vrsqrt.f32 %v11144_v37  ;;  %vm5087_vm1 = vmor %vm5085_vm0, %vm5086_vm15  ;;  %v6854_v62 = vld [vmem:[#allocation16 + $0x28] sm:$0xf0]  ;;  %vm5353_vm4 = vweird.f32 %v11144_v37 }
 0x79c   : > { %v5073_v4 = vsel %vm5072_vm13, %v7664_v15, %v5069_v29  ;;  %v5238_v17 = vpop.xlane.xlu0 %5237  ;;  %v5082_v52 = vsub.f32 1.0, %v5081_v56  ;;  %v6853_v29 = vor.u32 %v6957_v3, %v6852_v26  ;;  %v6857_v56 = vor.u32 %v6956_v0, %v6854_v62 }
 0x79d   : > { %v5078_v48 = vsel %vm5075_vm14, %v5077_v21, %v5073_v4  ;;  %v5300_v41 = vmul.f32 %v11147_v13, %v11147_v13  ;;  %v5268_v33 = vmul.f32 %v5238_v17, %v9158_v32  ;;  %5670 = vmatpush.bf16.msrb.mxu0 %v6861_v1  ;;  %5719 = vmatpush.bf16.msrb.mxu1 %v6865_v9  ;;  %v6844_v21 = vld [vmem:[#allocation16 + $0x10] sm:$0xf]  ;;  %v6954_v4 = vld [vmem:[#allocation16 + $0x14] sm:$0xf]  ;;  %v6846_v17 = vld [vmem:[#allocation16 + $0x18] sm:$0xf0] }
 0x79e   : > { %v11156_v35 = vmul.f32 %v5078_v48, %v11101_v54  ;;  %v5083_v15 = vmul.f32 %v7666_v14, %v5082_v52  ;;  %v6845_v36 = vor.u32 %v6955_v27, %v6844_v21  ;;  %v7884_v1 = vld [vmem:[#allocation18 + $0x8] sm:$0x7f] }
 0x79f   : > { %v5316_v63 = vsub.f32 %v5268_v33, %v5300_v41  ;;  %v6849_v33 = vor.u32 %v6954_v4, %v6846_v17  ;;  %v11199_v3 = vperm.slane %v7884_v1, 6 }
 0x7a0   : > { %5191 = vadd.xlane.f32.xlu1 %v11156_v35  ;;  %v5229_v54 = vmul.f32 %v11156_v35, %v11156_v35  ;;  %v5084_v47 = vadd.f32 %v7666_v14, %v5083_v15 }
 0x7a1   : > { %v11163_v2 = vadd.f32 0.1, %v5316_v63  ;;  %v7668_v42 = vpop.eup %7667  ;;  %5671 = vmatpush.bf16.msrb.mxu0 %v6853_v29  ;;  %5720 = vmatpush.bf16.msrb.mxu1 %v6857_v56 }
 0x7a2   : > { %5255 = vadd.xlane.f32.xlu2 %v5229_v54  ;;  %v5088_v6 = vsel %vm5087_vm1, %v7666_v14, %v5084_v47  ;;  %v5348_v24 = vmul.f32 %v7668_v42, %v11144_v37  ;;  %vm5354_vm3 = vweird.f32 %v7668_v42  ;;  %v6838_v37 = vld [vmem:[#allocation16 + $0x8] sm:$0xf0]  ;;  %v5283_v47 = vsub.f32 %v11003_v39, %v11133_v60 }
 0x7a3   : > { %v5093_v23 = vsel %vm5090_vm2, %v5092_v19, %v5088_v6  ;;  %7669 = vrsqrt.f32 %v11163_v2  ;;  %v4809_v14 = vpop.f32.mrf.mxu3  ;;  %vm11180_vm5 = vmor %vm5353_vm4, %vm5354_vm3  ;;  %v6841_v30 = vor.u32 %v6952_v38, %v6838_v37  ;;  %vm5363_vm7 = vweird.f32 %v11163_v2 }
 0x7a4   : > { %v11168_v11 = vmul.f32 %v5093_v23, %v11112_v44  ;;  %v5349_v7 = vmul.f32 %v7668_v42, %v5348_v24  ;;  %v4810_v44 = vadd.f32 %v4809_v14, %v10941_v61  ;;  %v5284_v39 = vsub.f32 %v11021_v10, %v11147_v13 }
 0x7a5   : > { %5672 = vmatpush.bf16.msrb.mxu0 %v6845_v36  ;;  %5721 = vmatpush.bf16.msrb.mxu1 %v6849_v33 }
 0x7a6   : > { %5193 = vadd.xlane.f32.xlu0 %v11168_v11  ;;  %v5230_v40 = vmul.f32 %v11168_v11, %v11168_v11  ;;  %v5350_v53 = vmul.f32 0.5, %v5349_v7  ;;  %v11175_v41 = vadd.f32 %v4810_v44, %v10996_v22  ;;  %v6836_v22 = vld [vmem:[#allocation16] sm:$0xf] }
 0x7a7   : > { %v6837_v54 = vor.u32 %v6953_v34, %v6836_v22 }
 0x7a8   : > { %5257 = vadd.xlane.f32.xlu1 %v5230_v40  ;;  %v5351_v52 = vsub.f32 1.5, %v5350_v53  ;;  %v6830_v28 = vmul.f32 -1.442695, %v11175_v41 }
 0x7a9   : > { %v7670_v48 = vpop.eup %7669  ;;  %5673 = vmatpush.bf16.msrb.mxu0 %v6837_v54  ;;  %5722 = vmatpush.bf16.msrb.mxu1 %v6841_v30 }
 0x7aa   : > { %v5358_v31 = vmul.f32 %v7670_v48, %v11163_v2  ;;  %v5352_v15 = vmul.f32 %v7668_v42, %v5351_v52  ;;  %7671 = vpow2.f32 %v6830_v28  ;;  %vm5364_vm6 = vweird.f32 %v7670_v48 }
 0x7ab   : > { %v4811_v63 = vpop.f32.mrf.mxu3  ;;  %vm5365_vm8 = vmor %vm5363_vm7, %vm5364_vm6 }
 0x7ac   : > { %v5359_v50 = vmul.f32 %v7670_v48, %v5358_v31  ;;  %v5356_v58 = vsel %vm11180_vm5, %v7668_v42, %v5352_v15  ;;  %v4812_v57 = vadd.f32 %v4811_v63, %v10941_v61  ;;  %v11192_v42 = vperm.slane %v7884_v1, 1 }
 0x7ad   : > { %v5507_v6 = vmul.f32 %v5356_v58, %v5283_v47 }
 0x7ae   : > { %v5360_v46 = vmul.f32 0.5, %v5359_v50  ;;  %v11190_v19 = vadd.f32 %v4812_v57, %v11014_v12 }
 0x7af   : > { %v5524_v26 = vmul.f32 %v11192_v42, %v5507_v6 }
 0x7b0   : > { %v5361_v8 = vsub.f32 1.5, %v5360_v46  ;;  %v7672_v9 = vpop.eup %7671  ;;  %v6831_v60 = vmul.f32 -1.442695, %v11190_v19 }
 0x7b1   : > { %v4911_v7 = vadd.f32 1.0, %v7672_v9  ;;  %v5541_v10 = vadd.f32 %v11199_v3, %v5524_v26 }
 0x7b2   : > { %v5362_v23 = vmul.f32 %v7670_v48, %v5361_v8  ;;  %7673 = vpow2.f32 %v6831_v60 }
 0x7b3   : > { %7675 = vrcp.f32 %v4911_v7  ;;  %v4814_v0 = vpop.f32.mrf.mxu3  ;;  %v5106_v25 = vand.u32 2147483648, %v4911_v7  ;;  %v5104_v22 = vand.u32 2147483647, %v4911_v7  ;;  %vm5100_vm10 = vweird.f32 %v4911_v7 }
 0x7b4   : > { %v5366_v24 = vsel %vm5365_vm8, %v7670_v48, %v5362_v23  ;;  %v4815_v2 = vadd.f32 %v4814_v0, %v10941_v61 }
 0x7b5   : > { %v5508_v12 = vmul.f32 %v5366_v24, %v5284_v39  ;;  %v5107_v47 = vor.u32 1.1754944e-38, %v5106_v25  ;;  %vm5105_vm12 = vcmp.eq.f32.partialorder %v5104_v22, 8.507059e+37 }
 0x7b6   : > { %v11204_v40 = vadd.f32 %v4815_v2, %v11034_v16 }
 0x7b7   : > { %v5525_v14 = vmul.f32 %v11192_v42, %v5508_v12 }
 0x7b8   : > { %v7674_v29 = vpop.eup %7673  ;;  %v6832_v62 = vmul.f32 -1.442695, %v11204_v40 }
 0x7b9   : > { %v5542_v13 = vadd.f32 %v11199_v3, %v5525_v14  ;;  %v5176_v21 = vpop.xlane.xlu2 %5175  ;;  %v7676_v53 = vpop.eup %7675  ;;  %v11209_v44 = vadd.f32 1.0, %v7674_v29 }
 0x7ba   : > { %v11212_v56 = vmul.f32 %v5176_v21, %v9158_v32  ;;  %7677 = vpow2.f32 %v6832_v62  ;;  %v5096_v16 = vmul.f32 %v7676_v53, %v4911_v7  ;;  %vm5101_vm9 = vweird.f32 %v7676_v53 }
 0x7bb   : > { %v5557_v27 = vpack.c.bf16 %v5542_v13, %v5541_v10  ;;  %v5240_v4 = vpop.xlane.xlu0 %5239  ;;  %7679 = vrcp.f32 %v11209_v44  ;;  %v4816_v48 = vpop.f32.mrf.mxu3  ;;  %vm5102_vm11 = vmor %vm5100_vm10, %vm5101_vm9  ;;  %v5121_v39 = vand.u32 2147483648, %v11209_v44  ;;  %v5119_v24 = vand.u32 2147483647, %v11209_v44 }
 0x7bc   : > { %v5301_v17 = vmul.f32 %v11212_v56, %v11212_v56  ;;  %v5269_v52 = vmul.f32 %v5240_v4, %v9158_v32  ;;  %v4817_v36 = vadd.f32 %v4816_v48, %v10941_v61  ;;  %v5097_v31 = vsub.f32 1.0, %v5096_v16 }
 0x7bd   : > { %5674 = vmatmul.bf16.vlgmr.msrb.gmra.mxu0 %v5557_v27  ;;  %5723 = vmatmul.bf16.vlgmr.msrb.gmra.mxu1 %v5557_v27  ;;  %vm5115_vm14 = vweird.f32 %v11209_v44  ;;  %v5122_v13 = vor.u32 1.1754944e-38, %v5121_v39  ;;  %vm5120_vm0 = vcmp.eq.f32.partialorder %v5119_v24, 8.507059e+37 }
 0x7be   : > { %v5317_v33 = vsub.f32 %v5269_v52, %v5301_v17  ;;  %v11220_v15 = vadd.f32 %v4817_v36, %v11042_v5  ;;  %v5098_v28 = vmul.f32 %v7676_v53, %v5097_v31 }
 0x7c0   : > { %v11222_v50 = vadd.f32 0.1, %v5317_v33  ;;  %v7678_v34 = vpop.eup %7677  ;;  %v6833_v38 = vmul.f32 -1.442695, %v11220_v15  ;;  %v5099_v46 = vadd.f32 %v7676_v53, %v5098_v28 }
 0x7c1   : > { %v5178_v58 = vpop.xlane.xlu1 %5177  ;;  %v7680_v63 = vpop.eup %7679  ;;  %v11225_v54 = vadd.f32 1.0, %v7678_v34 }
 0x7c2   : > { %7681 = vrsqrt.f32 %v11222_v50  ;;  %v11229_v61 = vmul.f32 %v5178_v58, %v9158_v32  ;;  %v5103_v37 = vsel %vm5102_vm11, %v7676_v53, %v5099_v46  ;;  %v5111_v57 = vmul.f32 %v7680_v63, %v11209_v44 }
 0x7c3   : > { %7683 = vpow2.f32 %v6833_v38  ;;  %v5242_v5 = vpop.xlane.xlu2 %5241  ;;  %v5108_v6 = vsel %vm5105_vm12, %v5107_v47, %v5103_v37  ;;  %vm5116_vm13 = vweird.f32 %v7680_v63  ;;  %v5134_v16 = vand.u32 2147483647, %v11225_v54 }
 0x7c4   : > { %7685 = vrcp.f32 %v11225_v54  ;;  %v5302_v30 = vmul.f32 %v11229_v61, %v11229_v61  ;;  %v5270_v8 = vmul.f32 %v5242_v5, %v9158_v32  ;;  %v5112_v1 = vsub.f32 1.0, %v5111_v57  ;;  %vm5117_vm15 = vmor %vm5115_vm14, %vm5116_vm13 }
 0x7c5   : > { %v11237_v9 = vmul.f32 %v5108_v6, %v11175_v41  ;;  %v5136_v17 = vand.u32 2147483648, %v11225_v54  ;;  %vm5130_vm2 = vweird.f32 %v11225_v54  ;;  %vm5373_vm4 = vweird.f32 %v11222_v50 }
 0x7c6   : > { %v5318_v23 = vsub.f32 %v5270_v8, %v5302_v30  ;;  %v5113_v60 = vmul.f32 %v7680_v63, %v5112_v1  ;;  %vm5135_vm6 = vcmp.eq.f32.partialorder %v5134_v16, 8.507059e+37  ;;  %v5285_v47 = vsub.f32 %v11045_v45, %v11212_v56 }
 0x7c7   : > { %5195 = vadd.xlane.f32.xlu0 %v11237_v9  ;;  %v5231_v26 = vmul.f32 %v11237_v9, %v11237_v9  ;;  %v5137_v22 = vor.u32 1.1754944e-38, %v5136_v17  ;;  %v5286_v45 = vsub.f32 %v11052_v43, %v11229_v61 }
 0x7c8   : > { %v7682_v7 = vpop.eup %7681  ;;  %v5334_v12 = vadd.f32 0.1, %v5318_v23  ;;  %v5114_v14 = vadd.f32 %v7680_v63, %v5113_v60 }
 0x7c9   : > { %v7684_v0 = vpop.eup %7683  ;;  %v5368_v2 = vmul.f32 %v7682_v7, %v11222_v50  ;;  %5259 = vadd.xlane.f32.xlu1 %v5231_v26  ;;  %vm5374_vm3 = vweird.f32 %v7682_v7 }
 0x7ca   : > { %v7686_v41 = vpop.eup %7685  ;;  %v11246_v10 = vadd.f32 1.0, %v7684_v0  ;;  %7687 = vrsqrt.f32 %v5334_v12  ;;  %v5118_v62 = vsel %vm5117_vm15, %v7680_v63, %v5114_v14  ;;  %vm11261_vm7 = vmor %vm5373_vm4, %vm5374_vm3  ;;  %vm5383_vm10 = vweird.f32 %v5334_v12 }
 0x7cb   : > { %v5369_v29 = vmul.f32 %v7682_v7, %v5368_v2  ;;  %v5126_v21 = vmul.f32 %v7686_v41, %v11225_v54  ;;  %v5123_v27 = vsel %vm5120_vm0, %v5122_v13, %v5118_v62  ;;  %vm5131_vm1 = vweird.f32 %v7686_v41 }
 0x7cc   : > { %7689 = vrcp.f32 %v11246_v10  ;;  %v11251_v4 = vmul.f32 %v5123_v27, %v11190_v19  ;;  %vm5132_vm5 = vmor %vm5130_vm2, %vm5131_vm1  ;;  %v5149_v57 = vand.u32 2147483647, %v11246_v10  ;;  %v5151_v30 = vand.u32 2147483648, %v11246_v10 }
 0x7cd   : > { %v5370_v53 = vmul.f32 0.5, %v5369_v29  ;;  %v5127_v44 = vsub.f32 1.0, %v5126_v21  ;;  %vm5145_vm12 = vweird.f32 %v11246_v10 }
 0x7ce   : > { %5197 = vadd.xlane.f32.xlu2 %v11251_v4  ;;  %v5232_v52 = vmul.f32 %v11251_v4, %v11251_v4  ;;  %v5152_v56 = vor.u32 1.1754944e-38, %v5151_v30  ;;  %vm5150_vm14 = vcmp.eq.f32.partialorder %v5149_v57, 8.507059e+37 }
 0x7cf   : > { %v5371_v48 = vsub.f32 1.5, %v5370_v53  ;;  %v5128_v36 = vmul.f32 %v7686_v41, %v5127_v44 }
 0x7d0   : > { %v7688_v31 = vpop.eup %7687  ;;  %5261 = vadd.xlane.f32.xlu0 %v5232_v52 }
 0x7d1   : > { %v5372_v33 = vmul.f32 %v7682_v7, %v5371_v48  ;;  %v5378_v19 = vmul.f32 %v7688_v31, %v5334_v12  ;;  %v5129_v28 = vadd.f32 %v7686_v41, %v5128_v36  ;;  %vm5384_vm8 = vweird.f32 %v7688_v31 }
 0x7d2   : > { %v7690_v25 = vpop.eup %7689  ;;  %vm5385_vm11 = vmor %vm5383_vm10, %vm5384_vm8 }
 0x7d3   : > { %v5379_v34 = vmul.f32 %v7688_v31, %v5378_v19  ;;  %v5133_v38 = vsel %vm5132_vm5, %v7686_v41, %v5129_v28  ;;  %v5141_v58 = vmul.f32 %v7690_v25, %v11246_v10  ;;  %v5376_v50 = vsel %vm11261_vm7, %v7682_v7, %v5372_v33 }
 0x7d4   : > { %v5138_v63 = vsel %vm5135_vm6, %v5137_v22, %v5133_v38  ;;  %vm5146_vm9 = vweird.f32 %v7690_v25  ;;  %v5509_v1 = vmul.f32 %v5376_v50, %v5285_v47 }
 0x7d5   : > { %v5380_v54 = vmul.f32 0.5, %v5379_v34  ;;  %v11266_v5 = vmul.f32 %v5138_v63, %v11204_v40  ;;  %v5142_v37 = vsub.f32 1.0, %v5141_v58  ;;  %vm5147_vm13 = vmor %vm5145_vm12, %vm5146_vm9 }
 0x7d6   : > { %v5526_v14 = vmul.f32 %v11192_v42, %v5509_v1 }
 0x7d7   : > { %v5381_v8 = vsub.f32 1.5, %v5380_v54  ;;  %5199 = vadd.xlane.f32.xlu2 %v11266_v5  ;;  %v5233_v6 = vmul.f32 %v11266_v5, %v11266_v5  ;;  %v5143_v40 = vmul.f32 %v7690_v25, %v5142_v37 }
 0x7d8   : > { %v5543_v62 = vadd.f32 %v11199_v3, %v5526_v14 }
 0x7d9   : > { %v5382_v23 = vmul.f32 %v7688_v31, %v5381_v8  ;;  %5263 = vadd.xlane.f32.xlu0 %v5233_v6  ;;  %v5144_v39 = vadd.f32 %v7690_v25, %v5143_v40 }
 0x7db   : > { %v5148_v24 = vsel %vm5147_vm13, %v7690_v25, %v5144_v39  ;;  %v5386_v26 = vsel %vm5385_vm11, %v7688_v31, %v5382_v23 }
 0x7dc   : > { %v5153_v12 = vsel %vm5150_vm14, %v5152_v56, %v5148_v24  ;;  %v5510_v2 = vmul.f32 %v5386_v26, %v5286_v45 }
 0x7dd   : > { %v5180_v60 = vpop.xlane.xlu1 %5179  ;;  %v11285_v41 = vmul.f32 %v5153_v12, %v11220_v15 }
 0x7de   : > { %v11281_v7 = vmul.f32 %v5180_v60, %v9158_v32  ;;  %v5527_v10 = vmul.f32 %v11192_v42, %v5510_v2 }
 0x7df   : > { %v5244_v0 = vpop.xlane.xlu2 %5243  ;;  %5201 = vadd.xlane.f32.xlu1 %v11285_v41  ;;  %v5234_v13 = vmul.f32 %v11285_v41, %v11285_v41 }
 0x7e0   : > { %v5303_v43 = vmul.f32 %v11281_v7, %v11281_v7  ;;  %v5271_v61 = vmul.f32 %v5244_v0, %v9158_v32  ;;  %v5544_v21 = vadd.f32 %v11199_v3, %v5527_v10  ;;  %v5287_v45 = vsub.f32 %v11072_v20, %v11281_v7 }
 0x7e1   : > { %5265 = vadd.xlane.f32.xlu2 %v5234_v13 }
 0x7e2   : > { %v5319_v29 = vsub.f32 %v5271_v61, %v5303_v43  ;;  %v5558_v27 = vpack.c.bf16 %v5544_v21, %v5543_v62 }
 0x7e4   : > { %v5335_v15 = vadd.f32 0.1, %v5319_v29  ;;  %5679 = vmatmul.bf16.gmra.mxu0 %v5558_v27  ;;  %5728 = vmatmul.bf16.gmra.mxu1 %v5558_v27 }
 0x7e5   : > { %v5182_v53 = vpop.xlane.xlu0 %5181 }
 0x7e6   : > { %7691 = vrsqrt.f32 %v5335_v15  ;;  %v5208_v44 = vmul.f32 %v5182_v53, %v9158_v32  ;;  %vm5393_vm0 = vweird.f32 %v5335_v15 }
 0x7e7   : > { %v5246_v16 = vpop.xlane.xlu1 %5245 }
 0x7e8   : > { %v5304_v17 = vmul.f32 %v5208_v44, %v5208_v44  ;;  %v5272_v48 = vmul.f32 %v5246_v16, %v9158_v32  ;;  %v5288_v14 = vsub.f32 %v11083_v59, %v5208_v44 }
 0x7ea   : > { %v5320_v52 = vsub.f32 %v5272_v48, %v5304_v17 }
 0x7ec   : > { %v7692_v36 = vpop.eup %7691  ;;  %v5336_v31 = vadd.f32 0.1, %v5320_v52 }
 0x7ed   : > { %v5388_v33 = vmul.f32 %v7692_v36, %v5335_v15  ;;  %v5184_v19 = vpop.xlane.xlu0 %5183  ;;  %vm5394_vm15 = vweird.f32 %v7692_v36 }
 0x7ee   : > { %7693 = vrsqrt.f32 %v5336_v31  ;;  %v11299_v28 = vmul.f32 %v5184_v19, %v9158_v32  ;;  %vm5395_vm1 = vmor %vm5393_vm0, %vm5394_vm15  ;;  %vm5403_vm3 = vweird.f32 %v5336_v31 }
 0x7ef   : > { %v5389_v25 = vmul.f32 %v7692_v36, %v5388_v33  ;;  %v5248_v22 = vpop.xlane.xlu1 %5247 }
 0x7f0   : > { %v5305_v34 = vmul.f32 %v11299_v28, %v11299_v28  ;;  %v5273_v38 = vmul.f32 %v5248_v22, %v9158_v32 }
 0x7f1   : > { %v5390_v58 = vmul.f32 0.5, %v5389_v25 }
 0x7f2   : > { %v5321_v46 = vsub.f32 %v5273_v38, %v5305_v34  ;;  %v5289_v34 = vsub.f32 %v11094_v51, %v11299_v28 }
 0x7f3   : > { %v5391_v63 = vsub.f32 1.5, %v5390_v58 }
 0x7f4   : > { %v7694_v54 = vpop.eup %7693  ;;  %v5337_v37 = vadd.f32 0.1, %v5321_v46 }
 0x7f5   : > { %v5392_v50 = vmul.f32 %v7692_v36, %v5391_v63  ;;  %v5398_v47 = vmul.f32 %v7694_v54, %v5336_v31  ;;  %v5186_v57 = vpop.xlane.xlu2 %5185  ;;  %vm5404_vm2 = vweird.f32 %v7694_v54 }
 0x7f6   : > { %7695 = vrsqrt.f32 %v5337_v37  ;;  %v11305_v30 = vmul.f32 %v5186_v57, %v9158_v32  ;;  %vm5405_vm4 = vmor %vm5403_vm3, %vm5404_vm2  ;;  %vm5413_vm6 = vweird.f32 %v5337_v37 }
 0x7f7   : > { %v5399_v8 = vmul.f32 %v7694_v54, %v5398_v47  ;;  %v5250_v6 = vpop.xlane.xlu0 %5249  ;;  %v5396_v39 = vsel %vm5395_vm1, %v7692_v36, %v5392_v50 }
 0x7f8   : > { %v5306_v40 = vmul.f32 %v11305_v30, %v11305_v30  ;;  %v5274_v1 = vmul.f32 %v5250_v6, %v9158_v32  ;;  %v5511_v12 = vmul.f32 %v5396_v39, %v5287_v45  ;;  %v5290_v57 = vsub.f32 %v11105_v18, %v11305_v30 }
 0x7f9   : > { %v5400_v23 = vmul.f32 0.5, %v5399_v8 }
 0x7fa   : > { %v5322_v56 = vsub.f32 %v5274_v1, %v5306_v40  ;;  %v5528_v29 = vmul.f32 %v11192_v42, %v5511_v12 }
 0x7fb   : > { %v5401_v60 = vsub.f32 1.5, %v5400_v23 }
 0x7fc   : > { %v7696_v24 = vpop.eup %7695  ;;  %v5338_v26 = vadd.f32 0.1, %v5322_v56  ;;  %v5545_v44 = vadd.f32 %v11199_v3, %v5528_v29 }
 0x7fd   : > { %v5402_v0 = vmul.f32 %v7694_v54, %v5401_v60  ;;  %v5408_v2 = vmul.f32 %v7696_v24, %v5337_v37  ;;  %vm5414_vm5 = vweird.f32 %v7696_v24 }
 0x7fe   : > { %7697 = vrsqrt.f32 %v5338_v26  ;;  %vm5415_vm7 = vmor %vm5413_vm6, %vm5414_vm5  ;;  %vm5423_vm9 = vweird.f32 %v5338_v26 }
 0x7ff   : > { %v5409_v43 = vmul.f32 %v7696_v24, %v5408_v2  ;;  %v5406_v61 = vsel %vm5405_vm4, %v7694_v54, %v5402_v0 }
 0x800   : > { %v5512_v13 = vmul.f32 %v5406_v61, %v5288_v14 }
 0x801   : > { %v5188_v10 = vpop.xlane.xlu2 %5187  ;;  %v5410_v20 = vmul.f32 0.5, %v5409_v43 }
 0x802   : > { %v11315_v7 = vmul.f32 %v5188_v10, %v9158_v32  ;;  %v5529_v21 = vmul.f32 %v11192_v42, %v5512_v13 }
 0x803   : > { %v5252_v62 = vpop.xlane.xlu0 %5251  ;;  %v5411_v15 = vsub.f32 1.5, %v5410_v20 }
 0x804   : > { %v5307_v27 = vmul.f32 %v11315_v7, %v11315_v7  ;;  %v5275_v59 = vmul.f32 %v5252_v62, %v9158_v32  ;;  %v7698_v53 = vpop.eup %7697  ;;  %v5546_v16 = vadd.f32 %v11199_v3, %v5529_v21 }
 0x805   : > { %v5418_v17 = vmul.f32 %v7698_v53, %v5338_v26  ;;  %v5412_v52 = vmul.f32 %v7696_v24, %v5411_v15  ;;  %vm5424_vm8 = vweird.f32 %v7698_v53 }
 0x806   : > { %v5323_v48 = vsub.f32 %v5275_v59, %v5307_v27  ;;  %v5559_v36 = vpack.c.bf16 %v5546_v16, %v5545_v44  ;;  %vm5425_vm10 = vmor %vm5423_vm9, %vm5424_vm8  ;;  %v5291_v44 = vsub.f32 %v11118_v55, %v11315_v7 }
 0x807   : > { %v5419_v31 = vmul.f32 %v7698_v53, %v5418_v17  ;;  %v5416_v58 = vsel %vm5415_vm7, %v7696_v24, %v5412_v52 }
 0x808   : > { %v5339_v33 = vadd.f32 0.1, %v5323_v48  ;;  %5684 = vmatmul.bf16.gmra.mxu0 %v5559_v36  ;;  %5733 = vmatmul.bf16.gmra.mxu1 %v5559_v36  ;;  %v5513_v47 = vmul.f32 %v5416_v58, %v5289_v34 }
 0x809   : > { %v5190_v19 = vpop.xlane.xlu1 %5189  ;;  %v5420_v25 = vmul.f32 0.5, %v5419_v31 }
 0x80a   : > { %7699 = vrsqrt.f32 %v5339_v33  ;;  %v11324_v22 = vmul.f32 %v5190_v19, %v9158_v32  ;;  %v5530_v1 = vmul.f32 %v11192_v42, %v5513_v47  ;;  %vm5433_vm12 = vweird.f32 %v5339_v33 }
 0x80b   : > { %v5254_v38 = vpop.xlane.xlu2 %5253  ;;  %v5421_v46 = vsub.f32 1.5, %v5420_v25 }
 0x80c   : > { %v5308_v63 = vmul.f32 %v11324_v22, %v11324_v22  ;;  %v5276_v54 = vmul.f32 %v5254_v38, %v9158_v32  ;;  %v5547_v30 = vadd.f32 %v11199_v3, %v5530_v1 }
 0x80d   : > { %v5422_v37 = vmul.f32 %v7698_v53, %v5421_v46 }
 0x80e   : > { %v5324_v50 = vsub.f32 %v5276_v54, %v5308_v63 }
 0x80f   : > { %v5426_v51 = vsel %vm5425_vm10, %v7698_v53, %v5422_v37 }
 0x810   : > { %v7700_v8 = vpop.eup %7699  ;;  %v5340_v6 = vadd.f32 0.1, %v5324_v50  ;;  %v5514_v40 = vmul.f32 %v5426_v51, %v5290_v57 }
 0x811   : > { %v5428_v28 = vmul.f32 %v7700_v8, %v5339_v33  ;;  %vm5434_vm11 = vweird.f32 %v7700_v8  ;;  %v5292_v33 = vsub.f32 %v11128_v49, %v11324_v22 }
 0x812   : > { %7701 = vrsqrt.f32 %v5340_v6  ;;  %v5531_v39 = vmul.f32 %v11192_v42, %v5514_v40  ;;  %vm5435_vm13 = vmor %vm5433_vm12, %vm5434_vm11  ;;  %vm5443_vm15 = vweird.f32 %v5340_v6 }
 0x813   : > { %v5429_v23 = vmul.f32 %v7700_v8, %v5428_v28  ;;  %v5192_v45 = vpop.xlane.xlu1 %5191 }
 0x814   : > { %v11336_v60 = vmul.f32 %v5192_v45, %v9158_v32  ;;  %v5548_v24 = vadd.f32 %v11199_v3, %v5531_v39  ;;  %v969_v39 = vld [vmem:[%s11876_s10] sm:$0x7] }
 0x815   : > { %v5430_v56 = vmul.f32 0.5, %v5429_v23  ;;  %v5256_v18 = vpop.xlane.xlu2 %5255  ;;  %v970_v45 = vld [vmem:[%s11877_s1] sm:$0x3] }
 0x816   : > { %v5309_v12 = vmul.f32 %v11336_v60, %v11336_v60  ;;  %v5277_v0 = vmul.f32 %v5256_v18, %v9158_v32  ;;  %v5560_v14 = vpack.c.bf16 %v5548_v24, %v5547_v30  ;;  %v11364_v30 = vperm.slane %v970_v45, 1 }
 0x817   : > { %v5431_v26 = vsub.f32 1.5, %v5430_v56 }
 0x818   : > { %v7702_v2 = vpop.eup %7701  ;;  %v5325_v61 = vsub.f32 %v5277_v0, %v5309_v12  ;;  %5689 = vmatmul.bf16.gmra.mxu0 %v5560_v14  ;;  %5738 = vmatmul.bf16.gmra.mxu1 %v5560_v14  ;;  %v5813_v0 = vadd.f32 1.837877, %v969_v39 }
 0x819   : > { %v5438_v43 = vmul.f32 %v7702_v2, %v5340_v6  ;;  %v5432_v10 = vmul.f32 %v7700_v8, %v5431_v26  ;;  %v5194_v20 = vpop.xlane.xlu0 %5193  ;;  %vm5444_vm14 = vweird.f32 %v7702_v2  ;;  %v5293_v6 = vsub.f32 %v11156_v35, %v11336_v60 }
 0x81a   : > { %v5341_v29 = vadd.f32 0.1, %v5325_v61  ;;  %v5214_v62 = vmul.f32 %v5194_v20, %v9158_v32  ;;  %vm5445_vm0 = vmor %vm5443_vm15, %vm5444_vm14  ;;  %v5817_v60 = vsub.f32 0.0, %v969_v39 }
 0x81b   : > { %v5439_v13 = vmul.f32 %v7702_v2, %v5438_v43  ;;  %v5258_v15 = vpop.xlane.xlu1 %5257  ;;  %v5436_v53 = vsel %vm5435_vm13, %v7700_v8, %v5432_v10  ;;  %v5764_v10 = vld [vmem:[%s8607_s2] sm:$0xff] }
 0x81c   : > { %7703 = vrsqrt.f32 %v5341_v29  ;;  %v5310_v27 = vmul.f32 %v5214_v62, %v5214_v62  ;;  %v5278_v59 = vmul.f32 %v5258_v15, %v9158_v32  ;;  %v5515_v52 = vmul.f32 %v5436_v53, %v5291_v44 }
 0x81d   : > { %v5440_v21 = vmul.f32 0.5, %v5439_v13  ;;  %vm5453_vm2 = vweird.f32 %v5341_v29  ;;  %v5294_v1 = vsub.f32 %v11168_v11, %v5214_v62  ;;  %v5818_v18 = vmul.f32 1.442695, %v5817_v60 }
 0x81e   : > { %v5326_v17 = vsub.f32 %v5278_v59, %v5310_v27  ;;  %v5532_v38 = vmul.f32 %v11192_v42, %v5515_v52  ;;  %v11366_v11 = vperm.slane %v969_v39, 0  ;;  %v5814_v62 = vmul.f32 -0.5, %v5813_v0 }
 0x81f   : > { %v5441_v16 = vsub.f32 1.5, %v5440_v21 }
 0x820   : > { %v5342_v36 = vadd.f32 0.1, %v5326_v17  ;;  %v5549_v46 = vadd.f32 %v11199_v3, %v5532_v38  ;;  %v5815_v52 = vadd.f32 -1.89712, %v5814_v62 }
 0x821   : > { %v5442_v48 = vmul.f32 %v7702_v2, %v5441_v16 }
 0x822   : > { %v7704_v31 = vpop.eup %7703  ;;  %7705 = vrsqrt.f32 %v5342_v36  ;;  %vm5463_vm5 = vweird.f32 %v5342_v36 }
 0x823   : > { %v5446_v19 = vsel %vm5445_vm0, %v7702_v2, %v5442_v48  ;;  %v5448_v25 = vmul.f32 %v7704_v31, %v5341_v29  ;;  %vm5454_vm1 = vweird.f32 %v7704_v31  ;;  %v11370_v2 = vperm.slane %v970_v45, 0 }
 0x824   : > { %v5516_v34 = vmul.f32 %v5446_v19, %v5292_v33  ;;  %vm5455_vm3 = vmor %vm5453_vm2, %vm5454_vm1  ;;  %7707 = vpow2.f32 %v5818_v18  ;;  %v5781_v29 = vsub.f32 %v5764_v10, %v11366_v11  ;;  %v5765_v19 = vld [vmem:[%s8607_s2 + $0x8] sm:$0xff] }
 0x825   : > { %v5449_v58 = vmul.f32 %v7704_v31, %v5448_v25 }
 0x826   : > { %v5533_v55 = vmul.f32 %v11192_v42, %v5516_v34  ;;  %v5797_v17 = vmul.f32 %v5781_v29, %v5781_v29 }
 0x827   : > { %v5450_v7 = vmul.f32 0.5, %v5449_v58 }
 0x828   : > { %v5550_v63 = vadd.f32 %v11199_v3, %v5533_v55  ;;  %v7706_v54 = vpop.eup %7705  ;;  %v5820_v38 = vmul.f32 0.5, %v5797_v17 }
 0x829   : > { %v5451_v37 = vsub.f32 1.5, %v5450_v7  ;;  %v5458_v50 = vmul.f32 %v7706_v54, %v5342_v36  ;;  %vm5464_vm4 = vweird.f32 %v7706_v54 }
 0x82a   : > { %v5561_v47 = vpack.c.bf16 %v5550_v63, %v5549_v46  ;;  %vm5465_vm6 = vmor %vm5463_vm5, %vm5464_vm4  ;;  %v7708_v48 = vpop.eup %7707  ;;  %v5782_v46 = vsub.f32 %v5765_v19, %v11366_v11  ;;  %v5816_v63 = vadd.f32 -2.3025851, %v5814_v62 }
 0x82b   : > { %v5452_v49 = vmul.f32 %v7704_v31, %v5451_v37  ;;  %v5459_v22 = vmul.f32 %v7706_v54, %v5458_v50  ;;  %v11386_v58 = vperm.slane %v7708_v48, 1  ;;  %v11395_v50 = vperm.slane %v7708_v48, 2 }
 0x82c   : > { %5694 = vmatmul.bf16.gmra.mxu0 %v5561_v47  ;;  %5743 = vmatmul.bf16.gmra.mxu1 %v5561_v47 }
 0x82d   : > { %v5460_v57 = vmul.f32 0.5, %v5459_v22  ;;  %v5456_v8 = vsel %vm5455_vm3, %v7704_v31, %v5452_v49 }
 0x82e   : > { %v5517_v28 = vmul.f32 %v5456_v8, %v5293_v6 }
 0x82f   : > { %v5461_v51 = vsub.f32 1.5, %v5460_v57 }
 0x830   : > { %v5534_v35 = vmul.f32 %v11192_v42, %v5517_v28  ;;  %v5798_v28 = vmul.f32 %v5782_v46, %v5782_v46 }
 0x831   : > { %v5462_v40 = vmul.f32 %v7706_v54, %v5461_v51 }
 0x832   : > { %v5551_v26 = vadd.f32 %v11199_v3, %v5534_v35  ;;  %v11403_v35 = vperm.slane %v5816_v63, 2  ;;  %v5821_v18 = vmul.f32 0.5, %v5798_v28 }
 0x833   : > { %v5466_v23 = vsel %vm5465_vm6, %v7706_v54, %v5462_v40  ;;  %v11389_v54 = vperm.slane %v5815_v52, 1  ;;  %v5837_v40 = vmul.f32 %v11386_v58, %v5820_v38 }
 0x834   : > { %v5518_v56 = vmul.f32 %v5466_v23, %v5294_v1 }
 0x835   : > { %v5854_v0 = vsub.f32 %v11389_v54, %v5837_v40 }
 0x836   : > { %v5535_v24 = vmul.f32 %v11192_v42, %v5518_v56  ;;  %v5871_v56 = vmul.f32 %v11395_v50, %v5820_v38 }
 0x838   : > { %v5552_v12 = vadd.f32 %v11199_v3, %v5535_v24 }
 0x83a   : > { %v5675_v14 = vpop.f32.mrf.mxu0  ;;  %v5724_v43 = vpop.f32.mrf.mxu1  ;;  %v5562_v61 = vpack.c.bf16 %v5552_v12, %v5551_v26 }
 0x83b   : > { %v5725_v13 = vadd.f32 %v5724_v43, %v11364_v30  ;;  %v5196_v20 = vpop.xlane.xlu0 %5195  ;;  %v5676_v27 = vadd.f32 %v5675_v14, %v11370_v2 }
 0x83c   : > { %5699 = vmatmul.bf16.gmra.mxu0 %v5562_v61  ;;  %5748 = vmatmul.bf16.gmra.mxu1 %v5562_v61  ;;  %v11376_v15 = vmul.f32 %v5196_v20, %v9158_v32  ;;  %v5260_v59 = vpop.xlane.xlu1 %5259 }
 0x83d   : > { %v5952_v21 = vsub.f32 0.0, %v5725_v13  ;;  %v5279_v16 = vmul.f32 %v5260_v59, %v9158_v32  ;;  %v5904_v31 = vsub.f32 %v5764_v10, %v5676_v27  ;;  %v5920_v1 = vadd.f32 1.837877, %v5725_v13 }
 0x83e   : > { %v5311_v44 = vmul.f32 %v11376_v15, %v11376_v15  ;;  %v5888_v10 = vsub.f32 %v11403_v35, %v5871_v56 }
 0x83f   : > { %v5968_v53 = vmul.f32 1.442695, %v5952_v21  ;;  %v5936_v47 = vmul.f32 %v5904_v31, %v5904_v31  ;;  %v5838_v21 = vmul.f32 %v11386_v58, %v5821_v18  ;;  %v5872_v31 = vmul.f32 %v11395_v50, %v5821_v18 }
 0x840   : > { %v5327_v36 = vsub.f32 %v5279_v16, %v5311_v44 }
 0x841   : > { %7709 = vpow2.f32 %v5968_v53  ;;  %v5198_v55 = vpop.xlane.xlu2 %5197  ;;  %v5889_v40 = vsub.f32 %v11403_v35, %v5872_v31 }
 0x842   : > { %v5726_v33 = vpop.f32.mrf.mxu1  ;;  %v11384_v34 = vadd.f32 0.1, %v5327_v36  ;;  %v5677_v7 = vpop.f32.mrf.mxu0  ;;  %v11392_v37 = vmul.f32 %v5198_v55, %v9158_v32  ;;  %v5855_v55 = vsub.f32 %v11389_v54, %v5838_v21 }
 0x843   : > { %v5727_v25 = vadd.f32 %v5726_v33, %v11364_v30  ;;  %v5262_v49 = vpop.xlane.xlu0 %5261  ;;  %v5678_v51 = vadd.f32 %v5677_v7, %v11370_v2 }
 0x844   : > { %7711 = vrsqrt.f32 %v11384_v34  ;;  %v5312_v8 = vmul.f32 %v11392_v37, %v11392_v37  ;;  %v5280_v6 = vmul.f32 %v5262_v49, %v9158_v32  ;;  %vm5473_vm7 = vweird.f32 %v11384_v34 }
 0x845   : > { %v5953_v22 = vsub.f32 0.0, %v5727_v25  ;;  %v5905_v26 = vsub.f32 %v5765_v19, %v5678_v51  ;;  %v5921_v48 = vadd.f32 1.837877, %v5727_v25 }
 0x846   : > { %v5328_v45 = vsub.f32 %v5280_v6, %v5312_v8 }
 0x847   : > { %v7710_v57 = vpop.eup %7709  ;;  %v5970_v39 = vmul.f32 1.442695, %v5953_v22  ;;  %v5937_v27 = vmul.f32 %v5905_v26, %v5905_v26 }
 0x848   : > { %v6000_v23 = vmul.f32 %v7710_v57, %v5936_v47  ;;  %v11405_v24 = vadd.f32 0.1, %v5328_v45 }
 0x849   : > { %7713 = vpow2.f32 %v5970_v39 }
 0x84a   : > { %v6016_v60 = vadd.f32 %v6000_v23, %v5920_v1  ;;  %v11407_v12 = vpop.eup %7711  ;;  %v5200_v43 = vpop.xlane.xlu2 %5199  ;;  %7715 = vrsqrt.f32 %v11405_v24  ;;  %vm5483_vm11 = vweird.f32 %v11405_v24 }
 0x84b   : > { %v5468_v61 = vmul.f32 %v11407_v12, %v11384_v34  ;;  %v11415_v29 = vmul.f32 %v5200_v43, %v9158_v32  ;;  %vm5474_vm8 = vweird.f32 %v11407_v12  ;;  %v5295_v34 = vsub.f32 %v11237_v9, %v11376_v15 }
 0x84c   : > { %v6032_v14 = vmul.f32 -0.5, %v6016_v60  ;;  %v5264_v20 = vpop.xlane.xlu0 %5263  ;;  %vm11442_vm9 = vmor %vm5473_vm7, %vm5474_vm8 }
 0x84d   : > { %v5469_v62 = vmul.f32 %v11407_v12, %v5468_v61  ;;  %v5281_v59 = vmul.f32 %v5264_v20, %v9158_v32  ;;  %v5313_v16 = vmul.f32 %v11415_v29, %v11415_v29 }
 0x84e   : > { %v6048_v13 = vadd.f32 -0.2876821, %v6032_v14 }
 0x84f   : > { %v7714_v53 = vpop.eup %7713  ;;  %v5470_v17 = vmul.f32 0.5, %v5469_v62  ;;  %v5329_v33 = vsub.f32 %v5281_v59, %v5313_v16  ;;  %v5296_v59 = vsub.f32 %v11251_v4, %v11392_v37  ;;  %v5297_v62 = vsub.f32 %v11266_v5, %v11415_v29 }
 0x850   : > { %v6064_v44 = vmax.f32 %v5854_v0, %v6048_v13  ;;  %v6001_v52 = vmul.f32 %v7714_v53, %v5937_v27  ;;  %v7716_v19 = vpop.eup %7715 }
 0x851   : > { %v5471_v38 = vsub.f32 1.5, %v5470_v17  ;;  %v5478_v25 = vmul.f32 %v7716_v19, %v11405_v24  ;;  %v11433_v8 = vadd.f32 0.1, %v5329_v33  ;;  %vm5484_vm10 = vweird.f32 %v7716_v19 }
 0x852   : > { %v11422_v36 = vmax.f32 %v6064_v44, %v5888_v10  ;;  %v6017_v7 = vadd.f32 %v6001_v52, %v5921_v48  ;;  %v5202_v49 = vpop.xlane.xlu1 %5201  ;;  %vm11459_vm12 = vmor %vm5483_vm11, %vm5484_vm10 }
 0x853   : > { %v5472_v22 = vmul.f32 %v11407_v12, %v5471_v38  ;;  %v5479_v28 = vmul.f32 %v7716_v19, %v5478_v25  ;;  %7717 = vrsqrt.f32 %v11433_v8  ;;  %v11438_v45 = vmul.f32 %v5202_v49, %v9158_v32  ;;  %v5766_v49 = vld [vmem:[%s8607_s2 + $0x10] sm:$0xff] }
 0x854   : > { %v6096_v46 = vsub.f32 %v5854_v0, %v11422_v36  ;;  %v6144_v63 = vsub.f32 %v6048_v13, %v11422_v36  ;;  %v6208_v47 = vsub.f32 %v5888_v10, %v11422_v36  ;;  %v6033_v57 = vmul.f32 -0.5, %v6017_v7  ;;  %v5266_v1 = vpop.xlane.xlu2 %5265 }
 0x855   : > { %v5480_v60 = vmul.f32 0.5, %v5479_v28  ;;  %v5282_v18 = vmul.f32 %v5266_v1, %v9158_v32  ;;  %v5314_v0 = vmul.f32 %v11438_v45, %v11438_v45  ;;  %v5476_v14 = vsel %vm11442_vm9, %v11407_v12, %v5472_v22 }
 0x856   : > { %v6112_v6 = vmul.f32 1.442695, %v6096_v46  ;;  %v6160_v51 = vmul.f32 1.442695, %v6144_v63  ;;  %v6224_v23 = vmul.f32 1.442695, %v6208_v47  ;;  %v5519_v32 = vmul.f32 %v5476_v14, %v5295_v34 }
 0x857   : > { %v6049_v39 = vadd.f32 -0.2876821, %v6033_v57  ;;  %v5481_v43 = vsub.f32 1.5, %v5480_v60  ;;  %v5330_v10 = vsub.f32 %v5282_v18, %v5314_v0  ;;  %v5783_v28 = vsub.f32 %v5766_v49, %v11366_v11 }
 0x858   : > { %7719 = vpow2.f32 %v6112_v6  ;;  %v5536_v4 = vmul.f32 %v11192_v42, %v5519_v32  ;;  %vm5493_vm14 = vweird.f32 %v11433_v8  ;;  %v5298_v5 = vsub.f32 %v11285_v41, %v11438_v45 }
 0x859   : > { %7721 = vpow2.f32 %v6160_v51  ;;  %v6065_v26 = vmax.f32 %v5855_v55, %v6049_v39  ;;  %v5482_v13 = vmul.f32 %v7716_v19, %v5481_v43  ;;  %v11457_v20 = vpop.eup %7717  ;;  %v11466_v21 = vadd.f32 0.1, %v5330_v10 }
 0x85a   : > { %7723 = vpow2.f32 %v6224_v23  ;;  %v5488_v24 = vmul.f32 %v11457_v20, %v11433_v8  ;;  %v5553_v22 = vadd.f32 %v11199_v3, %v5536_v4  ;;  %vm5494_vm13 = vweird.f32 %v11457_v20 }
 0x85b   : > { %v11454_v61 = vmax.f32 %v6065_v26, %v5889_v40  ;;  %v5486_v53 = vsel %vm11459_vm12, %v7716_v19, %v5482_v13  ;;  %7725 = vrsqrt.f32 %v11466_v21  ;;  %vm11488_vm15 = vmor %vm5493_vm14, %vm5494_vm13  ;;  %v5799_v10 = vmul.f32 %v5783_v28, %v5783_v28 }
 0x85c   : > { %v5489_v31 = vmul.f32 %v11457_v20, %v5488_v24  ;;  %v5520_v38 = vmul.f32 %v5486_v53, %v5296_v59  ;;  %vm5503_vm1 = vweird.f32 %v11466_v21 }
 0x85d   : > { %v6097_v12 = vsub.f32 %v5855_v55, %v11454_v61  ;;  %v6145_v9 = vsub.f32 %v6049_v39, %v11454_v61  ;;  %v6209_v15 = vsub.f32 %v5889_v40, %v11454_v61 }
 0x85e   : > { %v7720_v27 = vpop.eup %7719  ;;  %v5490_v55 = vmul.f32 0.5, %v5489_v31  ;;  %v5537_v46 = vmul.f32 %v11192_v42, %v5520_v38 }
 0x85f   : > { %v7722_v44 = vpop.eup %7721  ;;  %v6114_v16 = vmul.f32 1.442695, %v6097_v12  ;;  %v6162_v17 = vmul.f32 1.442695, %v6145_v9  ;;  %v6226_v48 = vmul.f32 1.442695, %v6209_v15 }
 0x860   : > { %v6192_v52 = vadd.f32 %v7722_v44, %v7720_v27  ;;  %v7724_v33 = vpop.eup %7723  ;;  %v5491_v63 = vsub.f32 1.5, %v5490_v55  ;;  %v5554_v57 = vadd.f32 %v11199_v3, %v5537_v46  ;;  %v5822_v44 = vmul.f32 0.5, %v5799_v10 }
 0x861   : > { %7727 = vpow2.f32 %v6114_v16  ;;  %v5680_v19 = vpop.f32.mrf.mxu0  ;;  %v5729_v7 = vpop.f32.mrf.mxu1  ;;  %v5767_v16 = vld [vmem:[%s8607_s2 + $0x18] sm:$0xff] }
 0x862   : > { %v6256_v37 = vadd.f32 %v7724_v33, %v6192_v52  ;;  %7729 = vpow2.f32 %v6162_v17  ;;  %v5730_v47 = vadd.f32 %v5729_v7, %v11364_v30  ;;  %v7726_v25 = vpop.eup %7725  ;;  %v5492_v6 = vmul.f32 %v11457_v20, %v5491_v63 }
 0x863   : > { %7731 = vpow2.f32 %v6226_v48  ;;  %v5498_v51 = vmul.f32 %v7726_v25, %v11466_v21  ;;  %v5563_v23 = vpack.c.bf16 %v5554_v57, %v5553_v22  ;;  %v5681_v60 = vadd.f32 %v5680_v19, %v11370_v2 }
 0x864   : > { %7733 = vlog2.f32 %v6256_v37  ;;  %v5954_v1 = vsub.f32 0.0, %v5730_v47  ;;  %v5496_v13 = vsel %vm11488_vm15, %v11457_v20, %v5492_v6  ;;  %vm5504_vm0 = vweird.f32 %v7726_v25 }
 0x865   : > { %v5499_v56 = vmul.f32 %v7726_v25, %v5498_v51  ;;  %5704 = vmatmul.bf16.gmra.mxu0 %v5563_v23  ;;  %5753 = vmatmul.bf16.gmra.mxu1 %v5563_v23  ;;  %v5906_v15 = vsub.f32 %v5766_v49, %v5681_v60  ;;  %v5521_v53 = vmul.f32 %v5496_v13, %v5297_v62  ;;  %vm5505_vm2 = vmor %vm5503_vm1, %vm5504_vm0  ;;  %v5922_v37 = vadd.f32 1.837877, %v5730_v47 }
 0x866   : > { %v5972_v14 = vmul.f32 1.442695, %v5954_v1  ;;  %v5784_v29 = vsub.f32 %v5767_v16, %v11366_v11  ;;  %v5839_v21 = vmul.f32 %v11386_v58, %v5822_v44  ;;  %v5873_v46 = vmul.f32 %v11395_v50, %v5822_v44 }
 0x867   : > { %v7728_v40 = vpop.eup %7727  ;;  %v5500_v43 = vmul.f32 0.5, %v5499_v56  ;;  %v5938_v48 = vmul.f32 %v5906_v15, %v5906_v15  ;;  %v5538_v4 = vmul.f32 %v11192_v42, %v5521_v53 }
 0x868   : > { %v7730_v39 = vpop.eup %7729  ;;  %7735 = vpow2.f32 %v5972_v14  ;;  %v5800_v41 = vmul.f32 %v5784_v29, %v5784_v29  ;;  %v5856_v47 = vsub.f32 %v11389_v54, %v5839_v21 }
 0x869   : > { %v7732_v18 = vpop.eup %7731  ;;  %v6193_v26 = vadd.f32 %v7730_v39, %v7728_v40  ;;  %v5731_v12 = vpop.f32.mrf.mxu1  ;;  %v5501_v9 = vsub.f32 1.5, %v5500_v43  ;;  %v5555_v49 = vadd.f32 %v11199_v3, %v5538_v4  ;;  %v5890_v40 = vsub.f32 %v11403_v35, %v5873_v46 }
 0x86a   : > { %v7734_v34 = vpop.eup %7733  ;;  %v5732_v27 = vadd.f32 %v5731_v12, %v11364_v30  ;;  %v5682_v24 = vpop.f32.mrf.mxu0  ;;  %v5823_v51 = vmul.f32 0.5, %v5800_v41 }
 0x86b   : > { %v6273_v8 = vmul.f32 0.6931472, %v7734_v34  ;;  %v6257_v32 = vadd.f32 %v7732_v18, %v6193_v26  ;;  %v5502_v20 = vmul.f32 %v7726_v25, %v5501_v9  ;;  %v5683_v52 = vadd.f32 %v5682_v24, %v11370_v2 }
 0x86c   : > { %v5955_v17 = vsub.f32 0.0, %v5732_v27  ;;  %v5923_v56 = vadd.f32 1.837877, %v5732_v27  ;;  %v5874_v26 = vmul.f32 %v11395_v50, %v5823_v51 }
 0x86d   : > { %v6304_v59 = vadd.f32 %v6273_v8, %v11422_v36  ;;  %7737 = vlog2.f32 %v6257_v32  ;;  %v5506_v36 = vsel %vm5505_vm2, %v7726_v25, %v5502_v20  ;;  %v5907_v25 = vsub.f32 %v5767_v16, %v5683_v52 }
 0x86e   : > { %v7736_v31 = vpop.eup %7735  ;;  %v5974_v33 = vmul.f32 1.442695, %v5955_v17  ;;  %v5522_v38 = vmul.f32 %v5506_v36, %v5298_v5  ;;  %v5891_v62 = vsub.f32 %v11403_v35, %v5874_v26  ;;  %v5768_v5 = vld [vmem:[%s8607_s2 + $0x20] sm:$0xff] }
 0x86f   : > { %6320 = vst [vmem:[%s8629_s23] sm:$0xff] %v6304_v59  ;;  %v6002_v55 = vmul.f32 %v7736_v31, %v5938_v48  ;;  %v5939_v1 = vmul.f32 %v5907_v25, %v5907_v25 }
 0x870   : > { %7739 = vpow2.f32 %v5974_v33  ;;  %v5539_v45 = vmul.f32 %v11192_v42, %v5522_v38  ;;  %v5785_v33 = vsub.f32 %v5768_v5, %v11366_v11 }
 0x871   : > { %v6018_v63 = vadd.f32 %v6002_v55, %v5922_v37 }
 0x872   : > { %v5556_v22 = vadd.f32 %v11199_v3, %v5539_v45  ;;  %v5840_v3 = vmul.f32 %v11386_v58, %v5823_v51  ;;  %v5801_v45 = vmul.f32 %v5785_v33, %v5785_v33 }
 0x873   : > { %v7738_v19 = vpop.eup %7737  ;;  %v6034_v6 = vmul.f32 -0.5, %v6018_v63 }
 0x874   : > { %v6275_v7 = vmul.f32 0.6931472, %v7738_v19  ;;  %v5564_v28 = vpack.c.bf16 %v5556_v22, %v5555_v49  ;;  %v5857_v10 = vsub.f32 %v11389_v54, %v5840_v3 }
 0x875   : > { %v6050_v42 = vadd.f32 -0.2876821, %v6034_v6 }
 0x876   : > { %v6305_v57 = vadd.f32 %v6275_v7, %v11454_v61  ;;  %v7740_v23 = vpop.eup %7739  ;;  %5709 = vmatmul.bf16.gmra.mxu0 %v5564_v28  ;;  %5758 = vmatmul.bf16.gmra.mxu1 %v5564_v28  ;;  %v5769_v7 = vld [vmem:[%s8607_s2 + $0x28] sm:$0xff] }
 0x877   : > { %v6066_v39 = vmax.f32 %v5856_v47, %v6050_v42  ;;  %v6003_v60 = vmul.f32 %v7740_v23, %v5939_v1  ;;  %v5786_v46 = vsub.f32 %v5769_v7, %v11366_v11 }
 0x878   : > { %6321 = vst [vmem:[%s8629_s23 + $0x8] sm:$0xff] %v6305_v57 }
 0x879   : > { %v11517_v18 = vmax.f32 %v6066_v39, %v5890_v40  ;;  %v6019_v61 = vadd.f32 %v6003_v60, %v5923_v56 }
 0x87b   : > { %v6098_v0 = vsub.f32 %v5856_v47, %v11517_v18  ;;  %v6146_v14 = vsub.f32 %v6050_v42, %v11517_v18  ;;  %v6210_v34 = vsub.f32 %v5890_v40, %v11517_v18  ;;  %v6035_v43 = vmul.f32 -0.5, %v6019_v61 }
 0x87c   : > { %v5824_v47 = vmul.f32 0.5, %v5801_v45  ;;  %v5802_v40 = vmul.f32 %v5786_v46, %v5786_v46 }
 0x87d   : > { %v6116_v13 = vmul.f32 1.442695, %v6098_v0  ;;  %v6164_v8 = vmul.f32 1.442695, %v6146_v14  ;;  %v6228_v32 = vmul.f32 1.442695, %v6210_v34 }
 0x87e   : > { %v6051_v12 = vadd.f32 -0.2876821, %v6035_v43  ;;  %v5841_v61 = vmul.f32 %v11386_v58, %v5824_v47 }
 0x87f   : > { %7741 = vpow2.f32 %v6116_v13  ;;  %v5770_v13 = vld [vmem:[%s8607_s2 + $0x30] sm:$0xff] }
 0x880   : > { %7743 = vpow2.f32 %v6164_v8  ;;  %v6067_v9 = vmax.f32 %v5857_v10, %v6051_v12  ;;  %v5875_v8 = vmul.f32 %v11395_v50, %v5824_v47 }
 0x881   : > { %7745 = vpow2.f32 %v6228_v32 }
 0x882   : > { %v11525_v59 = vmax.f32 %v6067_v9, %v5891_v62 }
 0x884   : > { %v6099_v53 = vsub.f32 %v5857_v10, %v11525_v59  ;;  %v6147_v20 = vsub.f32 %v6051_v12, %v11525_v59  ;;  %v6211_v44 = vsub.f32 %v5891_v62, %v11525_v59  ;;  %v5825_v10 = vmul.f32 0.5, %v5802_v40 }
 0x885   : > { %v5685_v15 = vpop.f32.mrf.mxu0  ;;  %v5734_v27 = vpop.f32.mrf.mxu1  ;;  %v5787_v62 = vsub.f32 %v5770_v13, %v11366_v11 }
 0x886   : > { %v5735_v24 = vadd.f32 %v5734_v27, %v11364_v30  ;;  %v7742_v16 = vpop.eup %7741  ;;  %v6118_v48 = vmul.f32 1.442695, %v6099_v53  ;;  %v6166_v52 = vmul.f32 1.442695, %v6147_v20  ;;  %v6230_v36 = vmul.f32 1.442695, %v6211_v44 }
 0x887   : > { %v7744_v17 = vpop.eup %7743  ;;  %v5686_v37 = vadd.f32 %v5685_v15, %v11370_v2 }
 0x888   : > { %v5956_v29 = vsub.f32 0.0, %v5735_v24  ;;  %v6194_v31 = vadd.f32 %v7744_v17, %v7742_v16  ;;  %v7746_v38 = vpop.eup %7745  ;;  %7747 = vpow2.f32 %v6118_v48  ;;  %v5924_v26 = vadd.f32 1.837877, %v5735_v24 }
 0x889   : > { %7749 = vpow2.f32 %v6166_v52  ;;  %v5908_v63 = vsub.f32 %v5768_v5, %v5686_v37  ;;  %v5858_v24 = vsub.f32 %v11389_v54, %v5841_v61  ;;  %v5803_v16 = vmul.f32 %v5787_v62, %v5787_v62 }
 0x88a   : > { %v5976_v4 = vmul.f32 1.442695, %v5956_v29  ;;  %v6258_v21 = vadd.f32 %v7746_v38, %v6194_v31  ;;  %7751 = vpow2.f32 %v6230_v36  ;;  %v5892_v29 = vsub.f32 %v11403_v35, %v5875_v8 }
 0x88b   : > { %v5940_v1 = vmul.f32 %v5908_v63, %v5908_v63  ;;  %v5876_v52 = vmul.f32 %v11395_v50, %v5825_v10 }
 0x88c   : > { %7753 = vlog2.f32 %v6258_v21 }
 0x88d   : > { %v5687_v55 = vpop.f32.mrf.mxu0  ;;  %v5736_v19 = vpop.f32.mrf.mxu1  ;;  %7755 = vpow2.f32 %v5976_v4 }
 0x88e   : > { %v5737_v41 = vadd.f32 %v5736_v19, %v11364_v30  ;;  %v7748_v49 = vpop.eup %7747  ;;  %v5688_v22 = vadd.f32 %v5687_v55, %v11370_v2  ;;  %v5826_v55 = vmul.f32 0.5, %v5803_v16 }
 0x88f   : > { %v7750_v57 = vpop.eup %7749 }
 0x890   : > { %v5957_v25 = vsub.f32 0.0, %v5737_v41  ;;  %v7752_v51 = vpop.eup %7751  ;;  %v6195_v28 = vadd.f32 %v7750_v57, %v7748_v49  ;;  %v5909_v60 = vsub.f32 %v5769_v7, %v5688_v22  ;;  %v5925_v20 = vadd.f32 1.837877, %v5737_v41 }
 0x891   : > { %v5893_v7 = vsub.f32 %v11403_v35, %v5876_v52 }
 0x892   : > { %v5978_v6 = vmul.f32 1.442695, %v5957_v25  ;;  %v7754_v42 = vpop.eup %7753  ;;  %v6259_v56 = vadd.f32 %v7752_v51, %v6195_v28  ;;  %v5941_v12 = vmul.f32 %v5909_v60, %v5909_v60  ;;  %v5771_v25 = vld [vmem:[%s8607_s2 + $0x38] sm:$0xff] }
 0x893   : > { %v7756_v23 = vpop.eup %7755  ;;  %v6277_v39 = vmul.f32 0.6931472, %v7754_v42 }
 0x894   : > { %7757 = vpow2.f32 %v5978_v6  ;;  %v6004_v0 = vmul.f32 %v7756_v23, %v5940_v1  ;;  %v5788_v6 = vsub.f32 %v5771_v25, %v11366_v11 }
 0x895   : > { %v5739_v3 = vpop.f32.mrf.mxu1  ;;  %v5690_v14 = vpop.f32.mrf.mxu0  ;;  %v6306_v43 = vadd.f32 %v6277_v39, %v11517_v18  ;;  %7759 = vlog2.f32 %v6259_v56  ;;  %v5842_v18 = vmul.f32 %v11386_v58, %v5825_v10 }
 0x896   : > { %v5740_v34 = vadd.f32 %v5739_v3, %v11364_v30  ;;  %v6020_v32 = vadd.f32 %v6004_v0, %v5924_v26  ;;  %v5691_v9 = vadd.f32 %v5690_v14, %v11370_v2  ;;  %v5877_v26 = vmul.f32 %v11395_v50, %v5826_v55 }
 0x897   : > { %6322 = vst [vmem:[%s8629_s23 + $0x10] sm:$0xff] %v6306_v43  ;;  %v5859_v21 = vsub.f32 %v11389_v54, %v5842_v18  ;;  %v5804_v14 = vmul.f32 %v5788_v6, %v5788_v6 }
 0x898   : > { %v5958_v15 = vsub.f32 0.0, %v5740_v34  ;;  %v6036_v53 = vmul.f32 -0.5, %v6020_v32  ;;  %v5910_v31 = vsub.f32 %v5770_v13, %v5691_v9  ;;  %v5926_v40 = vadd.f32 1.837877, %v5740_v34 }
 0x899   : > { %v5827_v18 = vmul.f32 0.5, %v5804_v14 }
 0x89a   : > { %v7758_v27 = vpop.eup %7757  ;;  %v5980_v5 = vmul.f32 1.442695, %v5958_v15  ;;  %v6052_v17 = vadd.f32 -0.2876821, %v6036_v53  ;;  %v5942_v63 = vmul.f32 %v5910_v31, %v5910_v31  ;;  %v5894_v15 = vsub.f32 %v11403_v35, %v5877_v26  ;;  %v5772_v53 = vld [vmem:[%s8607_s2 + $0x40] sm:$0xff] }
 0x89b   : > { %v6005_v44 = vmul.f32 %v7758_v27, %v5941_v12  ;;  %v7760_v48 = vpop.eup %7759  ;;  %v5789_v16 = vsub.f32 %v5772_v53, %v11366_v11 }
 0x89c   : > { %7761 = vpow2.f32 %v5980_v5  ;;  %v6279_v38 = vmul.f32 0.6931472, %v7760_v48  ;;  %v6068_v4 = vmax.f32 %v5858_v24, %v6052_v17 }
 0x89d   : > { %v6021_v36 = vadd.f32 %v6005_v44, %v5925_v20  ;;  %v5741_v33 = vpop.f32.mrf.mxu1  ;;  %v5692_v47 = vpop.f32.mrf.mxu0 }
 0x89e   : > { %v5742_v19 = vadd.f32 %v5741_v33, %v11364_v30  ;;  %v6307_v41 = vadd.f32 %v6279_v38, %v11525_v59  ;;  %v11553_v45 = vmax.f32 %v6068_v4, %v5892_v29  ;;  %v5843_v59 = vmul.f32 %v11386_v58, %v5826_v55 }
 0x89f   : > { %v6037_v37 = vmul.f32 -0.5, %v6021_v36  ;;  %v5693_v3 = vadd.f32 %v5692_v47, %v11370_v2  ;;  %v5805_v55 = vmul.f32 %v5789_v16, %v5789_v16 }
 0x8a0   : > { %6323 = vst [vmem:[%s8629_s23 + $0x18] sm:$0xff] %v6307_v41  ;;  %v6100_v49 = vsub.f32 %v5858_v24, %v11553_v45  ;;  %v6148_v22 = vsub.f32 %v6052_v17, %v11553_v45  ;;  %v6212_v57 = vsub.f32 %v5892_v29, %v11553_v45  ;;  %v5959_v42 = vsub.f32 0.0, %v5742_v19 }
 0x8a1   : > { %v6053_v46 = vadd.f32 -0.2876821, %v6037_v37  ;;  %v5860_v13 = vsub.f32 %v11389_v54, %v5843_v59  ;;  %v5911_v44 = vsub.f32 %v5771_v25, %v5693_v3  ;;  %v5927_v38 = vadd.f32 1.837877, %v5742_v19 }
 0x8a2   : > { %v7762_v51 = vpop.eup %7761  ;;  %v6120_v1 = vmul.f32 1.442695, %v6100_v49  ;;  %v6168_v23 = vmul.f32 1.442695, %v6148_v22  ;;  %v6232_v39 = vmul.f32 1.442695, %v6212_v57  ;;  %v5878_v57 = vmul.f32 %v11395_v50, %v5827_v18 }
 0x8a3   : > { %v6069_v28 = vmax.f32 %v5859_v21, %v6053_v46  ;;  %v6006_v56 = vmul.f32 %v7762_v51, %v5942_v63  ;;  %v5982_v61 = vmul.f32 1.442695, %v5959_v42  ;;  %v5943_v37 = vmul.f32 %v5911_v44, %v5911_v44 }
 0x8a4   : > { %7763 = vpow2.f32 %v6120_v1  ;;  %v5828_v1 = vmul.f32 0.5, %v5805_v55 }
 0x8a5   : > { %v11563_v60 = vmax.f32 %v6069_v28, %v5893_v7  ;;  %v6022_v0 = vadd.f32 %v6006_v56, %v5926_v40  ;;  %7765 = vpow2.f32 %v6168_v23  ;;  %v5773_v23 = vld [vmem:[%s8607_s2 + $0x48] sm:$0xff] }
 0x8a6   : > { %7767 = vpow2.f32 %v6232_v39  ;;  %v5790_v3 = vsub.f32 %v5773_v23, %v11366_v11  ;;  %v5879_v16 = vmul.f32 %v11395_v50, %v5828_v1 }
 0x8a7   : > { %v6101_v43 = vsub.f32 %v5859_v21, %v11563_v60  ;;  %v6149_v34 = vsub.f32 %v6053_v46, %v11563_v60  ;;  %v6213_v10 = vsub.f32 %v5893_v7, %v11563_v60  ;;  %v6038_v8 = vmul.f32 -0.5, %v6022_v0 }
 0x8a8   : > { %7769 = vpow2.f32 %v5982_v61  ;;  %v5844_v21 = vmul.f32 %v11386_v58, %v5827_v18 }
 0x8a9   : > { %v5744_v32 = vpop.f32.mrf.mxu1  ;;  %v6122_v62 = vmul.f32 1.442695, %v6101_v43  ;;  %v6170_v12 = vmul.f32 1.442695, %v6149_v34  ;;  %v6234_v9 = vmul.f32 1.442695, %v6213_v10  ;;  %v5695_v24 = vpop.f32.mrf.mxu0  ;;  %v5895_v43 = vsub.f32 %v11403_v35, %v5878_v57 }
 0x8aa   : > { %v6054_v27 = vadd.f32 -0.2876821, %v6038_v8  ;;  %v5745_v20 = vadd.f32 %v5744_v32, %v11364_v30  ;;  %v7764_v5 = vpop.eup %7763  ;;  %v5696_v48 = vadd.f32 %v5695_v24, %v11370_v2  ;;  %v5861_v0 = vsub.f32 %v11389_v54, %v5844_v21  ;;  %v5774_v57 = vld [vmem:[%s8607_s2 + $0x50] sm:$0xff] }
 0x8ab   : > { %7771 = vpow2.f32 %v6122_v62  ;;  %v7766_v17 = vpop.eup %7765  ;;  %v5845_v8 = vmul.f32 %v11386_v58, %v5828_v1 }
 0x8ac   : > { %7773 = vpow2.f32 %v6170_v12  ;;  %v6070_v29 = vmax.f32 %v5860_v13, %v6054_v27  ;;  %v5960_v52 = vsub.f32 0.0, %v5745_v20  ;;  %v7768_v36 = vpop.eup %7767  ;;  %v6196_v31 = vadd.f32 %v7766_v17, %v7764_v5 }
 0x8ad   : > { %7775 = vpow2.f32 %v6234_v9  ;;  %v5912_v19 = vsub.f32 %v5772_v53, %v5696_v48  ;;  %v5928_v12 = vadd.f32 1.837877, %v5745_v20  ;;  %v5862_v20 = vsub.f32 %v11389_v54, %v5845_v8 }
 0x8ae   : > { %v11576_v33 = vmax.f32 %v6070_v29, %v5894_v15  ;;  %v7770_v4 = vpop.eup %7769  ;;  %v5984_v41 = vmul.f32 1.442695, %v5960_v52  ;;  %v6260_v7 = vadd.f32 %v7768_v36, %v6196_v31 }
 0x8af   : > { %v6007_v47 = vmul.f32 %v7770_v4, %v5943_v37  ;;  %v5944_v34 = vmul.f32 %v5912_v19, %v5912_v19 }
 0x8b0   : > { %v6102_v46 = vsub.f32 %v5860_v13, %v11576_v33  ;;  %v6150_v63 = vsub.f32 %v6054_v27, %v11576_v33  ;;  %v6214_v25 = vsub.f32 %v5894_v15, %v11576_v33  ;;  %7777 = vpow2.f32 %v5984_v41 }
 0x8b1   : > { %v5746_v49 = vpop.f32.mrf.mxu1  ;;  %v7772_v22 = vpop.eup %7771  ;;  %7779 = vlog2.f32 %v6260_v7  ;;  %v6023_v42 = vadd.f32 %v6007_v47, %v5927_v38  ;;  %v5806_v27 = vmul.f32 %v5790_v3, %v5790_v3 }
 0x8b2   : > { %v7774_v6 = vpop.eup %7773  ;;  %v6124_v51 = vmul.f32 1.442695, %v6102_v46  ;;  %v6172_v28 = vmul.f32 1.442695, %v6150_v63  ;;  %v6236_v59 = vmul.f32 1.442695, %v6214_v25  ;;  %v5697_v56 = vpop.f32.mrf.mxu0  ;;  %v5747_v61 = vadd.f32 %v5746_v49, %v11364_v30 }
 0x8b3   : > { %v6197_v40 = vadd.f32 %v7774_v6, %v7772_v22  ;;  %v7776_v39 = vpop.eup %7775  ;;  %v6039_v14 = vmul.f32 -0.5, %v6023_v42  ;;  %v5698_v15 = vadd.f32 %v5697_v56, %v11370_v2  ;;  %v5829_v4 = vmul.f32 0.5, %v5806_v27 }
 0x8b4   : > { %7781 = vpow2.f32 %v6124_v51  ;;  %v5961_v32 = vsub.f32 0.0, %v5747_v61  ;;  %v5896_v25 = vsub.f32 %v11403_v35, %v5879_v16  ;;  %v5791_v51 = vsub.f32 %v5774_v57, %v11366_v11 }
 0x8b5   : > { %v6261_v26 = vadd.f32 %v7776_v39, %v6197_v40  ;;  %7783 = vpow2.f32 %v6172_v28  ;;  %v6055_v13 = vadd.f32 -0.2876821, %v6039_v14  ;;  %v5913_v21 = vsub.f32 %v5773_v23, %v5698_v15 }
 0x8b6   : > { %7785 = vpow2.f32 %v6236_v59  ;;  %v7778_v10 = vpop.eup %7777  ;;  %v5986_v18 = vmul.f32 1.442695, %v5961_v32  ;;  %v5846_v1 = vmul.f32 %v11386_v58, %v5829_v4  ;;  %v5929_v23 = vadd.f32 1.837877, %v5747_v61 }
 0x8b7   : > { %7787 = vlog2.f32 %v6261_v26  ;;  %v7780_v62 = vpop.eup %7779  ;;  %v6008_v9 = vmul.f32 %v7778_v10, %v5944_v34  ;;  %v6071_v53 = vmax.f32 %v5861_v0, %v6055_v13  ;;  %v5945_v40 = vmul.f32 %v5913_v21, %v5913_v21 }
 0x8b8   : > { %v6281_v24 = vmul.f32 0.6931472, %v7780_v62  ;;  %7789 = vpow2.f32 %v5986_v18  ;;  %v5775_v18 = vld [vmem:[%s8607_s2 + $0x58] sm:$0xff] }
 0x8b9   : > { %v6024_v5 = vadd.f32 %v6008_v9, %v5928_v12  ;;  %v5749_v29 = vpop.f32.mrf.mxu1  ;;  %v11592_v52 = vmax.f32 %v6071_v53, %v5895_v43  ;;  %v5863_v12 = vsub.f32 %v11389_v54, %v5846_v1 }
 0x8ba   : > { %v7782_v44 = vpop.eup %7781  ;;  %v6308_v48 = vadd.f32 %v6281_v24, %v11553_v45  ;;  %v11600_v45 = vadd.f32 %v5749_v29, %v11364_v30  ;;  %v5700_v22 = vpop.f32.mrf.mxu0 }
 0x8bb   : > { %v7784_v17 = vpop.eup %7783  ;;  %v6040_v38 = vmul.f32 -0.5, %v6024_v5  ;;  %v6103_v55 = vsub.f32 %v5861_v0, %v11592_v52  ;;  %v6151_v41 = vsub.f32 %v6055_v13, %v11592_v52  ;;  %v6215_v7 = vsub.f32 %v5895_v43, %v11592_v52 }
 0x8bc   : > { %v7786_v36 = vpop.eup %7785  ;;  %v6198_v31 = vadd.f32 %v7784_v17, %v7782_v44  ;;  %6324 = vst [vmem:[%s8629_s23 + $0x20] sm:$0xff] %v6308_v48  ;;  %v5962_v39 = vsub.f32 0.0, %v11600_v45  ;;  %v5701_v26 = vadd.f32 %v5700_v22, %v11370_v2  ;;  %v5807_v0 = vmul.f32 %v5791_v51, %v5791_v51 }
 0x8bd   : > { %v7788_v37 = vpop.eup %7787  ;;  %v6056_v49 = vadd.f32 -0.2876821, %v6040_v38  ;;  %v6126_v47 = vmul.f32 1.442695, %v6103_v55  ;;  %v6174_v19 = vmul.f32 1.442695, %v6151_v41  ;;  %v5792_v48 = vsub.f32 %v5775_v18, %v11366_v11 }
 0x8be   : > { %v6283_v46 = vmul.f32 0.6931472, %v7788_v37  ;;  %v6262_v63 = vadd.f32 %v7786_v36, %v6198_v31  ;;  %v6238_v6 = vmul.f32 1.442695, %v6215_v7  ;;  %v7790_v42 = vpop.eup %7789  ;;  %v5988_v14 = vmul.f32 1.442695, %v5962_v39 }
 0x8bf   : > { %v6072_v59 = vmax.f32 %v5862_v20, %v6056_v49  ;;  %v6009_v3 = vmul.f32 %v7790_v42, %v5945_v40  ;;  %v5914_v9 = vsub.f32 %v5774_v57, %v5701_v26  ;;  %v5830_v29 = vmul.f32 0.5, %v5807_v0 }
 0x8c0   : > { %v6309_v28 = vadd.f32 %v6283_v46, %v11563_v60  ;;  %7791 = vlog2.f32 %v6262_v63  ;;  %v5880_v60 = vmul.f32 %v11395_v50, %v5829_v4  ;;  %v5930_v63 = vadd.f32 1.837877, %v11600_v45 }
 0x8c1   : > { %7793 = vpow2.f32 %v6126_v47  ;;  %v11609_v56 = vmax.f32 %v6072_v59, %v5896_v25  ;;  %v6025_v10 = vadd.f32 %v6009_v3, %v5929_v23  ;;  %v5751_v13 = vpop.f32.mrf.mxu1  ;;  %v5946_v4 = vmul.f32 %v5914_v9, %v5914_v9 }
 0x8c2   : > { %6325 = vst [vmem:[%s8629_s23 + $0x28] sm:$0xff] %v6309_v28  ;;  %7795 = vpow2.f32 %v6174_v19  ;;  %v5752_v44 = vadd.f32 %v5751_v13, %v11364_v30  ;;  %v5897_v5 = vsub.f32 %v11403_v35, %v5880_v60  ;;  %v5702_v17 = vpop.f32.mrf.mxu0  ;;  %v5847_v46 = vmul.f32 %v11386_v58, %v5830_v29 }
 0x8c3   : > { %7797 = vpow2.f32 %v6238_v6  ;;  %v6104_v43 = vsub.f32 %v5862_v20, %v11609_v56  ;;  %v6152_v34 = vsub.f32 %v6056_v49, %v11609_v56  ;;  %v6216_v61 = vsub.f32 %v5896_v25, %v11609_v56 }
 0x8c4   : > { %7799 = vpow2.f32 %v5988_v14  ;;  %v6041_v53 = vmul.f32 -0.5, %v6025_v10  ;;  %v5963_v21 = vsub.f32 0.0, %v5752_v44  ;;  %v5703_v7 = vadd.f32 %v5702_v17, %v11370_v2 }
 0x8c5   : > { %v6128_v32 = vmul.f32 1.442695, %v6104_v43  ;;  %v6176_v62 = vmul.f32 1.442695, %v6152_v34  ;;  %v6240_v24 = vmul.f32 1.442695, %v6216_v61  ;;  %v5808_v22 = vmul.f32 %v5792_v48, %v5792_v48 }
 0x8c6   : > { %v7792_v8 = vpop.eup %7791  ;;  %v6057_v38 = vadd.f32 -0.2876821, %v6041_v53  ;;  %v5990_v49 = vmul.f32 1.442695, %v5963_v21  ;;  %v5881_v47 = vmul.f32 %v11395_v50, %v5830_v29  ;;  %v5915_v40 = vsub.f32 %v5775_v18, %v5703_v7 }
 0x8c7   : > { %v7794_v15 = vpop.eup %7793  ;;  %v6285_v27 = vmul.f32 0.6931472, %v7792_v8  ;;  %7801 = vpow2.f32 %v6128_v32  ;;  %v5864_v42 = vsub.f32 %v11389_v54, %v5847_v46  ;;  %v5831_v26 = vmul.f32 0.5, %v5808_v22 }
 0x8c8   : > { %v7796_v16 = vpop.eup %7795  ;;  %7803 = vpow2.f32 %v6176_v62  ;;  %v6073_v41 = vmax.f32 %v5863_v12, %v6057_v38  ;;  %v5898_v0 = vsub.f32 %v11403_v35, %v5881_v47  ;;  %v5947_v61 = vmul.f32 %v5915_v40, %v5915_v40 }
 0x8c9   : > { %v7798_v20 = vpop.eup %7797  ;;  %v6310_v36 = vadd.f32 %v6285_v27, %v11576_v33  ;;  %v6199_v31 = vadd.f32 %v7796_v16, %v7794_v15  ;;  %7805 = vpow2.f32 %v6240_v24  ;;  %v5848_v32 = vmul.f32 %v11386_v58, %v5831_v26 }
 0x8ca   : > { %v7800_v37 = vpop.eup %7799  ;;  %v11626_v33 = vmax.f32 %v6073_v41, %v5897_v5  ;;  %v5931_v62 = vadd.f32 1.837877, %v5752_v44  ;;  %v5882_v27 = vmul.f32 %v11395_v50, %v5831_v26 }
 0x8cb   : > { %6326 = vst [vmem:[%s8629_s23 + $0x30] sm:$0xff] %v6310_v36  ;;  %v6263_v55 = vadd.f32 %v7798_v20, %v6199_v31  ;;  %v6010_v25 = vmul.f32 %v7800_v37, %v5946_v4  ;;  %v5865_v29 = vsub.f32 %v11389_v54, %v5848_v32 }
 0x8cc   : > { %v6105_v51 = vsub.f32 %v5863_v12, %v11626_v33  ;;  %v6153_v28 = vsub.f32 %v6057_v38, %v11626_v33  ;;  %v6217_v59 = vsub.f32 %v5897_v5, %v11626_v33  ;;  %v5899_v38 = vsub.f32 %v11403_v35, %v5882_v27 }
 0x8cd   : > { %7807 = vlog2.f32 %v6263_v55  ;;  %v7802_v57 = vpop.eup %7801  ;;  %v6026_v19 = vadd.f32 %v6010_v25, %v5930_v63 }
 0x8ce   : > { %7809 = vpow2.f32 %v5990_v49  ;;  %v7804_v6 = vpop.eup %7803  ;;  %v6130_v39 = vmul.f32 1.442695, %v6105_v51  ;;  %v6178_v3 = vmul.f32 1.442695, %v6153_v28  ;;  %v6242_v34 = vmul.f32 1.442695, %v6217_v59 }
 0x8cf   : > { %v6200_v45 = vadd.f32 %v7804_v6, %v7802_v57  ;;  %v6042_v1 = vmul.f32 -0.5, %v6026_v19  ;;  %v7806_v23 = vpop.eup %7805 }
 0x8d0   : > { %7811 = vpow2.f32 %v6130_v39 }
 0x8d1   : > { %v6264_v60 = vadd.f32 %v7806_v23, %v6200_v45  ;;  %v6058_v14 = vadd.f32 -0.2876821, %v6042_v1  ;;  %v5776_v1 = vld [vmem:[%s8607_s2 + $0x60] sm:$0xff] }
 0x8d2   : > { %v5793_v39 = vsub.f32 %v5776_v1, %v11366_v11 }
 0x8d3   : > { %v7808_v43 = vpop.eup %7807  ;;  %7813 = vlog2.f32 %v6264_v60  ;;  %v6074_v8 = vmax.f32 %v5864_v42, %v6058_v14 }
 0x8d4   : > { %v7810_v10 = vpop.eup %7809  ;;  %v6287_v13 = vmul.f32 0.6931472, %v7808_v43  ;;  %7815 = vpow2.f32 %v6178_v3 }
 0x8d5   : > { %v6011_v12 = vmul.f32 %v7810_v10, %v5947_v61  ;;  %v11636_v15 = vmax.f32 %v6074_v8, %v5898_v0  ;;  %7817 = vpow2.f32 %v6242_v34  ;;  %v5809_v34 = vmul.f32 %v5793_v39, %v5793_v39 }
 0x8d6   : > { %v6311_v9 = vadd.f32 %v6287_v13, %v11592_v52  ;;  %v7812_v5 = vpop.eup %7811 }
 0x8d7   : > { %v6027_v24 = vadd.f32 %v6011_v12, %v5931_v62  ;;  %v6106_v53 = vsub.f32 %v5864_v42, %v11636_v15  ;;  %v6154_v18 = vsub.f32 %v6058_v14, %v11636_v15  ;;  %v6218_v16 = vsub.f32 %v5898_v0, %v11636_v15 }
 0x8d8   : > { %6327 = vst [vmem:[%s8629_s23 + $0x38] sm:$0xff] %v6311_v9  ;;  %v5832_v27 = vmul.f32 0.5, %v5809_v34 }
 0x8d9   : > { %v6043_v44 = vmul.f32 -0.5, %v6027_v24  ;;  %v7814_v17 = vpop.eup %7813  ;;  %v6132_v52 = vmul.f32 1.442695, %v6106_v53  ;;  %v6180_v48 = vmul.f32 1.442695, %v6154_v18  ;;  %v5777_v24 = vld [vmem:[%s8607_s2 + $0x68] sm:$0xff] }
 0x8da   : > { %v7816_v20 = vpop.eup %7815  ;;  %v6289_v36 = vmul.f32 0.6931472, %v7814_v17  ;;  %v6244_v31 = vmul.f32 1.442695, %v6218_v16  ;;  %v5794_v18 = vsub.f32 %v5777_v24, %v11366_v11  ;;  %v5849_v17 = vmul.f32 %v11386_v58, %v5832_v27 }
 0x8db   : > { %v6059_v4 = vadd.f32 -0.2876821, %v6043_v44  ;;  %v6201_v21 = vadd.f32 %v7816_v20, %v7812_v5  ;;  %7819 = vpow2.f32 %v6132_v52  ;;  %v7818_v37 = vpop.eup %7817 }
 0x8dc   : > { %v6312_v55 = vadd.f32 %v6289_v36, %v11609_v56  ;;  %7821 = vpow2.f32 %v6180_v48  ;;  %v5810_v36 = vmul.f32 %v5794_v18, %v5794_v18 }
 0x8dd   : > { %v6075_v41 = vmax.f32 %v5865_v29, %v6059_v4  ;;  %v6265_v7 = vadd.f32 %v7818_v37, %v6201_v21  ;;  %7823 = vpow2.f32 %v6244_v31  ;;  %v5883_v31 = vmul.f32 %v11395_v50, %v5832_v27 }
 0x8de   : > { %6328 = vst [vmem:[%s8629_s23 + $0x40] sm:$0xff] %v6312_v55 }
 0x8df   : > { %v11647_v46 = vmax.f32 %v6075_v41, %v5899_v38  ;;  %7825 = vlog2.f32 %v6265_v7 }
 0x8e1   : > { %v6107_v63 = vsub.f32 %v5865_v29, %v11647_v46  ;;  %v6155_v25 = vsub.f32 %v6059_v4, %v11647_v46  ;;  %v6219_v49 = vsub.f32 %v5899_v38, %v11647_v46  ;;  %v7820_v22 = vpop.eup %7819 }
 0x8e2   : > { %v7822_v57 = vpop.eup %7821  ;;  %v5705_v40 = vpop.f32.mrf.mxu0 }
 0x8e3   : > { %v6134_v47 = vmul.f32 1.442695, %v6107_v63  ;;  %v6182_v19 = vmul.f32 1.442695, %v6155_v25  ;;  %v6246_v56 = vmul.f32 1.442695, %v6219_v49  ;;  %v6202_v6 = vadd.f32 %v7822_v57, %v7820_v22  ;;  %v7824_v51 = vpop.eup %7823  ;;  %v5754_v45 = vpop.f32.mrf.mxu1 }
 0x8e4   : > { %v5755_v23 = vadd.f32 %v5754_v45, %v11364_v30  ;;  %v5706_v60 = vadd.f32 %v5705_v40, %v11370_v2  ;;  %v5866_v25 = vsub.f32 %v11389_v54, %v5849_v17  ;;  %v5833_v22 = vmul.f32 0.5, %v5810_v36 }
 0x8e5   : > { %7827 = vpow2.f32 %v6134_v47  ;;  %v7826_v28 = vpop.eup %7825  ;;  %v6266_v59 = vadd.f32 %v7824_v51, %v6202_v6 }
 0x8e6   : > { %7829 = vpow2.f32 %v6182_v19  ;;  %v6291_v42 = vmul.f32 0.6931472, %v7826_v28  ;;  %v5964_v26 = vsub.f32 0.0, %v5755_v23  ;;  %v5916_v8 = vsub.f32 %v5776_v1, %v5706_v60 }
 0x8e7   : > { %7831 = vpow2.f32 %v6246_v56  ;;  %v5932_v52 = vadd.f32 1.837877, %v5755_v23  ;;  %v5900_v19 = vsub.f32 %v11403_v35, %v5883_v31 }
 0x8e8   : > { %7833 = vlog2.f32 %v6266_v59  ;;  %v6313_v3 = vadd.f32 %v6291_v42, %v11626_v33  ;;  %v5992_v14 = vmul.f32 1.442695, %v5964_v26  ;;  %v5948_v16 = vmul.f32 %v5916_v8, %v5916_v8 }
 0x8e9   : > { %v5850_v42 = vmul.f32 %v11386_v58, %v5833_v22  ;;  %v5884_v26 = vmul.f32 %v11395_v50, %v5833_v22 }
 0x8ea   : > { %6329 = vst [vmem:[%s8629_s23 + $0x48] sm:$0xff] %v6313_v3  ;;  %7835 = vpow2.f32 %v5992_v14  ;;  %v5707_v32 = vpop.f32.mrf.mxu0 }
 0x8eb   : > { %v7828_v0 = vpop.eup %7827  ;;  %v5756_v62 = vpop.f32.mrf.mxu1  ;;  %v5708_v44 = vadd.f32 %v5707_v32, %v11370_v2 }
 0x8ec   : > { %v7830_v43 = vpop.eup %7829  ;;  %v5757_v33 = vadd.f32 %v5756_v62, %v11364_v30 }
 0x8ed   : > { %v7832_v61 = vpop.eup %7831  ;;  %v6203_v10 = vadd.f32 %v7830_v43, %v7828_v0  ;;  %v5917_v37 = vsub.f32 %v5777_v24, %v5708_v44 }
 0x8ee   : > { %v7834_v13 = vpop.eup %7833  ;;  %v5965_v5 = vsub.f32 0.0, %v5757_v33  ;;  %v5933_v1 = vadd.f32 1.837877, %v5757_v33 }
 0x8ef   : > { %v6293_v12 = vmul.f32 0.6931472, %v7834_v13  ;;  %v6267_v9 = vadd.f32 %v7832_v61, %v6203_v10  ;;  %v5949_v51 = vmul.f32 %v5917_v37, %v5917_v37  ;;  %v5779_v10 = vld [vmem:[%s8607_s2 + $0x78] sm:$0xff]  ;;  %v5867_v13 = vsub.f32 %v11389_v54, %v5850_v42 }
 0x8f0   : > { %v7836_v29 = vpop.eup %7835  ;;  %v5994_v20 = vmul.f32 1.442695, %v5965_v5  ;;  %v5796_v62 = vsub.f32 %v5779_v10, %v11366_v11 }
 0x8f1   : > { %v6314_v53 = vadd.f32 %v6293_v12, %v11636_v15  ;;  %7837 = vlog2.f32 %v6267_v9  ;;  %v6012_v48 = vmul.f32 %v7836_v29, %v5948_v16  ;;  %v5778_v15 = vld [vmem:[%s8607_s2 + $0x70] sm:$0xff] }
 0x8f2   : > { %7839 = vpow2.f32 %v5994_v20  ;;  %v5795_v41 = vsub.f32 %v5778_v15, %v11366_v11  ;;  %v5812_v20 = vmul.f32 %v5796_v62, %v5796_v62 }
 0x8f3   : > { %6330 = vst [vmem:[%s8629_s23 + $0x50] sm:$0xff] %v6314_v53  ;;  %v6028_v38 = vadd.f32 %v6012_v48, %v5932_v52  ;;  %v5759_v4 = vpop.f32.mrf.mxu1  ;;  %v5710_v55 = vpop.f32.mrf.mxu0 }
 0x8f4   : > { %v5760_v7 = vadd.f32 %v5759_v4, %v11364_v30  ;;  %v5711_v6 = vadd.f32 %v5710_v55, %v11370_v2  ;;  %v5811_v28 = vmul.f32 %v5795_v41, %v5795_v41 }
 0x8f5   : > { %v6044_v49 = vmul.f32 -0.5, %v6028_v38 }
 0x8f6   : > { %v5966_v57 = vsub.f32 0.0, %v5760_v7  ;;  %v5834_v0 = vmul.f32 0.5, %v5811_v28  ;;  %v5934_v5 = vadd.f32 1.837877, %v5760_v7  ;;  %v5835_v7 = vmul.f32 0.5, %v5812_v20 }
 0x8f7   : > { %v7838_v21 = vpop.eup %7837  ;;  %v6060_v56 = vadd.f32 -0.2876821, %v6044_v49 }
 0x8f8   : > { %v6295_v63 = vmul.f32 0.6931472, %v7838_v21  ;;  %v5996_v59 = vmul.f32 1.442695, %v5966_v57  ;;  %v7840_v40 = vpop.eup %7839  ;;  %v5851_v18 = vmul.f32 %v11386_v58, %v5834_v0  ;;  %v5885_v11 = vmul.f32 %v11395_v50, %v5834_v0 }
 0x8f9   : > { %v6076_v45 = vmax.f32 %v5866_v25, %v6060_v56  ;;  %v6013_v23 = vmul.f32 %v7840_v40, %v5949_v51  ;;  %v5852_v40 = vmul.f32 %v11386_v58, %v5835_v7 }
 0x8fa   : > { %v6315_v47 = vadd.f32 %v6295_v63, %v11647_v46  ;;  %7841 = vpow2.f32 %v5996_v59  ;;  %v5918_v46 = vsub.f32 %v5778_v15, %v5711_v6  ;;  %v5868_v31 = vsub.f32 %v11389_v54, %v5851_v18 }
 0x8fb   : > { %v11675_v39 = vmax.f32 %v6076_v45, %v5900_v19  ;;  %v5761_v3 = vpop.f32.mrf.mxu1  ;;  %v6029_v60 = vadd.f32 %v6013_v23, %v5933_v1  ;;  %v5712_v32 = vpop.f32.mrf.mxu0  ;;  %v5902_v55 = vsub.f32 %v11403_v35, %v5885_v11 }
 0x8fc   : > { %6331 = vst [vmem:[%s8629_s23 + $0x58] sm:$0xff] %v6315_v47  ;;  %v5762_v14 = vadd.f32 %v5761_v3, %v11364_v30  ;;  %v5950_v27 = vmul.f32 %v5918_v46, %v5918_v46  ;;  %v5901_v30 = vsub.f32 %v11403_v35, %v5884_v26  ;;  %v5713_v44 = vadd.f32 %v5712_v32, %v11370_v2 }
 0x8fd   : > { %v6108_v43 = vsub.f32 %v5866_v25, %v11675_v39  ;;  %v6156_v34 = vsub.f32 %v6060_v56, %v11675_v39  ;;  %v6220_v61 = vsub.f32 %v5900_v19, %v11675_v39  ;;  %v6045_v8 = vmul.f32 -0.5, %v6029_v60 }
 0x8fe   : > { %v5967_v16 = vsub.f32 0.0, %v5762_v14  ;;  %v5919_v15 = vsub.f32 %v5779_v10, %v5713_v44  ;;  %v5935_v45 = vadd.f32 1.837877, %v5762_v14  ;;  %v5886_v46 = vmul.f32 %v11395_v50, %v5835_v7 }
 0x8ff   : > { %v6136_v12 = vmul.f32 1.442695, %v6108_v43  ;;  %v6184_v9 = vmul.f32 1.442695, %v6156_v34  ;;  %v6248_v33 = vmul.f32 1.442695, %v6220_v61  ;;  %v5869_v34 = vsub.f32 %v11389_v54, %v5852_v40 }
 0x900   : > { %v7842_v24 = vpop.eup %7841  ;;  %v6061_v53 = vadd.f32 -0.2876821, %v6045_v8  ;;  %v5998_v52 = vmul.f32 1.442695, %v5967_v16  ;;  %v5951_v56 = vmul.f32 %v5919_v15, %v5919_v15  ;;  %v5903_v14 = vsub.f32 %v11403_v35, %v5886_v46 }
 0x901   : > { %7843 = vpow2.f32 %v6136_v12  ;;  %v6014_v29 = vmul.f32 %v7842_v24, %v5950_v27 }
 0x902   : > { %7845 = vpow2.f32 %v6184_v9  ;;  %v6077_v17 = vmax.f32 %v5867_v13, %v6061_v53 }
 0x903   : > { %7847 = vpow2.f32 %v6248_v33  ;;  %v6030_v48 = vadd.f32 %v6014_v29, %v5934_v5 }
 0x904   : > { %v11689_v36 = vmax.f32 %v6077_v17, %v5901_v30  ;;  %7849 = vpow2.f32 %v5998_v52 }
 0x905   : > { %v6046_v38 = vmul.f32 -0.5, %v6030_v48 }
 0x906   : > { %v6109_v4 = vsub.f32 %v5867_v13, %v11689_v36  ;;  %v6157_v21 = vsub.f32 %v6061_v53, %v11689_v36  ;;  %v6221_v2 = vsub.f32 %v5901_v30, %v11689_v36 }
 0x907   : > { %v7844_v37 = vpop.eup %7843  ;;  %v6062_v41 = vadd.f32 -0.2876821, %v6046_v38 }
 0x908   : > { %v7846_v63 = vpop.eup %7845  ;;  %v6138_v25 = vmul.f32 1.442695, %v6109_v4  ;;  %v6186_v49 = vmul.f32 1.442695, %v6157_v21  ;;  %v6250_v22 = vmul.f32 1.442695, %v6221_v2 }
 0x909   : > { %v7848_v57 = vpop.eup %7847  ;;  %v6204_v47 = vadd.f32 %v7846_v63, %v7844_v37  ;;  %v6078_v19 = vmax.f32 %v5868_v31, %v6062_v41 }
 0x90a   : > { %v7850_v6 = vpop.eup %7849  ;;  %7851 = vpow2.f32 %v6138_v25 }
 0x90b   : > { %v6268_v51 = vadd.f32 %v7848_v57, %v6204_v47  ;;  %7853 = vpow2.f32 %v6186_v49  ;;  %v6094_v28 = vmax.f32 %v6078_v19, %v5902_v55  ;;  %v6015_v59 = vmul.f32 %v7850_v6, %v5951_v56 }
 0x90c   : > { %7855 = vpow2.f32 %v6250_v22 }
 0x90d   : > { %7857 = vlog2.f32 %v6268_v51  ;;  %v6110_v42 = vsub.f32 %v5868_v31, %v6094_v28  ;;  %v6158_v1 = vsub.f32 %v6062_v41, %v6094_v28  ;;  %v6222_v23 = vsub.f32 %v5902_v55, %v6094_v28 }
 0x90e   : > { %v6031_v3 = vadd.f32 %v6015_v59, %v5935_v45 }
 0x90f   : > { %v6140_v26 = vmul.f32 1.442695, %v6110_v42  ;;  %v6188_v60 = vmul.f32 1.442695, %v6158_v1  ;;  %v6252_v43 = vmul.f32 1.442695, %v6222_v23 }
 0x910   : > { %v7852_v0 = vpop.eup %7851  ;;  %v6047_v61 = vmul.f32 -0.5, %v6031_v3 }
 0x911   : > { %v7854_v10 = vpop.eup %7853  ;;  %7859 = vpow2.f32 %v6140_v26 }
 0x912   : > { %v7856_v13 = vpop.eup %7855  ;;  %v6205_v58 = vadd.f32 %v7854_v10, %v7852_v0  ;;  %7861 = vpow2.f32 %v6188_v60  ;;  %v6063_v8 = vadd.f32 -0.2876821, %v6047_v61 }
 0x913   : > { %v7858_v32 = vpop.eup %7857  ;;  %7863 = vpow2.f32 %v6252_v43 }
 0x914   : > { %v6297_v62 = vmul.f32 0.6931472, %v7858_v32  ;;  %v6269_v50 = vadd.f32 %v7856_v13, %v6205_v58  ;;  %v6079_v12 = vmax.f32 %v5869_v34, %v6063_v8 }
 0x916   : > { %v6316_v9 = vadd.f32 %v6297_v62, %v11675_v39  ;;  %7865 = vlog2.f32 %v6269_v50  ;;  %v6095_v33 = vmax.f32 %v6079_v12, %v5903_v14 }
 0x917   : > { %v7860_v54 = vpop.eup %7859 }
 0x918   : > { %v7862_v27 = vpop.eup %7861  ;;  %6332 = vst [vmem:[%s8629_s23 + $0x60] sm:$0xff] %v6316_v9  ;;  %v6111_v24 = vsub.f32 %v5869_v34, %v6095_v33  ;;  %v6159_v30 = vsub.f32 %v6063_v8, %v6095_v33  ;;  %v6223_v53 = vsub.f32 %v5903_v14, %v6095_v33 }
 0x919   : > { %v6206_v18 = vadd.f32 %v7862_v27, %v7860_v54  ;;  %v7864_v16 = vpop.eup %7863 }
 0x91a   : > { %v6142_v35 = vmul.f32 1.442695, %v6111_v24  ;;  %v6190_v5 = vmul.f32 1.442695, %v6159_v30  ;;  %v6254_v17 = vmul.f32 1.442695, %v6223_v53 }
 0x91b   : > { %v6270_v29 = vadd.f32 %v7864_v16, %v6206_v18 }
 0x91c   : > { %v7866_v44 = vpop.eup %7865  ;;  %7867 = vpow2.f32 %v6142_v35 }
 0x91d   : > { %v6299_v52 = vmul.f32 0.6931472, %v7866_v44  ;;  %7869 = vlog2.f32 %v6270_v29 }
 0x91e   : > { %7871 = vpow2.f32 %v6190_v5 }
 0x91f   : > { %v6317_v39 = vadd.f32 %v6299_v52, %v11689_v36  ;;  %7873 = vpow2.f32 %v6254_v17 }
 0x921   : > { %6333 = vst [vmem:[%s8629_s23 + $0x68] sm:$0xff] %v6317_v39 }
 0x922   : > { %v7868_v11 = vpop.eup %7867 }
 0x923   : > { %v7870_v48 = vpop.eup %7869 }
 0x924   : > { %v7872_v20 = vpop.eup %7871  ;;  %v6301_v31 = vmul.f32 0.6931472, %v7870_v48 }
 0x925   : > { %v6207_v38 = vadd.f32 %v7872_v20, %v7868_v11  ;;  %v7874_v15 = vpop.eup %7873 }
 0x926   : > { %v6318_v4 = vadd.f32 %v6301_v31, %v6094_v28 }
 0x927   : > { %v6271_v21 = vadd.f32 %v7874_v15, %v6207_v38 }
 0x928   : > { %6334 = vst [vmem:[%s8629_s23 + $0x70] sm:$0xff] %v6318_v4 }
 0x929   : > { %7875 = vlog2.f32 %v6271_v21 }
 0x92f   : > { %v7876_v2 = vpop.eup %7875 }
 0x930   : > { %v6303_v37 = vmul.f32 0.6931472, %v7876_v2 }
 0x932   : > { %v6319_v55 = vadd.f32 %v6303_v37, %v6095_v33 }
 0x934   : > { %6335 = vst [vmem:[%s8629_s23 + $0x78] sm:$0xff] %v6319_v55 }
 0x935 PF: > { %s11884_s9 = sld [smem:[#allocation28_spill]]  ;;  %s6349_s28 = sshll.u32 %s8629_s23, 4  ;;  %s6350_s28 = int_to_ptr.vmem [resolvable:$true] %s6349_s28 }
 0x936   : > { %s11885_s2 = sld [smem:[#allocation45_spill]]  ;;  %s6337_s11 = scalar_lea.sflag [#allocation6], %s498_s8 }
 0x93b   : > { %s6968_s0 = sshll.u32 %s11884_s9, 7 }
 0x93c   : > { %s6348_s4 = scalar_lea.hbm %s11885_s2, %s6968_s0  ;;  %s8175_s10 = scalar_lea.hbm %s11885_s2, 256 }
 0x93d   : > { %s6351_s30 = sshll.u32 %s6348_s4, 4  ;;  %s6352_s30 = int_to_ptr.hbm [resolvable:$true] %s6351_s30 }
 0x93e   : > { %s8169_s3 = sshra.s32 %s6352_s30, 4  ;;  %s8170_s3 = int_to_ptr.hbm [resolvable:$true] %s8169_s3 }
 0x93f   : > { %s8171_s14 = scalar_lea.hbm %s8170_s3, 128  ;;  %p8176_p5 = scmp.lt.s32.totalorder %s8170_s3, %s11885_s2 }
 0x940   : > { %p8172_p12 = scmp.ne.s32.totalorder %s8170_s3, %s8171_s14  ;;  %p8177_p6 = scmp.lt.s32.totalorder %s8175_s10, %s8171_s14 }
 0x942   : > { %p8173_p13 = pnand %p8172_p12, %p8573_p2  ;;  %p8178_p7 = por %p8177_p6, %p8176_p5 }
 0x944   : > { %p8174_p4 = pneg %p8173_p13 }
 0x946   : > { %p8179_p9 = pnand %p8178_p7, %p8174_p4 }
 0x948   : > { %8182 = shalt.err (!%p8179_p9)
}
 0x949   : > { %s8314_s8 = smov 128   ;;  %s8315_s23 = smov 8  }
 0x94a   : > { %7042 = dma.vmem_to_hbm [thread:$0]  (%p8573_p2), %s6350_s28, 2048, %s6352_s30, %s6337_s11, %s8314_s8, %s8314_s8, %s8315_s23  }
 0x94b PF: > { %p7092_p10 = scmp.ge.s32.totalorder %s8297_s27, 2  ;;  %s6366_s1 = sand.u32 1, %s8257_s17  }
 0x94c   : > { %s6367_s9 = scalar_lea.sflag [#allocation6], %s6366_s1 }
 0x94d   : > { %p7074_p11 = pnand %p7092_p10, %p8577_p0 }
 0x94f   : > { %p7075_p8 = pneg %p7074_p11 }
 0x951   : > { %8252 = dma.done.wait (%p7075_p8), %s6367_s9, 2048  }
 0x952   : > { %8254 = vsyncadd (%p7075_p8), %s6367_s9, 4294965248  ;;  %s33_s27 = sadd.s32 1, %s8297_s27   ;;  %s11886_s5 = sld [smem:[#allocation30_spill]] }
 0x953   : > { %p30_p3 = scmp.ge.s32.totalorder %s33_s27, 8   ;;  %s11887_s0 = sld [smem:[#allocation31_spill]] }
 0x954   : > { %s11888_s17 = smov %s8261_s18  ;;  %s11889_s18 = smov %s8265_s19 }
 0x955   : > { %s11890_s19 = smov %s8554_s7  ;;  %s11891_s20 = smov %s8273_s21 }
 0x956   : > { %s11892_s21 = smov %s8277_s22  ;;  %s11893_s22 = smov %s8538_s13 }
 0x957   : > { %s11894_s23 = smov %s8289_s25  ;;  %s11895_s24 = smov %s8293_s26 }
 0x958   : > { %s11896_s25 = smov %s11886_s5  ;;  %32 = sbr.rel (!%p30_p3) target bundleno = 27 (0x1b), region = 159 }
 0x959   : > { %s11897_s26 = smov %s11887_s0 }
 0x95d   :  { %6373 = vsyncpa [#allocation5], 1 }
 0x95e   :  { %6375 = vsyncpa [#allocation5 + $0x1], 1 }
 0x95f   :  { %6376 = vsyncpa [#allocation8], 1 }
 0x960   :  { %6378 = vsyncpa [#allocation8 + $0x1], 1 }
 0x961   :  { %6379 = vsyncpa [#allocation11], 1 }
 0x962   :  { %6380 = vsyncpa [#allocation14], 1 }
 0x963   :  { %6381 = vsyncpa [#allocation17], 1 }
 0x964   :  { %6382 = vsyncpa [#allocation6], 1 }
 0x965   :  { %6384 = vsyncpa [#allocation6 + $0x1], 1 }

</bundles_post_ra>
